<compile_context>
chip_gen: v7x
topology: tpu7x:2x2x1
jax: 0.10.0
libtpu: 0.0.40
codegen_flags: <defaults>
</compile_context>

<pallas_src>
import math

import jax
import jax.numpy as jnp
from jax.experimental import pallas as pl
from jax.experimental.pallas import tpu as pltpu

# ----------------------------- config (from T5Config in __init__) -------------
D_MODEL = 256
D_KV = 64                 # T5Config default d_kv
N_HEADS = 4
INNER = N_HEADS * D_KV    # 256
D_FF = 1024
N_LAYERS = 4
VOCAB = 512               # synthetic tokenizer.vocab_size
NUM_BUCKETS = 32          # T5 relative_attention_num_buckets default
MAX_DISTANCE = 128
EPS = 1e-6
NEG_INF = -1e9
PAD_ID = 0                # pad_token_id == decoder_start_token_id
WDT = jnp.bfloat16        # MXU operand dtype (accumulate in f32)

_VMEM_LIMIT = 32 * 1024 * 1024  # fits v5e/v6e/v7x scoped-VMEM budgets


# ----------------------------- in-kernel helpers -------------------------------
def _rms(x, w):
    """T5LayerNorm: RMS norm (no mean subtraction, no bias). x:(M,D) f32, w:(1,D)."""
    var = jnp.mean(x * x, axis=-1, keepdims=True)
    return x * jax.lax.rsqrt(var + EPS) * w


def _softmax_ctx(q, k, v, bias):
    """One head, one batch. q:(Lq,dk) k,v:(Lk,dk) f32; bias broadcastable to (Lq,Lk).
    T5 attention has no 1/sqrt(dk) scaling; bias carries rel-pos / mask.
    bf16 MXU operands, f32 accumulation, exact softmax reciprocal."""
    s = jax.lax.dot_general(q.astype(WDT), k.astype(WDT), (((1,), (1,)), ((), ())),
                            preferred_element_type=jnp.float32) + bias
    m = jnp.max(s, axis=-1, keepdims=True)
    p = jnp.exp(s - m)
    p = p * pl.reciprocal(jnp.sum(p, axis=-1, keepdims=True))
    return jnp.dot(p.astype(WDT), v.astype(WDT), preferred_element_type=jnp.float32)


# ----------------------------- fused encoder stack -----------------------------
def run_encoder(h0, rel_bias, mask_add, enc):
    """h0:(B*Le, D) f32, rel_bias:(H,Le,Le) f32, mask_add:(B,Le) f32 additive.
    Returns final-normed encoder hidden states (B*Le, D) in bf16."""
    BL, D = h0.shape
    B, L = mask_add.shape

    def kernel(h0_ref, relb_ref, mask_ref, lns_ref, wqkv_ref, wo_ref,
               wi_ref, woff_ref, fln_ref, out_ref, h_sc, ctx_sc):
        l = pl.program_id(0)

        @pl.when(l == 0)
        def _():
            h_sc[...] = h0_ref[...]

        h = h_sc[...]                       # (B*L, D) f32, carried across layers
        ln = lns_ref[0]                     # (2, D)
        relb = relb_ref[...]                # (H, L, L)
        mask = mask_ref[...]                # (B, L)

        # ---- self attention: fused (B*L,256)@(256,768) QKV, (B*L,256)@(256,256) O ----
        xb = _rms(h, ln[0:1, :]).astype(WDT)
        qkv = jnp.dot(xb, wqkv_ref[0], preferred_element_type=jnp.float32)
        for b in range(B):
            r0 = b * L
            madd = mask[b:b + 1, :]
            for hd in range(N_HEADS):
                c = hd * D_KV
                q = qkv[r0:r0 + L, c:c + D_KV]
                k = qkv[r0:r0 + L, INNER + c:INNER + c + D_KV]
                v = qkv[r0:r0 + L, 2 * INNER + c:2 * INNER + c + D_KV]
                ctx_sc[r0:r0 + L, c:c + D_KV] = _softmax_ctx(q, k, v, relb[hd] + madd)
        h = h + jnp.dot(ctx_sc[...].astype(WDT), wo_ref[0],
                        preferred_element_type=jnp.float32)

        # ---- FFN (ReLU) ----
        xb = _rms(h, ln[1:2, :]).astype(WDT)
        ff = jnp.maximum(jnp.dot(xb, wi_ref[0], preferred_element_type=jnp.float32), 0.0)
        h = h + jnp.dot(ff.astype(WDT), woff_ref[0], preferred_element_type=jnp.float32)

        h_sc[...] = h

        @pl.when(l == N_LAYERS - 1)
        def _():
            out_ref[...] = _rms(h, fln_ref[...]).astype(WDT)   # final LN, emit bf16

    return pl.pallas_call(
        kernel,
        out_shape=jax.ShapeDtypeStruct((BL, D), WDT),
        grid=(N_LAYERS,),
        in_specs=[
            pl.BlockSpec((BL, D), lambda l: (0, 0)),
            pl.BlockSpec((N_HEADS, L, L), lambda l: (0, 0, 0)),
            pl.BlockSpec((B, L), lambda l: (0, 0)),
            pl.BlockSpec((1, 2, D), lambda l: (l, 0, 0)),
            pl.BlockSpec((1, D, 3 * INNER), lambda l: (l, 0, 0)),
            pl.BlockSpec((1, INNER, D), lambda l: (l, 0, 0)),
            pl.BlockSpec((1, D, D_FF), lambda l: (l, 0, 0)),
            pl.BlockSpec((1, D_FF, D), lambda l: (l, 0, 0)),
            pl.BlockSpec((1, D), lambda l: (0, 0)),
        ],
        out_specs=pl.BlockSpec((BL, D), lambda l: (0, 0)),
        scratch_shapes=[pltpu.VMEM((BL, D), jnp.float32),
                        pltpu.VMEM((BL, INNER), jnp.float32)],
        compiler_params=pltpu.CompilerParams(
            dimension_semantics=("arbitrary",),
            vmem_limit_bytes=_VMEM_LIMIT),
    )(h0, rel_bias, mask_add, enc["lns"], enc["wqkv"], enc["wo"],
      enc["wi"], enc["wo_ff"], enc["fln"])


# ----------------------------- fused decoder stack (+ tied LM head) ------------
def run_decoder(d0, enc_h, self_bias, mask_add, dec, emb_t):
    """d0:(B*Ld,D) f32, enc_h:(B*Le,D) bf16, self_bias:(H,Ld,Ld) f32 (rel-pos+causal),
    mask_add:(B,Le) f32 additive encoder padding mask, emb_t:(D,VOCAB) bf16
    (pre-transposed, pre-scaled by d_model**-0.5). Returns logits (B*Ld, VOCAB) f32."""
    BLd, D = d0.shape
    B, Le = mask_add.shape
    Ld = BLd // B

    def kernel(d0_ref, enc_ref, sbias_ref, mask_ref, lns_ref,
               wqkv_ref, wosa_ref, wqca_ref, wkvca_ref, woca_ref,
               wi_ref, woff_ref, fln_ref, embt_ref, out_ref, h_sc, ctx_sc):
        l = pl.program_id(0)

        @pl.when(l == 0)
        def _():
            h_sc[...] = d0_ref[...]

        h = h_sc[...]                       # (B*Ld, D) f32
        ln = lns_ref[0]                     # (3, D)
        sbias = sbias_ref[...]              # (H, Ld, Ld)
        mask = mask_ref[...]                # (B, Le)
        eb = enc_ref[...]                   # (B*Le, D) bf16

        # ---- masked self attention ----
        xb = _rms(h, ln[0:1, :]).astype(WDT)
        qkv = jnp.dot(xb, wqkv_ref[0], preferred_element_type=jnp.float32)
        for b in range(B):
            r0 = b * Ld
            for hd in range(N_HEADS):
                c = hd * D_KV
                q = qkv[r0:r0 + Ld, c:c + D_KV]
                k = qkv[r0:r0 + Ld, INNER + c:INNER + c + D_KV]
                v = qkv[r0:r0 + Ld, 2 * INNER + c:2 * INNER + c + D_KV]
                ctx_sc[r0:r0 + Ld, c:c + D_KV] = _softmax_ctx(q, k, v, sbias[hd])
        h = h + jnp.dot(ctx_sc[...].astype(WDT), wosa_ref[0],
                        preferred_element_type=jnp.float32)

        # ---- cross attention (K/V from encoder output, no rel-pos bias) ----
        xb = _rms(h, ln[1:2, :]).astype(WDT)
        q_all = jnp.dot(xb, wqca_ref[0], preferred_element_type=jnp.float32)
        kv_all = jnp.dot(eb, wkvca_ref[0], preferred_element_type=jnp.float32)
        for b in range(B):
            rq, rk = b * Ld, b * Le
            madd = mask[b:b + 1, :]
            for hd in range(N_HEADS):
                c = hd * D_KV
                q = q_all[rq:rq + Ld, c:c + D_KV]
                k = kv_all[rk:rk + Le, c:c + D_KV]
                v = kv_all[rk:rk + Le, INNER + c:INNER + c + D_KV]
                ctx_sc[rq:rq + Ld, c:c + D_KV] = _softmax_ctx(q, k, v, madd)
        h = h + jnp.dot(ctx_sc[...].astype(WDT), woca_ref[0],
                        preferred_element_type=jnp.float32)

        # ---- FFN (ReLU) ----
        xb = _rms(h, ln[2:3, :]).astype(WDT)
        ff = jnp.maximum(jnp.dot(xb, wi_ref[0], preferred_element_type=jnp.float32), 0.0)
        h = h + jnp.dot(ff.astype(WDT), woff_ref[0], preferred_element_type=jnp.float32)

        h_sc[...] = h

        # ---- last layer: final LN + tied LM head (tie scale folded into embt) ----
        @pl.when(l == N_LAYERS - 1)
        def _():
            d_fin = _rms(h, fln_ref[...]).astype(WDT)
            out_ref[...] = jnp.dot(d_fin, embt_ref[...],
                                   preferred_element_type=jnp.float32)

    return pl.pallas_call(
        kernel,
        out_shape=jax.ShapeDtypeStruct((BLd, VOCAB), jnp.float32),
        grid=(N_LAYERS,),
        in_specs=[
            pl.BlockSpec((BLd, D), lambda l: (0, 0)),
            pl.BlockSpec((B * Le, D), lambda l: (0, 0)),
            pl.BlockSpec((N_HEADS, Ld, Ld), lambda l: (0, 0, 0)),
            pl.BlockSpec((B, Le), lambda l: (0, 0)),
            pl.BlockSpec((1, 3, D), lambda l: (l, 0, 0)),
            pl.BlockSpec((1, D, 3 * INNER), lambda l: (l, 0, 0)),
            pl.BlockSpec((1, INNER, D), lambda l: (l, 0, 0)),
            pl.BlockSpec((1, D, INNER), lambda l: (l, 0, 0)),
            pl.BlockSpec((1, D, 2 * INNER), lambda l: (l, 0, 0)),
            pl.BlockSpec((1, INNER, D), lambda l: (l, 0, 0)),
            pl.BlockSpec((1, D, D_FF), lambda l: (l, 0, 0)),
            pl.BlockSpec((1, D_FF, D), lambda l: (l, 0, 0)),
            pl.BlockSpec((1, D), lambda l: (0, 0)),
            pl.BlockSpec((D, VOCAB), lambda l: (0, 0)),
        ],
        out_specs=pl.BlockSpec((BLd, VOCAB), lambda l: (0, 0)),
        scratch_shapes=[pltpu.VMEM((BLd, D), jnp.float32),
                        pltpu.VMEM((BLd, INNER), jnp.float32)],
        compiler_params=pltpu.CompilerParams(
            dimension_semantics=("arbitrary",),
            vmem_limit_bytes=_VMEM_LIMIT),
    )(d0, enc_h, self_bias, mask_add, dec["lns"], dec["wqkv_sa"], dec["wo_sa"],
      dec["wq_ca"], dec["wkv_ca"], dec["wo_ca"], dec["wi"], dec["wo_ff"],
      dec["fln"], emb_t)


# ----------------------------- T5 glue (plain JAX, tiny) ------------------------
def relative_position_bucket(rel_pos, bidirectional, num_buckets=NUM_BUCKETS,
                             max_distance=MAX_DISTANCE):
    ret = jnp.zeros_like(rel_pos)
    n = num_buckets
    if bidirectional:
        n = n // 2
        ret = ret + (rel_pos > 0).astype(jnp.int32) * n
        rel_pos = jnp.abs(rel_pos)
    else:
        rel_pos = -jnp.minimum(rel_pos, 0)
    max_exact = n // 2
    is_small = rel_pos < max_exact
    rp_f = jnp.maximum(rel_pos, 1).astype(jnp.float32)
    rp_large = max_exact + (jnp.log(rp_f / max_exact)
                            / math.log(max_distance / max_exact)
                            * (n - max_exact)).astype(jnp.int32)
    rp_large = jnp.minimum(rp_large, n - 1)
    return ret + jnp.where(is_small, rel_pos, rp_large)


def compute_bias(qlen, klen, rel_emb, bidirectional):
    ctx = jnp.arange(qlen)[:, None]
    mem = jnp.arange(klen)[None, :]
    buckets = relative_position_bucket(mem - ctx, bidirectional)
    values = rel_emb[buckets]                      # (qlen, klen, H)
    return jnp.transpose(values, (2, 0, 1))        # (H, qlen, klen)


def shift_right(labels):
    B = labels.shape[0]
    start = jnp.full((B, 1), PAD_ID, labels.dtype)  # decoder_start_token_id = pad
    shifted = jnp.concatenate([start, labels[:, :-1]], axis=1)
    return jnp.where(shifted == -100, PAD_ID, shifted)


def t5_forward(params, input_ids, attention_mask, labels):
    B, Le = input_ids.shape
    Ld = labels.shape[1]
    emb = params["shared"]

    # ---- encoder (one fused pallas_call, batch folded into M) ----
    mask_add = (1.0 - attention_mask.astype(jnp.float32)) * NEG_INF        # (B, Le)
    enc_rel = compute_bias(Le, Le, params["enc_rel"], True)                # (H, Le, Le)
    h0 = emb[input_ids].reshape(B * Le, D_MODEL)                           # (B*Le, D)
    enc_h = run_encoder(h0, enc_rel, mask_add, params["encoder"])          # bf16

    # ---- decoder + tied LM head (one fused pallas_call) ----
    dec_ids = shift_right(labels)
    d0 = emb[dec_ids].reshape(B * Ld, D_MODEL)                             # (B*Ld, D)
    causal = jnp.where(jnp.arange(Ld)[None, :] <= jnp.arange(Ld)[:, None], 0.0, NEG_INF)
    self_bias = compute_bias(Ld, Ld, params["dec_rel"], False) + causal[None]  # (H,Ld,Ld)
    logits = run_decoder(d0, enc_h, self_bias, mask_add,
                         params["decoder"], params["shared_t"])            # (B*Ld, V)
    logits = logits.reshape(B, Ld, VOCAB)

    # ---- cross-entropy loss (ignore_index=-100); tiny, plain JAX ----
    labels_flat = labels.reshape(-1)
    logits_flat = logits.reshape(-1, VOCAB)
    logz = jax.nn.logsumexp(logits_flat, axis=-1)
    valid = labels_flat != -100
    safe = jnp.where(valid, labels_flat, 0)
    picked = jnp.take_along_axis(logits_flat, safe[:, None], axis=1)[:, 0]
    nll = logz - picked
    loss = jnp.sum(jnp.where(valid, nll, 0.0)) / jnp.maximum(jnp.sum(valid), 1)
    return {"loss": loss, "logits": logits}


# ----------------------------- deterministic param init ------------------------
def _nrm(key, shape, scale=0.05, dtype=WDT):
    return (scale * jax.random.normal(key, shape, jnp.float32)).astype(dtype)


def init_params(key):
    ks = jax.random.split(key, 16)
    shared = jax.random.normal(ks[0], (VOCAB, D_MODEL), jnp.float32)
    encoder = {
        "lns": jnp.ones((N_LAYERS, 2, D_MODEL), jnp.float32),
        # fused QKV: columns = [Q heads | K heads | V heads], each head D_KV wide
        "wqkv": _nrm(ks[1], (N_LAYERS, D_MODEL, 3 * INNER)),
        "wo": _nrm(ks[2], (N_LAYERS, INNER, D_MODEL)),
        "wi": _nrm(ks[3], (N_LAYERS, D_MODEL, D_FF)),
        "wo_ff": _nrm(ks[4], (N_LAYERS, D_FF, D_MODEL)),
        "fln": jnp.ones((1, D_MODEL), jnp.float32),
    }
    decoder = {
        "lns": jnp.ones((N_LAYERS, 3, D_MODEL), jnp.float32),
        "wqkv_sa": _nrm(ks[5], (N_LAYERS, D_MODEL, 3 * INNER)),
        "wo_sa": _nrm(ks[6], (N_LAYERS, INNER, D_MODEL)),
        "wq_ca": _nrm(ks[7], (N_LAYERS, D_MODEL, INNER)),
        "wkv_ca": _nrm(ks[8], (N_LAYERS, D_MODEL, 2 * INNER)),   # [K heads | V heads]
        "wo_ca": _nrm(ks[9], (N_LAYERS, INNER, D_MODEL)),
        "wi": _nrm(ks[10], (N_LAYERS, D_MODEL, D_FF)),
        "wo_ff": _nrm(ks[11], (N_LAYERS, D_FF, D_MODEL)),
        "fln": jnp.ones((1, D_MODEL), jnp.float32),
    }
    return {
        "shared": shared,
        # tied LM head: transposed once + d_model**-0.5 tie scale folded in + bf16
        "shared_t": (shared.T * (D_MODEL ** -0.5)).astype(WDT),
        "enc_rel": _nrm(ks[12], (NUM_BUCKETS, N_HEADS), dtype=jnp.float32),
        "dec_rel": _nrm(ks[13], (NUM_BUCKETS, N_HEADS), dtype=jnp.float32),
        "encoder": encoder,
        "decoder": decoder,
    }


# ----------------------------- main --------------------------------------------
if __name__ == "__main__":
    key = jax.random.PRNGKey(0)
    kp, ki, kl = jax.random.split(key, 3)
    params = init_params(kp)

    B, Le, Ld = 2, 8, 8
    input_ids = jax.random.randint(ki, (B, Le), 1, VOCAB, dtype=jnp.int32)
    attention_mask = jnp.ones((B, Le), jnp.int32).at[1, -2:].set(0)
    labels = jax.random.randint(kl, (B, Ld), 1, VOCAB, dtype=jnp.int32)

    fwd = jax.jit(t5_forward)
    out = fwd(params, input_ids, attention_mask, labels)
    jax.block_until_ready(out["loss"])
    assert out["logits"].shape == (B, Ld, VOCAB)
    assert bool(jnp.isfinite(out["loss"]))
    # TODO(synk): dropout (rate=0.1) omitted — forward implemented in eval semantics.
    print("KERNEL_OK")
</pallas_src>

<mosaic_0001>
module attributes {stable_mosaic.version = 11 : i64} {
  func.func @kernel(%arg0: i32, %arg1: memref<16x256xf32, #tpu.memory_space<vmem>>, %arg2: memref<4x8x8xf32, #tpu.memory_space<vmem>>, %arg3: memref<2x8xf32, #tpu.memory_space<vmem>>, %arg4: memref<1x2x256xf32, #tpu.memory_space<vmem>>, %arg5: memref<1x256x768xbf16, #tpu.memory_space<vmem>>, %arg6: memref<1x256x256xbf16, #tpu.memory_space<vmem>>, %arg7: memref<1x256x1024xbf16, #tpu.memory_space<vmem>>, %arg8: memref<1x1024x256xbf16, #tpu.memory_space<vmem>>, %arg9: memref<1x256xf32, #tpu.memory_space<vmem>>, %arg10: memref<16x256xbf16, #tpu.memory_space<vmem>>, %arg11: memref<16x256xf32, #tpu.memory_space<vmem>>, %arg12: memref<16x256xf32, #tpu.memory_space<vmem>>) attributes {dimension_semantics = [#tpu.dimension_semantics<arbitrary>], iteration_bounds = array<i64: 4>, scalar_prefetch = 0 : i64, scratch_operands = 2 : i64, tpu.core_type = #tpu.core_type<tc>, window_params = [{pipeline_mode = #tpu.pipeline_mode<synchronous>, transform_indices = @transform_0, window_bounds = array<i64: 16, 256>}, {pipeline_mode = #tpu.pipeline_mode<synchronous>, transform_indices = @transform_1, window_bounds = array<i64: 4, 8, 8>}, {pipeline_mode = #tpu.pipeline_mode<synchronous>, transform_indices = @transform_2, window_bounds = array<i64: 2, 8>}, {transform_indices = @transform_3, window_bounds = array<i64: 1, 2, 256>}, {transform_indices = @transform_4, window_bounds = array<i64: 1, 256, 768>}, {transform_indices = @transform_5, window_bounds = array<i64: 1, 256, 256>}, {transform_indices = @transform_6, window_bounds = array<i64: 1, 256, 1024>}, {transform_indices = @transform_7, window_bounds = array<i64: 1, 1024, 256>}, {pipeline_mode = #tpu.pipeline_mode<synchronous>, transform_indices = @transform_8, window_bounds = array<i64: 1, 256>}, {pipeline_mode = #tpu.pipeline_mode<synchronous>, transform_indices = @transform_9, window_bounds = array<i64: 16, 256>}]} {
    %c0_i32 = arith.constant 0 : i32
    %0 = arith.cmpi eq, %arg0, %c0_i32 : i32
    %1 = arith.extui %0 : i1 to i32
    %c0_i32_0 = arith.constant 0 : i32
    %2 = arith.cmpi ne, %1, %c0_i32_0 : i32
    scf.if %2 {
      %c0_81 = arith.constant 0 : index
      %c0_82 = arith.constant 0 : index
      %261 = vector.load %arg1[%c0_81, %c0_82] : memref<16x256xf32, #tpu.memory_space<vmem>>, vector<16x256xf32>
      %c0_83 = arith.constant 0 : index
      %c0_84 = arith.constant 0 : index
      %262 = vector.load %arg11[%c0_83, %c0_84] : memref<16x256xf32, #tpu.memory_space<vmem>>, vector<16x256xf32>
      tpu.vector_store %arg11[%c0_83, %c0_84], %261 {strides = array<i32>} : memref<16x256xf32, #tpu.memory_space<vmem>>, vector<16x256xf32>,
    } else {
    }
    %c0 = arith.constant 0 : index
    %c0_1 = arith.constant 0 : index
    %3 = vector.load %arg11[%c0, %c0_1] : memref<16x256xf32, #tpu.memory_space<vmem>>, vector<16x256xf32>
    %c0_2 = arith.constant 0 : index
    %c0_3 = arith.constant 0 : index
    %c0_4 = arith.constant 0 : index
    %4 = vector.load %arg4[%c0_2, %c0_3, %c0_4] : memref<1x2x256xf32, #tpu.memory_space<vmem>>, vector<1x2x256xf32>
    %5 = vector.shape_cast %4 : vector<1x2x256xf32> to vector<2x256xf32>
    %c0_5 = arith.constant 0 : index
    %c0_6 = arith.constant 0 : index
    %c0_7 = arith.constant 0 : index
    %6 = vector.load %arg2[%c0_5, %c0_6, %c0_7] : memref<4x8x8xf32, #tpu.memory_space<vmem>>, vector<4x8x8xf32>
    %c0_8 = arith.constant 0 : index
    %c0_9 = arith.constant 0 : index
    %7 = vector.load %arg3[%c0_8, %c0_9] : memref<2x8xf32, #tpu.memory_space<vmem>>, vector<2x8xf32>
    %8 = vector.extract_strided_slice %5 {offsets = [0, 0], sizes = [1, 256], strides = [1, 1]} : vector<2x256xf32> to vector<1x256xf32>
    %9 = arith.mulf %3, %3 : vector<16x256xf32>
    %cst = arith.constant dense<0.000000e+00> : vector<16xf32>
    %10 = vector.multi_reduction <add>, %9, %cst [1] : vector<16x256xf32> to vector<16xf32>
    %11 = vector.shape_cast %10 : vector<16xf32> to vector<16x1xf32>
    %cst_10 = arith.constant 2.560000e+02 : f32
    %12 = vector.broadcast %cst_10 : f32 to vector<16x1xf32>
    %13 = arith.divf %11, %12 : vector<16x1xf32>
    %cst_11 = arith.constant 9.99999997E-7 : f32
    %14 = vector.broadcast %cst_11 : f32 to vector<16x1xf32>
    %15 = arith.addf %13, %14 : vector<16x1xf32>
    %16 = math.rsqrt %15 : vector<16x1xf32>
    %17 = vector.broadcast %16 : vector<16x1xf32> to vector<16x256xf32>
    %18 = arith.mulf %3, %17 : vector<16x256xf32>
    %19 = vector.broadcast %8 : vector<1x256xf32> to vector<16x256xf32>
    %20 = arith.mulf %18, %19 : vector<16x256xf32>
    %21 = arith.truncf %20 : vector<16x256xf32> to vector<16x256xbf16>
    %c0_12 = arith.constant 0 : index
    %c0_13 = arith.constant 0 : index
    %c0_14 = arith.constant 0 : index
    %22 = vector.load %arg5[%c0_12, %c0_13, %c0_14] : memref<1x256x768xbf16, #tpu.memory_space<vmem>>, vector<1x256x768xbf16>
    %23 = vector.shape_cast %22 : vector<1x256x768xbf16> to vector<256x768xbf16>
    %cst_15 = arith.constant dense<0.000000e+00> : vector<16x768xf32>
    %24 = tpu.matmul %21, %23, %cst_15 {dimension_numbers = #tpu.dot_dimension_numbers<[1], [0], [0], [1], [0, 0, 1, 1], [], []>} : vector<16x256xbf16>, vector<256x768xbf16>, vector<16x768xf32> -> vector<16x768xf32>
    %25 = vector.extract_strided_slice %7 {offsets = [0, 0], sizes = [1, 8], strides = [1, 1]} : vector<2x8xf32> to vector<1x8xf32>
    %26 = vector.extract_strided_slice %24 {offsets = [0, 0], sizes = [8, 64], strides = [1, 1]} : vector<16x768xf32> to vector<8x64xf32>
    %27 = vector.extract_strided_slice %24 {offsets = [0, 256], sizes = [8, 64], strides = [1, 1]} : vector<16x768xf32> to vector<8x64xf32>
    %28 = vector.extract_strided_slice %24 {offsets = [0, 512], sizes = [8, 64], strides = [1, 1]} : vector<16x768xf32> to vector<8x64xf32>
    %29 = vector.extract_strided_slice %6 {offsets = [0, 0, 0], sizes = [1, 8, 8], strides = [1, 1, 1]} : vector<4x8x8xf32> to vector<1x8x8xf32>
    %30 = vector.shape_cast %29 : vector<1x8x8xf32> to vector<8x8xf32>
    %31 = vector.broadcast %25 : vector<1x8xf32> to vector<8x8xf32>
    %32 = arith.addf %30, %31 : vector<8x8xf32>
    %33 = arith.truncf %26 : vector<8x64xf32> to vector<8x64xbf16>
    %34 = arith.truncf %27 : vector<8x64xf32> to vector<8x64xbf16>
    %cst_16 = arith.constant dense<0.000000e+00> : vector<8x8xf32>
    %35 = tpu.matmul %33, %34, %cst_16 {dimension_numbers = #tpu.dot_dimension_numbers<[1], [1], [0], [0], [0, 0, 1, 0], [], []>} : vector<8x64xbf16>, vector<8x64xbf16>, vector<8x8xf32> -> vector<8x8xf32>
    %36 = arith.addf %35, %32 : vector<8x8xf32>
    %cst_17 = arith.constant dense<0xFF800000> : vector<8xf32>
    %37 = vector.multi_reduction <maximumf>, %36, %cst_17 [1] : vector<8x8xf32> to vector<8xf32>
    %38 = vector.shape_cast %37 : vector<8xf32> to vector<8x1xf32>
    %39 = vector.broadcast %38 : vector<8x1xf32> to vector<8x8xf32>
    %40 = arith.subf %36, %39 : vector<8x8xf32>
    %41 = math.exp %40 : vector<8x8xf32>
    %cst_18 = arith.constant dense<0.000000e+00> : vector<8xf32>
    %42 = vector.multi_reduction <add>, %41, %cst_18 [1] : vector<8x8xf32> to vector<8xf32>
    %43 = vector.shape_cast %42 : vector<8xf32> to vector<8x1xf32>
    %44 = tpu.reciprocal %43 : vector<8x1xf32> -> vector<8x1xf32>
    %45 = vector.broadcast %44 : vector<8x1xf32> to vector<8x8xf32>
    %46 = arith.mulf %41, %45 : vector<8x8xf32>
    %47 = arith.truncf %46 : vector<8x8xf32> to vector<8x8xbf16>
    %48 = arith.truncf %28 : vector<8x64xf32> to vector<8x64xbf16>
    %cst_19 = arith.constant dense<0.000000e+00> : vector<8x64xf32>
    %49 = tpu.matmul %47, %48, %cst_19 {dimension_numbers = #tpu.dot_dimension_numbers<[1], [0], [0], [1], [0, 0, 1, 1], [], []>} : vector<8x8xbf16>, vector<8x64xbf16>, vector<8x64xf32> -> vector<8x64xf32>
    %c0_20 = arith.constant 0 : index
    %c0_21 = arith.constant 0 : index
    %50 = vector.load %arg12[%c0_20, %c0_21] : memref<16x256xf32, #tpu.memory_space<vmem>>, vector<8x64xf32>
    tpu.vector_store %arg12[%c0_20, %c0_21], %49 {strides = array<i32>} : memref<16x256xf32, #tpu.memory_space<vmem>>, vector<8x64xf32>,
    %51 = vector.extract_strided_slice %24 {offsets = [0, 64], sizes = [8, 64], strides = [1, 1]} : vector<16x768xf32> to vector<8x64xf32>
    %52 = vector.extract_strided_slice %24 {offsets = [0, 320], sizes = [8, 64], strides = [1, 1]} : vector<16x768xf32> to vector<8x64xf32>
    %53 = vector.extract_strided_slice %24 {offsets = [0, 576], sizes = [8, 64], strides = [1, 1]} : vector<16x768xf32> to vector<8x64xf32>
    %54 = vector.extract_strided_slice %6 {offsets = [1, 0, 0], sizes = [1, 8, 8], strides = [1, 1, 1]} : vector<4x8x8xf32> to vector<1x8x8xf32>
    %55 = vector.shape_cast %54 : vector<1x8x8xf32> to vector<8x8xf32>
    %56 = vector.broadcast %25 : vector<1x8xf32> to vector<8x8xf32>
    %57 = arith.addf %55, %56 : vector<8x8xf32>
    %58 = arith.truncf %51 : vector<8x64xf32> to vector<8x64xbf16>
    %59 = arith.truncf %52 : vector<8x64xf32> to vector<8x64xbf16>
    %cst_22 = arith.constant dense<0.000000e+00> : vector<8x8xf32>
    %60 = tpu.matmul %58, %59, %cst_22 {dimension_numbers = #tpu.dot_dimension_numbers<[1], [1], [0], [0], [0, 0, 1, 0], [], []>} : vector<8x64xbf16>, vector<8x64xbf16>, vector<8x8xf32> -> vector<8x8xf32>
    %61 = arith.addf %60, %57 : vector<8x8xf32>
    %cst_23 = arith.constant dense<0xFF800000> : vector<8xf32>
    %62 = vector.multi_reduction <maximumf>, %61, %cst_23 [1] : vector<8x8xf32> to vector<8xf32>
    %63 = vector.shape_cast %62 : vector<8xf32> to vector<8x1xf32>
    %64 = vector.broadcast %63 : vector<8x1xf32> to vector<8x8xf32>
    %65 = arith.subf %61, %64 : vector<8x8xf32>
    %66 = math.exp %65 : vector<8x8xf32>
    %cst_24 = arith.constant dense<0.000000e+00> : vector<8xf32>
    %67 = vector.multi_reduction <add>, %66, %cst_24 [1] : vector<8x8xf32> to vector<8xf32>
    %68 = vector.shape_cast %67 : vector<8xf32> to vector<8x1xf32>
    %69 = tpu.reciprocal %68 : vector<8x1xf32> -> vector<8x1xf32>
    %70 = vector.broadcast %69 : vector<8x1xf32> to vector<8x8xf32>
    %71 = arith.mulf %66, %70 : vector<8x8xf32>
    %72 = arith.truncf %71 : vector<8x8xf32> to vector<8x8xbf16>
    %73 = arith.truncf %53 : vector<8x64xf32> to vector<8x64xbf16>
    %cst_25 = arith.constant dense<0.000000e+00> : vector<8x64xf32>
    %74 = tpu.matmul %72, %73, %cst_25 {dimension_numbers = #tpu.dot_dimension_numbers<[1], [0], [0], [1], [0, 0, 1, 1], [], []>} : vector<8x8xbf16>, vector<8x64xbf16>, vector<8x64xf32> -> vector<8x64xf32>
    %c0_26 = arith.constant 0 : index
    %c64 = arith.constant 64 : index
    %75 = vector.load %arg12[%c0_26, %c64] : memref<16x256xf32, #tpu.memory_space<vmem>>, vector<8x64xf32>
    tpu.vector_store %arg12[%c0_26, %c64], %74 {strides = array<i32>} : memref<16x256xf32, #tpu.memory_space<vmem>>, vector<8x64xf32>,
    %76 = vector.extract_strided_slice %24 {offsets = [0, 128], sizes = [8, 64], strides = [1, 1]} : vector<16x768xf32> to vector<8x64xf32>
    %77 = vector.extract_strided_slice %24 {offsets = [0, 384], sizes = [8, 64], strides = [1, 1]} : vector<16x768xf32> to vector<8x64xf32>
    %78 = vector.extract_strided_slice %24 {offsets = [0, 640], sizes = [8, 64], strides = [1, 1]} : vector<16x768xf32> to vector<8x64xf32>
    %79 = vector.extract_strided_slice %6 {offsets = [2, 0, 0], sizes = [1, 8, 8], strides = [1, 1, 1]} : vector<4x8x8xf32> to vector<1x8x8xf32>
    %80 = vector.shape_cast %79 : vector<1x8x8xf32> to vector<8x8xf32>
    %81 = vector.broadcast %25 : vector<1x8xf32> to vector<8x8xf32>
    %82 = arith.addf %80, %81 : vector<8x8xf32>
    %83 = arith.truncf %76 : vector<8x64xf32> to vector<8x64xbf16>
    %84 = arith.truncf %77 : vector<8x64xf32> to vector<8x64xbf16>
    %cst_27 = arith.constant dense<0.000000e+00> : vector<8x8xf32>
    %85 = tpu.matmul %83, %84, %cst_27 {dimension_numbers = #tpu.dot_dimension_numbers<[1], [1], [0], [0], [0, 0, 1, 0], [], []>} : vector<8x64xbf16>, vector<8x64xbf16>, vector<8x8xf32> -> vector<8x8xf32>
    %86 = arith.addf %85, %82 : vector<8x8xf32>
    %cst_28 = arith.constant dense<0xFF800000> : vector<8xf32>
    %87 = vector.multi_reduction <maximumf>, %86, %cst_28 [1] : vector<8x8xf32> to vector<8xf32>
    %88 = vector.shape_cast %87 : vector<8xf32> to vector<8x1xf32>
    %89 = vector.broadcast %88 : vector<8x1xf32> to vector<8x8xf32>
    %90 = arith.subf %86, %89 : vector<8x8xf32>
    %91 = math.exp %90 : vector<8x8xf32>
    %cst_29 = arith.constant dense<0.000000e+00> : vector<8xf32>
    %92 = vector.multi_reduction <add>, %91, %cst_29 [1] : vector<8x8xf32> to vector<8xf32>
    %93 = vector.shape_cast %92 : vector<8xf32> to vector<8x1xf32>
    %94 = tpu.reciprocal %93 : vector<8x1xf32> -> vector<8x1xf32>
    %95 = vector.broadcast %94 : vector<8x1xf32> to vector<8x8xf32>
    %96 = arith.mulf %91, %95 : vector<8x8xf32>
    %97 = arith.truncf %96 : vector<8x8xf32> to vector<8x8xbf16>
    %98 = arith.truncf %78 : vector<8x64xf32> to vector<8x64xbf16>
    %cst_30 = arith.constant dense<0.000000e+00> : vector<8x64xf32>
    %99 = tpu.matmul %97, %98, %cst_30 {dimension_numbers = #tpu.dot_dimension_numbers<[1], [0], [0], [1], [0, 0, 1, 1], [], []>} : vector<8x8xbf16>, vector<8x64xbf16>, vector<8x64xf32> -> vector<8x64xf32>
    %c0_31 = arith.constant 0 : index
    %c128 = arith.constant 128 : index
    %100 = vector.load %arg12[%c0_31, %c128] : memref<16x256xf32, #tpu.memory_space<vmem>>, vector<8x64xf32>
    tpu.vector_store %arg12[%c0_31, %c128], %99 {strides = array<i32>} : memref<16x256xf32, #tpu.memory_space<vmem>>, vector<8x64xf32>,
    %101 = vector.extract_strided_slice %24 {offsets = [0, 192], sizes = [8, 64], strides = [1, 1]} : vector<16x768xf32> to vector<8x64xf32>
    %102 = vector.extract_strided_slice %24 {offsets = [0, 448], sizes = [8, 64], strides = [1, 1]} : vector<16x768xf32> to vector<8x64xf32>
    %103 = vector.extract_strided_slice %24 {offsets = [0, 704], sizes = [8, 64], strides = [1, 1]} : vector<16x768xf32> to vector<8x64xf32>
    %104 = vector.extract_strided_slice %6 {offsets = [3, 0, 0], sizes = [1, 8, 8], strides = [1, 1, 1]} : vector<4x8x8xf32> to vector<1x8x8xf32>
    %105 = vector.shape_cast %104 : vector<1x8x8xf32> to vector<8x8xf32>
    %106 = vector.broadcast %25 : vector<1x8xf32> to vector<8x8xf32>
    %107 = arith.addf %105, %106 : vector<8x8xf32>
    %108 = arith.truncf %101 : vector<8x64xf32> to vector<8x64xbf16>
    %109 = arith.truncf %102 : vector<8x64xf32> to vector<8x64xbf16>
    %cst_32 = arith.constant dense<0.000000e+00> : vector<8x8xf32>
    %110 = tpu.matmul %108, %109, %cst_32 {dimension_numbers = #tpu.dot_dimension_numbers<[1], [1], [0], [0], [0, 0, 1, 0], [], []>} : vector<8x64xbf16>, vector<8x64xbf16>, vector<8x8xf32> -> vector<8x8xf32>
    %111 = arith.addf %110, %107 : vector<8x8xf32>
    %cst_33 = arith.constant dense<0xFF800000> : vector<8xf32>
    %112 = vector.multi_reduction <maximumf>, %111, %cst_33 [1] : vector<8x8xf32> to vector<8xf32>
    %113 = vector.shape_cast %112 : vector<8xf32> to vector<8x1xf32>
    %114 = vector.broadcast %113 : vector<8x1xf32> to vector<8x8xf32>
    %115 = arith.subf %111, %114 : vector<8x8xf32>
    %116 = math.exp %115 : vector<8x8xf32>
    %cst_34 = arith.constant dense<0.000000e+00> : vector<8xf32>
    %117 = vector.multi_reduction <add>, %116, %cst_34 [1] : vector<8x8xf32> to vector<8xf32>
    %118 = vector.shape_cast %117 : vector<8xf32> to vector<8x1xf32>
    %119 = tpu.reciprocal %118 : vector<8x1xf32> -> vector<8x1xf32>
    %120 = vector.broadcast %119 : vector<8x1xf32> to vector<8x8xf32>
    %121 = arith.mulf %116, %120 : vector<8x8xf32>
    %122 = arith.truncf %121 : vector<8x8xf32> to vector<8x8xbf16>
    %123 = arith.truncf %103 : vector<8x64xf32> to vector<8x64xbf16>
    %cst_35 = arith.constant dense<0.000000e+00> : vector<8x64xf32>
    %124 = tpu.matmul %122, %123, %cst_35 {dimension_numbers = #tpu.dot_dimension_numbers<[1], [0], [0], [1], [0, 0, 1, 1], [], []>} : vector<8x8xbf16>, vector<8x64xbf16>, vector<8x64xf32> -> vector<8x64xf32>
    %c0_36 = arith.constant 0 : index
    %c192 = arith.constant 192 : index
    %125 = vector.load %arg12[%c0_36, %c192] : memref<16x256xf32, #tpu.memory_space<vmem>>, vector<8x64xf32>
    tpu.vector_store %arg12[%c0_36, %c192], %124 {strides = array<i32>} : memref<16x256xf32, #tpu.memory_space<vmem>>, vector<8x64xf32>,
    %126 = vector.extract_strided_slice %7 {offsets = [1, 0], sizes = [1, 8], strides = [1, 1]} : vector<2x8xf32> to vector<1x8xf32>
    %127 = vector.extract_strided_slice %24 {offsets = [8, 0], sizes = [8, 64], strides = [1, 1]} : vector<16x768xf32> to vector<8x64xf32>
    %128 = vector.extract_strided_slice %24 {offsets = [8, 256], sizes = [8, 64], strides = [1, 1]} : vector<16x768xf32> to vector<8x64xf32>
    %129 = vector.extract_strided_slice %24 {offsets = [8, 512], sizes = [8, 64], strides = [1, 1]} : vector<16x768xf32> to vector<8x64xf32>
    %130 = vector.extract_strided_slice %6 {offsets = [0, 0, 0], sizes = [1, 8, 8], strides = [1, 1, 1]} : vector<4x8x8xf32> to vector<1x8x8xf32>
    %131 = vector.shape_cast %130 : vector<1x8x8xf32> to vector<8x8xf32>
    %132 = vector.broadcast %126 : vector<1x8xf32> to vector<8x8xf32>
    %133 = arith.addf %131, %132 : vector<8x8xf32>
    %134 = arith.truncf %127 : vector<8x64xf32> to vector<8x64xbf16>
    %135 = arith.truncf %128 : vector<8x64xf32> to vector<8x64xbf16>
    %cst_37 = arith.constant dense<0.000000e+00> : vector<8x8xf32>
    %136 = tpu.matmul %134, %135, %cst_37 {dimension_numbers = #tpu.dot_dimension_numbers<[1], [1], [0], [0], [0, 0, 1, 0], [], []>} : vector<8x64xbf16>, vector<8x64xbf16>, vector<8x8xf32> -> vector<8x8xf32>
    %137 = arith.addf %136, %133 : vector<8x8xf32>
    %cst_38 = arith.constant dense<0xFF800000> : vector<8xf32>
    %138 = vector.multi_reduction <maximumf>, %137, %cst_38 [1] : vector<8x8xf32> to vector<8xf32>
    %139 = vector.shape_cast %138 : vector<8xf32> to vector<8x1xf32>
    %140 = vector.broadcast %139 : vector<8x1xf32> to vector<8x8xf32>
    %141 = arith.subf %137, %140 : vector<8x8xf32>
    %142 = math.exp %141 : vector<8x8xf32>
    %cst_39 = arith.constant dense<0.000000e+00> : vector<8xf32>
    %143 = vector.multi_reduction <add>, %142, %cst_39 [1] : vector<8x8xf32> to vector<8xf32>
    %144 = vector.shape_cast %143 : vector<8xf32> to vector<8x1xf32>
    %145 = tpu.reciprocal %144 : vector<8x1xf32> -> vector<8x1xf32>
    %146 = vector.broadcast %145 : vector<8x1xf32> to vector<8x8xf32>
    %147 = arith.mulf %142, %146 : vector<8x8xf32>
    %148 = arith.truncf %147 : vector<8x8xf32> to vector<8x8xbf16>
    %149 = arith.truncf %129 : vector<8x64xf32> to vector<8x64xbf16>
    %cst_40 = arith.constant dense<0.000000e+00> : vector<8x64xf32>
    %150 = tpu.matmul %148, %149, %cst_40 {dimension_numbers = #tpu.dot_dimension_numbers<[1], [0], [0], [1], [0, 0, 1, 1], [], []>} : vector<8x8xbf16>, vector<8x64xbf16>, vector<8x64xf32> -> vector<8x64xf32>
    %c8 = arith.constant 8 : index
    %c0_41 = arith.constant 0 : index
    %151 = vector.load %arg12[%c8, %c0_41] : memref<16x256xf32, #tpu.memory_space<vmem>>, vector<8x64xf32>
    tpu.vector_store %arg12[%c8, %c0_41], %150 {strides = array<i32>} : memref<16x256xf32, #tpu.memory_space<vmem>>, vector<8x64xf32>,
    %152 = vector.extract_strided_slice %24 {offsets = [8, 64], sizes = [8, 64], strides = [1, 1]} : vector<16x768xf32> to vector<8x64xf32>
    %153 = vector.extract_strided_slice %24 {offsets = [8, 320], sizes = [8, 64], strides = [1, 1]} : vector<16x768xf32> to vector<8x64xf32>
    %154 = vector.extract_strided_slice %24 {offsets = [8, 576], sizes = [8, 64], strides = [1, 1]} : vector<16x768xf32> to vector<8x64xf32>
    %155 = vector.extract_strided_slice %6 {offsets = [1, 0, 0], sizes = [1, 8, 8], strides = [1, 1, 1]} : vector<4x8x8xf32> to vector<1x8x8xf32>
    %156 = vector.shape_cast %155 : vector<1x8x8xf32> to vector<8x8xf32>
    %157 = vector.broadcast %126 : vector<1x8xf32> to vector<8x8xf32>
    %158 = arith.addf %156, %157 : vector<8x8xf32>
    %159 = arith.truncf %152 : vector<8x64xf32> to vector<8x64xbf16>
    %160 = arith.truncf %153 : vector<8x64xf32> to vector<8x64xbf16>
    %cst_42 = arith.constant dense<0.000000e+00> : vector<8x8xf32>
    %161 = tpu.matmul %159, %160, %cst_42 {dimension_numbers = #tpu.dot_dimension_numbers<[1], [1], [0], [0], [0, 0, 1, 0], [], []>} : vector<8x64xbf16>, vector<8x64xbf16>, vector<8x8xf32> -> vector<8x8xf32>
    %162 = arith.addf %161, %158 : vector<8x8xf32>
    %cst_43 = arith.constant dense<0xFF800000> : vector<8xf32>
    %163 = vector.multi_reduction <maximumf>, %162, %cst_43 [1] : vector<8x8xf32> to vector<8xf32>
    %164 = vector.shape_cast %163 : vector<8xf32> to vector<8x1xf32>
    %165 = vector.broadcast %164 : vector<8x1xf32> to vector<8x8xf32>
    %166 = arith.subf %162, %165 : vector<8x8xf32>
    %167 = math.exp %166 : vector<8x8xf32>
    %cst_44 = arith.constant dense<0.000000e+00> : vector<8xf32>
    %168 = vector.multi_reduction <add>, %167, %cst_44 [1] : vector<8x8xf32> to vector<8xf32>
    %169 = vector.shape_cast %168 : vector<8xf32> to vector<8x1xf32>
    %170 = tpu.reciprocal %169 : vector<8x1xf32> -> vector<8x1xf32>
    %171 = vector.broadcast %170 : vector<8x1xf32> to vector<8x8xf32>
    %172 = arith.mulf %167, %171 : vector<8x8xf32>
    %173 = arith.truncf %172 : vector<8x8xf32> to vector<8x8xbf16>
    %174 = arith.truncf %154 : vector<8x64xf32> to vector<8x64xbf16>
    %cst_45 = arith.constant dense<0.000000e+00> : vector<8x64xf32>
    %175 = tpu.matmul %173, %174, %cst_45 {dimension_numbers = #tpu.dot_dimension_numbers<[1], [0], [0], [1], [0, 0, 1, 1], [], []>} : vector<8x8xbf16>, vector<8x64xbf16>, vector<8x64xf32> -> vector<8x64xf32>
    %c8_46 = arith.constant 8 : index
    %c64_47 = arith.constant 64 : index
    %176 = vector.load %arg12[%c8_46, %c64_47] : memref<16x256xf32, #tpu.memory_space<vmem>>, vector<8x64xf32>
    tpu.vector_store %arg12[%c8_46, %c64_47], %175 {strides = array<i32>} : memref<16x256xf32, #tpu.memory_space<vmem>>, vector<8x64xf32>,
    %177 = vector.extract_strided_slice %24 {offsets = [8, 128], sizes = [8, 64], strides = [1, 1]} : vector<16x768xf32> to vector<8x64xf32>
    %178 = vector.extract_strided_slice %24 {offsets = [8, 384], sizes = [8, 64], strides = [1, 1]} : vector<16x768xf32> to vector<8x64xf32>
    %179 = vector.extract_strided_slice %24 {offsets = [8, 640], sizes = [8, 64], strides = [1, 1]} : vector<16x768xf32> to vector<8x64xf32>
    %180 = vector.extract_strided_slice %6 {offsets = [2, 0, 0], sizes = [1, 8, 8], strides = [1, 1, 1]} : vector<4x8x8xf32> to vector<1x8x8xf32>
    %181 = vector.shape_cast %180 : vector<1x8x8xf32> to vector<8x8xf32>
    %182 = vector.broadcast %126 : vector<1x8xf32> to vector<8x8xf32>
    %183 = arith.addf %181, %182 : vector<8x8xf32>
    %184 = arith.truncf %177 : vector<8x64xf32> to vector<8x64xbf16>
    %185 = arith.truncf %178 : vector<8x64xf32> to vector<8x64xbf16>
    %cst_48 = arith.constant dense<0.000000e+00> : vector<8x8xf32>
    %186 = tpu.matmul %184, %185, %cst_48 {dimension_numbers = #tpu.dot_dimension_numbers<[1], [1], [0], [0], [0, 0, 1, 0], [], []>} : vector<8x64xbf16>, vector<8x64xbf16>, vector<8x8xf32> -> vector<8x8xf32>
    %187 = arith.addf %186, %183 : vector<8x8xf32>
    %cst_49 = arith.constant dense<0xFF800000> : vector<8xf32>
    %188 = vector.multi_reduction <maximumf>, %187, %cst_49 [1] : vector<8x8xf32> to vector<8xf32>
    %189 = vector.shape_cast %188 : vector<8xf32> to vector<8x1xf32>
    %190 = vector.broadcast %189 : vector<8x1xf32> to vector<8x8xf32>
    %191 = arith.subf %187, %190 : vector<8x8xf32>
    %192 = math.exp %191 : vector<8x8xf32>
    %cst_50 = arith.constant dense<0.000000e+00> : vector<8xf32>
    %193 = vector.multi_reduction <add>, %192, %cst_50 [1] : vector<8x8xf32> to vector<8xf32>
    %194 = vector.shape_cast %193 : vector<8xf32> to vector<8x1xf32>
    %195 = tpu.reciprocal %194 : vector<8x1xf32> -> vector<8x1xf32>
    %196 = vector.broadcast %195 : vector<8x1xf32> to vector<8x8xf32>
    %197 = arith.mulf %192, %196 : vector<8x8xf32>
    %198 = arith.truncf %197 : vector<8x8xf32> to vector<8x8xbf16>
    %199 = arith.truncf %179 : vector<8x64xf32> to vector<8x64xbf16>
    %cst_51 = arith.constant dense<0.000000e+00> : vector<8x64xf32>
    %200 = tpu.matmul %198, %199, %cst_51 {dimension_numbers = #tpu.dot_dimension_numbers<[1], [0], [0], [1], [0, 0, 1, 1], [], []>} : vector<8x8xbf16>, vector<8x64xbf16>, vector<8x64xf32> -> vector<8x64xf32>
    %c8_52 = arith.constant 8 : index
    %c128_53 = arith.constant 128 : index
    %201 = vector.load %arg12[%c8_52, %c128_53] : memref<16x256xf32, #tpu.memory_space<vmem>>, vector<8x64xf32>
    tpu.vector_store %arg12[%c8_52, %c128_53], %200 {strides = array<i32>} : memref<16x256xf32, #tpu.memory_space<vmem>>, vector<8x64xf32>,
    %202 = vector.extract_strided_slice %24 {offsets = [8, 192], sizes = [8, 64], strides = [1, 1]} : vector<16x768xf32> to vector<8x64xf32>
    %203 = vector.extract_strided_slice %24 {offsets = [8, 448], sizes = [8, 64], strides = [1, 1]} : vector<16x768xf32> to vector<8x64xf32>
    %204 = vector.extract_strided_slice %24 {offsets = [8, 704], sizes = [8, 64], strides = [1, 1]} : vector<16x768xf32> to vector<8x64xf32>
    %205 = vector.extract_strided_slice %6 {offsets = [3, 0, 0], sizes = [1, 8, 8], strides = [1, 1, 1]} : vector<4x8x8xf32> to vector<1x8x8xf32>
    %206 = vector.shape_cast %205 : vector<1x8x8xf32> to vector<8x8xf32>
    %207 = vector.broadcast %126 : vector<1x8xf32> to vector<8x8xf32>
    %208 = arith.addf %206, %207 : vector<8x8xf32>
    %209 = arith.truncf %202 : vector<8x64xf32> to vector<8x64xbf16>
    %210 = arith.truncf %203 : vector<8x64xf32> to vector<8x64xbf16>
    %cst_54 = arith.constant dense<0.000000e+00> : vector<8x8xf32>
    %211 = tpu.matmul %209, %210, %cst_54 {dimension_numbers = #tpu.dot_dimension_numbers<[1], [1], [0], [0], [0, 0, 1, 0], [], []>} : vector<8x64xbf16>, vector<8x64xbf16>, vector<8x8xf32> -> vector<8x8xf32>
    %212 = arith.addf %211, %208 : vector<8x8xf32>
    %cst_55 = arith.constant dense<0xFF800000> : vector<8xf32>
    %213 = vector.multi_reduction <maximumf>, %212, %cst_55 [1] : vector<8x8xf32> to vector<8xf32>
    %214 = vector.shape_cast %213 : vector<8xf32> to vector<8x1xf32>
    %215 = vector.broadcast %214 : vector<8x1xf32> to vector<8x8xf32>
    %216 = arith.subf %212, %215 : vector<8x8xf32>
    %217 = math.exp %216 : vector<8x8xf32>
    %cst_56 = arith.constant dense<0.000000e+00> : vector<8xf32>
    %218 = vector.multi_reduction <add>, %217, %cst_56 [1] : vector<8x8xf32> to vector<8xf32>
    %219 = vector.shape_cast %218 : vector<8xf32> to vector<8x1xf32>
    %220 = tpu.reciprocal %219 : vector<8x1xf32> -> vector<8x1xf32>
    %221 = vector.broadcast %220 : vector<8x1xf32> to vector<8x8xf32>
    %222 = arith.mulf %217, %221 : vector<8x8xf32>
    %223 = arith.truncf %222 : vector<8x8xf32> to vector<8x8xbf16>
    %224 = arith.truncf %204 : vector<8x64xf32> to vector<8x64xbf16>
    %cst_57 = arith.constant dense<0.000000e+00> : vector<8x64xf32>
    %225 = tpu.matmul %223, %224, %cst_57 {dimension_numbers = #tpu.dot_dimension_numbers<[1], [0], [0], [1], [0, 0, 1, 1], [], []>} : vector<8x8xbf16>, vector<8x64xbf16>, vector<8x64xf32> -> vector<8x64xf32>
    %c8_58 = arith.constant 8 : index
    %c192_59 = arith.constant 192 : index
    %226 = vector.load %arg12[%c8_58, %c192_59] : memref<16x256xf32, #tpu.memory_space<vmem>>, vector<8x64xf32>
    tpu.vector_store %arg12[%c8_58, %c192_59], %225 {strides = array<i32>} : memref<16x256xf32, #tpu.memory_space<vmem>>, vector<8x64xf32>,
    %c0_60 = arith.constant 0 : index
    %c0_61 = arith.constant 0 : index
    %227 = vector.load %arg12[%c0_60, %c0_61] : memref<16x256xf32, #tpu.memory_space<vmem>>, vector<16x256xf32>
    %228 = arith.truncf %227 : vector<16x256xf32> to vector<16x256xbf16>
    %c0_62 = arith.constant 0 : index
    %c0_63 = arith.constant 0 : index
    %c0_64 = arith.constant 0 : index
    %229 = vector.load %arg6[%c0_62, %c0_63, %c0_64] : memref<1x256x256xbf16, #tpu.memory_space<vmem>>, vector<1x256x256xbf16>
    %230 = vector.shape_cast %229 : vector<1x256x256xbf16> to vector<256x256xbf16>
    %cst_65 = arith.constant dense<0.000000e+00> : vector<16x256xf32>
    %231 = tpu.matmul %228, %230, %cst_65 {dimension_numbers = #tpu.dot_dimension_numbers<[1], [0], [0], [1], [0, 0, 1, 1], [], []>} : vector<16x256xbf16>, vector<256x256xbf16>, vector<16x256xf32> -> vector<16x256xf32>
    %232 = arith.addf %3, %231 : vector<16x256xf32>
    %233 = vector.extract_strided_slice %5 {offsets = [1, 0], sizes = [1, 256], strides = [1, 1]} : vector<2x256xf32> to vector<1x256xf32>
    %234 = arith.mulf %232, %232 : vector<16x256xf32>
    %cst_66 = arith.constant dense<0.000000e+00> : vector<16xf32>
    %235 = vector.multi_reduction <add>, %234, %cst_66 [1] : vector<16x256xf32> to vector<16xf32>
    %236 = vector.shape_cast %235 : vector<16xf32> to vector<16x1xf32>
    %cst_67 = arith.constant 2.560000e+02 : f32
    %237 = vector.broadcast %cst_67 : f32 to vector<16x1xf32>
    %238 = arith.divf %236, %237 : vector<16x1xf32>
    %cst_68 = arith.constant 9.99999997E-7 : f32
    %239 = vector.broadcast %cst_68 : f32 to vector<16x1xf32>
    %240 = arith.addf %238, %239 : vector<16x1xf32>
    %241 = math.rsqrt %240 : vector<16x1xf32>
    %242 = vector.broadcast %241 : vector<16x1xf32> to vector<16x256xf32>
    %243 = arith.mulf %232, %242 : vector<16x256xf32>
    %244 = vector.broadcast %233 : vector<1x256xf32> to vector<16x256xf32>
    %245 = arith.mulf %243, %244 : vector<16x256xf32>
    %246 = arith.truncf %245 : vector<16x256xf32> to vector<16x256xbf16>
    %c0_69 = arith.constant 0 : index
    %c0_70 = arith.constant 0 : index
    %c0_71 = arith.constant 0 : index
    %247 = vector.load %arg7[%c0_69, %c0_70, %c0_71] : memref<1x256x1024xbf16, #tpu.memory_space<vmem>>, vector<1x256x1024xbf16>
    %248 = vector.shape_cast %247 : vector<1x256x1024xbf16> to vector<256x1024xbf16>
    %cst_72 = arith.constant dense<0.000000e+00> : vector<16x1024xf32>
    %249 = tpu.matmul %246, %248, %cst_72 {dimension_numbers = #tpu.dot_dimension_numbers<[1], [0], [0], [1], [0, 0, 1, 1], [], []>} : vector<16x256xbf16>, vector<256x1024xbf16>, vector<16x1024xf32> -> vector<16x1024xf32>
    %cst_73 = arith.constant 0.000000e+00 : f32
    %250 = vector.broadcast %cst_73 : f32 to vector<16x1024xf32>
    %251 = arith.maximumf %249, %250 : vector<16x1024xf32>
    %252 = arith.truncf %251 : vector<16x1024xf32> to vector<16x1024xbf16>
    %c0_74 = arith.constant 0 : index
    %c0_75 = arith.constant 0 : index
    %c0_76 = arith.constant 0 : index
    %253 = vector.load %arg8[%c0_74, %c0_75, %c0_76] : memref<1x1024x256xbf16, #tpu.memory_space<vmem>>, vector<1x1024x256xbf16>
    %254 = vector.shape_cast %253 : vector<1x1024x256xbf16> to vector<1024x256xbf16>
    %cst_77 = arith.constant dense<0.000000e+00> : vector<16x256xf32>
    %255 = tpu.matmul %252, %254, %cst_77 {dimension_numbers = #tpu.dot_dimension_numbers<[1], [0], [0], [1], [0, 0, 1, 1], [], []>} : vector<16x1024xbf16>, vector<1024x256xbf16>, vector<16x256xf32> -> vector<16x256xf32>
    %256 = arith.addf %232, %255 : vector<16x256xf32>
    %c0_78 = arith.constant 0 : index
    %c0_79 = arith.constant 0 : index
    %257 = vector.load %arg11[%c0_78, %c0_79] : memref<16x256xf32, #tpu.memory_space<vmem>>, vector<16x256xf32>
    tpu.vector_store %arg11[%c0_78, %c0_79], %256 {strides = array<i32>} : memref<16x256xf32, #tpu.memory_space<vmem>>, vector<16x256xf32>,
    %c3_i32 = arith.constant 3 : i32
    %258 = arith.cmpi eq, %arg0, %c3_i32 : i32
    %259 = arith.extui %258 : i1 to i32
    %c0_i32_80 = arith.constant 0 : i32
    %260 = arith.cmpi ne, %259, %c0_i32_80 : i32
    scf.if %260 {
      %c0_81 = arith.constant 0 : index
      %c0_82 = arith.constant 0 : index
      %261 = vector.load %arg9[%c0_81, %c0_82] : memref<1x256xf32, #tpu.memory_space<vmem>>, vector<1x256xf32>
      %262 = arith.mulf %256, %256 : vector<16x256xf32>
      %cst_83 = arith.constant dense<0.000000e+00> : vector<16xf32>
      %263 = vector.multi_reduction <add>, %262, %cst_83 [1] : vector<16x256xf32> to vector<16xf32>
      %264 = vector.shape_cast %263 : vector<16xf32> to vector<16x1xf32>
      %cst_84 = arith.constant 2.560000e+02 : f32
      %265 = vector.broadcast %cst_84 : f32 to vector<16x1xf32>
      %266 = arith.divf %264, %265 : vector<16x1xf32>
      %cst_85 = arith.constant 9.99999997E-7 : f32
      %267 = vector.broadcast %cst_85 : f32 to vector<16x1xf32>
      %268 = arith.addf %266, %267 : vector<16x1xf32>
      %269 = math.rsqrt %268 : vector<16x1xf32>
      %270 = vector.broadcast %269 : vector<16x1xf32> to vector<16x256xf32>
      %271 = arith.mulf %256, %270 : vector<16x256xf32>
      %272 = vector.broadcast %261 : vector<1x256xf32> to vector<16x256xf32>
      %273 = arith.mulf %271, %272 : vector<16x256xf32>
      %274 = arith.truncf %273 : vector<16x256xf32> to vector<16x256xbf16>
      %c0_86 = arith.constant 0 : index
      %c0_87 = arith.constant 0 : index
      %275 = vector.load %arg10[%c0_86, %c0_87] : memref<16x256xbf16, #tpu.memory_space<vmem>>, vector<16x256xbf16>
      tpu.vector_store %arg10[%c0_86, %c0_87], %274 {strides = array<i32>} : memref<16x256xbf16, #tpu.memory_space<vmem>>, vector<16x256xbf16>,
    } else {
    }
    return
  }
  func.func @transform_0(%arg0: i32) -> (i32, i32) {
    %c0_i32 = arith.constant 0 : i32
    %c0_i32_0 = arith.constant 0 : i32
    %c0_i32_1 = arith.constant 0 : i32
    return %c0_i32, %c0_i32_0 : i32, i32
  }
  func.func @transform_1(%arg0: i32) -> (i32, i32, i32) {
    %c0_i32 = arith.constant 0 : i32
    %c0_i32_0 = arith.constant 0 : i32
    %c0_i32_1 = arith.constant 0 : i32
    %c0_i32_2 = arith.constant 0 : i32
    return %c0_i32, %c0_i32_0, %c0_i32_1 : i32, i32, i32
  }
  func.func @transform_2(%arg0: i32) -> (i32, i32) {
    %c0_i32 = arith.constant 0 : i32
    %c0_i32_0 = arith.constant 0 : i32
    %c0_i32_1 = arith.constant 0 : i32
    return %c0_i32, %c0_i32_0 : i32, i32
  }
  func.func @transform_3(%arg0: i32) -> (i32, i32, i32) {
    %c0_i32 = arith.constant 0 : i32
    %c0_i32_0 = arith.constant 0 : i32
    %c0_i32_1 = arith.constant 0 : i32
    return %arg0, %c0_i32, %c0_i32_0 : i32, i32, i32
  }
  func.func @transform_4(%arg0: i32) -> (i32, i32, i32) {
    %c0_i32 = arith.constant 0 : i32
    %c0_i32_0 = arith.constant 0 : i32
    %c0_i32_1 = arith.constant 0 : i32
    return %arg0, %c0_i32, %c0_i32_0 : i32, i32, i32
  }
  func.func @transform_5(%arg0: i32) -> (i32, i32, i32) {
    %c0_i32 = arith.constant 0 : i32
    %c0_i32_0 = arith.constant 0 : i32
    %c0_i32_1 = arith.constant 0 : i32
    return %arg0, %c0_i32, %c0_i32_0 : i32, i32, i32
  }
  func.func @transform_6(%arg0: i32) -> (i32, i32, i32) {
    %c0_i32 = arith.constant 0 : i32
    %c0_i32_0 = arith.constant 0 : i32
    %c0_i32_1 = arith.constant 0 : i32
    return %arg0, %c0_i32, %c0_i32_0 : i32, i32, i32
  }
  func.func @transform_7(%arg0: i32) -> (i32, i32, i32) {
    %c0_i32 = arith.constant 0 : i32
    %c0_i32_0 = arith.constant 0 : i32
    %c0_i32_1 = arith.constant 0 : i32
    return %arg0, %c0_i32, %c0_i32_0 : i32, i32, i32
  }
  func.func @transform_8(%arg0: i32) -> (i32, i32) {
    %c0_i32 = arith.constant 0 : i32
    %c0_i32_0 = arith.constant 0 : i32
    %c0_i32_1 = arith.constant 0 : i32
    return %c0_i32, %c0_i32_0 : i32, i32
  }
  func.func @transform_9(%arg0: i32) -> (i32, i32) {
    %c0_i32 = arith.constant 0 : i32
    %c0_i32_0 = arith.constant 0 : i32
    %c0_i32_1 = arith.constant 0 : i32
    return %c0_i32, %c0_i32_0 : i32, i32
  }
}

module attributes {stable_mosaic.version = 11 : i64} {
  func.func @kernel(%arg0: i32, %arg1: memref<16x256xf32, #tpu.memory_space<vmem>>, %arg2: memref<16x256xbf16, #tpu.memory_space<vmem>>, %arg3: memref<4x8x8xf32, #tpu.memory_space<vmem>>, %arg4: memref<2x8xf32, #tpu.memory_space<vmem>>, %arg5: memref<1x3x256xf32, #tpu.memory_space<vmem>>, %arg6: memref<1x256x768xbf16, #tpu.memory_space<vmem>>, %arg7: memref<1x256x256xbf16, #tpu.memory_space<vmem>>, %arg8: memref<1x256x256xbf16, #tpu.memory_space<vmem>>, %arg9: memref<1x256x512xbf16, #tpu.memory_space<vmem>>, %arg10: memref<1x256x256xbf16, #tpu.memory_space<vmem>>, %arg11: memref<1x256x1024xbf16, #tpu.memory_space<vmem>>, %arg12: memref<1x1024x256xbf16, #tpu.memory_space<vmem>>, %arg13: memref<1x256xf32, #tpu.memory_space<vmem>>, %arg14: memref<256x512xbf16, #tpu.memory_space<vmem>>, %arg15: memref<16x512xf32, #tpu.memory_space<vmem>>, %arg16: memref<16x256xf32, #tpu.memory_space<vmem>>, %arg17: memref<16x256xf32, #tpu.memory_space<vmem>>) attributes {dimension_semantics = [#tpu.dimension_semantics<arbitrary>], iteration_bounds = array<i64: 4>, scalar_prefetch = 0 : i64, scratch_operands = 2 : i64, tpu.core_type = #tpu.core_type<tc>, window_params = [{pipeline_mode = #tpu.pipeline_mode<synchronous>, transform_indices = @transform_0, window_bounds = array<i64: 16, 256>}, {pipeline_mode = #tpu.pipeline_mode<synchronous>, transform_indices = @transform_1, window_bounds = array<i64: 16, 256>}, {pipeline_mode = #tpu.pipeline_mode<synchronous>, transform_indices = @transform_2, window_bounds = array<i64: 4, 8, 8>}, {pipeline_mode = #tpu.pipeline_mode<synchronous>, transform_indices = @transform_3, window_bounds = array<i64: 2, 8>}, {transform_indices = @transform_4, window_bounds = array<i64: 1, 3, 256>}, {transform_indices = @transform_5, window_bounds = array<i64: 1, 256, 768>}, {transform_indices = @transform_6, window_bounds = array<i64: 1, 256, 256>}, {transform_indices = @transform_7, window_bounds = array<i64: 1, 256, 256>}, {transform_indices = @transform_8, window_bounds = array<i64: 1, 256, 512>}, {transform_indices = @transform_9, window_bounds = array<i64: 1, 256, 256>}, {transform_indices = @transform_10, window_bounds = array<i64: 1, 256, 1024>}, {transform_indices = @transform_11, window_bounds = array<i64: 1, 1024, 256>}, {pipeline_mode = #tpu.pipeline_mode<synchronous>, transform_indices = @transform_12, window_bounds = array<i64: 1, 256>}, {pipeline_mode = #tpu.pipeline_mode<synchronous>, transform_indices = @transform_13, window_bounds = array<i64: 256, 512>}, {pipeline_mode = #tpu.pipeline_mode<synchronous>, transform_indices = @transform_14, window_bounds = array<i64: 16, 512>}]} {
    %c0_i32 = arith.constant 0 : i32
    %0 = arith.cmpi eq, %arg0, %c0_i32 : i32
    %1 = arith.extui %0 : i1 to i32
    %c0_i32_0 = arith.constant 0 : i32
    %2 = arith.cmpi ne, %1, %c0_i32_0 : i32
    scf.if %2 {
      %c0_148 = arith.constant 0 : index
      %c0_149 = arith.constant 0 : index
      %448 = vector.load %arg1[%c0_148, %c0_149] : memref<16x256xf32, #tpu.memory_space<vmem>>, vector<16x256xf32>
      %c0_150 = arith.constant 0 : index
      %c0_151 = arith.constant 0 : index
      %449 = vector.load %arg16[%c0_150, %c0_151] : memref<16x256xf32, #tpu.memory_space<vmem>>, vector<16x256xf32>
      tpu.vector_store %arg16[%c0_150, %c0_151], %448 {strides = array<i32>} : memref<16x256xf32, #tpu.memory_space<vmem>>, vector<16x256xf32>,
    } else {
    }
    %c0 = arith.constant 0 : index
    %c0_1 = arith.constant 0 : index
    %3 = vector.load %arg16[%c0, %c0_1] : memref<16x256xf32, #tpu.memory_space<vmem>>, vector<16x256xf32>
    %c0_2 = arith.constant 0 : index
    %c0_3 = arith.constant 0 : index
    %c0_4 = arith.constant 0 : index
    %4 = vector.load %arg5[%c0_2, %c0_3, %c0_4] : memref<1x3x256xf32, #tpu.memory_space<vmem>>, vector<1x3x256xf32>
    %5 = vector.shape_cast %4 : vector<1x3x256xf32> to vector<3x256xf32>
    %c0_5 = arith.constant 0 : index
    %c0_6 = arith.constant 0 : index
    %c0_7 = arith.constant 0 : index
    %6 = vector.load %arg3[%c0_5, %c0_6, %c0_7] : memref<4x8x8xf32, #tpu.memory_space<vmem>>, vector<4x8x8xf32>
    %c0_8 = arith.constant 0 : index
    %c0_9 = arith.constant 0 : index
    %7 = vector.load %arg4[%c0_8, %c0_9] : memref<2x8xf32, #tpu.memory_space<vmem>>, vector<2x8xf32>
    %c0_10 = arith.constant 0 : index
    %c0_11 = arith.constant 0 : index
    %8 = vector.load %arg2[%c0_10, %c0_11] : memref<16x256xbf16, #tpu.memory_space<vmem>>, vector<16x256xbf16>
    %9 = vector.extract_strided_slice %5 {offsets = [0, 0], sizes = [1, 256], strides = [1, 1]} : vector<3x256xf32> to vector<1x256xf32>
    %10 = arith.mulf %3, %3 : vector<16x256xf32>
    %cst = arith.constant dense<0.000000e+00> : vector<16xf32>
    %11 = vector.multi_reduction <add>, %10, %cst [1] : vector<16x256xf32> to vector<16xf32>
    %12 = vector.shape_cast %11 : vector<16xf32> to vector<16x1xf32>
    %cst_12 = arith.constant 2.560000e+02 : f32
    %13 = vector.broadcast %cst_12 : f32 to vector<16x1xf32>
    %14 = arith.divf %12, %13 : vector<16x1xf32>
    %cst_13 = arith.constant 9.99999997E-7 : f32
    %15 = vector.broadcast %cst_13 : f32 to vector<16x1xf32>
    %16 = arith.addf %14, %15 : vector<16x1xf32>
    %17 = math.rsqrt %16 : vector<16x1xf32>
    %18 = vector.broadcast %17 : vector<16x1xf32> to vector<16x256xf32>
    %19 = arith.mulf %3, %18 : vector<16x256xf32>
    %20 = vector.broadcast %9 : vector<1x256xf32> to vector<16x256xf32>
    %21 = arith.mulf %19, %20 : vector<16x256xf32>
    %22 = arith.truncf %21 : vector<16x256xf32> to vector<16x256xbf16>
    %c0_14 = arith.constant 0 : index
    %c0_15 = arith.constant 0 : index
    %c0_16 = arith.constant 0 : index
    %23 = vector.load %arg6[%c0_14, %c0_15, %c0_16] : memref<1x256x768xbf16, #tpu.memory_space<vmem>>, vector<1x256x768xbf16>
    %24 = vector.shape_cast %23 : vector<1x256x768xbf16> to vector<256x768xbf16>
    %cst_17 = arith.constant dense<0.000000e+00> : vector<16x768xf32>
    %25 = tpu.matmul %22, %24, %cst_17 {dimension_numbers = #tpu.dot_dimension_numbers<[1], [0], [0], [1], [0, 0, 1, 1], [], []>} : vector<16x256xbf16>, vector<256x768xbf16>, vector<16x768xf32> -> vector<16x768xf32>
    %26 = vector.extract_strided_slice %25 {offsets = [0, 0], sizes = [8, 64], strides = [1, 1]} : vector<16x768xf32> to vector<8x64xf32>
    %27 = vector.extract_strided_slice %25 {offsets = [0, 256], sizes = [8, 64], strides = [1, 1]} : vector<16x768xf32> to vector<8x64xf32>
    %28 = vector.extract_strided_slice %25 {offsets = [0, 512], sizes = [8, 64], strides = [1, 1]} : vector<16x768xf32> to vector<8x64xf32>
    %29 = vector.extract_strided_slice %6 {offsets = [0, 0, 0], sizes = [1, 8, 8], strides = [1, 1, 1]} : vector<4x8x8xf32> to vector<1x8x8xf32>
    %30 = vector.shape_cast %29 : vector<1x8x8xf32> to vector<8x8xf32>
    %31 = arith.truncf %26 : vector<8x64xf32> to vector<8x64xbf16>
    %32 = arith.truncf %27 : vector<8x64xf32> to vector<8x64xbf16>
    %cst_18 = arith.constant dense<0.000000e+00> : vector<8x8xf32>
    %33 = tpu.matmul %31, %32, %cst_18 {dimension_numbers = #tpu.dot_dimension_numbers<[1], [1], [0], [0], [0, 0, 1, 0], [], []>} : vector<8x64xbf16>, vector<8x64xbf16>, vector<8x8xf32> -> vector<8x8xf32>
    %34 = arith.addf %33, %30 : vector<8x8xf32>
    %cst_19 = arith.constant dense<0xFF800000> : vector<8xf32>
    %35 = vector.multi_reduction <maximumf>, %34, %cst_19 [1] : vector<8x8xf32> to vector<8xf32>
    %36 = vector.shape_cast %35 : vector<8xf32> to vector<8x1xf32>
    %37 = vector.broadcast %36 : vector<8x1xf32> to vector<8x8xf32>
    %38 = arith.subf %34, %37 : vector<8x8xf32>
    %39 = math.exp %38 : vector<8x8xf32>
    %cst_20 = arith.constant dense<0.000000e+00> : vector<8xf32>
    %40 = vector.multi_reduction <add>, %39, %cst_20 [1] : vector<8x8xf32> to vector<8xf32>
    %41 = vector.shape_cast %40 : vector<8xf32> to vector<8x1xf32>
    %42 = tpu.reciprocal %41 : vector<8x1xf32> -> vector<8x1xf32>
    %43 = vector.broadcast %42 : vector<8x1xf32> to vector<8x8xf32>
    %44 = arith.mulf %39, %43 : vector<8x8xf32>
    %45 = arith.truncf %44 : vector<8x8xf32> to vector<8x8xbf16>
    %46 = arith.truncf %28 : vector<8x64xf32> to vector<8x64xbf16>
    %cst_21 = arith.constant dense<0.000000e+00> : vector<8x64xf32>
    %47 = tpu.matmul %45, %46, %cst_21 {dimension_numbers = #tpu.dot_dimension_numbers<[1], [0], [0], [1], [0, 0, 1, 1], [], []>} : vector<8x8xbf16>, vector<8x64xbf16>, vector<8x64xf32> -> vector<8x64xf32>
    %c0_22 = arith.constant 0 : index
    %c0_23 = arith.constant 0 : index
    %48 = vector.load %arg17[%c0_22, %c0_23] : memref<16x256xf32, #tpu.memory_space<vmem>>, vector<8x64xf32>
    tpu.vector_store %arg17[%c0_22, %c0_23], %47 {strides = array<i32>} : memref<16x256xf32, #tpu.memory_space<vmem>>, vector<8x64xf32>,
    %49 = vector.extract_strided_slice %25 {offsets = [0, 64], sizes = [8, 64], strides = [1, 1]} : vector<16x768xf32> to vector<8x64xf32>
    %50 = vector.extract_strided_slice %25 {offsets = [0, 320], sizes = [8, 64], strides = [1, 1]} : vector<16x768xf32> to vector<8x64xf32>
    %51 = vector.extract_strided_slice %25 {offsets = [0, 576], sizes = [8, 64], strides = [1, 1]} : vector<16x768xf32> to vector<8x64xf32>
    %52 = vector.extract_strided_slice %6 {offsets = [1, 0, 0], sizes = [1, 8, 8], strides = [1, 1, 1]} : vector<4x8x8xf32> to vector<1x8x8xf32>
    %53 = vector.shape_cast %52 : vector<1x8x8xf32> to vector<8x8xf32>
    %54 = arith.truncf %49 : vector<8x64xf32> to vector<8x64xbf16>
    %55 = arith.truncf %50 : vector<8x64xf32> to vector<8x64xbf16>
    %cst_24 = arith.constant dense<0.000000e+00> : vector<8x8xf32>
    %56 = tpu.matmul %54, %55, %cst_24 {dimension_numbers = #tpu.dot_dimension_numbers<[1], [1], [0], [0], [0, 0, 1, 0], [], []>} : vector<8x64xbf16>, vector<8x64xbf16>, vector<8x8xf32> -> vector<8x8xf32>
    %57 = arith.addf %56, %53 : vector<8x8xf32>
    %cst_25 = arith.constant dense<0xFF800000> : vector<8xf32>
    %58 = vector.multi_reduction <maximumf>, %57, %cst_25 [1] : vector<8x8xf32> to vector<8xf32>
    %59 = vector.shape_cast %58 : vector<8xf32> to vector<8x1xf32>
    %60 = vector.broadcast %59 : vector<8x1xf32> to vector<8x8xf32>
    %61 = arith.subf %57, %60 : vector<8x8xf32>
    %62 = math.exp %61 : vector<8x8xf32>
    %cst_26 = arith.constant dense<0.000000e+00> : vector<8xf32>
    %63 = vector.multi_reduction <add>, %62, %cst_26 [1] : vector<8x8xf32> to vector<8xf32>
    %64 = vector.shape_cast %63 : vector<8xf32> to vector<8x1xf32>
    %65 = tpu.reciprocal %64 : vector<8x1xf32> -> vector<8x1xf32>
    %66 = vector.broadcast %65 : vector<8x1xf32> to vector<8x8xf32>
    %67 = arith.mulf %62, %66 : vector<8x8xf32>
    %68 = arith.truncf %67 : vector<8x8xf32> to vector<8x8xbf16>
    %69 = arith.truncf %51 : vector<8x64xf32> to vector<8x64xbf16>
    %cst_27 = arith.constant dense<0.000000e+00> : vector<8x64xf32>
    %70 = tpu.matmul %68, %69, %cst_27 {dimension_numbers = #tpu.dot_dimension_numbers<[1], [0], [0], [1], [0, 0, 1, 1], [], []>} : vector<8x8xbf16>, vector<8x64xbf16>, vector<8x64xf32> -> vector<8x64xf32>
    %c0_28 = arith.constant 0 : index
    %c64 = arith.constant 64 : index
    %71 = vector.load %arg17[%c0_28, %c64] : memref<16x256xf32, #tpu.memory_space<vmem>>, vector<8x64xf32>
    tpu.vector_store %arg17[%c0_28, %c64], %70 {strides = array<i32>} : memref<16x256xf32, #tpu.memory_space<vmem>>, vector<8x64xf32>,
    %72 = vector.extract_strided_slice %25 {offsets = [0, 128], sizes = [8, 64], strides = [1, 1]} : vector<16x768xf32> to vector<8x64xf32>
    %73 = vector.extract_strided_slice %25 {offsets = [0, 384], sizes = [8, 64], strides = [1, 1]} : vector<16x768xf32> to vector<8x64xf32>
    %74 = vector.extract_strided_slice %25 {offsets = [0, 640], sizes = [8, 64], strides = [1, 1]} : vector<16x768xf32> to vector<8x64xf32>
    %75 = vector.extract_strided_slice %6 {offsets = [2, 0, 0], sizes = [1, 8, 8], strides = [1, 1, 1]} : vector<4x8x8xf32> to vector<1x8x8xf32>
    %76 = vector.shape_cast %75 : vector<1x8x8xf32> to vector<8x8xf32>
    %77 = arith.truncf %72 : vector<8x64xf32> to vector<8x64xbf16>
    %78 = arith.truncf %73 : vector<8x64xf32> to vector<8x64xbf16>
    %cst_29 = arith.constant dense<0.000000e+00> : vector<8x8xf32>
    %79 = tpu.matmul %77, %78, %cst_29 {dimension_numbers = #tpu.dot_dimension_numbers<[1], [1], [0], [0], [0, 0, 1, 0], [], []>} : vector<8x64xbf16>, vector<8x64xbf16>, vector<8x8xf32> -> vector<8x8xf32>
    %80 = arith.addf %79, %76 : vector<8x8xf32>
    %cst_30 = arith.constant dense<0xFF800000> : vector<8xf32>
    %81 = vector.multi_reduction <maximumf>, %80, %cst_30 [1] : vector<8x8xf32> to vector<8xf32>
    %82 = vector.shape_cast %81 : vector<8xf32> to vector<8x1xf32>
    %83 = vector.broadcast %82 : vector<8x1xf32> to vector<8x8xf32>
    %84 = arith.subf %80, %83 : vector<8x8xf32>
    %85 = math.exp %84 : vector<8x8xf32>
    %cst_31 = arith.constant dense<0.000000e+00> : vector<8xf32>
    %86 = vector.multi_reduction <add>, %85, %cst_31 [1] : vector<8x8xf32> to vector<8xf32>
    %87 = vector.shape_cast %86 : vector<8xf32> to vector<8x1xf32>
    %88 = tpu.reciprocal %87 : vector<8x1xf32> -> vector<8x1xf32>
    %89 = vector.broadcast %88 : vector<8x1xf32> to vector<8x8xf32>
    %90 = arith.mulf %85, %89 : vector<8x8xf32>
    %91 = arith.truncf %90 : vector<8x8xf32> to vector<8x8xbf16>
    %92 = arith.truncf %74 : vector<8x64xf32> to vector<8x64xbf16>
    %cst_32 = arith.constant dense<0.000000e+00> : vector<8x64xf32>
    %93 = tpu.matmul %91, %92, %cst_32 {dimension_numbers = #tpu.dot_dimension_numbers<[1], [0], [0], [1], [0, 0, 1, 1], [], []>} : vector<8x8xbf16>, vector<8x64xbf16>, vector<8x64xf32> -> vector<8x64xf32>
    %c0_33 = arith.constant 0 : index
    %c128 = arith.constant 128 : index
    %94 = vector.load %arg17[%c0_33, %c128] : memref<16x256xf32, #tpu.memory_space<vmem>>, vector<8x64xf32>
    tpu.vector_store %arg17[%c0_33, %c128], %93 {strides = array<i32>} : memref<16x256xf32, #tpu.memory_space<vmem>>, vector<8x64xf32>,
    %95 = vector.extract_strided_slice %25 {offsets = [0, 192], sizes = [8, 64], strides = [1, 1]} : vector<16x768xf32> to vector<8x64xf32>
    %96 = vector.extract_strided_slice %25 {offsets = [0, 448], sizes = [8, 64], strides = [1, 1]} : vector<16x768xf32> to vector<8x64xf32>
    %97 = vector.extract_strided_slice %25 {offsets = [0, 704], sizes = [8, 64], strides = [1, 1]} : vector<16x768xf32> to vector<8x64xf32>
    %98 = vector.extract_strided_slice %6 {offsets = [3, 0, 0], sizes = [1, 8, 8], strides = [1, 1, 1]} : vector<4x8x8xf32> to vector<1x8x8xf32>
    %99 = vector.shape_cast %98 : vector<1x8x8xf32> to vector<8x8xf32>
    %100 = arith.truncf %95 : vector<8x64xf32> to vector<8x64xbf16>
    %101 = arith.truncf %96 : vector<8x64xf32> to vector<8x64xbf16>
    %cst_34 = arith.constant dense<0.000000e+00> : vector<8x8xf32>
    %102 = tpu.matmul %100, %101, %cst_34 {dimension_numbers = #tpu.dot_dimension_numbers<[1], [1], [0], [0], [0, 0, 1, 0], [], []>} : vector<8x64xbf16>, vector<8x64xbf16>, vector<8x8xf32> -> vector<8x8xf32>
    %103 = arith.addf %102, %99 : vector<8x8xf32>
    %cst_35 = arith.constant dense<0xFF800000> : vector<8xf32>
    %104 = vector.multi_reduction <maximumf>, %103, %cst_35 [1] : vector<8x8xf32> to vector<8xf32>
    %105 = vector.shape_cast %104 : vector<8xf32> to vector<8x1xf32>
    %106 = vector.broadcast %105 : vector<8x1xf32> to vector<8x8xf32>
    %107 = arith.subf %103, %106 : vector<8x8xf32>
    %108 = math.exp %107 : vector<8x8xf32>
    %cst_36 = arith.constant dense<0.000000e+00> : vector<8xf32>
    %109 = vector.multi_reduction <add>, %108, %cst_36 [1] : vector<8x8xf32> to vector<8xf32>
    %110 = vector.shape_cast %109 : vector<8xf32> to vector<8x1xf32>
    %111 = tpu.reciprocal %110 : vector<8x1xf32> -> vector<8x1xf32>
    %112 = vector.broadcast %111 : vector<8x1xf32> to vector<8x8xf32>
    %113 = arith.mulf %108, %112 : vector<8x8xf32>
    %114 = arith.truncf %113 : vector<8x8xf32> to vector<8x8xbf16>
    %115 = arith.truncf %97 : vector<8x64xf32> to vector<8x64xbf16>
    %cst_37 = arith.constant dense<0.000000e+00> : vector<8x64xf32>
    %116 = tpu.matmul %114, %115, %cst_37 {dimension_numbers = #tpu.dot_dimension_numbers<[1], [0], [0], [1], [0, 0, 1, 1], [], []>} : vector<8x8xbf16>, vector<8x64xbf16>, vector<8x64xf32> -> vector<8x64xf32>
    %c0_38 = arith.constant 0 : index
    %c192 = arith.constant 192 : index
    %117 = vector.load %arg17[%c0_38, %c192] : memref<16x256xf32, #tpu.memory_space<vmem>>, vector<8x64xf32>
    tpu.vector_store %arg17[%c0_38, %c192], %116 {strides = array<i32>} : memref<16x256xf32, #tpu.memory_space<vmem>>, vector<8x64xf32>,
    %118 = vector.extract_strided_slice %25 {offsets = [8, 0], sizes = [8, 64], strides = [1, 1]} : vector<16x768xf32> to vector<8x64xf32>
    %119 = vector.extract_strided_slice %25 {offsets = [8, 256], sizes = [8, 64], strides = [1, 1]} : vector<16x768xf32> to vector<8x64xf32>
    %120 = vector.extract_strided_slice %25 {offsets = [8, 512], sizes = [8, 64], strides = [1, 1]} : vector<16x768xf32> to vector<8x64xf32>
    %121 = vector.extract_strided_slice %6 {offsets = [0, 0, 0], sizes = [1, 8, 8], strides = [1, 1, 1]} : vector<4x8x8xf32> to vector<1x8x8xf32>
    %122 = vector.shape_cast %121 : vector<1x8x8xf32> to vector<8x8xf32>
    %123 = arith.truncf %118 : vector<8x64xf32> to vector<8x64xbf16>
    %124 = arith.truncf %119 : vector<8x64xf32> to vector<8x64xbf16>
    %cst_39 = arith.constant dense<0.000000e+00> : vector<8x8xf32>
    %125 = tpu.matmul %123, %124, %cst_39 {dimension_numbers = #tpu.dot_dimension_numbers<[1], [1], [0], [0], [0, 0, 1, 0], [], []>} : vector<8x64xbf16>, vector<8x64xbf16>, vector<8x8xf32> -> vector<8x8xf32>
    %126 = arith.addf %125, %122 : vector<8x8xf32>
    %cst_40 = arith.constant dense<0xFF800000> : vector<8xf32>
    %127 = vector.multi_reduction <maximumf>, %126, %cst_40 [1] : vector<8x8xf32> to vector<8xf32>
    %128 = vector.shape_cast %127 : vector<8xf32> to vector<8x1xf32>
    %129 = vector.broadcast %128 : vector<8x1xf32> to vector<8x8xf32>
    %130 = arith.subf %126, %129 : vector<8x8xf32>
    %131 = math.exp %130 : vector<8x8xf32>
    %cst_41 = arith.constant dense<0.000000e+00> : vector<8xf32>
    %132 = vector.multi_reduction <add>, %131, %cst_41 [1] : vector<8x8xf32> to vector<8xf32>
    %133 = vector.shape_cast %132 : vector<8xf32> to vector<8x1xf32>
    %134 = tpu.reciprocal %133 : vector<8x1xf32> -> vector<8x1xf32>
    %135 = vector.broadcast %134 : vector<8x1xf32> to vector<8x8xf32>
    %136 = arith.mulf %131, %135 : vector<8x8xf32>
    %137 = arith.truncf %136 : vector<8x8xf32> to vector<8x8xbf16>
    %138 = arith.truncf %120 : vector<8x64xf32> to vector<8x64xbf16>
    %cst_42 = arith.constant dense<0.000000e+00> : vector<8x64xf32>
    %139 = tpu.matmul %137, %138, %cst_42 {dimension_numbers = #tpu.dot_dimension_numbers<[1], [0], [0], [1], [0, 0, 1, 1], [], []>} : vector<8x8xbf16>, vector<8x64xbf16>, vector<8x64xf32> -> vector<8x64xf32>
    %c8 = arith.constant 8 : index
    %c0_43 = arith.constant 0 : index
    %140 = vector.load %arg17[%c8, %c0_43] : memref<16x256xf32, #tpu.memory_space<vmem>>, vector<8x64xf32>
    tpu.vector_store %arg17[%c8, %c0_43], %139 {strides = array<i32>} : memref<16x256xf32, #tpu.memory_space<vmem>>, vector<8x64xf32>,
    %141 = vector.extract_strided_slice %25 {offsets = [8, 64], sizes = [8, 64], strides = [1, 1]} : vector<16x768xf32> to vector<8x64xf32>
    %142 = vector.extract_strided_slice %25 {offsets = [8, 320], sizes = [8, 64], strides = [1, 1]} : vector<16x768xf32> to vector<8x64xf32>
    %143 = vector.extract_strided_slice %25 {offsets = [8, 576], sizes = [8, 64], strides = [1, 1]} : vector<16x768xf32> to vector<8x64xf32>
    %144 = vector.extract_strided_slice %6 {offsets = [1, 0, 0], sizes = [1, 8, 8], strides = [1, 1, 1]} : vector<4x8x8xf32> to vector<1x8x8xf32>
    %145 = vector.shape_cast %144 : vector<1x8x8xf32> to vector<8x8xf32>
    %146 = arith.truncf %141 : vector<8x64xf32> to vector<8x64xbf16>
    %147 = arith.truncf %142 : vector<8x64xf32> to vector<8x64xbf16>
    %cst_44 = arith.constant dense<0.000000e+00> : vector<8x8xf32>
    %148 = tpu.matmul %146, %147, %cst_44 {dimension_numbers = #tpu.dot_dimension_numbers<[1], [1], [0], [0], [0, 0, 1, 0], [], []>} : vector<8x64xbf16>, vector<8x64xbf16>, vector<8x8xf32> -> vector<8x8xf32>
    %149 = arith.addf %148, %145 : vector<8x8xf32>
    %cst_45 = arith.constant dense<0xFF800000> : vector<8xf32>
    %150 = vector.multi_reduction <maximumf>, %149, %cst_45 [1] : vector<8x8xf32> to vector<8xf32>
    %151 = vector.shape_cast %150 : vector<8xf32> to vector<8x1xf32>
    %152 = vector.broadcast %151 : vector<8x1xf32> to vector<8x8xf32>
    %153 = arith.subf %149, %152 : vector<8x8xf32>
    %154 = math.exp %153 : vector<8x8xf32>
    %cst_46 = arith.constant dense<0.000000e+00> : vector<8xf32>
    %155 = vector.multi_reduction <add>, %154, %cst_46 [1] : vector<8x8xf32> to vector<8xf32>
    %156 = vector.shape_cast %155 : vector<8xf32> to vector<8x1xf32>
    %157 = tpu.reciprocal %156 : vector<8x1xf32> -> vector<8x1xf32>
    %158 = vector.broadcast %157 : vector<8x1xf32> to vector<8x8xf32>
    %159 = arith.mulf %154, %158 : vector<8x8xf32>
    %160 = arith.truncf %159 : vector<8x8xf32> to vector<8x8xbf16>
    %161 = arith.truncf %143 : vector<8x64xf32> to vector<8x64xbf16>
    %cst_47 = arith.constant dense<0.000000e+00> : vector<8x64xf32>
    %162 = tpu.matmul %160, %161, %cst_47 {dimension_numbers = #tpu.dot_dimension_numbers<[1], [0], [0], [1], [0, 0, 1, 1], [], []>} : vector<8x8xbf16>, vector<8x64xbf16>, vector<8x64xf32> -> vector<8x64xf32>
    %c8_48 = arith.constant 8 : index
    %c64_49 = arith.constant 64 : index
    %163 = vector.load %arg17[%c8_48, %c64_49] : memref<16x256xf32, #tpu.memory_space<vmem>>, vector<8x64xf32>
    tpu.vector_store %arg17[%c8_48, %c64_49], %162 {strides = array<i32>} : memref<16x256xf32, #tpu.memory_space<vmem>>, vector<8x64xf32>,
    %164 = vector.extract_strided_slice %25 {offsets = [8, 128], sizes = [8, 64], strides = [1, 1]} : vector<16x768xf32> to vector<8x64xf32>
    %165 = vector.extract_strided_slice %25 {offsets = [8, 384], sizes = [8, 64], strides = [1, 1]} : vector<16x768xf32> to vector<8x64xf32>
    %166 = vector.extract_strided_slice %25 {offsets = [8, 640], sizes = [8, 64], strides = [1, 1]} : vector<16x768xf32> to vector<8x64xf32>
    %167 = vector.extract_strided_slice %6 {offsets = [2, 0, 0], sizes = [1, 8, 8], strides = [1, 1, 1]} : vector<4x8x8xf32> to vector<1x8x8xf32>
    %168 = vector.shape_cast %167 : vector<1x8x8xf32> to vector<8x8xf32>
    %169 = arith.truncf %164 : vector<8x64xf32> to vector<8x64xbf16>
    %170 = arith.truncf %165 : vector<8x64xf32> to vector<8x64xbf16>
    %cst_50 = arith.constant dense<0.000000e+00> : vector<8x8xf32>
    %171 = tpu.matmul %169, %170, %cst_50 {dimension_numbers = #tpu.dot_dimension_numbers<[1], [1], [0], [0], [0, 0, 1, 0], [], []>} : vector<8x64xbf16>, vector<8x64xbf16>, vector<8x8xf32> -> vector<8x8xf32>
    %172 = arith.addf %171, %168 : vector<8x8xf32>
    %cst_51 = arith.constant dense<0xFF800000> : vector<8xf32>
    %173 = vector.multi_reduction <maximumf>, %172, %cst_51 [1] : vector<8x8xf32> to vector<8xf32>
    %174 = vector.shape_cast %173 : vector<8xf32> to vector<8x1xf32>
    %175 = vector.broadcast %174 : vector<8x1xf32> to vector<8x8xf32>
    %176 = arith.subf %172, %175 : vector<8x8xf32>
    %177 = math.exp %176 : vector<8x8xf32>
    %cst_52 = arith.constant dense<0.000000e+00> : vector<8xf32>
    %178 = vector.multi_reduction <add>, %177, %cst_52 [1] : vector<8x8xf32> to vector<8xf32>
    %179 = vector.shape_cast %178 : vector<8xf32> to vector<8x1xf32>
    %180 = tpu.reciprocal %179 : vector<8x1xf32> -> vector<8x1xf32>
    %181 = vector.broadcast %180 : vector<8x1xf32> to vector<8x8xf32>
    %182 = arith.mulf %177, %181 : vector<8x8xf32>
    %183 = arith.truncf %182 : vector<8x8xf32> to vector<8x8xbf16>
    %184 = arith.truncf %166 : vector<8x64xf32> to vector<8x64xbf16>
    %cst_53 = arith.constant dense<0.000000e+00> : vector<8x64xf32>
    %185 = tpu.matmul %183, %184, %cst_53 {dimension_numbers = #tpu.dot_dimension_numbers<[1], [0], [0], [1], [0, 0, 1, 1], [], []>} : vector<8x8xbf16>, vector<8x64xbf16>, vector<8x64xf32> -> vector<8x64xf32>
    %c8_54 = arith.constant 8 : index
    %c128_55 = arith.constant 128 : index
    %186 = vector.load %arg17[%c8_54, %c128_55] : memref<16x256xf32, #tpu.memory_space<vmem>>, vector<8x64xf32>
    tpu.vector_store %arg17[%c8_54, %c128_55], %185 {strides = array<i32>} : memref<16x256xf32, #tpu.memory_space<vmem>>, vector<8x64xf32>,
    %187 = vector.extract_strided_slice %25 {offsets = [8, 192], sizes = [8, 64], strides = [1, 1]} : vector<16x768xf32> to vector<8x64xf32>
    %188 = vector.extract_strided_slice %25 {offsets = [8, 448], sizes = [8, 64], strides = [1, 1]} : vector<16x768xf32> to vector<8x64xf32>
    %189 = vector.extract_strided_slice %25 {offsets = [8, 704], sizes = [8, 64], strides = [1, 1]} : vector<16x768xf32> to vector<8x64xf32>
    %190 = vector.extract_strided_slice %6 {offsets = [3, 0, 0], sizes = [1, 8, 8], strides = [1, 1, 1]} : vector<4x8x8xf32> to vector<1x8x8xf32>
    %191 = vector.shape_cast %190 : vector<1x8x8xf32> to vector<8x8xf32>
    %192 = arith.truncf %187 : vector<8x64xf32> to vector<8x64xbf16>
    %193 = arith.truncf %188 : vector<8x64xf32> to vector<8x64xbf16>
    %cst_56 = arith.constant dense<0.000000e+00> : vector<8x8xf32>
    %194 = tpu.matmul %192, %193, %cst_56 {dimension_numbers = #tpu.dot_dimension_numbers<[1], [1], [0], [0], [0, 0, 1, 0], [], []>} : vector<8x64xbf16>, vector<8x64xbf16>, vector<8x8xf32> -> vector<8x8xf32>
    %195 = arith.addf %194, %191 : vector<8x8xf32>
    %cst_57 = arith.constant dense<0xFF800000> : vector<8xf32>
    %196 = vector.multi_reduction <maximumf>, %195, %cst_57 [1] : vector<8x8xf32> to vector<8xf32>
    %197 = vector.shape_cast %196 : vector<8xf32> to vector<8x1xf32>
    %198 = vector.broadcast %197 : vector<8x1xf32> to vector<8x8xf32>
    %199 = arith.subf %195, %198 : vector<8x8xf32>
    %200 = math.exp %199 : vector<8x8xf32>
    %cst_58 = arith.constant dense<0.000000e+00> : vector<8xf32>
    %201 = vector.multi_reduction <add>, %200, %cst_58 [1] : vector<8x8xf32> to vector<8xf32>
    %202 = vector.shape_cast %201 : vector<8xf32> to vector<8x1xf32>
    %203 = tpu.reciprocal %202 : vector<8x1xf32> -> vector<8x1xf32>
    %204 = vector.broadcast %203 : vector<8x1xf32> to vector<8x8xf32>
    %205 = arith.mulf %200, %204 : vector<8x8xf32>
    %206 = arith.truncf %205 : vector<8x8xf32> to vector<8x8xbf16>
    %207 = arith.truncf %189 : vector<8x64xf32> to vector<8x64xbf16>
    %cst_59 = arith.constant dense<0.000000e+00> : vector<8x64xf32>
    %208 = tpu.matmul %206, %207, %cst_59 {dimension_numbers = #tpu.dot_dimension_numbers<[1], [0], [0], [1], [0, 0, 1, 1], [], []>} : vector<8x8xbf16>, vector<8x64xbf16>, vector<8x64xf32> -> vector<8x64xf32>
    %c8_60 = arith.constant 8 : index
    %c192_61 = arith.constant 192 : index
    %209 = vector.load %arg17[%c8_60, %c192_61] : memref<16x256xf32, #tpu.memory_space<vmem>>, vector<8x64xf32>
    tpu.vector_store %arg17[%c8_60, %c192_61], %208 {strides = array<i32>} : memref<16x256xf32, #tpu.memory_space<vmem>>, vector<8x64xf32>,
    %c0_62 = arith.constant 0 : index
    %c0_63 = arith.constant 0 : index
    %210 = vector.load %arg17[%c0_62, %c0_63] : memref<16x256xf32, #tpu.memory_space<vmem>>, vector<16x256xf32>
    %211 = arith.truncf %210 : vector<16x256xf32> to vector<16x256xbf16>
    %c0_64 = arith.constant 0 : index
    %c0_65 = arith.constant 0 : index
    %c0_66 = arith.constant 0 : index
    %212 = vector.load %arg7[%c0_64, %c0_65, %c0_66] : memref<1x256x256xbf16, #tpu.memory_space<vmem>>, vector<1x256x256xbf16>
    %213 = vector.shape_cast %212 : vector<1x256x256xbf16> to vector<256x256xbf16>
    %cst_67 = arith.constant dense<0.000000e+00> : vector<16x256xf32>
    %214 = tpu.matmul %211, %213, %cst_67 {dimension_numbers = #tpu.dot_dimension_numbers<[1], [0], [0], [1], [0, 0, 1, 1], [], []>} : vector<16x256xbf16>, vector<256x256xbf16>, vector<16x256xf32> -> vector<16x256xf32>
    %215 = arith.addf %3, %214 : vector<16x256xf32>
    %216 = vector.extract_strided_slice %5 {offsets = [1, 0], sizes = [1, 256], strides = [1, 1]} : vector<3x256xf32> to vector<1x256xf32>
    %217 = arith.mulf %215, %215 : vector<16x256xf32>
    %cst_68 = arith.constant dense<0.000000e+00> : vector<16xf32>
    %218 = vector.multi_reduction <add>, %217, %cst_68 [1] : vector<16x256xf32> to vector<16xf32>
    %219 = vector.shape_cast %218 : vector<16xf32> to vector<16x1xf32>
    %cst_69 = arith.constant 2.560000e+02 : f32
    %220 = vector.broadcast %cst_69 : f32 to vector<16x1xf32>
    %221 = arith.divf %219, %220 : vector<16x1xf32>
    %cst_70 = arith.constant 9.99999997E-7 : f32
    %222 = vector.broadcast %cst_70 : f32 to vector<16x1xf32>
    %223 = arith.addf %221, %222 : vector<16x1xf32>
    %224 = math.rsqrt %223 : vector<16x1xf32>
    %225 = vector.broadcast %224 : vector<16x1xf32> to vector<16x256xf32>
    %226 = arith.mulf %215, %225 : vector<16x256xf32>
    %227 = vector.broadcast %216 : vector<1x256xf32> to vector<16x256xf32>
    %228 = arith.mulf %226, %227 : vector<16x256xf32>
    %229 = arith.truncf %228 : vector<16x256xf32> to vector<16x256xbf16>
    %c0_71 = arith.constant 0 : index
    %c0_72 = arith.constant 0 : index
    %c0_73 = arith.constant 0 : index
    %230 = vector.load %arg8[%c0_71, %c0_72, %c0_73] : memref<1x256x256xbf16, #tpu.memory_space<vmem>>, vector<1x256x256xbf16>
    %231 = vector.shape_cast %230 : vector<1x256x256xbf16> to vector<256x256xbf16>
    %cst_74 = arith.constant dense<0.000000e+00> : vector<16x256xf32>
    %232 = tpu.matmul %229, %231, %cst_74 {dimension_numbers = #tpu.dot_dimension_numbers<[1], [0], [0], [1], [0, 0, 1, 1], [], []>} : vector<16x256xbf16>, vector<256x256xbf16>, vector<16x256xf32> -> vector<16x256xf32>
    %c0_75 = arith.constant 0 : index
    %c0_76 = arith.constant 0 : index
    %c0_77 = arith.constant 0 : index
    %233 = vector.load %arg9[%c0_75, %c0_76, %c0_77] : memref<1x256x512xbf16, #tpu.memory_space<vmem>>, vector<1x256x512xbf16>
    %234 = vector.shape_cast %233 : vector<1x256x512xbf16> to vector<256x512xbf16>
    %cst_78 = arith.constant dense<0.000000e+00> : vector<16x512xf32>
    %235 = tpu.matmul %8, %234, %cst_78 {dimension_numbers = #tpu.dot_dimension_numbers<[1], [0], [0], [1], [0, 0, 1, 1], [], []>} : vector<16x256xbf16>, vector<256x512xbf16>, vector<16x512xf32> -> vector<16x512xf32>
    %236 = vector.extract_strided_slice %7 {offsets = [0, 0], sizes = [1, 8], strides = [1, 1]} : vector<2x8xf32> to vector<1x8xf32>
    %237 = vector.extract_strided_slice %232 {offsets = [0, 0], sizes = [8, 64], strides = [1, 1]} : vector<16x256xf32> to vector<8x64xf32>
    %238 = vector.extract_strided_slice %235 {offsets = [0, 0], sizes = [8, 64], strides = [1, 1]} : vector<16x512xf32> to vector<8x64xf32>
    %239 = vector.extract_strided_slice %235 {offsets = [0, 256], sizes = [8, 64], strides = [1, 1]} : vector<16x512xf32> to vector<8x64xf32>
    %240 = arith.truncf %237 : vector<8x64xf32> to vector<8x64xbf16>
    %241 = arith.truncf %238 : vector<8x64xf32> to vector<8x64xbf16>
    %cst_79 = arith.constant dense<0.000000e+00> : vector<8x8xf32>
    %242 = tpu.matmul %240, %241, %cst_79 {dimension_numbers = #tpu.dot_dimension_numbers<[1], [1], [0], [0], [0, 0, 1, 0], [], []>} : vector<8x64xbf16>, vector<8x64xbf16>, vector<8x8xf32> -> vector<8x8xf32>
    %243 = vector.broadcast %236 : vector<1x8xf32> to vector<8x8xf32>
    %244 = arith.addf %242, %243 : vector<8x8xf32>
    %cst_80 = arith.constant dense<0xFF800000> : vector<8xf32>
    %245 = vector.multi_reduction <maximumf>, %244, %cst_80 [1] : vector<8x8xf32> to vector<8xf32>
    %246 = vector.shape_cast %245 : vector<8xf32> to vector<8x1xf32>
    %247 = vector.broadcast %246 : vector<8x1xf32> to vector<8x8xf32>
    %248 = arith.subf %244, %247 : vector<8x8xf32>
    %249 = math.exp %248 : vector<8x8xf32>
    %cst_81 = arith.constant dense<0.000000e+00> : vector<8xf32>
    %250 = vector.multi_reduction <add>, %249, %cst_81 [1] : vector<8x8xf32> to vector<8xf32>
    %251 = vector.shape_cast %250 : vector<8xf32> to vector<8x1xf32>
    %252 = tpu.reciprocal %251 : vector<8x1xf32> -> vector<8x1xf32>
    %253 = vector.broadcast %252 : vector<8x1xf32> to vector<8x8xf32>
    %254 = arith.mulf %249, %253 : vector<8x8xf32>
    %255 = arith.truncf %254 : vector<8x8xf32> to vector<8x8xbf16>
    %256 = arith.truncf %239 : vector<8x64xf32> to vector<8x64xbf16>
    %cst_82 = arith.constant dense<0.000000e+00> : vector<8x64xf32>
    %257 = tpu.matmul %255, %256, %cst_82 {dimension_numbers = #tpu.dot_dimension_numbers<[1], [0], [0], [1], [0, 0, 1, 1], [], []>} : vector<8x8xbf16>, vector<8x64xbf16>, vector<8x64xf32> -> vector<8x64xf32>
    %c0_83 = arith.constant 0 : index
    %c0_84 = arith.constant 0 : index
    %258 = vector.load %arg17[%c0_83, %c0_84] : memref<16x256xf32, #tpu.memory_space<vmem>>, vector<8x64xf32>
    tpu.vector_store %arg17[%c0_83, %c0_84], %257 {strides = array<i32>} : memref<16x256xf32, #tpu.memory_space<vmem>>, vector<8x64xf32>,
    %259 = vector.extract_strided_slice %232 {offsets = [0, 64], sizes = [8, 64], strides = [1, 1]} : vector<16x256xf32> to vector<8x64xf32>
    %260 = vector.extract_strided_slice %235 {offsets = [0, 64], sizes = [8, 64], strides = [1, 1]} : vector<16x512xf32> to vector<8x64xf32>
    %261 = vector.extract_strided_slice %235 {offsets = [0, 320], sizes = [8, 64], strides = [1, 1]} : vector<16x512xf32> to vector<8x64xf32>
    %262 = arith.truncf %259 : vector<8x64xf32> to vector<8x64xbf16>
    %263 = arith.truncf %260 : vector<8x64xf32> to vector<8x64xbf16>
    %cst_85 = arith.constant dense<0.000000e+00> : vector<8x8xf32>
    %264 = tpu.matmul %262, %263, %cst_85 {dimension_numbers = #tpu.dot_dimension_numbers<[1], [1], [0], [0], [0, 0, 1, 0], [], []>} : vector<8x64xbf16>, vector<8x64xbf16>, vector<8x8xf32> -> vector<8x8xf32>
    %265 = vector.broadcast %236 : vector<1x8xf32> to vector<8x8xf32>
    %266 = arith.addf %264, %265 : vector<8x8xf32>
    %cst_86 = arith.constant dense<0xFF800000> : vector<8xf32>
    %267 = vector.multi_reduction <maximumf>, %266, %cst_86 [1] : vector<8x8xf32> to vector<8xf32>
    %268 = vector.shape_cast %267 : vector<8xf32> to vector<8x1xf32>
    %269 = vector.broadcast %268 : vector<8x1xf32> to vector<8x8xf32>
    %270 = arith.subf %266, %269 : vector<8x8xf32>
    %271 = math.exp %270 : vector<8x8xf32>
    %cst_87 = arith.constant dense<0.000000e+00> : vector<8xf32>
    %272 = vector.multi_reduction <add>, %271, %cst_87 [1] : vector<8x8xf32> to vector<8xf32>
    %273 = vector.shape_cast %272 : vector<8xf32> to vector<8x1xf32>
    %274 = tpu.reciprocal %273 : vector<8x1xf32> -> vector<8x1xf32>
    %275 = vector.broadcast %274 : vector<8x1xf32> to vector<8x8xf32>
    %276 = arith.mulf %271, %275 : vector<8x8xf32>
    %277 = arith.truncf %276 : vector<8x8xf32> to vector<8x8xbf16>
    %278 = arith.truncf %261 : vector<8x64xf32> to vector<8x64xbf16>
    %cst_88 = arith.constant dense<0.000000e+00> : vector<8x64xf32>
    %279 = tpu.matmul %277, %278, %cst_88 {dimension_numbers = #tpu.dot_dimension_numbers<[1], [0], [0], [1], [0, 0, 1, 1], [], []>} : vector<8x8xbf16>, vector<8x64xbf16>, vector<8x64xf32> -> vector<8x64xf32>
    %c0_89 = arith.constant 0 : index
    %c64_90 = arith.constant 64 : index
    %280 = vector.load %arg17[%c0_89, %c64_90] : memref<16x256xf32, #tpu.memory_space<vmem>>, vector<8x64xf32>
    tpu.vector_store %arg17[%c0_89, %c64_90], %279 {strides = array<i32>} : memref<16x256xf32, #tpu.memory_space<vmem>>, vector<8x64xf32>,
    %281 = vector.extract_strided_slice %232 {offsets = [0, 128], sizes = [8, 64], strides = [1, 1]} : vector<16x256xf32> to vector<8x64xf32>
    %282 = vector.extract_strided_slice %235 {offsets = [0, 128], sizes = [8, 64], strides = [1, 1]} : vector<16x512xf32> to vector<8x64xf32>
    %283 = vector.extract_strided_slice %235 {offsets = [0, 384], sizes = [8, 64], strides = [1, 1]} : vector<16x512xf32> to vector<8x64xf32>
    %284 = arith.truncf %281 : vector<8x64xf32> to vector<8x64xbf16>
    %285 = arith.truncf %282 : vector<8x64xf32> to vector<8x64xbf16>
    %cst_91 = arith.constant dense<0.000000e+00> : vector<8x8xf32>
    %286 = tpu.matmul %284, %285, %cst_91 {dimension_numbers = #tpu.dot_dimension_numbers<[1], [1], [0], [0], [0, 0, 1, 0], [], []>} : vector<8x64xbf16>, vector<8x64xbf16>, vector<8x8xf32> -> vector<8x8xf32>
    %287 = vector.broadcast %236 : vector<1x8xf32> to vector<8x8xf32>
    %288 = arith.addf %286, %287 : vector<8x8xf32>
    %cst_92 = arith.constant dense<0xFF800000> : vector<8xf32>
    %289 = vector.multi_reduction <maximumf>, %288, %cst_92 [1] : vector<8x8xf32> to vector<8xf32>
    %290 = vector.shape_cast %289 : vector<8xf32> to vector<8x1xf32>
    %291 = vector.broadcast %290 : vector<8x1xf32> to vector<8x8xf32>
    %292 = arith.subf %288, %291 : vector<8x8xf32>
    %293 = math.exp %292 : vector<8x8xf32>
    %cst_93 = arith.constant dense<0.000000e+00> : vector<8xf32>
    %294 = vector.multi_reduction <add>, %293, %cst_93 [1] : vector<8x8xf32> to vector<8xf32>
    %295 = vector.shape_cast %294 : vector<8xf32> to vector<8x1xf32>
    %296 = tpu.reciprocal %295 : vector<8x1xf32> -> vector<8x1xf32>
    %297 = vector.broadcast %296 : vector<8x1xf32> to vector<8x8xf32>
    %298 = arith.mulf %293, %297 : vector<8x8xf32>
    %299 = arith.truncf %298 : vector<8x8xf32> to vector<8x8xbf16>
    %300 = arith.truncf %283 : vector<8x64xf32> to vector<8x64xbf16>
    %cst_94 = arith.constant dense<0.000000e+00> : vector<8x64xf32>
    %301 = tpu.matmul %299, %300, %cst_94 {dimension_numbers = #tpu.dot_dimension_numbers<[1], [0], [0], [1], [0, 0, 1, 1], [], []>} : vector<8x8xbf16>, vector<8x64xbf16>, vector<8x64xf32> -> vector<8x64xf32>
    %c0_95 = arith.constant 0 : index
    %c128_96 = arith.constant 128 : index
    %302 = vector.load %arg17[%c0_95, %c128_96] : memref<16x256xf32, #tpu.memory_space<vmem>>, vector<8x64xf32>
    tpu.vector_store %arg17[%c0_95, %c128_96], %301 {strides = array<i32>} : memref<16x256xf32, #tpu.memory_space<vmem>>, vector<8x64xf32>,
    %303 = vector.extract_strided_slice %232 {offsets = [0, 192], sizes = [8, 64], strides = [1, 1]} : vector<16x256xf32> to vector<8x64xf32>
    %304 = vector.extract_strided_slice %235 {offsets = [0, 192], sizes = [8, 64], strides = [1, 1]} : vector<16x512xf32> to vector<8x64xf32>
    %305 = vector.extract_strided_slice %235 {offsets = [0, 448], sizes = [8, 64], strides = [1, 1]} : vector<16x512xf32> to vector<8x64xf32>
    %306 = arith.truncf %303 : vector<8x64xf32> to vector<8x64xbf16>
    %307 = arith.truncf %304 : vector<8x64xf32> to vector<8x64xbf16>
    %cst_97 = arith.constant dense<0.000000e+00> : vector<8x8xf32>
    %308 = tpu.matmul %306, %307, %cst_97 {dimension_numbers = #tpu.dot_dimension_numbers<[1], [1], [0], [0], [0, 0, 1, 0], [], []>} : vector<8x64xbf16>, vector<8x64xbf16>, vector<8x8xf32> -> vector<8x8xf32>
    %309 = vector.broadcast %236 : vector<1x8xf32> to vector<8x8xf32>
    %310 = arith.addf %308, %309 : vector<8x8xf32>
    %cst_98 = arith.constant dense<0xFF800000> : vector<8xf32>
    %311 = vector.multi_reduction <maximumf>, %310, %cst_98 [1] : vector<8x8xf32> to vector<8xf32>
    %312 = vector.shape_cast %311 : vector<8xf32> to vector<8x1xf32>
    %313 = vector.broadcast %312 : vector<8x1xf32> to vector<8x8xf32>
    %314 = arith.subf %310, %313 : vector<8x8xf32>
    %315 = math.exp %314 : vector<8x8xf32>
    %cst_99 = arith.constant dense<0.000000e+00> : vector<8xf32>
    %316 = vector.multi_reduction <add>, %315, %cst_99 [1] : vector<8x8xf32> to vector<8xf32>
    %317 = vector.shape_cast %316 : vector<8xf32> to vector<8x1xf32>
    %318 = tpu.reciprocal %317 : vector<8x1xf32> -> vector<8x1xf32>
    %319 = vector.broadcast %318 : vector<8x1xf32> to vector<8x8xf32>
    %320 = arith.mulf %315, %319 : vector<8x8xf32>
    %321 = arith.truncf %320 : vector<8x8xf32> to vector<8x8xbf16>
    %322 = arith.truncf %305 : vector<8x64xf32> to vector<8x64xbf16>
    %cst_100 = arith.constant dense<0.000000e+00> : vector<8x64xf32>
    %323 = tpu.matmul %321, %322, %cst_100 {dimension_numbers = #tpu.dot_dimension_numbers<[1], [0], [0], [1], [0, 0, 1, 1], [], []>} : vector<8x8xbf16>, vector<8x64xbf16>, vector<8x64xf32> -> vector<8x64xf32>
    %c0_101 = arith.constant 0 : index
    %c192_102 = arith.constant 192 : index
    %324 = vector.load %arg17[%c0_101, %c192_102] : memref<16x256xf32, #tpu.memory_space<vmem>>, vector<8x64xf32>
    tpu.vector_store %arg17[%c0_101, %c192_102], %323 {strides = array<i32>} : memref<16x256xf32, #tpu.memory_space<vmem>>, vector<8x64xf32>,
    %325 = vector.extract_strided_slice %7 {offsets = [1, 0], sizes = [1, 8], strides = [1, 1]} : vector<2x8xf32> to vector<1x8xf32>
    %326 = vector.extract_strided_slice %232 {offsets = [8, 0], sizes = [8, 64], strides = [1, 1]} : vector<16x256xf32> to vector<8x64xf32>
    %327 = vector.extract_strided_slice %235 {offsets = [8, 0], sizes = [8, 64], strides = [1, 1]} : vector<16x512xf32> to vector<8x64xf32>
    %328 = vector.extract_strided_slice %235 {offsets = [8, 256], sizes = [8, 64], strides = [1, 1]} : vector<16x512xf32> to vector<8x64xf32>
    %329 = arith.truncf %326 : vector<8x64xf32> to vector<8x64xbf16>
    %330 = arith.truncf %327 : vector<8x64xf32> to vector<8x64xbf16>
    %cst_103 = arith.constant dense<0.000000e+00> : vector<8x8xf32>
    %331 = tpu.matmul %329, %330, %cst_103 {dimension_numbers = #tpu.dot_dimension_numbers<[1], [1], [0], [0], [0, 0, 1, 0], [], []>} : vector<8x64xbf16>, vector<8x64xbf16>, vector<8x8xf32> -> vector<8x8xf32>
    %332 = vector.broadcast %325 : vector<1x8xf32> to vector<8x8xf32>
    %333 = arith.addf %331, %332 : vector<8x8xf32>
    %cst_104 = arith.constant dense<0xFF800000> : vector<8xf32>
    %334 = vector.multi_reduction <maximumf>, %333, %cst_104 [1] : vector<8x8xf32> to vector<8xf32>
    %335 = vector.shape_cast %334 : vector<8xf32> to vector<8x1xf32>
    %336 = vector.broadcast %335 : vector<8x1xf32> to vector<8x8xf32>
    %337 = arith.subf %333, %336 : vector<8x8xf32>
    %338 = math.exp %337 : vector<8x8xf32>
    %cst_105 = arith.constant dense<0.000000e+00> : vector<8xf32>
    %339 = vector.multi_reduction <add>, %338, %cst_105 [1] : vector<8x8xf32> to vector<8xf32>
    %340 = vector.shape_cast %339 : vector<8xf32> to vector<8x1xf32>
    %341 = tpu.reciprocal %340 : vector<8x1xf32> -> vector<8x1xf32>
    %342 = vector.broadcast %341 : vector<8x1xf32> to vector<8x8xf32>
    %343 = arith.mulf %338, %342 : vector<8x8xf32>
    %344 = arith.truncf %343 : vector<8x8xf32> to vector<8x8xbf16>
    %345 = arith.truncf %328 : vector<8x64xf32> to vector<8x64xbf16>
    %cst_106 = arith.constant dense<0.000000e+00> : vector<8x64xf32>
    %346 = tpu.matmul %344, %345, %cst_106 {dimension_numbers = #tpu.dot_dimension_numbers<[1], [0], [0], [1], [0, 0, 1, 1], [], []>} : vector<8x8xbf16>, vector<8x64xbf16>, vector<8x64xf32> -> vector<8x64xf32>
    %c8_107 = arith.constant 8 : index
    %c0_108 = arith.constant 0 : index
    %347 = vector.load %arg17[%c8_107, %c0_108] : memref<16x256xf32, #tpu.memory_space<vmem>>, vector<8x64xf32>
    tpu.vector_store %arg17[%c8_107, %c0_108], %346 {strides = array<i32>} : memref<16x256xf32, #tpu.memory_space<vmem>>, vector<8x64xf32>,
    %348 = vector.extract_strided_slice %232 {offsets = [8, 64], sizes = [8, 64], strides = [1, 1]} : vector<16x256xf32> to vector<8x64xf32>
    %349 = vector.extract_strided_slice %235 {offsets = [8, 64], sizes = [8, 64], strides = [1, 1]} : vector<16x512xf32> to vector<8x64xf32>
    %350 = vector.extract_strided_slice %235 {offsets = [8, 320], sizes = [8, 64], strides = [1, 1]} : vector<16x512xf32> to vector<8x64xf32>
    %351 = arith.truncf %348 : vector<8x64xf32> to vector<8x64xbf16>
    %352 = arith.truncf %349 : vector<8x64xf32> to vector<8x64xbf16>
    %cst_109 = arith.constant dense<0.000000e+00> : vector<8x8xf32>
    %353 = tpu.matmul %351, %352, %cst_109 {dimension_numbers = #tpu.dot_dimension_numbers<[1], [1], [0], [0], [0, 0, 1, 0], [], []>} : vector<8x64xbf16>, vector<8x64xbf16>, vector<8x8xf32> -> vector<8x8xf32>
    %354 = vector.broadcast %325 : vector<1x8xf32> to vector<8x8xf32>
    %355 = arith.addf %353, %354 : vector<8x8xf32>
    %cst_110 = arith.constant dense<0xFF800000> : vector<8xf32>
    %356 = vector.multi_reduction <maximumf>, %355, %cst_110 [1] : vector<8x8xf32> to vector<8xf32>
    %357 = vector.shape_cast %356 : vector<8xf32> to vector<8x1xf32>
    %358 = vector.broadcast %357 : vector<8x1xf32> to vector<8x8xf32>
    %359 = arith.subf %355, %358 : vector<8x8xf32>
    %360 = math.exp %359 : vector<8x8xf32>
    %cst_111 = arith.constant dense<0.000000e+00> : vector<8xf32>
    %361 = vector.multi_reduction <add>, %360, %cst_111 [1] : vector<8x8xf32> to vector<8xf32>
    %362 = vector.shape_cast %361 : vector<8xf32> to vector<8x1xf32>
    %363 = tpu.reciprocal %362 : vector<8x1xf32> -> vector<8x1xf32>
    %364 = vector.broadcast %363 : vector<8x1xf32> to vector<8x8xf32>
    %365 = arith.mulf %360, %364 : vector<8x8xf32>
    %366 = arith.truncf %365 : vector<8x8xf32> to vector<8x8xbf16>
    %367 = arith.truncf %350 : vector<8x64xf32> to vector<8x64xbf16>
    %cst_112 = arith.constant dense<0.000000e+00> : vector<8x64xf32>
    %368 = tpu.matmul %366, %367, %cst_112 {dimension_numbers = #tpu.dot_dimension_numbers<[1], [0], [0], [1], [0, 0, 1, 1], [], []>} : vector<8x8xbf16>, vector<8x64xbf16>, vector<8x64xf32> -> vector<8x64xf32>
    %c8_113 = arith.constant 8 : index
    %c64_114 = arith.constant 64 : index
    %369 = vector.load %arg17[%c8_113, %c64_114] : memref<16x256xf32, #tpu.memory_space<vmem>>, vector<8x64xf32>
    tpu.vector_store %arg17[%c8_113, %c64_114], %368 {strides = array<i32>} : memref<16x256xf32, #tpu.memory_space<vmem>>, vector<8x64xf32>,
    %370 = vector.extract_strided_slice %232 {offsets = [8, 128], sizes = [8, 64], strides = [1, 1]} : vector<16x256xf32> to vector<8x64xf32>
    %371 = vector.extract_strided_slice %235 {offsets = [8, 128], sizes = [8, 64], strides = [1, 1]} : vector<16x512xf32> to vector<8x64xf32>
    %372 = vector.extract_strided_slice %235 {offsets = [8, 384], sizes = [8, 64], strides = [1, 1]} : vector<16x512xf32> to vector<8x64xf32>
    %373 = arith.truncf %370 : vector<8x64xf32> to vector<8x64xbf16>
    %374 = arith.truncf %371 : vector<8x64xf32> to vector<8x64xbf16>
    %cst_115 = arith.constant dense<0.000000e+00> : vector<8x8xf32>
    %375 = tpu.matmul %373, %374, %cst_115 {dimension_numbers = #tpu.dot_dimension_numbers<[1], [1], [0], [0], [0, 0, 1, 0], [], []>} : vector<8x64xbf16>, vector<8x64xbf16>, vector<8x8xf32> -> vector<8x8xf32>
    %376 = vector.broadcast %325 : vector<1x8xf32> to vector<8x8xf32>
    %377 = arith.addf %375, %376 : vector<8x8xf32>
    %cst_116 = arith.constant dense<0xFF800000> : vector<8xf32>
    %378 = vector.multi_reduction <maximumf>, %377, %cst_116 [1] : vector<8x8xf32> to vector<8xf32>
    %379 = vector.shape_cast %378 : vector<8xf32> to vector<8x1xf32>
    %380 = vector.broadcast %379 : vector<8x1xf32> to vector<8x8xf32>
    %381 = arith.subf %377, %380 : vector<8x8xf32>
    %382 = math.exp %381 : vector<8x8xf32>
    %cst_117 = arith.constant dense<0.000000e+00> : vector<8xf32>
    %383 = vector.multi_reduction <add>, %382, %cst_117 [1] : vector<8x8xf32> to vector<8xf32>
    %384 = vector.shape_cast %383 : vector<8xf32> to vector<8x1xf32>
    %385 = tpu.reciprocal %384 : vector<8x1xf32> -> vector<8x1xf32>
    %386 = vector.broadcast %385 : vector<8x1xf32> to vector<8x8xf32>
    %387 = arith.mulf %382, %386 : vector<8x8xf32>
    %388 = arith.truncf %387 : vector<8x8xf32> to vector<8x8xbf16>
    %389 = arith.truncf %372 : vector<8x64xf32> to vector<8x64xbf16>
    %cst_118 = arith.constant dense<0.000000e+00> : vector<8x64xf32>
    %390 = tpu.matmul %388, %389, %cst_118 {dimension_numbers = #tpu.dot_dimension_numbers<[1], [0], [0], [1], [0, 0, 1, 1], [], []>} : vector<8x8xbf16>, vector<8x64xbf16>, vector<8x64xf32> -> vector<8x64xf32>
    %c8_119 = arith.constant 8 : index
    %c128_120 = arith.constant 128 : index
    %391 = vector.load %arg17[%c8_119, %c128_120] : memref<16x256xf32, #tpu.memory_space<vmem>>, vector<8x64xf32>
    tpu.vector_store %arg17[%c8_119, %c128_120], %390 {strides = array<i32>} : memref<16x256xf32, #tpu.memory_space<vmem>>, vector<8x64xf32>,
    %392 = vector.extract_strided_slice %232 {offsets = [8, 192], sizes = [8, 64], strides = [1, 1]} : vector<16x256xf32> to vector<8x64xf32>
    %393 = vector.extract_strided_slice %235 {offsets = [8, 192], sizes = [8, 64], strides = [1, 1]} : vector<16x512xf32> to vector<8x64xf32>
    %394 = vector.extract_strided_slice %235 {offsets = [8, 448], sizes = [8, 64], strides = [1, 1]} : vector<16x512xf32> to vector<8x64xf32>
    %395 = arith.truncf %392 : vector<8x64xf32> to vector<8x64xbf16>
    %396 = arith.truncf %393 : vector<8x64xf32> to vector<8x64xbf16>
    %cst_121 = arith.constant dense<0.000000e+00> : vector<8x8xf32>
    %397 = tpu.matmul %395, %396, %cst_121 {dimension_numbers = #tpu.dot_dimension_numbers<[1], [1], [0], [0], [0, 0, 1, 0], [], []>} : vector<8x64xbf16>, vector<8x64xbf16>, vector<8x8xf32> -> vector<8x8xf32>
    %398 = vector.broadcast %325 : vector<1x8xf32> to vector<8x8xf32>
    %399 = arith.addf %397, %398 : vector<8x8xf32>
    %cst_122 = arith.constant dense<0xFF800000> : vector<8xf32>
    %400 = vector.multi_reduction <maximumf>, %399, %cst_122 [1] : vector<8x8xf32> to vector<8xf32>
    %401 = vector.shape_cast %400 : vector<8xf32> to vector<8x1xf32>
    %402 = vector.broadcast %401 : vector<8x1xf32> to vector<8x8xf32>
    %403 = arith.subf %399, %402 : vector<8x8xf32>
    %404 = math.exp %403 : vector<8x8xf32>
    %cst_123 = arith.constant dense<0.000000e+00> : vector<8xf32>
    %405 = vector.multi_reduction <add>, %404, %cst_123 [1] : vector<8x8xf32> to vector<8xf32>
    %406 = vector.shape_cast %405 : vector<8xf32> to vector<8x1xf32>
    %407 = tpu.reciprocal %406 : vector<8x1xf32> -> vector<8x1xf32>
    %408 = vector.broadcast %407 : vector<8x1xf32> to vector<8x8xf32>
    %409 = arith.mulf %404, %408 : vector<8x8xf32>
    %410 = arith.truncf %409 : vector<8x8xf32> to vector<8x8xbf16>
    %411 = arith.truncf %394 : vector<8x64xf32> to vector<8x64xbf16>
    %cst_124 = arith.constant dense<0.000000e+00> : vector<8x64xf32>
    %412 = tpu.matmul %410, %411, %cst_124 {dimension_numbers = #tpu.dot_dimension_numbers<[1], [0], [0], [1], [0, 0, 1, 1], [], []>} : vector<8x8xbf16>, vector<8x64xbf16>, vector<8x64xf32> -> vector<8x64xf32>
    %c8_125 = arith.constant 8 : index
    %c192_126 = arith.constant 192 : index
    %413 = vector.load %arg17[%c8_125, %c192_126] : memref<16x256xf32, #tpu.memory_space<vmem>>, vector<8x64xf32>
    tpu.vector_store %arg17[%c8_125, %c192_126], %412 {strides = array<i32>} : memref<16x256xf32, #tpu.memory_space<vmem>>, vector<8x64xf32>,
    %c0_127 = arith.constant 0 : index
    %c0_128 = arith.constant 0 : index
    %414 = vector.load %arg17[%c0_127, %c0_128] : memref<16x256xf32, #tpu.memory_space<vmem>>, vector<16x256xf32>
    %415 = arith.truncf %414 : vector<16x256xf32> to vector<16x256xbf16>
    %c0_129 = arith.constant 0 : index
    %c0_130 = arith.constant 0 : index
    %c0_131 = arith.constant 0 : index
    %416 = vector.load %arg10[%c0_129, %c0_130, %c0_131] : memref<1x256x256xbf16, #tpu.memory_space<vmem>>, vector<1x256x256xbf16>
    %417 = vector.shape_cast %416 : vector<1x256x256xbf16> to vector<256x256xbf16>
    %cst_132 = arith.constant dense<0.000000e+00> : vector<16x256xf32>
    %418 = tpu.matmul %415, %417, %cst_132 {dimension_numbers = #tpu.dot_dimension_numbers<[1], [0], [0], [1], [0, 0, 1, 1], [], []>} : vector<16x256xbf16>, vector<256x256xbf16>, vector<16x256xf32> -> vector<16x256xf32>
    %419 = arith.addf %215, %418 : vector<16x256xf32>
    %420 = vector.extract_strided_slice %5 {offsets = [2, 0], sizes = [1, 256], strides = [1, 1]} : vector<3x256xf32> to vector<1x256xf32>
    %421 = arith.mulf %419, %419 : vector<16x256xf32>
    %cst_133 = arith.constant dense<0.000000e+00> : vector<16xf32>
    %422 = vector.multi_reduction <add>, %421, %cst_133 [1] : vector<16x256xf32> to vector<16xf32>
    %423 = vector.shape_cast %422 : vector<16xf32> to vector<16x1xf32>
    %cst_134 = arith.constant 2.560000e+02 : f32
    %424 = vector.broadcast %cst_134 : f32 to vector<16x1xf32>
    %425 = arith.divf %423, %424 : vector<16x1xf32>
    %cst_135 = arith.constant 9.99999997E-7 : f32
    %426 = vector.broadcast %cst_135 : f32 to vector<16x1xf32>
    %427 = arith.addf %425, %426 : vector<16x1xf32>
    %428 = math.rsqrt %427 : vector<16x1xf32>
    %429 = vector.broadcast %428 : vector<16x1xf32> to vector<16x256xf32>
    %430 = arith.mulf %419, %429 : vector<16x256xf32>
    %431 = vector.broadcast %420 : vector<1x256xf32> to vector<16x256xf32>
    %432 = arith.mulf %430, %431 : vector<16x256xf32>
    %433 = arith.truncf %432 : vector<16x256xf32> to vector<16x256xbf16>
    %c0_136 = arith.constant 0 : index
    %c0_137 = arith.constant 0 : index
    %c0_138 = arith.constant 0 : index
    %434 = vector.load %arg11[%c0_136, %c0_137, %c0_138] : memref<1x256x1024xbf16, #tpu.memory_space<vmem>>, vector<1x256x1024xbf16>
    %435 = vector.shape_cast %434 : vector<1x256x1024xbf16> to vector<256x1024xbf16>
    %cst_139 = arith.constant dense<0.000000e+00> : vector<16x1024xf32>
    %436 = tpu.matmul %433, %435, %cst_139 {dimension_numbers = #tpu.dot_dimension_numbers<[1], [0], [0], [1], [0, 0, 1, 1], [], []>} : vector<16x256xbf16>, vector<256x1024xbf16>, vector<16x1024xf32> -> vector<16x1024xf32>
    %cst_140 = arith.constant 0.000000e+00 : f32
    %437 = vector.broadcast %cst_140 : f32 to vector<16x1024xf32>
    %438 = arith.maximumf %436, %437 : vector<16x1024xf32>
    %439 = arith.truncf %438 : vector<16x1024xf32> to vector<16x1024xbf16>
    %c0_141 = arith.constant 0 : index
    %c0_142 = arith.constant 0 : index
    %c0_143 = arith.constant 0 : index
    %440 = vector.load %arg12[%c0_141, %c0_142, %c0_143] : memref<1x1024x256xbf16, #tpu.memory_space<vmem>>, vector<1x1024x256xbf16>
    %441 = vector.shape_cast %440 : vector<1x1024x256xbf16> to vector<1024x256xbf16>
    %cst_144 = arith.constant dense<0.000000e+00> : vector<16x256xf32>
    %442 = tpu.matmul %439, %441, %cst_144 {dimension_numbers = #tpu.dot_dimension_numbers<[1], [0], [0], [1], [0, 0, 1, 1], [], []>} : vector<16x1024xbf16>, vector<1024x256xbf16>, vector<16x256xf32> -> vector<16x256xf32>
    %443 = arith.addf %419, %442 : vector<16x256xf32>
    %c0_145 = arith.constant 0 : index
    %c0_146 = arith.constant 0 : index
    %444 = vector.load %arg16[%c0_145, %c0_146] : memref<16x256xf32, #tpu.memory_space<vmem>>, vector<16x256xf32>
    tpu.vector_store %arg16[%c0_145, %c0_146], %443 {strides = array<i32>} : memref<16x256xf32, #tpu.memory_space<vmem>>, vector<16x256xf32>,
    %c3_i32 = arith.constant 3 : i32
    %445 = arith.cmpi eq, %arg0, %c3_i32 : i32
    %446 = arith.extui %445 : i1 to i32
    %c0_i32_147 = arith.constant 0 : i32
    %447 = arith.cmpi ne, %446, %c0_i32_147 : i32
    scf.if %447 {
      %c0_148 = arith.constant 0 : index
      %c0_149 = arith.constant 0 : index
      %448 = vector.load %arg13[%c0_148, %c0_149] : memref<1x256xf32, #tpu.memory_space<vmem>>, vector<1x256xf32>
      %449 = arith.mulf %443, %443 : vector<16x256xf32>
      %cst_150 = arith.constant dense<0.000000e+00> : vector<16xf32>
      %450 = vector.multi_reduction <add>, %449, %cst_150 [1] : vector<16x256xf32> to vector<16xf32>
      %451 = vector.shape_cast %450 : vector<16xf32> to vector<16x1xf32>
      %cst_151 = arith.constant 2.560000e+02 : f32
      %452 = vector.broadcast %cst_151 : f32 to vector<16x1xf32>
      %453 = arith.divf %451, %452 : vector<16x1xf32>
      %cst_152 = arith.constant 9.99999997E-7 : f32
      %454 = vector.broadcast %cst_152 : f32 to vector<16x1xf32>
      %455 = arith.addf %453, %454 : vector<16x1xf32>
      %456 = math.rsqrt %455 : vector<16x1xf32>
      %457 = vector.broadcast %456 : vector<16x1xf32> to vector<16x256xf32>
      %458 = arith.mulf %443, %457 : vector<16x256xf32>
      %459 = vector.broadcast %448 : vector<1x256xf32> to vector<16x256xf32>
      %460 = arith.mulf %458, %459 : vector<16x256xf32>
      %461 = arith.truncf %460 : vector<16x256xf32> to vector<16x256xbf16>
      %c0_153 = arith.constant 0 : index
      %c0_154 = arith.constant 0 : index
      %462 = vector.load %arg14[%c0_153, %c0_154] : memref<256x512xbf16, #tpu.memory_space<vmem>>, vector<256x512xbf16>
      %cst_155 = arith.constant dense<0.000000e+00> : vector<16x512xf32>
      %463 = tpu.matmul %461, %462, %cst_155 {dimension_numbers = #tpu.dot_dimension_numbers<[1], [0], [0], [1], [0, 0, 1, 1], [], []>} : vector<16x256xbf16>, vector<256x512xbf16>, vector<16x512xf32> -> vector<16x512xf32>
      %c0_156 = arith.constant 0 : index
      %c0_157 = arith.constant 0 : index
      %464 = vector.load %arg15[%c0_156, %c0_157] : memref<16x512xf32, #tpu.memory_space<vmem>>, vector<16x512xf32>
      tpu.vector_store %arg15[%c0_156, %c0_157], %463 {strides = array<i32>} : memref<16x512xf32, #tpu.memory_space<vmem>>, vector<16x512xf32>,
    } else {
    }
    return
  }
  func.func @transform_0(%arg0: i32) -> (i32, i32) {
    %c0_i32 = arith.constant 0 : i32
    %c0_i32_0 = arith.constant 0 : i32
    %c0_i32_1 = arith.constant 0 : i32
    return %c0_i32, %c0_i32_0 : i32, i32
  }
  func.func @transform_1(%arg0: i32) -> (i32, i32) {
    %c0_i32 = arith.constant 0 : i32
    %c0_i32_0 = arith.constant 0 : i32
    %c0_i32_1 = arith.constant 0 : i32
    return %c0_i32, %c0_i32_0 : i32, i32
  }
  func.func @transform_2(%arg0: i32) -> (i32, i32, i32) {
    %c0_i32 = arith.constant 0 : i32
    %c0_i32_0 = arith.constant 0 : i32
    %c0_i32_1 = arith.constant 0 : i32
    %c0_i32_2 = arith.constant 0 : i32
    return %c0_i32, %c0_i32_0, %c0_i32_1 : i32, i32, i32
  }
  func.func @transform_3(%arg0: i32) -> (i32, i32) {
    %c0_i32 = arith.constant 0 : i32
    %c0_i32_0 = arith.constant 0 : i32
    %c0_i32_1 = arith.constant 0 : i32
    return %c0_i32, %c0_i32_0 : i32, i32
  }
  func.func @transform_4(%arg0: i32) -> (i32, i32, i32) {
    %c0_i32 = arith.constant 0 : i32
    %c0_i32_0 = arith.constant 0 : i32
    %c0_i32_1 = arith.constant 0 : i32
    return %arg0, %c0_i32, %c0_i32_0 : i32, i32, i32
  }
  func.func @transform_5(%arg0: i32) -> (i32, i32, i32) {
    %c0_i32 = arith.constant 0 : i32
    %c0_i32_0 = arith.constant 0 : i32
    %c0_i32_1 = arith.constant 0 : i32
    return %arg0, %c0_i32, %c0_i32_0 : i32, i32, i32
  }
  func.func @transform_6(%arg0: i32) -> (i32, i32, i32) {
    %c0_i32 = arith.constant 0 : i32
    %c0_i32_0 = arith.constant 0 : i32
    %c0_i32_1 = arith.constant 0 : i32
    return %arg0, %c0_i32, %c0_i32_0 : i32, i32, i32
  }
  func.func @transform_7(%arg0: i32) -> (i32, i32, i32) {
    %c0_i32 = arith.constant 0 : i32
    %c0_i32_0 = arith.constant 0 : i32
    %c0_i32_1 = arith.constant 0 : i32
    return %arg0, %c0_i32, %c0_i32_0 : i32, i32, i32
  }
  func.func @transform_8(%arg0: i32) -> (i32, i32, i32) {
    %c0_i32 = arith.constant 0 : i32
    %c0_i32_0 = arith.constant 0 : i32
    %c0_i32_1 = arith.constant 0 : i32
    return %arg0, %c0_i32, %c0_i32_0 : i32, i32, i32
  }
  func.func @transform_9(%arg0: i32) -> (i32, i32, i32) {
    %c0_i32 = arith.constant 0 : i32
    %c0_i32_0 = arith.constant 0 : i32
    %c0_i32_1 = arith.constant 0 : i32
    return %arg0, %c0_i32, %c0_i32_0 : i32, i32, i32
  }
  func.func @transform_10(%arg0: i32) -> (i32, i32, i32) {
    %c0_i32 = arith.constant 0 : i32
    %c0_i32_0 = arith.constant 0 : i32
    %c0_i32_1 = arith.constant 0 : i32
    return %arg0, %c0_i32, %c0_i32_0 : i32, i32, i32
  }
  func.func @transform_11(%arg0: i32) -> (i32, i32, i32) {
    %c0_i32 = arith.constant 0 : i32
    %c0_i32_0 = arith.constant 0 : i32
    %c0_i32_1 = arith.constant 0 : i32
    return %arg0, %c0_i32, %c0_i32_0 : i32, i32, i32
  }
  func.func @transform_12(%arg0: i32) -> (i32, i32) {
    %c0_i32 = arith.constant 0 : i32
    %c0_i32_0 = arith.constant 0 : i32
    %c0_i32_1 = arith.constant 0 : i32
    return %c0_i32, %c0_i32_0 : i32, i32
  }
  func.func @transform_13(%arg0: i32) -> (i32, i32) {
    %c0_i32 = arith.constant 0 : i32
    %c0_i32_0 = arith.constant 0 : i32
    %c0_i32_1 = arith.constant 0 : i32
    return %c0_i32, %c0_i32_0 : i32, i32
  }
  func.func @transform_14(%arg0: i32) -> (i32, i32) {
    %c0_i32 = arith.constant 0 : i32
    %c0_i32_0 = arith.constant 0 : i32
    %c0_i32_1 = arith.constant 0 : i32
    return %c0_i32, %c0_i32_0 : i32, i32
  }
}

</mosaic_0001>

<bundles_post_ra>
// kernel: t5_forward.2
= control target key start
LH: loop header
LB: loop body
LE: loop exit
PB: predicated region body
PF: predicated region fallthrough
CT: control target
= control target key end

     0   :  { %s6971_s0 = inlined_call_operand.vmem [shape: f32[16,256], index: 0, kind: input, shape index: {}]   ;;  %s6972_s1 = inlined_call_operand.vmem [shape: f32[4,8,8], index: 1, kind: input, shape index: {}]   ;;  %s6973_s2 = inlined_call_operand.vmem [shape: f32[2,8], index: 2, kind: input, shape index: {}]   ;;  %s6974_s3 = inlined_call_operand.hbm [shape: f32[4,2,256], index: 3, kind: input, shape index: {}]   ;;  %s6975_s4 = inlined_call_operand.hbm [shape: bf16[4,256,768], index: 4, kind: input, shape index: {}]   ;;  %s6976_s5 = inlined_call_operand.hbm [shape: bf16[4,256,256], index: 5, kind: input, shape index: {}]   ;;  %s6977_s6 = inlined_call_operand.hbm [shape: bf16[4,256,1024], index: 6, kind: input, shape index: {}]   ;;  %s6978_s7 = inlined_call_operand.hbm [shape: bf16[4,1024,256], index: 7, kind: input, shape index: {}]   ;;  %s6979_s8 = inlined_call_operand.hbm [shape: f32[1,256], index: 8, kind: input, shape index: {}]   ;;  %s6980_s9 = inlined_call_operand.vmem [shape: bf16[16,256], index: 9, kind: output, shape index: {}]  }
   0x1   :  { %6994 = sst [smem:[#allocation21_spill]] %s6972_s1 }
   0x2   :  { %6995 = sst [smem:[#allocation22_spill]] %s6973_s2 }
   0x3   :  { %6996 = sst [smem:[#allocation23_spill]] %s6975_s4 }
   0x4   :  { %6997 = sst [smem:[#allocation24_spill]] %s6977_s6 }
   0x5   :  { %6998 = sst [smem:[#allocation25_spill]] %s6980_s9 }
   0x6   :  { %14 = vsyncpa [#allocation5], 0 }
   0x7   :  { %16 = vsyncpa [#allocation5 + $0x1], 0 }
   0x8   :  { %17 = vsyncpa [#allocation7], 0 }
   0x9   :  { %19 = vsyncpa [#allocation7 + $0x1], 0 }
   0xa   :  { %20 = vsyncpa [#allocation10], 0 }
   0xb   :  { %22 = vsyncpa [#allocation10 + $0x1], 0 }
   0xc   :  { %23 = vsyncpa [#allocation13], 0  ;;  %s5972_s30 = smov 0   ;;  %s5974_s10 = smov 0  }
   0xd   :  { %s5976_s11 = smov 0   ;;  %s5978_s12 = smov 0  }
   0xe LB: > { %6999 = sst [smem:[#allocation18_spill]] %s5901_s11  ;;  %s5993_s13 = sadd.s32 1, %s5905_s12   ;;  %s5905_s12 = sphi %s5978_s12, %s7020_s12   ;;  %s5901_s11 = sphi %s5976_s11, %s7022_s11   ;;  %s5897_s10 = sphi %s5974_s10, %s7024_s10   ;;  %s5893_s30 = sphi %s5972_s30, %s7023_s30  }
   0xf   : > { %7000 = sst [smem:[#allocation19_spill]] %s5993_s13  ;;  %s99_s14 = sadd.s32 1, %s5901_s11 }
  0x10   : > { %s96_s15 = ssub.s32 %s5905_s12, %s5993_s13  ;;  %p106_p0 = scmp.ne.s32.totalorder %s5901_s11, %s5897_s10 }
  0x11   : > { %p97_p1 = scmp.eq.s32.totalorder %s96_s15, 0  ;;  %p107_p2 = scmp.eq.s32.totalorder %s5905_s12, 0 }
  0x12   : > { %p5204_p3 = scmp.lt.s32.totalorder %s5905_s12, 4  ;;  %s6006_s17 = sand.u32 1, %s5901_s11  }
  0x13   : > { %s6003_s16 = scalar_select %p97_p1, %s5901_s11, %s99_s14  }
  0x14   : > { %p108_p4 = por %p107_p2, %p106_p0  ;;  %s6981_s18 = sand.u32 1, %s5905_s12  }
  0x15   : > { %7001 = sst [smem:[#allocation20_spill]] %s6003_s16  ;;  %s5166_s19 = smul.u32 768, %s6006_s17 }
  0x16   : > { %p6010_p5 = pnand %p5204_p3, %p108_p4  ;;  %s5167_s21 = smul.u32 12288, %s5905_s12 }
  0x17   : > { %s325_s22 = scalar_lea.vmem [#allocation6], %s5166_s19  ;;  %s7003_s4 = sld [smem:[#allocation23_spill]] }
  0x18   : > { %s7002_s20 = scalar_select %p6010_p5, 1, 0 }
  0x19   : > { %s332_s23 = sshll.u32 %s325_s22, 4  ;;  %s6024_s27 = scalar_lea.sflag [#allocation7], %s6981_s18  ;;  %s6020_s23 = int_to_ptr.vmem [resolvable:$true] %s332_s23 }
  0x1a   : > { %p6030_p7 = pneg %p6010_p5 }
  0x1c   : > { %s7004_s29 = scalar_select %p6030_p7, 1, 0 }
  0x1d   : > { %s6018_s26 = scalar_lea.hbm %s7003_s4, %s5167_s21  ;;  %s5686_s19 = scalar_lea.hbm %s7003_s4, 49152 }
  0x1e   : > { %s5681_s28 = scalar_lea.hbm %s6018_s26, 12288  ;;  %p5687_p10 = scmp.lt.u32.totalorder %s6018_s26, %s7003_s4 }
  0x1f   : > { %p5682_p6 = scmp.ne.s32.totalorder %s6018_s26, %s5681_s28  ;;  %p5688_p11 = scmp.lt.u32.totalorder %s5686_s19, %s5681_s28 }
  0x20   : > { %p5690_p13 = scmp.lt.u32.totalorder %s5681_s28, %s6018_s26 }
  0x21   : > { %p5684_p8 = pnand %p6030_p7, %p5682_p6  ;;  %p5689_p12 = por %p5688_p11, %p5687_p10 }
  0x23   : > { %p5685_p9 = pneg %p5684_p8  ;;  %p5691_p0 = por %p5690_p13, %p5689_p12 }
  0x25   : > { %p5692_p1 = pnand %p5691_p0, %p5685_p9 }
  0x27   : > { %5695 = shalt.err (!%p5692_p1)
}
  0x28   : > { %s5696_s24 = scalar_lea.vmem %s6020_s23, 12288  ;;  %s5907_s25 = smov [#allocation6]  }
  0x29   : > { %p5697_p2 = scmp.ne.s32.totalorder %s6020_s23, %s5696_s24  ;;  %s5701_s14 = sshll.u32 %s5907_s25, 4  ;;  %s5702_s14 = int_to_ptr.vmem [resolvable:$false] %s5701_s14 }
  0x2a   : > { %s5703_s15 = scalar_lea.vmem %s5702_s14, 24576  ;;  %p5704_p6 = scmp.lt.s32.totalorder %s6020_s23, %s5702_s14 }
  0x2b   : > { %p5699_p3 = pnand %p5697_p2, %p6030_p7  ;;  %p5705_p8 = scmp.lt.s32.totalorder %s5703_s15, %s5696_s24 }
  0x2d   : > { %p5700_p4 = pneg %p5699_p3  ;;  %p5706_p10 = por %p5705_p8, %p5704_p6 }
  0x2f   : > { %p5707_p11 = pnand %p5706_p10, %p5700_p4 }
  0x31   : > { %5710 = shalt.err (!%p5707_p11)
}
  0x32   : > { %s5908_s28 = smov 384   ;;  %s5909_s19 = smov 24  }
  0x33   : > { %5193 = dma.hbm_to_vmem [thread:$0]  (!%p6010_p5), %s6018_s26, 12288, %s6020_s23, %s6024_s27, %s5908_s28, %s5908_s28, %s5909_s19  }
  0x34   : > { %s4602_s21 = sshll.u32 %s6006_s17, 10  ;;  %s5022_s22 = sshll.u32 %s5905_s12, 14 }
  0x35   : > { %s7005_s6 = sld [smem:[#allocation24_spill]]  ;;  %s367_s15 = scalar_lea.vmem [#allocation9], %s4602_s21 }
  0x36   : > { %s374_s18 = sshll.u32 %s367_s15, 4  ;;  %s7006_s4 = sand.u32 1, %s5905_s12   ;;  %s6065_s18 = int_to_ptr.vmem [resolvable:$true] %s374_s18 }
  0x37   : > { %s6069_s16 = scalar_lea.sflag [#allocation10], %s7006_s4 }
  0x3b   : > { %s6061_s14 = scalar_lea.hbm %s7005_s6, %s5022_s22  ;;  %s5716_s19 = scalar_lea.hbm %s7005_s6, 65536 }
  0x3c   : > { %s5711_s23 = scalar_lea.hbm %s6061_s14, 16384  ;;  %p5717_p0 = scmp.lt.u32.totalorder %s6061_s14, %s7005_s6 }
  0x3d   : > { %p5712_p9 = scmp.ne.s32.totalorder %s6061_s14, %s5711_s23  ;;  %p5718_p1 = scmp.lt.u32.totalorder %s5716_s19, %s5711_s23 }
  0x3e   : > { %p5720_p3 = scmp.lt.u32.totalorder %s5711_s23, %s6061_s14 }
  0x3f   : > { %p5714_p12 = pnand %p5712_p9, %p6030_p7  ;;  %p5719_p2 = por %p5718_p1, %p5717_p0 }
  0x41   : > { %p5715_p13 = pneg %p5714_p12  ;;  %p5721_p4 = por %p5720_p3, %p5719_p2 }
  0x43   : > { %p5722_p6 = pnand %p5721_p4, %p5715_p13 }
  0x45   : > { %5725 = shalt.err (!%p5722_p6)
}
  0x46   : > { %s5726_s4 = scalar_lea.vmem %s6065_s18, 16384  ;;  %s5910_s15 = smov [#allocation9]  }
  0x47   : > { %p5727_p8 = scmp.ne.s32.totalorder %s6065_s18, %s5726_s4  ;;  %s5731_s26 = sshll.u32 %s5910_s15, 4  ;;  %s5732_s26 = int_to_ptr.vmem [resolvable:$false] %s5731_s26 }
  0x48   : > { %s5733_s28 = scalar_lea.vmem %s5732_s26, 32768  ;;  %p5734_p9 = scmp.lt.s32.totalorder %s6065_s18, %s5732_s26 }
  0x49   : > { %p5729_p10 = pnand %p5727_p8, %p6030_p7  ;;  %p5735_p12 = scmp.lt.s32.totalorder %s5733_s28, %s5726_s4 }
  0x4b   : > { %p5730_p11 = pneg %p5729_p10  ;;  %p5736_p0 = por %p5735_p12, %p5734_p9 }
  0x4d   : > { %p5737_p1 = pnand %p5736_p0, %p5730_p11 }
  0x4f   : > { %5740 = shalt.err (!%p5737_p1)
}
  0x50   : > { %s5911_s23 = smov 512   ;;  %s5912_s19 = smov 32  }
  0x51   : > { %5199 = dma.hbm_to_vmem [thread:$0]  (!%p6010_p5), %s6061_s14, 16384, %s6065_s18, %s6069_s16, %s5911_s23, %s5911_s23, %s5912_s19  }
  0x52   : > { %s6098_s4 = scalar_lea.hbm %s6978_s7, %s5022_s22  ;;  %s388_s15 = scalar_lea.vmem [#allocation11], %s4602_s21 }
  0x53   : > { %s395_s26 = sshll.u32 %s388_s15, 4  ;;  %s6105_s28 = sadd.s32 4294967295, %s5905_s12   ;;  %s6102_s26 = int_to_ptr.vmem [resolvable:$true] %s395_s26 }
  0x54   : > { %p112_p13 = scmp.ne.s32.totalorder %s5897_s10, %s5893_s30  ;;  %p6987_p2 = scmp.eq.s32.totalorder %s6105_s28, 0 }
  0x55   : > { %p4592_p3 = scmp.ge.s32.totalorder %s5905_s12, 1  ;;  %p269_p4 = scmp.lt.s32.totalorder %s5905_s12, 5 }
  0x56   : > { %p6114_p6 = por %p6987_p2, %p112_p13  ;;  %s5913_s22 = smov [#allocation12]  }
  0x57   : > { %p6119_p10 = pnand %p4592_p3, %p269_p4  ;;  %s291_s14 = sshll.u32 %s5913_s22, 4  ;;  %s292_s14 = int_to_ptr.vmem [resolvable:$true] %s291_s14 }
  0x58   : > { %s7007_s18 = scalar_select %p6114_p6, 1, 0 }
  0x59   : > { %s7008_s21 = scalar_select %p6119_p10, 1, 0 }
  0x5a   : > { %p5183_p11 = pneg %p6119_p10  ;;  %s4595_s30 = sshll.u32 %s6006_s17, 2 }
  0x5b   : > { %s5020_s23 = sshll.u32 %s5905_s12, 6  ;;  %s306_s6 = scalar_lea.vmem [#allocation4], %s4595_s30 }
  0x5c   : > { %p6129_p9 = pnand %p5183_p11, %p6987_p2  ;;  %s6136_s15 = scalar_lea.hbm %s6974_s3, %s5020_s23 }
  0x5d   : > { %s314_s11 = sshll.u32 %s306_s6, 4  ;;  %s5741_s9 = scalar_lea.hbm %s6979_s8, 32  ;;  %s6138_s11 = int_to_ptr.vmem [resolvable:$true] %s314_s11 }
  0x5e   : > { %p5742_p12 = scmp.ne.s32.totalorder %s6979_s8, %s5741_s9  ;;  %p5743_p0 = pneg %p6129_p9 }
  0x5f   : > { %p5748_p3 = scmp.lt.u32.totalorder %s5741_s9, %s6979_s8 }
  0x60   : > { %p5744_p1 = pnand %p5743_p0, %p5742_p12 }
  0x62   : > { %p5745_p13 = pneg %p5744_p1 }
  0x64   : > { %p5750_p4 = pnand %p5748_p3, %p5745_p13 }
  0x66   : > { %5753 = shalt.err (!%p5750_p4)
}
  0x67   : > { %s5754_s6 = scalar_lea.vmem %s292_s14, 32  ;;  %p5762_p6 = scmp.lt.s32.totalorder %s292_s14, %s292_s14 }
  0x68   : > { %p5755_p11 = scmp.ne.s32.totalorder %s292_s14, %s5754_s6  ;;  %p5763_p10 = scmp.lt.s32.totalorder %s5754_s6, %s5754_s6 }
  0x6a   : > { %p5757_p8 = pnand %p5755_p11, %p5743_p0  ;;  %p5764_p5 = por %p5763_p10, %p5762_p6 }
  0x6c   : > { %p5758_p2 = pneg %p5757_p8 }
  0x6e   : > { %p5765_p7 = pnand %p5764_p5, %p5758_p2 }
  0x70   : > { %5768 = shalt.err (!%p5765_p7)
}
  0x71   : > { %5186 = dma.hbm_to_vmem [thread:$0]  (!%p6129_p9), %s6979_s8, 32, %s292_s14, [#allocation13]  }
  0x72   : > { %s303_s9 = scalar_lea.sflag [#allocation5], %s6006_s17  ;;  %s5769_s13 = scalar_lea.hbm %s6136_s15, 64 }
  0x73   : > { %p5770_p8 = scmp.ne.s32.totalorder %s6136_s15, %s5769_s13  ;;  %p7010_p12 = scmp.ne.s32.totalorder %s7004_s29, 0 }
  0x74   : > { %s5774_s19 = scalar_lea.hbm %s6974_s3, 256  ;;  %p5775_p5 = scmp.lt.u32.totalorder %s6136_s15, %s6974_s3 }
  0x75   : > { %p5772_p0 = pnand %p5770_p8, %p7010_p12  ;;  %p5776_p7 = scmp.lt.u32.totalorder %s5774_s19, %s5769_s13 }
  0x76   : > { %p5778_p10 = scmp.lt.u32.totalorder %s5769_s13, %s6136_s15 }
  0x77   : > { %p5773_p6 = pneg %p5772_p0  ;;  %p5777_p2 = por %p5776_p7, %p5775_p5 }
  0x79   : > { %p5779_p1 = por %p5778_p10, %p5777_p2 }
  0x7b   : > { %p5780_p13 = pnand %p5779_p1, %p5773_p6 }
  0x7d   : > { %5783 = shalt.err (!%p5780_p13)
}
  0x7e   : > { %s5784_s14 = scalar_lea.vmem %s6138_s11, 64  ;;  %s5914_s25 = smov [#allocation4]  }
  0x7f   : > { %p5785_p9 = scmp.ne.s32.totalorder %s6138_s11, %s5784_s14  ;;  %s5789_s6 = sshll.u32 %s5914_s25, 4  ;;  %s5790_s6 = int_to_ptr.vmem [resolvable:$false] %s5789_s6 }
  0x80   : > { %s5791_s1 = scalar_lea.vmem %s5790_s6, 128  ;;  %p5792_p11 = scmp.lt.s32.totalorder %s6138_s11, %s5790_s6 }
  0x81   : > { %p5787_p3 = pnand %p5785_p9, %p7010_p12  ;;  %p5793_p8 = scmp.lt.s32.totalorder %s5791_s1, %s5784_s14 }
  0x83   : > { %p5788_p4 = pneg %p5787_p3  ;;  %p5794_p0 = por %p5793_p8, %p5792_p11 }
  0x85   : > { %p5795_p5 = pnand %p5794_p0, %p5788_p4 }
  0x87   : > { %5798 = shalt.err (!%p5795_p5)
}
  0x88   : > { %p7011_p6 = scmp.ne.s32.totalorder %s7002_s20, 0  ;;  %s4599_s2 = sshll.u32 %s6006_s17, 8 }
  0x89   : > { %s5021_s13 = sshll.u32 %s5905_s12, 12  ;;  %s346_s22 = scalar_lea.vmem [#allocation8], %s4599_s2 }
  0x8a   : > { %5190 = dma.hbm_to_vmem [thread:$0]  (!%p7011_p6), %s6136_s15, 64, %s6138_s11, %s303_s9  }
  0x8b   : > { %s6183_s19 = scalar_lea.hbm %s6976_s5, %s5021_s13  ;;  %s353_s24 = sshll.u32 %s346_s22, 4  ;;  %s6185_s24 = int_to_ptr.vmem [resolvable:$true] %s353_s24 }
  0x8c   : > { %s5799_s14 = scalar_lea.hbm %s6183_s19, 4096  ;;  %s5804_s17 = scalar_lea.hbm %s6976_s5, 16384 }
  0x8d   : > { %p5800_p7 = scmp.ne.s32.totalorder %s6183_s19, %s5799_s14  ;;  %p5805_p1 = scmp.lt.u32.totalorder %s6183_s19, %s6976_s5 }
  0x8e   : > { %p5806_p13 = scmp.lt.u32.totalorder %s5804_s17, %s5799_s14  ;;  %p5808_p3 = scmp.lt.u32.totalorder %s5799_s14, %s6183_s19 }
  0x8f   : > { %p5802_p2 = pnand %p5800_p7, %p7010_p12 }
  0x90   : > { %p5807_p9 = por %p5806_p13, %p5805_p1 }
  0x91   : > { %p5803_p10 = pneg %p5802_p2 }
  0x92   : > { %p5809_p4 = por %p5808_p3, %p5807_p9 }
  0x94   : > { %p5810_p11 = pnand %p5809_p4, %p5803_p10 }
  0x96   : > { %5813 = shalt.err (!%p5810_p11)
}
  0x97   : > { %s5814_s25 = scalar_lea.vmem %s6185_s24, 4096  ;;  %s5915_s6 = smov [#allocation8]  }
  0x98   : > { %p5815_p8 = scmp.ne.s32.totalorder %s6185_s24, %s5814_s25  ;;  %s5819_s1 = sshll.u32 %s5915_s6, 4  ;;  %s5820_s1 = int_to_ptr.vmem [resolvable:$false] %s5819_s1 }
  0x99   : > { %s5821_s2 = scalar_lea.vmem %s5820_s1, 8192  ;;  %p5822_p7 = scmp.lt.s32.totalorder %s6185_s24, %s5820_s1 }
  0x9a   : > { %p5817_p0 = pnand %p5815_p8, %p7010_p12  ;;  %p5823_p2 = scmp.lt.s32.totalorder %s5821_s2, %s5814_s25 }
  0x9c   : > { %p5818_p5 = pneg %p5817_p0  ;;  %p5824_p1 = por %p5823_p2, %p5822_p7 }
  0x9e   : > { %p5825_p13 = pnand %p5824_p1, %p5818_p5 }
  0xa0   : > { %5828 = shalt.err (!%p5825_p13)
}
  0xa1   : > { %s5916_s13 = smov 128   ;;  %s5917_s30 = smov 8  }
  0xa2   : > { %5196 = dma.hbm_to_vmem [thread:$0]  (!%p7011_p6), %s6183_s19, 4096, %s6185_s24, %s6024_s27, %s5916_s13, %s5916_s13, %s5917_s30  }
  0xa3   : > { %s5829_s23 = scalar_lea.hbm %s6098_s4, 16384  ;;  %s5834_s11 = scalar_lea.hbm %s6978_s7, 65536 }
  0xa4   : > { %p5830_p10 = scmp.ne.s32.totalorder %s6098_s4, %s5829_s23  ;;  %p5835_p4 = scmp.lt.u32.totalorder %s6098_s4, %s6978_s7 }
  0xa5   : > { %p5836_p11 = scmp.lt.u32.totalorder %s5834_s11, %s5829_s23  ;;  %p5838_p0 = scmp.lt.u32.totalorder %s5829_s23, %s6098_s4 }
  0xa6   : > { %p5832_p9 = pnand %p5830_p10, %p7010_p12 }
  0xa7   : > { %p5837_p8 = por %p5836_p11, %p5835_p4 }
  0xa8   : > { %p5833_p3 = pneg %p5832_p9 }
  0xa9   : > { %p5839_p5 = por %p5838_p0, %p5837_p8 }
  0xab   : > { %p5840_p7 = pnand %p5839_p5, %p5833_p3 }
  0xad   : > { %5843 = shalt.err (!%p5840_p7)
}
  0xae   : > { %s5844_s27 = scalar_lea.vmem %s6102_s26, 16384  ;;  %s5918_s19 = smov [#allocation11]  }
  0xaf   : > { %p5845_p2 = scmp.ne.s32.totalorder %s6102_s26, %s5844_s27  ;;  %s5849_s24 = sshll.u32 %s5918_s19, 4  ;;  %s5850_s24 = int_to_ptr.vmem [resolvable:$false] %s5849_s24 }
  0xb0   : > { %s5851_s15 = scalar_lea.vmem %s5850_s24, 32768  ;;  %p5852_p10 = scmp.lt.s32.totalorder %s6102_s26, %s5850_s24 }
  0xb1   : > { %p5847_p1 = pnand %p5845_p2, %p7010_p12  ;;  %p5853_p9 = scmp.lt.s32.totalorder %s5851_s15, %s5844_s27 }
  0xb3   : > { %p5848_p13 = pneg %p5847_p1  ;;  %p5854_p4 = por %p5853_p9, %p5852_p10 }
  0xb5   : > { %p5855_p11 = pnand %p5854_p4, %p5848_p13 }
  0xb7   : > { %5858 = shalt.err (!%p5855_p11)
}
  0xb8   : > { %5202 = dma.hbm_to_vmem [thread:$0]  (!%p7011_p6), %s6098_s4, 16384, %s6102_s26, %s6069_s16, %s5916_s13, %s5916_s13, %s5917_s30  }
  0xb9   : > { %p7012_p12 = scmp.ne.s32.totalorder %s7008_s21, 0 }
  0xba   : > { %s409_s29 = sand.u32 (!%p7012_p12), 1, %s5897_s10   ;;  %p7013_p3 = scmp.ne.s32.totalorder (!%p7012_p12), %s7007_s18, 0 }
  0xbb   : > { %407 = sbr.rel (%p7012_p12) target bundleno = 3866 (0xf1a), region = 56  ;;  %s4609_s9 = sshll.u32 (!%p7012_p12), %s409_s29, 2 }
  0xbc   : > { %s410_s25 = scalar_lea.sflag (!%p7012_p12), [#allocation5], %s409_s29  ;;  %s6240_s6 = scalar_lea.vmem (!%p7012_p12), [#allocation4], %s4609_s9 }
  0xc2   : > { %5876 = dma.done.wait (%p7013_p3), %s410_s25, 64  }
  0xc3   : > { %5878 = vsyncadd (%p7013_p3), %s410_s25, 4294967232  ;;  %s418_s20 = sand.u32 1, %s6105_s28   ;;  %s5168_s1 = smul.u32 768, %s409_s29 }
  0xc4   : > { %s419_s16 = scalar_lea.sflag [#allocation7], %s418_s20 }
  0xc5   : > { %s6247_s4 = scalar_lea.vmem [#allocation6], %s5168_s1 }
  0xc6   : > { %5880 = dma.done.wait (%p7013_p3), %s419_s16, 16384  }
  0xc7   : > { %5882 = vsyncadd (%p7013_p3), %s419_s16, 4294950912  ;;  %s4610_s26 = sshll.u32 %s409_s29, 8  ;;  %s4611_s21 = sshll.u32 %s409_s29, 10 }
  0xc8   : > { %s6253_s2 = scalar_lea.vmem [#allocation8], %s4610_s26  ;;  %s437_s13 = scalar_lea.sflag [#allocation10], %s418_s20 }
  0xc9   : > { %s6255_s30 = scalar_lea.vmem [#allocation9], %s4611_s21 }
  0xca   : > { %5884 = dma.done.wait (%p7013_p3), %s437_s13, 32768  }
  0xcb   : > { %5886 = vsyncadd (%p7013_p3), %s437_s13, 4294934528  ;;  %s6261_s23 = scalar_lea.vmem [#allocation11], %s4611_s21  ;;  %p7014_p6 = scmp.eq.s32.totalorder %s6105_s28, 0 }
  0xcd   : > { %5888 = dma.done.wait (%p7014_p6), [#allocation13], 32   ;;  %p7015_p8 = pmov %p7014_p6 }
  0xce   : > { %p7016_p0 = scmp.ne.s32.totalorder %s6105_s28, 0 }
  0xcf   : > { %5890 = vsyncadd (%p7015_p8), [#allocation13], 4294967264  ;;  %v508_v0 = vld [vmem:[%s6971_s0] sm:$0xff] (!%p7016_p0)  ;;  %v509_v1 = vld [vmem:[%s6971_s0 + $0x8] sm:$0xff] (!%p7016_p0) }
  0xd0   : > { %507 = sbr.rel (%p7016_p0) target bundleno = 215 (0xd7), region = 84  ;;  %v510_v2 = vld [vmem:[%s6971_s0 + $0x10] sm:$0xff] (!%p7016_p0)  ;;  %512 = vst [vmem:[#allocation2] sm:$0xff] (!%p7016_p0), %v508_v0  ;;  %513 = vst [vmem:[#allocation2 + $0x8] sm:$0xff] (!%p7016_p0), %v509_v1  ;;  %v511_v3 = vld [vmem:[%s6971_s0 + $0x18] sm:$0xff] (!%p7016_p0) }
  0xd1   : > { %514 = vst [vmem:[#allocation2 + $0x10] sm:$0xff] (!%p7016_p0), %v510_v2  ;;  %515 = vst [vmem:[#allocation2 + $0x18] sm:$0xff] (!%p7016_p0), %v511_v3 }
  0xd7 PF: > { %v6281_v4 = vld [vmem:[#allocation2] sm:$0xff]  ;;  %v6283_v5 = vld [vmem:[#allocation2 + $0x8] sm:$0xff]  ;;  %v5251_v15 = vld [vmem:[%s6247_s4 + $0x34] ss:$24 sps:$4 sm:$0xff]   ;;  %v548_v49 = vlaneseq  ;;  %vm5920_vm0 = vmmov 0   ;;  %vm1284_vm1 = vcmask 523264  }
  0xd8   : > { %v6285_v6 = vld [vmem:[#allocation2 + $0x10] sm:$0xff]  ;;  %v526_v7 = vmul.f32 %v6281_v4, %v6281_v4  ;;  %v527_v8 = vmul.f32 %v6283_v5, %v6283_v5  ;;  %v6291_v9 = vld [vmem:[#allocation2 + $0x18] sm:$0xff]  ;;  %v5248_v12 = vld [vmem:[%s6247_s4 + $0x4] ss:$24 sps:$4 sm:$0xff]   ;;  %s5921_s24 = smov 64   ;;  %vm1348_vm2 = vcmask 1043456  }
  0xd9   : > { %v528_v10 = vmul.f32 %v6285_v6, %v6285_v6  ;;  %v529_v11 = vmul.f32 %v6291_v9, %v6291_v9  ;;  %v5250_v13 = vld [vmem:[%s6247_s4] ss:$24 sps:$4 sm:$0xff]   ;;  %1148 = vmatprep.subr.bf16.mxu0 %v5248_v12  ;;  %v5253_v17 = vld [vmem:[%s6247_s4 + $0x30] ss:$24 sps:$4 sm:$0xff]   ;;  %v5254_v18 = vld [vmem:[%s6247_s4 + $0x64] ss:$24 sps:$4 sm:$0xff]  }
  0xda   : > { %v530_v14 = vadd.f32 %v527_v8, %v526_v7  ;;  %1149 = vmatpush1.bf16.msra.mxu0 %v5250_v13  ;;  %v5256_v19 = vld [vmem:[%s6247_s4 + $0x60] ss:$24 sps:$4 sm:$0xff]   ;;  %v5257_v20 = vld [vmem:[%s6247_s4 + $0x94] ss:$24 sps:$4 sm:$0xff]   ;;  %v5259_v21 = vld [vmem:[%s6247_s4 + $0x90] ss:$24 sps:$4 sm:$0xff]  }
  0xdb   : > { %v533_v16 = vadd.f32 %v529_v11, %v528_v10  ;;  %1150 = vmatprep.subr.bf16.mxu0 %v5251_v15  ;;  %v5260_v22 = vld [vmem:[%s6247_s4 + $0xc4] ss:$24 sps:$4 sm:$0xff]   ;;  %v5262_v23 = vld [vmem:[%s6247_s4 + $0xc0] ss:$24 sps:$4 sm:$0xff]   ;;  %v5263_v24 = vld [vmem:[%s6247_s4 + $0xf4] ss:$24 sps:$4 sm:$0xff]  }
  0xdc   : > { %531 = vadd.xlane.f32.xlu0 %v530_v14  ;;  %v5265_v25 = vld [vmem:[%s6247_s4 + $0xf0] ss:$24 sps:$4 sm:$0xff]   ;;  %v5266_v26 = vld [vmem:[%s6247_s4 + $0x124] ss:$24 sps:$4 sm:$0xff]   ;;  %v5268_v27 = vld [vmem:[%s6247_s4 + $0x120] ss:$24 sps:$4 sm:$0xff]  }
  0xdd   : > { %v5269_v28 = vld [vmem:[%s6247_s4 + $0x154] ss:$24 sps:$4 sm:$0xff]   ;;  %v5271_v29 = vld [vmem:[%s6247_s4 + $0x150] ss:$24 sps:$4 sm:$0xff]   ;;  %v5272_v30 = vld [vmem:[%s6247_s4 + $0x184] ss:$24 sps:$4 sm:$0xff]  }
  0xde   : > { %1151 = vmatpush1.bf16.msra.mxu0 %v5253_v17  ;;  %v5274_v31 = vld [vmem:[%s6247_s4 + $0x180] ss:$24 sps:$4 sm:$0xff]   ;;  %v5275_v32 = vld [vmem:[%s6247_s4 + $0x1b4] ss:$24 sps:$4 sm:$0xff]   ;;  %v5277_v33 = vld [vmem:[%s6247_s4 + $0x1b0] ss:$24 sps:$4 sm:$0xff]  }
  0xdf   : > { %1152 = vmatprep.subr.bf16.mxu0 %v5254_v18  ;;  %v5278_v34 = vld [vmem:[%s6247_s4 + $0x1e4] ss:$24 sps:$4 sm:$0xff]   ;;  %v5280_v35 = vld [vmem:[%s6247_s4 + $0x1e0] ss:$24 sps:$4 sm:$0xff]   ;;  %v5281_v36 = vld [vmem:[%s6247_s4 + $0x214] ss:$24 sps:$4 sm:$0xff]  }
  0xe0   : > { %534 = vadd.xlane.f32.xlu0 %v533_v16  ;;  %v5283_v37 = vld [vmem:[%s6247_s4 + $0x210] ss:$24 sps:$4 sm:$0xff]   ;;  %v5284_v38 = vld [vmem:[%s6247_s4 + $0x244] ss:$24 sps:$4 sm:$0xff]   ;;  %v5286_v39 = vld [vmem:[%s6247_s4 + $0x240] ss:$24 sps:$4 sm:$0xff]  }
  0xe1   : > { %v5287_v40 = vld [vmem:[%s6247_s4 + $0x274] ss:$24 sps:$4 sm:$0xff]   ;;  %v5289_v41 = vld [vmem:[%s6247_s4 + $0x270] ss:$24 sps:$4 sm:$0xff]   ;;  %v5290_v42 = vld [vmem:[%s6247_s4 + $0x2a4] ss:$24 sps:$4 sm:$0xff]  }
  0xe2   : > { %1153 = vmatpush1.bf16.msra.mxu0 %v5256_v19  ;;  %v5292_v43 = vld [vmem:[%s6247_s4 + $0x2a0] ss:$24 sps:$4 sm:$0xff]   ;;  %v5293_v44 = vld [vmem:[%s6247_s4 + $0x2d4] ss:$24 sps:$4 sm:$0xff]   ;;  %v5295_v45 = vld [vmem:[%s6247_s4 + $0x2d0] ss:$24 sps:$4 sm:$0xff]  }
  0xe3   : > { %1154 = vmatprep.subr.bf16.mxu0 %v5257_v20  ;;  %v5298_v46 = vld [vmem:[%s6247_s4 + $0xc] ss:$24 sps:$4 sm:$0xff]   ;;  %v6330_v53 = vshrl.u32 %v548_v49, 7  ;;  %v520_v57 = vld [vmem:[%s6240_s6] sm:$0xf]  ;;  %s7017_s9 = sld [smem:[#allocation22_spill]] }
  0xe4   : > { %v5296_v12 = vld [vmem:[%s6247_s4 + $0x8] ss:$24 sps:$4 sm:$0xff]   ;;  %v5301_v13 = vld [vmem:[%s6247_s4 + $0x3c] ss:$24 sps:$4 sm:$0xff]   ;;  %v5305_v16 = vld [vmem:[%s6247_s4 + $0x98] ss:$24 sps:$4 sm:$0xff]  }
  0xe5   : > { %v6333_v55 = vsub.s32 0, %v6330_v53  ;;  %v554_v56 = vsub.s32 2, %v6330_v53  ;;  %v5302_v14 = vld [vmem:[%s6247_s4 + $0x68] ss:$24 sps:$4 sm:$0xff]   ;;  %v5307_v15 = vld [vmem:[%s6247_s4 + $0x9c] ss:$24 sps:$4 sm:$0xff]  }
  0xe6   : > { %1155 = vmatpush1.bf16.msra.mxu0 %v5259_v21  ;;  %v5310_v17 = vld [vmem:[%s6247_s4 + $0xcc] ss:$24 sps:$4 sm:$0xff]   ;;  %v5308_v18 = vld [vmem:[%s6247_s4 + $0xc8] ss:$24 sps:$4 sm:$0xff]   ;;  %v5313_v19 = vld [vmem:[%s6247_s4 + $0xfc] ss:$24 sps:$4 sm:$0xff]  }
  0xe7   : > { %1156 = vmatprep.subr.bf16.mxu0 %v5260_v22  ;;  %v555_v58 = vrot.slane %v520_v57, %v554_v56  ;;  %v551_v59 = vrot.slane %v520_v57, %v6333_v55  ;;  %v5311_v20 = vld [vmem:[%s6247_s4 + $0xf8] ss:$24 sps:$4 sm:$0xff]   ;;  %v5316_v21 = vld [vmem:[%s6247_s4 + $0x12c] ss:$24 sps:$4 sm:$0xff]   ;;  %v5314_v22 = vld [vmem:[%s6247_s4 + $0x128] ss:$24 sps:$4 sm:$0xff]  }
  0xe8   : > { %v5358_v49 = vld [vmem:[%s6247_s4 + $0xd4] ss:$24 sps:$4 sm:$0xff]   ;;  %v5362_v56 = vld [vmem:[%s6247_s4 + $0x130] ss:$24 sps:$4 sm:$0xff]   ;;  %v5367_v57 = vld [vmem:[%s6247_s4 + $0x164] ss:$24 sps:$4 sm:$0xff]  }
  0xe9   : > { %v565_v62 = vrot.slane %v555_v58, %v6333_v55  ;;  %v561_v0 = vrot.slane %v551_v59, %v6333_v55  ;;  %v5365_v58 = vld [vmem:[%s6247_s4 + $0x160] ss:$24 sps:$4 sm:$0xff]   ;;  %v5370_v59 = vld [vmem:[%s6247_s4 + $0x194] ss:$24 sps:$4 sm:$0xff]   ;;  %s7018_s1 = sld [smem:[#allocation21_spill]]  ;;  %vm1331_vm3 = vcmask 64512  }
  0xea   : > { %1157 = vmatpush1.bf16.msra.mxu0 %v5262_v23  ;;  %v5319_v23 = vld [vmem:[%s6247_s4 + $0x15c] ss:$24 sps:$4 sm:$0xff]   ;;  %vm1511_vm4 = vcmask 1048064   ;;  %p5015_p5 = scmp.ne.s32.totalorder %s6105_s28, 3 }
  0xeb   : > { %1158 = vmatprep.subr.bf16.mxu0 %v5263_v24  ;;  %v5317_v24 = vld [vmem:[%s6247_s4 + $0x158] ss:$24 sps:$4 sm:$0xff]  }
  0xee   : > { %1159 = vmatpush1.bf16.msra.mxu0 %v5265_v25  ;;  %v5322_v25 = vld [vmem:[%s6247_s4 + $0x18c] ss:$24 sps:$4 sm:$0xff]  }
  0xef   : > { %1160 = vmatprep.subr.bf16.mxu0 %v5266_v26  ;;  %v5320_v26 = vld [vmem:[%s6247_s4 + $0x188] ss:$24 sps:$4 sm:$0xff]  }
  0xf2   : > { %1161 = vmatpush1.bf16.msra.mxu0 %v5268_v27  ;;  %v5325_v27 = vld [vmem:[%s6247_s4 + $0x1bc] ss:$24 sps:$4 sm:$0xff]  }
  0xf3   : > { %1162 = vmatprep.subr.bf16.mxu0 %v5269_v28  ;;  %v5323_v28 = vld [vmem:[%s6247_s4 + $0x1b8] ss:$24 sps:$4 sm:$0xff]  }
  0xf6   : > { %1163 = vmatpush1.bf16.msra.mxu0 %v5271_v29  ;;  %v5328_v29 = vld [vmem:[%s6247_s4 + $0x1ec] ss:$24 sps:$4 sm:$0xff]  }
  0xf7   : > { %1164 = vmatprep.subr.bf16.mxu0 %v5272_v30  ;;  %v5326_v30 = vld [vmem:[%s6247_s4 + $0x1e8] ss:$24 sps:$4 sm:$0xff]  }
  0xfa   : > { %1165 = vmatpush1.bf16.msra.mxu0 %v5274_v31  ;;  %v5331_v31 = vld [vmem:[%s6247_s4 + $0x21c] ss:$24 sps:$4 sm:$0xff]  }
  0xfb   : > { %1166 = vmatprep.subr.bf16.mxu0 %v5275_v32  ;;  %v5329_v32 = vld [vmem:[%s6247_s4 + $0x218] ss:$24 sps:$4 sm:$0xff]  }
  0xfe   : > { %1167 = vmatpush1.bf16.msra.mxu0 %v5277_v33  ;;  %v5334_v33 = vld [vmem:[%s6247_s4 + $0x24c] ss:$24 sps:$4 sm:$0xff]  }
  0xff   : > { %1168 = vmatprep.subr.bf16.mxu0 %v5278_v34  ;;  %v5332_v34 = vld [vmem:[%s6247_s4 + $0x248] ss:$24 sps:$4 sm:$0xff]  }
 0x102   : > { %1169 = vmatpush1.bf16.msra.mxu0 %v5280_v35  ;;  %v5337_v35 = vld [vmem:[%s6247_s4 + $0x27c] ss:$24 sps:$4 sm:$0xff]  }
 0x103   : > { %1170 = vmatprep.subr.bf16.mxu0 %v5281_v36  ;;  %v5335_v36 = vld [vmem:[%s6247_s4 + $0x278] ss:$24 sps:$4 sm:$0xff]  }
 0x106   : > { %1171 = vmatpush1.bf16.msra.mxu0 %v5283_v37  ;;  %v5340_v37 = vld [vmem:[%s6247_s4 + $0x2ac] ss:$24 sps:$4 sm:$0xff]  }
 0x107   : > { %1172 = vmatprep.subr.bf16.mxu0 %v5284_v38  ;;  %v5338_v38 = vld [vmem:[%s6247_s4 + $0x2a8] ss:$24 sps:$4 sm:$0xff]  }
 0x10a   : > { %1173 = vmatpush1.bf16.msra.mxu0 %v5286_v39  ;;  %v5343_v39 = vld [vmem:[%s6247_s4 + $0x2dc] ss:$24 sps:$4 sm:$0xff]  }
 0x10b   : > { %1174 = vmatprep.subr.bf16.mxu0 %v5287_v40  ;;  %v5341_v40 = vld [vmem:[%s6247_s4 + $0x2d8] ss:$24 sps:$4 sm:$0xff]  }
 0x10e   : > { %1175 = vmatpush1.bf16.msra.mxu0 %v5289_v41  ;;  %v5346_v41 = vld [vmem:[%s6247_s4 + $0x14] ss:$24 sps:$4 sm:$0xff]  }
 0x10f   : > { %1176 = vmatprep.subr.bf16.mxu0 %v5290_v42  ;;  %v5344_v42 = vld [vmem:[%s6247_s4 + $0x10] ss:$24 sps:$4 sm:$0xff]  }
 0x112   : > { %1177 = vmatpush1.bf16.msra.mxu0 %v5292_v43  ;;  %v5349_v43 = vld [vmem:[%s6247_s4 + $0x44] ss:$24 sps:$4 sm:$0xff]  }
 0x113   : > { %1178 = vmatprep.subr.bf16.mxu0 %v5293_v44  ;;  %v5347_v44 = vld [vmem:[%s6247_s4 + $0x40] ss:$24 sps:$4 sm:$0xff]  }
 0x116   : > { %1179 = vmatpush1.bf16.msra.mxu0 %v5295_v45  ;;  %v5352_v45 = vld [vmem:[%s6247_s4 + $0x74] ss:$24 sps:$4 sm:$0xff]  }
 0x117   : > { %1191 = vmatprep.subr.bf16.mxu0 %v5298_v46  ;;  %v5350_v46 = vld [vmem:[%s6247_s4 + $0x70] ss:$24 sps:$4 sm:$0xff]  }
 0x169   : > { %v532_v47 = vpop.xlane.xlu0 %531 }
 0x16a   : > { %v537_v48 = vmul.f32 0.00390625, %v532_v47  ;;  %v5355_v47 = vld [vmem:[%s6247_s4 + $0xa4] ss:$24 sps:$4 sm:$0xff]  }
 0x16c   : > { %v539_v50 = vadd.f32 1e-06, %v537_v48  ;;  %v5353_v48 = vld [vmem:[%s6247_s4 + $0xa0] ss:$24 sps:$4 sm:$0xff]  }
 0x16d   : > { %v535_v51 = vpop.xlane.xlu0 %534 }
 0x16e   : > { %5632 = vrsqrt.f32 %v539_v50  ;;  %v538_v52 = vmul.f32 0.00390625, %v535_v51  ;;  %v5356_v50 = vld [vmem:[%s6247_s4 + $0xd0] ss:$24 sps:$4 sm:$0xff]   ;;  %v5361_v51 = vld [vmem:[%s6247_s4 + $0x104] ss:$24 sps:$4 sm:$0xff]  }
 0x170   : > { %v540_v54 = vadd.f32 1e-06, %v538_v52  ;;  %v5359_v52 = vld [vmem:[%s6247_s4 + $0x100] ss:$24 sps:$4 sm:$0xff]  }
 0x172   : > { %5634 = vrsqrt.f32 %v540_v54  ;;  %v5364_v54 = vld [vmem:[%s6247_s4 + $0x134] ss:$24 sps:$4 sm:$0xff]  }
 0x178   : > { %v5633_v60 = vpop.eup %5632 }
 0x179   : > { %v544_v61 = vmul.f32 %v5633_v60, %v6283_v5  ;;  %v543_v63 = vmul.f32 %v5633_v60, %v6281_v4  ;;  %v5368_v60 = vld [vmem:[%s6247_s4 + $0x190] ss:$24 sps:$4 sm:$0xff]  }
 0x17b   : > { %v567_v7 = vmul.f32 %v565_v62, %v544_v61  ;;  %v566_v10 = vmul.f32 %v561_v0, %v543_v63  ;;  %v5373_v61 = vld [vmem:[%s6247_s4 + $0x1c4] ss:$24 sps:$4 sm:$0xff]   ;;  %v5376_v63 = vld [vmem:[%s6247_s4 + $0x1f4] ss:$24 sps:$4 sm:$0xff]  }
 0x17c   : > { %v5635_v1 = vpop.eup %5634 }
 0x17d   : > { %v546_v2 = vmul.f32 %v5635_v1, %v6291_v9  ;;  %v545_v3 = vmul.f32 %v5635_v1, %v6285_v6  ;;  %v5299_v6 = vld [vmem:[%s6247_s4 + $0x38] ss:$24 sps:$4 sm:$0xff]   ;;  %v5304_v9 = vld [vmem:[%s6247_s4 + $0x6c] ss:$24 sps:$4 sm:$0xff]  }
 0x17e   : > { %v5379_v1 = vld [vmem:[%s6247_s4 + $0x224] ss:$24 sps:$4 sm:$0xff]  }
 0x17f   : > { %v569_v8 = vmul.f32 %v565_v62, %v546_v2  ;;  %v568_v11 = vmul.f32 %v561_v0, %v545_v3  ;;  %v5371_v62 = vld [vmem:[%s6247_s4 + $0x1c0] ss:$24 sps:$4 sm:$0xff]   ;;  %v5374_v0 = vld [vmem:[%s6247_s4 + $0x1f0] ss:$24 sps:$4 sm:$0xff]   ;;  %v5382_v3 = vld [vmem:[%s6247_s4 + $0x254] ss:$24 sps:$4 sm:$0xff]  }
 0x180   : > { %v5377_v2 = vld [vmem:[%s6247_s4 + $0x220] ss:$24 sps:$4 sm:$0xff]  }
 0x181   : > { %v6344_v5 = vpack.c.bf16 %v569_v8, %v567_v7  ;;  %v6347_v4 = vpack.c.bf16 %v568_v11, %v566_v10  ;;  %v5380_v7 = vld [vmem:[%s6247_s4 + $0x250] ss:$24 sps:$4 sm:$0xff]   ;;  %v5385_v8 = vld [vmem:[%s6247_s4 + $0x284] ss:$24 sps:$4 sm:$0xff]   ;;  %v5383_v10 = vld [vmem:[%s6247_s4 + $0x280] ss:$24 sps:$4 sm:$0xff]  }
 0x182   : > { %v5388_v11 = vld [vmem:[%s6247_s4 + $0x2b4] ss:$24 sps:$4 sm:$0xff]  }
 0x183   : > { %1180 = vmatprep.mubr.bf16.mxu0 %v6344_v5 }
 0x184   : > { %1181 = vmatmul.mubr.bf16.vlgmr.msra.gmra.mrb[0].mxu0 %v6347_v4 }
 0x185   : > { %1192 = vmatpush1.bf16.msra.mxu0 %v5296_v12  ;;  %1223 = vmatprep.mubr.bf16.mxu0 %v6344_v5  ;;  %v5391_v12 = vld [vmem:[%s6247_s4 + $0x2e4] ss:$24 sps:$4 sm:$0xff]  }
 0x186   : > { %1193 = vmatprep.subr.bf16.mxu0 %v5301_v13  ;;  %v5389_v13 = vld [vmem:[%s6247_s4 + $0x2e0] ss:$24 sps:$4 sm:$0xff]  }
 0x189   : > { %1194 = vmatpush1.bf16.msra.mxu0 %v5299_v6  ;;  %v5919_v6 = vmov 0.0  }
 0x18a   : > { %1195 = vmatprep.subr.bf16.mxu0 %v5304_v9  ;;  %5082 = vmatprep.subr.bf16.mxu1 %v5919_v6 }
 0x18b   : > { %5084 = vmatprep.mubr.msk.bf16.mxu1 %vm5920_vm0, %v5919_v6 }
 0x18d   : > { %1196 = vmatpush1.bf16.msra.mxu0 %v5302_v14 }
 0x18e   : > { %1197 = vmatprep.subr.bf16.mxu0 %v5307_v15 }
 0x191   : > { %1198 = vmatpush1.bf16.msra.mxu0 %v5305_v16 }
 0x192   : > { %1199 = vmatprep.subr.bf16.mxu0 %v5310_v17 }
 0x195   : > { %1200 = vmatpush1.bf16.msra.mxu0 %v5308_v18 }
 0x196   : > { %1201 = vmatprep.subr.bf16.mxu0 %v5313_v19 }
 0x199   : > { %1202 = vmatpush1.bf16.msra.mxu0 %v5311_v20 }
 0x19a   : > { %1203 = vmatprep.subr.bf16.mxu0 %v5316_v21 }
 0x19d   : > { %1204 = vmatpush1.bf16.msra.mxu0 %v5314_v22 }
 0x19e   : > { %1205 = vmatprep.subr.bf16.mxu0 %v5319_v23 }
 0x1a1   : > { %1206 = vmatpush1.bf16.msra.mxu0 %v5317_v24 }
 0x1a2   : > { %1207 = vmatprep.subr.bf16.mxu0 %v5322_v25 }
 0x1a5   : > { %1208 = vmatpush1.bf16.msra.mxu0 %v5320_v26 }
 0x1a6   : > { %1209 = vmatprep.subr.bf16.mxu0 %v5325_v27 }
 0x1a9   : > { %1210 = vmatpush1.bf16.msra.mxu0 %v5323_v28 }
 0x1aa   : > { %1211 = vmatprep.subr.bf16.mxu0 %v5328_v29 }
 0x1ad   : > { %1212 = vmatpush1.bf16.msra.mxu0 %v5326_v30 }
 0x1ae   : > { %1213 = vmatprep.subr.bf16.mxu0 %v5331_v31 }
 0x1b1   : > { %1214 = vmatpush1.bf16.msra.mxu0 %v5329_v32 }
 0x1b2   : > { %1215 = vmatprep.subr.bf16.mxu0 %v5334_v33 }
 0x1b5   : > { %1216 = vmatpush1.bf16.msra.mxu0 %v5332_v34  ;;  %v6462_v34 = vld [vmem:[%s7017_s9] sm:$0x3] }
 0x1b6   : > { %1217 = vmatprep.subr.bf16.mxu0 %v5337_v35  ;;  %v6466_v35 = vrot.slane %v6462_v34, %v6333_v55 }
 0x1b9   : > { %1218 = vmatpush1.bf16.msra.mxu0 %v5335_v36  ;;  %v6471_v36 = vld [vmem:[%s7018_s1] sm:$0xff] }
 0x1ba   : > { %1219 = vmatprep.subr.bf16.mxu0 %v5340_v37  ;;  %v1281_v37 = vadd.f32 %v6466_v35, %v6471_v36 }
 0x1bd   : > { %1220 = vmatpush1.bf16.msra.mxu0 %v5338_v38 }
 0x1be   : > { %1221 = vmatprep.subr.bf16.mxu0 %v5343_v39 }
 0x1c1   : > { %1222 = vmatpush1.bf16.msra.mxu0 %v5341_v40 }
 0x1c2   : > { %1234 = vmatprep.subr.bf16.mxu0 %v5346_v41 }
 0x1c4   : > { %1224 = vmatmul.mubr.bf16.vlgmr.msra.gmra.mrb[4].mxu0 %v6347_v4 }
 0x1c5   : > { %1235 = vmatpush1.bf16.msra.mxu0 %v5344_v42  ;;  %1266 = vmatprep.mubr.bf16.mxu0 %v6344_v5  ;;  %v5386_v5 = vld [vmem:[%s6247_s4 + $0x2b0] ss:$24 sps:$4 sm:$0xff]  }
 0x1c6   : > { %1236 = vmatprep.subr.bf16.mxu0 %v5349_v43 }
 0x1c9   : > { %1237 = vmatpush1.bf16.msra.mxu0 %v5347_v44 }
 0x1ca   : > { %1238 = vmatprep.subr.bf16.mxu0 %v5352_v45 }
 0x1cd   : > { %1239 = vmatpush1.bf16.msra.mxu0 %v5350_v46 }
 0x1ce   : > { %1240 = vmatprep.subr.bf16.mxu0 %v5355_v47 }
 0x1d1   : > { %1241 = vmatpush1.bf16.msra.mxu0 %v5353_v48 }
 0x1d2   : > { %1242 = vmatprep.subr.bf16.mxu0 %v5358_v49 }
 0x1d5   : > { %1243 = vmatpush1.bf16.msra.mxu0 %v5356_v50 }
 0x1d6   : > { %1244 = vmatprep.subr.bf16.mxu0 %v5361_v51 }
 0x1d9   : > { %1245 = vmatpush1.bf16.msra.mxu0 %v5359_v52 }
 0x1da   : > { %1246 = vmatprep.subr.bf16.mxu0 %v5364_v54  ;;  %v6481_v54 = vld [vmem:[%s7018_s1 + $0x10] sm:$0xff] }
 0x1dd   : > { %1247 = vmatpush1.bf16.msra.mxu0 %v5362_v56  ;;  %v1513_v56 = vadd.f32 %v6466_v35, %v6481_v54 }
 0x1de   : > { %1248 = vmatprep.subr.bf16.mxu0 %v5367_v57 }
 0x1e1   : > { %1249 = vmatpush1.bf16.msra.mxu0 %v5365_v58 }
 0x1e2   : > { %1250 = vmatprep.subr.bf16.mxu0 %v5370_v59 }
 0x1e5   : > { %1251 = vmatpush1.bf16.msra.mxu0 %v5368_v60 }
 0x1e6   : > { %1252 = vmatprep.subr.bf16.mxu0 %v5373_v61 }
 0x1e9   : > { %1253 = vmatpush1.bf16.msra.mxu0 %v5371_v62 }
 0x1ea   : > { %1254 = vmatprep.subr.bf16.mxu0 %v5376_v63 }
 0x1ed   : > { %1255 = vmatpush1.bf16.msra.mxu0 %v5374_v0 }
 0x1ee   : > { %1256 = vmatprep.subr.bf16.mxu0 %v5379_v1 }
 0x1f1   : > { %1257 = vmatpush1.bf16.msra.mxu0 %v5377_v2 }
 0x1f2   : > { %1258 = vmatprep.subr.bf16.mxu0 %v5382_v3 }
 0x1f5   : > { %1259 = vmatpush1.bf16.msra.mxu0 %v5380_v7 }
 0x1f6   : > { %1260 = vmatprep.subr.bf16.mxu0 %v5385_v8 }
 0x1f9   : > { %1261 = vmatpush1.bf16.msra.mxu0 %v5383_v10 }
 0x1fa   : > { %1262 = vmatprep.subr.bf16.mxu0 %v5388_v11 }
 0x1fd   : > { %1263 = vmatpush1.bf16.msra.mxu0 %v5386_v5  ;;  %v6499_v5 = vld [vmem:[%s7018_s1 + $0x8] sm:$0xff] }
 0x1fe   : > { %1264 = vmatprep.subr.bf16.mxu0 %v5391_v12 }
 0x201   : > { %1265 = vmatpush1.bf16.msra.mxu0 %v5389_v13  ;;  %v1393_v13 = vadd.f32 %v6466_v35, %v6499_v5 }
 0x202   : > { %5058 = vmatprep.subr.bf16.mxu0 %v5919_v6 }
 0x204   : > { %1267 = vmatmul.mubr.bf16.vlgmr.msra.gmra.mrb[8].mxu0 %v6347_v4 }
 0x205   : > { %5060 = vmatprep.mubr.msk.bf16.mxu0 %vm5920_vm0, %v5919_v6 }
 0x257   : > { %v1182_v9 = vpop.f32.mrb[0].mxu0 }
 0x258   : > { %v1184_v14 = vpop.f32.mrb[1].mxu0  ;;  %v1282_v24 = vpack.c.bf16 %v1182_v9, %v1182_v9 }
 0x259   : > { %v6423_v15 = vpop.f32.mrb[2].mxu0  ;;  %v6436_v25 = vpack.c.bf16 %v1184_v14, %v1184_v14 }
 0x25a   : > { %v6425_v16 = vpop.f32.mrb[3].mxu0 }
 0x297   : > { %v1225_v17 = vpop.f32.mrb[4].mxu0 }
 0x298   : > { %v1283_v4 = vpack.c.bf16 %v1225_v17, %v1225_v17  ;;  %v1227_v18 = vpop.f32.mrb[5].mxu0 }
 0x299   : > { %v1515_v19 = vpack.c.bf16 %v1227_v18, %v1227_v18  ;;  %v6427_v20 = vpop.f32.mrb[6].mxu0 }
 0x29a   : > { %v1289_v21 = vsel %vm1284_vm1, %v1283_v4, 0  ;;  %1398 = vrot.lane.b32.xlu0 %v1283_v4, %s5921_s24  ;;  %v6431_v22 = vpop.f32.mrb[7].mxu0 }
 0x29b   : > { %5059 = vmatpush3.bf16.xpose.msra.mxu0 %v1289_v21  ;;  %v1520_v23 = vsel %vm1284_vm1, %v1515_v19, 0 }
 0x29c   : > { %5083 = vmatpush3.bf16.xpose.msra.mxu1 %v1520_v23  ;;  %5064 = vmatprep.subr.bf16.mxu0 %v5919_v6 }
 0x29d   : > { %5088 = vmatprep.subr.bf16.mxu1 %v5919_v6 }
 0x2a2   : > { %5061 = vmatmul.mubr.msk.bf16.vlgmr.msra.gmra.mrb[12].mxu0 %vm1284_vm1, %v1282_v24 }
 0x2a3   : > { %5085 = vmatmul.mubr.msk.bf16.vlgmr.msra.gmra.mrb[0].mxu1 %vm1284_vm1, %v6436_v25  ;;  %5066 = vmatprep.mubr.msk.bf16.mxu0 %vm5920_vm0, %v5919_v6 }
 0x2a4   : > { %5090 = vmatprep.mubr.msk.bf16.mxu1 %vm5920_vm0, %v5919_v6 }
 0x2d7   : > { %v1268_v26 = vpop.f32.mrb[8].mxu0 }
 0x2d8   : > { %v6445_v27 = vpack.c.bf16 %v1268_v26, %v1268_v26  ;;  %v1270_v28 = vpop.f32.mrb[9].mxu0  ;;  %v1974_v26 = vpack.c.bf16 %v6425_v16, %v6425_v16 }
 0x2d9   : > { %v6447_v29 = vpack.c.bf16 %v1270_v28, %v1270_v28  ;;  %v6449_v30 = vpop.f32.mrb[10].mxu0 }
 0x2da   : > { %v1350_v31 = vsel %vm1348_vm2, %v6445_v27, 0  ;;  %v6453_v32 = vpop.f32.mrb[11].mxu0 }
 0x2db   : > { %v1579_v33 = vsel %vm1348_vm2, %v6447_v29, 0  ;;  %5065 = vmatpush3.bf16.msra.mxu0 %v1350_v31 }
 0x2dc   : > { %5089 = vmatpush3.bf16.msra.mxu1 %v1579_v33  ;;  %5070 = vmatprep.subr.bf16.mxu0 %v5919_v6 }
 0x2dd   : > { %5094 = vmatprep.subr.bf16.mxu1 %v5919_v6 }
 0x30c   : > { %v1399_v62 = vpop.permute.xlu0 %1398 }
 0x30d   : > { %v1404_v0 = vsel %vm1284_vm1, %v1399_v62, 0 }
 0x375   : > { %v1325_v38 = vpop.f32.mrb[12].mxu0 }
 0x376   : > { %v1326_v39 = vadd.f32 %v1325_v38, %v1281_v37  ;;  %v5062_v40 = vpop.f32.mrb[13].mxu0  ;;  %v1556_v41 = vpop.f32.mrb[0].mxu1 }
 0x377   : > { %v1328_v42 = vpop.f32.mrb[14].mxu0  ;;  %v5086_v43 = vpop.f32.mrb[1].mxu1  ;;  %v1557_v57 = vadd.f32 %v1556_v41, %v1513_v56 }
 0x378   : > { %v5063_v44 = vpop.f32.mrb[15].mxu0  ;;  %v1559_v45 = vpop.f32.mrb[2].mxu1  ;;  %v1332_v46 = vsel %vm1331_vm3, %v1326_v39, -inf }
 0x379   : > { %v5087_v47 = vpop.f32.mrb[3].mxu1  ;;  %1333 = vmax.xlane.f32.xlu1 %v1332_v46  ;;  %v1562_v58 = vsel %vm1331_vm3, %v1557_v57, -inf  ;;  %v1747_v44 = vpack.c.bf16 %v6427_v20, %v6427_v20  ;;  %v1975_v45 = vpack.c.bf16 %v6431_v22, %v6431_v22 }
 0x37b   : > { %v1752_v20 = vsel %vm1284_vm1, %v1747_v44, 0 }
 0x406   : > { %v1334_v48 = vpop.xlane.xlu1 %1333 }
 0x407   : > { %v1335_v49 = vsub.f32 %v1326_v39, %v1334_v48 }
 0x409   : > { %v1336_v50 = vmul.f32 1.442695, %v1335_v49 }
 0x40b   : > { %5636 = vpow2.f32 %v1336_v50 }
 0x415   : > { %v5637_v51 = vpop.eup %5636 }
 0x416   : > { %v1338_v52 = vsel %vm1331_vm3, %v5637_v51, 0.0 }
 0x417   : > { %1339 = vadd.xlane.f32.xlu1 %v1338_v52  ;;  %v1980_v52 = vsel %vm1284_vm1, %v1975_v45, 0 }
 0x428   : > { %1395 = vrot.lane.b32.xlu1 %v1282_v24, %s5921_s24  ;;  %v1746_v24 = vpack.c.bf16 %v6423_v15, %v6423_v15 }
 0x44c   : > { %1563 = vmax.xlane.f32.xlu1 %v1562_v58 }
 0x45d   : > { %1627 = vrot.lane.b32.xlu1 %v1515_v19, %s5921_s24 }
 0x4a4   : > { %v1340_v59 = vpop.xlane.xlu1 %1339 }
 0x4a5   : > { %5638 = vrcp.f32 %v1340_v59 }
 0x4a8   : > { %v1396_v1 = vpop.permute.xlu1 %1395 }
 0x4af   : > { %v5639_v60 = vpop.eup %5638 }
 0x4b0   : > { %v1342_v61 = vmul.f32 %v5639_v60, %v5637_v51 }
 0x4b2   : > { %v1343_v63 = vpack.c.bf16 %v1342_v61, %v1342_v61 }
 0x4b4   : > { %5067 = vmatmul.mubr.msk.bf16.vlgmr.msra.gmra.mrb[16].mxu0 %vm1331_vm3, %v1343_v63  ;;  %v524_v63 = vld [vmem:[%s7018_s1 + $0x18] sm:$0xff] }
 0x4b5   : > { %5071 = vmatpush3.bf16.xpose.msra.mxu0 %v1404_v0  ;;  %5072 = vmatprep.mubr.msk.bf16.mxu0 %vm5920_vm0, %v5919_v6  ;;  %v1622_v0 = vadd.f32 %v6466_v35, %v524_v63 }
 0x4b6   : > { %5076 = vmatprep.subr.bf16.mxu0 %v5919_v6 }
 0x4bc   : > { %5073 = vmatmul.mubr.msk.bf16.vlgmr.msra.gmra.mrb[20].mxu0 %vm1284_vm1, %v1396_v1 }
 0x4bd   : > { %5078 = vmatprep.mubr.msk.bf16.mxu0 %vm5920_vm0, %v5919_v6 }
 0x4d9   : > { %v1564_v2 = vpop.xlane.xlu1 %1563 }
 0x4da   : > { %v1565_v3 = vsub.f32 %v1557_v57, %v1564_v2 }
 0x4dc   : > { %v1566_v7 = vmul.f32 1.442695, %v1565_v3 }
 0x4dd   : > { %v1628_v16 = vpop.permute.xlu1 %1627 }
 0x4de   : > { %5640 = vpow2.f32 %v1566_v7  ;;  %v1633_v43 = vsel %vm1284_vm1, %v1628_v16, 0 }
 0x4e8   : > { %v5641_v21 = vpop.eup %5640 }
 0x4e9   : > { %v1568_v23 = vsel %vm1331_vm3, %v5641_v21, 0.0 }
 0x587   : > { %v1386_v8 = vpop.f32.mrb[16].mxu0 }
 0x588   : > { %1392 = vst.msk [vmem:[#allocation3] sm:$0xff] %vm1284_vm1, %v1386_v8  ;;  %v5068_v10 = vpop.f32.mrb[17].mxu0 }
 0x589   : > { %v1389_v11 = vpop.f32.mrb[18].mxu0 }
 0x58a   : > { %v5069_v12 = vpop.f32.mrb[19].mxu0  ;;  %v6559_v11 = vsub.s32 1, %v6330_v53 }
 0x58f   : > { %v1440_v9 = vpop.f32.mrb[20].mxu0 }
 0x590   : > { %v1441_v14 = vadd.f32 %v1440_v9, %v1393_v13  ;;  %v5074_v17 = vpop.f32.mrb[21].mxu0  ;;  %v1744_v9 = vrot.slane %v6462_v34, %v6559_v11 }
 0x591   : > { %v1443_v4 = vpop.f32.mrb[22].mxu0 }
 0x592   : > { %v5075_v18 = vpop.f32.mrb[23].mxu0  ;;  %v1446_v19 = vsel %vm1331_vm3, %v1441_v14, -inf  ;;  %v1745_v35 = vadd.f32 %v1744_v9, %v6471_v36  ;;  %v1973_v36 = vadd.f32 %v1744_v9, %v6481_v54 }
 0x593   : > { %1447 = vmax.xlane.f32.xlu0 %v1446_v19 }
 0x597   : > { %1569 = vadd.xlane.f32.xlu0 %v1568_v23 }
 0x5ad   : > { %1459 = vrot.lane.b32.xlu0 %v6445_v27, %s5921_s24 }
 0x5b1   : > { %1856 = vrot.lane.b32.xlu0 %v1746_v24, %s5921_s24 }
 0x5b5   : > { %2084 = vrot.lane.b32.xlu0 %v1974_v26, %s5921_s24 }
 0x620   : > { %v1448_v28 = vpop.xlane.xlu0 %1447 }
 0x621   : > { %v1449_v31 = vsub.f32 %v1441_v14, %v1448_v28 }
 0x623   : > { %v1450_v33 = vmul.f32 1.442695, %v1449_v31 }
 0x624   : > { %v1570_v37 = vpop.xlane.xlu0 %1569 }
 0x625   : > { %5642 = vpow2.f32 %v1450_v33 }
 0x626   : > { %5644 = vrcp.f32 %v1570_v37 }
 0x628   : > { %v1460_v38 = vpop.permute.xlu0 %1459 }
 0x629   : > { %v1465_v39 = vsel %vm1348_vm2, %v1460_v38, 0 }
 0x62a   : > { %5077 = vmatpush3.bf16.msra.mxu0 %v1465_v39 }
 0x62b   : > { %5106 = vmatprep.subr.bf16.mxu0 %v5919_v6 }
 0x62c   : > { %v1857_v51 = vpop.permute.xlu0 %1856 }
 0x62f   : > { %v5643_v15 = vpop.eup %5642 }
 0x630   : > { %v5645_v27 = vpop.eup %5644  ;;  %v1452_v40 = vsel %vm1331_vm3, %v5643_v15, 0.0  ;;  %v2085_v58 = vpop.permute.xlu0 %2084 }
 0x631   : > { %v1572_v41 = vmul.f32 %v5645_v27, %v5641_v21  ;;  %1453 = vadd.xlane.f32.xlu1 %v1452_v40 }
 0x633   : > { %v1573_v42 = vpack.c.bf16 %v1572_v41, %v1572_v41 }
 0x635   : > { %5091 = vmatmul.mubr.msk.bf16.vlgmr.msra.gmra.mrb[4].mxu1 %vm1331_vm3, %v1573_v42  ;;  %v2082_v42 = vadd.f32 %v1744_v9, %v524_v63 }
 0x636   : > { %5095 = vmatpush3.bf16.xpose.msra.mxu1 %v1633_v43  ;;  %5096 = vmatprep.mubr.msk.bf16.mxu1 %vm5920_vm0, %v5919_v6 }
 0x637   : > { %5100 = vmatprep.subr.bf16.mxu1 %v5919_v6 }
 0x642   : > { %1624 = vrot.lane.b32.xlu1 %v6436_v25, %s5921_s24 }
 0x646   : > { %1859 = vrot.lane.b32.xlu1 %v1747_v44, %s5921_s24 }
 0x64a   : > { %2087 = vrot.lane.b32.xlu1 %v1975_v45, %s5921_s24 }
 0x6be   : > { %v1454_v46 = vpop.xlane.xlu1 %1453 }
 0x6bf   : > { %5646 = vrcp.f32 %v1454_v46 }
 0x6c2   : > { %v1625_v47 = vpop.permute.xlu1 %1624 }
 0x6c3   : > { %5097 = vmatmul.mubr.msk.bf16.vlgmr.msra.gmra.mrb[8].mxu1 %vm1284_vm1, %v1625_v47 }
 0x6c4   : > { %5102 = vmatprep.mubr.msk.bf16.mxu1 %vm5920_vm0, %v5919_v6 }
 0x6c6   : > { %v1860_v22 = vpop.permute.xlu1 %1859 }
 0x6c7   : > { %v1865_v50 = vsel %vm1284_vm1, %v1860_v22, 0 }
 0x6c9   : > { %v5647_v48 = vpop.eup %5646 }
 0x6ca   : > { %v1456_v25 = vmul.f32 %v5647_v48, %v5643_v15  ;;  %v2088_v56 = vpop.permute.xlu1 %2087 }
 0x6cb   : > { %v2093_v57 = vsel %vm1284_vm1, %v2088_v56, 0 }
 0x6cc   : > { %v1457_v49 = vpack.c.bf16 %v1456_v25, %v1456_v25 }
 0x6ce   : > { %5079 = vmatmul.mubr.msk.bf16.vlgmr.msra.gmra.mrb[24].mxu0 %vm1331_vm3, %v1457_v49 }
 0x6cf   : > { %5107 = vmatpush3.bf16.xpose.msra.mxu0 %v1752_v20  ;;  %5108 = vmatprep.mubr.msk.bf16.mxu0 %vm5920_vm0, %v5919_v6 }
 0x6d0   : > { %5118 = vmatprep.subr.bf16.mxu0 %v5919_v6 }
 0x6d6   : > { %5109 = vmatmul.mubr.msk.bf16.vlgmr.msra.gmra.mrb[28].mxu0 %vm1284_vm1, %v1746_v24 }
 0x6d7   : > { %5119 = vmatpush3.bf16.xpose.msra.mxu0 %v1865_v50  ;;  %5120 = vmatprep.mubr.msk.bf16.mxu0 %vm5920_vm0, %v5919_v6 }
 0x6d8   : > { %5130 = vmatprep.subr.bf16.mxu0 %v5919_v6 }
 0x6de   : > { %5121 = vmatmul.mubr.msk.bf16.vlgmr.msra.gmra.mrb[32].mxu0 %vm1284_vm1, %v1857_v51 }
 0x6df   : > { %5131 = vmatpush3.bf16.xpose.msra.mxu0 %v1980_v52  ;;  %5132 = vmatprep.mubr.msk.bf16.mxu0 %vm5920_vm0, %v5919_v6 }
 0x6e0   : > { %5142 = vmatprep.subr.bf16.mxu0 %v5919_v6 }
 0x6e6   : > { %5133 = vmatmul.mubr.msk.bf16.vlgmr.msra.gmra.mrb[36].mxu0 %vm1284_vm1, %v1974_v26  ;;  %v1854_v26 = vadd.f32 %v1744_v9, %v6499_v5  ;;  %v2034_v9 = vpack.c.bf16 %v6453_v32, %v6453_v32 }
 0x6e7   : > { %5143 = vmatpush3.bf16.xpose.msra.mxu0 %v2093_v57  ;;  %5144 = vmatprep.mubr.msk.bf16.mxu0 %vm5920_vm0, %v5919_v6 }
 0x6ee   : > { %5145 = vmatmul.mubr.msk.bf16.vlgmr.msra.gmra.mrb[40].mxu0 %vm1284_vm1, %v2085_v58 }
 0x708   : > { %v1615_v59 = vpop.f32.mrb[4].mxu1 }
 0x709   : > { %1621 = vst.msk [vmem:[#allocation3 + $0x8] sm:$0xff] %vm1284_vm1, %v1615_v59  ;;  %v5092_v60 = vpop.f32.mrb[5].mxu1 }
 0x70a   : > { %v1618_v61 = vpop.f32.mrb[6].mxu1 }
 0x70b   : > { %v5093_v62 = vpop.f32.mrb[7].mxu1 }
 0x70c   : > { %v1806_v62 = vpack.c.bf16 %v6449_v30, %v6449_v30 }
 0x70e   : > { %v1811_v32 = vsel %vm1348_vm2, %v1806_v62, 0 }
 0x796   : > { %v1669_v1 = vpop.f32.mrb[8].mxu1 }
 0x797   : > { %v1670_v2 = vadd.f32 %v1669_v1, %v1622_v0  ;;  %v5098_v3 = vpop.f32.mrb[9].mxu1 }
 0x798   : > { %v1672_v7 = vpop.f32.mrb[10].mxu1 }
 0x799   : > { %v5099_v8 = vpop.f32.mrb[11].mxu1  ;;  %v1675_v10 = vsel %vm1331_vm3, %v1670_v2, -inf }
 0x79a   : > { %1676 = vmax.xlane.f32.xlu1 %v1675_v10 }
 0x7a1   : > { %v6561_v12 = vpop.f32.mrb[24].mxu0 }
 0x7a2   : > { %v5080_v13 = vpop.f32.mrb[25].mxu0 }
 0x7a3   : > { %v1504_v14 = vpop.f32.mrb[26].mxu0 }
 0x7a4   : > { %v5081_v17 = vpop.f32.mrb[27].mxu0 }
 0x7a9   : > { %v1788_v4 = vpop.f32.mrb[28].mxu0 }
 0x7aa   : > { %v1789_v18 = vadd.f32 %v1788_v4, %v1745_v35  ;;  %v5110_v19 = vpop.f32.mrb[29].mxu0 }
 0x7ab   : > { %v1791_v21 = vpop.f32.mrb[30].mxu0 }
 0x7ac   : > { %v5111_v23 = vpop.f32.mrb[31].mxu0  ;;  %v1794_v24 = vsel %vm1331_vm3, %v1789_v18, -inf }
 0x7ad   : > { %1795 = vmax.xlane.f32.xlu0 %v1794_v24 }
 0x7b1   : > { %v1901_v28 = vpop.f32.mrb[32].mxu0 }
 0x7b2   : > { %v1902_v31 = vadd.f32 %v1901_v28, %v1854_v26  ;;  %v5122_v33 = vpop.f32.mrb[33].mxu0 }
 0x7b3   : > { %v1904_v37 = vpop.f32.mrb[34].mxu0 }
 0x7b4   : > { %v5123_v38 = vpop.f32.mrb[35].mxu0  ;;  %v1907_v34 = vsel %vm1331_vm3, %v1902_v31, -inf }
 0x7b5   : > { %1908 = vmax.xlane.f32.xlu0 %v1907_v34  ;;  %v2039_v34 = vsel %vm1348_vm2, %v2034_v9, 0 }
 0x7b9   : > { %v2016_v39 = vpop.f32.mrb[36].mxu0 }
 0x7ba   : > { %v2017_v15 = vadd.f32 %v2016_v39, %v1973_v36  ;;  %v5134_v27 = vpop.f32.mrb[37].mxu0 }
 0x7bb   : > { %v2019_v40 = vpop.f32.mrb[38].mxu0 }
 0x7bc   : > { %v5135_v41 = vpop.f32.mrb[39].mxu0  ;;  %v2022_v16 = vsel %vm1331_vm3, %v2017_v15, -inf }
 0x7bd   : > { %2023 = vmax.xlane.f32.xlu0 %v2022_v16 }
 0x7c1   : > { %v2129_v5 = vpop.f32.mrb[40].mxu0 }
 0x7c2   : > { %v2130_v43 = vadd.f32 %v2129_v5, %v2082_v42  ;;  %v5146_v44 = vpop.f32.mrb[41].mxu0 }
 0x7c3   : > { %v2132_v45 = vpop.f32.mrb[42].mxu0  ;;  %v5392_v44 = vld [vmem:[%s6253_s2] ss:$8 sps:$4 sm:$0xff]  }
 0x7c4   : > { %v5147_v46 = vpop.f32.mrb[43].mxu0  ;;  %v2135_v47 = vsel %vm1331_vm3, %v2130_v43, -inf  ;;  %v5394_v45 = vld [vmem:[%s6253_s2 + $0x4] ss:$8 sps:$4 sm:$0xff]  }
 0x7c5   : > { %2136 = vmax.xlane.f32.xlu1 %v2135_v47  ;;  %v5397_v46 = vld [vmem:[%s6253_s2 + $0x14] ss:$8 sps:$4 sm:$0xff]   ;;  %2399 = vmatprep.subr.bf16.mxu0 %v5394_v45  ;;  %v5395_v47 = vld [vmem:[%s6253_s2 + $0x10] ss:$8 sps:$4 sm:$0xff]   ;;  %v2490_v45 = vld [vmem:[%s6255_s30] sm:$0xff] }
 0x7c6   : > { %2400 = vmatpush1.bf16.msra.mxu0 %v5392_v44 }
 0x7c7   : > { %2401 = vmatprep.subr.bf16.mxu0 %v5397_v46  ;;  %v2494_v46 = vld [vmem:[%s6255_s30 + $0x20] sm:$0xff] }
 0x7ca   : > { %2402 = vmatpush1.bf16.msra.mxu0 %v5395_v47  ;;  %v2491_v47 = vld [vmem:[%s6255_s30 + $0x8] sm:$0xff] }
 0x827   : > { %v1677_v48 = vpop.xlane.xlu1 %1676 }
 0x828   : > { %v1678_v25 = vsub.f32 %v1670_v2, %v1677_v48  ;;  %v5400_v48 = vld [vmem:[%s6253_s2 + $0x24] ss:$8 sps:$4 sm:$0xff]  }
 0x829   : > { %2403 = vmatprep.subr.bf16.mxu0 %v5400_v48  ;;  %v4759_v48 = vcombine.low %v2490_v45, %v2494_v46 }
 0x82a   : > { %v1679_v54 = vmul.f32 1.442695, %v1678_v25  ;;  %v5398_v25 = vld [vmem:[%s6253_s2 + $0x20] ss:$8 sps:$4 sm:$0xff]  }
 0x82b   : > { %2404 = vmatpush1.bf16.msra.mxu0 %v5398_v25  ;;  %v4760_v25 = vcombine.high %v2490_v45, %v2494_v46  ;;  %v2554_v46 = vld [vmem:[%s6255_s30 + $0x200] sm:$0xff] }
 0x82c   : > { %5648 = vpow2.f32 %v1679_v54 }
 0x836   : > { %v5649_v49 = vpop.eup %5648 }
 0x837   : > { %v1681_v20 = vsel %vm1331_vm3, %v5649_v49, 0.0 }
 0x838   : > { %1682 = vadd.xlane.f32.xlu0 %v1681_v20 }
 0x83a   : > { %v1796_v22 = vpop.xlane.xlu0 %1795 }
 0x83b   : > { %v1797_v50 = vsub.f32 %v1789_v18, %v1796_v22 }
 0x83d   : > { %v1798_v51 = vmul.f32 1.442695, %v1797_v50  ;;  %v5401_v50 = vld [vmem:[%s6253_s2 + $0x30] ss:$8 sps:$4 sm:$0xff]  }
 0x83f   : > { %5650 = vpow2.f32 %v1798_v51  ;;  %v5406_v51 = vld [vmem:[%s6253_s2 + $0x44] ss:$8 sps:$4 sm:$0xff]  }
 0x842   : > { %v1909_v52 = vpop.xlane.xlu0 %1908 }
 0x843   : > { %v1910_v56 = vsub.f32 %v1902_v31, %v1909_v52  ;;  %v5404_v52 = vld [vmem:[%s6253_s2 + $0x40] ss:$8 sps:$4 sm:$0xff]  }
 0x845   : > { %v1911_v57 = vmul.f32 1.442695, %v1910_v56 }
 0x847   : > { %5652 = vpow2.f32 %v1911_v57  ;;  %v5409_v57 = vld [vmem:[%s6253_s2 + $0x54] ss:$8 sps:$4 sm:$0xff]  }
 0x849   : > { %v5651_v58 = vpop.eup %5650 }
 0x84a   : > { %v1800_v59 = vsel %vm1331_vm3, %v5651_v58, 0.0  ;;  %v2024_v63 = vpop.xlane.xlu0 %2023 }
 0x84b   : > { %1801 = vadd.xlane.f32.xlu1 %v1800_v59  ;;  %v2025_v0 = vsub.f32 %v2017_v15, %v2024_v63 }
 0x84d   : > { %v2026_v2 = vmul.f32 1.442695, %v2025_v0  ;;  %v5415_v0 = vld [vmem:[%s6253_s2 + $0x74] ss:$8 sps:$4 sm:$0xff]  }
 0x84f   : > { %5654 = vpow2.f32 %v2026_v2 }
 0x851   : > { %v5653_v60 = vpop.eup %5652 }
 0x852   : > { %v1913_v61 = vsel %vm1331_vm3, %v5653_v60, 0.0  ;;  %v2137_v1 = vpop.xlane.xlu1 %2136 }
 0x853   : > { %1914 = vadd.xlane.f32.xlu0 %v1913_v61  ;;  %v2138_v3 = vsub.f32 %v2130_v43, %v2137_v1  ;;  %v5407_v61 = vld [vmem:[%s6253_s2 + $0x50] ss:$8 sps:$4 sm:$0xff]  }
 0x855   : > { %v2139_v7 = vmul.f32 1.442695, %v2138_v3 }
 0x857   : > { %5656 = vpow2.f32 %v2139_v7  ;;  %v5413_v7 = vld [vmem:[%s6253_s2 + $0x70] ss:$8 sps:$4 sm:$0xff]  }
 0x859   : > { %v5655_v8 = vpop.eup %5654 }
 0x85a   : > { %v2028_v10 = vsel %vm1331_vm3, %v5655_v8, 0.0 }
 0x85c   : > { %1920 = vrot.lane.b32.xlu1 %v1806_v62, %s5921_s24  ;;  %v5412_v62 = vld [vmem:[%s6253_s2 + $0x64] ss:$8 sps:$4 sm:$0xff]  }
 0x861   : > { %v5657_v13 = vpop.eup %5656 }
 0x862   : > { %v2141_v30 = vsel %vm1331_vm3, %v5657_v13, 0.0 }
 0x869   : > { %1688 = vrot.lane.b32.xlu0 %v6447_v29, %s5921_s24 }
 0x880   : > { %2029 = vadd.xlane.f32.xlu1 %v2028_v10  ;;  %v5416_v10 = vld [vmem:[%s6253_s2 + $0x80] ss:$8 sps:$4 sm:$0xff]  }
 0x884   : > { %2142 = vadd.xlane.f32.xlu1 %v2141_v30  ;;  %v5419_v30 = vld [vmem:[%s6253_s2 + $0x90] ss:$8 sps:$4 sm:$0xff]  }
 0x895   : > { %2148 = vrot.lane.b32.xlu1 %v2034_v9, %s5921_s24  ;;  %v5424_v9 = vld [vmem:[%s6253_s2 + $0xa4] ss:$8 sps:$4 sm:$0xff]  }
 0x8c5   : > { %v1683_v29 = vpop.xlane.xlu0 %1682 }
 0x8c6   : > { %5658 = vrcp.f32 %v1683_v29  ;;  %v5422_v29 = vld [vmem:[%s6253_s2 + $0xa0] ss:$8 sps:$4 sm:$0xff]  }
 0x8d0   : > { %v5659_v17 = vpop.eup %5658 }
 0x8d1   : > { %v1685_v4 = vmul.f32 %v5659_v17, %v5649_v49  ;;  %v5425_v17 = vld [vmem:[%s6253_s2 + $0xb0] ss:$8 sps:$4 sm:$0xff]  }
 0x8d3   : > { %v1686_v21 = vpack.c.bf16 %v1685_v4, %v1685_v4  ;;  %v5428_v4 = vld [vmem:[%s6253_s2 + $0xc0] ss:$8 sps:$4 sm:$0xff]  }
 0x8d8   : > { %v1802_v14 = vpop.xlane.xlu1 %1801 }
 0x8d9   : > { %5660 = vrcp.f32 %v1802_v14  ;;  %v5427_v14 = vld [vmem:[%s6253_s2 + $0xb4] ss:$8 sps:$4 sm:$0xff]  }
 0x8dc   : > { %v1921_v26 = vpop.permute.xlu1 %1920 }
 0x8dd   : > { %v1926_v33 = vsel %vm1348_vm2, %v1921_v26, 0  ;;  %v5439_v26 = vld [vmem:[%s6253_s2 + $0xf4] ss:$8 sps:$4 sm:$0xff]  }
 0x8e0   : > { %v1915_v35 = vpop.xlane.xlu0 %1914 }
 0x8e1   : > { %5662 = vrcp.f32 %v1915_v35  ;;  %v5430_v35 = vld [vmem:[%s6253_s2 + $0xc4] ss:$8 sps:$4 sm:$0xff]  }
 0x8e3   : > { %v5661_v23 = vpop.eup %5660 }
 0x8e4   : > { %v1689_v18 = vpop.permute.xlu0 %1688  ;;  %v1804_v24 = vmul.f32 %v5661_v23, %v5651_v58  ;;  %v5434_v23 = vld [vmem:[%s6253_s2 + $0xe0] ss:$8 sps:$4 sm:$0xff]  }
 0x8e5   : > { %v1694_v19 = vsel %vm1348_vm2, %v1689_v18, 0  ;;  %v5431_v18 = vld [vmem:[%s6253_s2 + $0xd0] ss:$8 sps:$4 sm:$0xff]  }
 0x8e6   : > { %5101 = vmatpush3.bf16.msra.mxu1 %v1694_v19  ;;  %v1805_v28 = vpack.c.bf16 %v1804_v24, %v1804_v24  ;;  %v5433_v19 = vld [vmem:[%s6253_s2 + $0xd4] ss:$8 sps:$4 sm:$0xff]  }
 0x8e7   : > { %5112 = vmatprep.subr.bf16.mxu1 %v5919_v6 }
 0x8e9   : > { %5103 = vmatmul.mubr.msk.bf16.vlgmr.msra.gmra.mrb[12].mxu1 %vm1331_vm3, %v1686_v21 }
 0x8ea   : > { %5113 = vmatpush3.bf16.msra.mxu1 %v1811_v32  ;;  %5114 = vmatprep.mubr.msk.bf16.mxu1 %vm5920_vm0, %v5919_v6  ;;  %v5436_v32 = vld [vmem:[%s6253_s2 + $0xe4] ss:$8 sps:$4 sm:$0xff]  }
 0x8eb   : > { %5124 = vmatprep.subr.bf16.mxu1 %v5919_v6  ;;  %v5663_v31 = vpop.eup %5662 }
 0x8ec   : > { %v1917_v37 = vmul.f32 %v5663_v31, %v5653_v60 }
 0x8ee   : > { %v1918_v38 = vpack.c.bf16 %v1917_v37, %v1917_v37 }
 0x8f1   : > { %5115 = vmatmul.mubr.msk.bf16.vlgmr.msra.gmra.mrb[16].mxu1 %vm1331_vm3, %v1805_v28 }
 0x8f2   : > { %5125 = vmatpush3.bf16.msra.mxu1 %v1926_v33  ;;  %5126 = vmatprep.mubr.msk.bf16.mxu1 %vm5920_vm0, %v5919_v6  ;;  %v5437_v33 = vld [vmem:[%s6253_s2 + $0xf0] ss:$8 sps:$4 sm:$0xff]  }
 0x8f3   : > { %5136 = vmatprep.subr.bf16.mxu1 %v5919_v6 }
 0x8f9   : > { %5127 = vmatmul.mubr.msk.bf16.vlgmr.msra.gmra.mrb[20].mxu1 %vm1331_vm3, %v1918_v38 }
 0x8fa   : > { %5137 = vmatpush3.bf16.msra.mxu1 %v2039_v34  ;;  %5138 = vmatprep.mubr.msk.bf16.mxu1 %vm5920_vm0, %v5919_v6 }
 0x8fb   : > { %5148 = vmatprep.subr.bf16.mxu1 %v5919_v6 }
 0x90d   : > { %v2030_v36 = vpop.xlane.xlu1 %2029 }
 0x90e   : > { %5664 = vrcp.f32 %v2030_v36 }
 0x911   : > { %v2143_v39 = vpop.xlane.xlu1 %2142 }
 0x912   : > { %5666 = vrcp.f32 %v2143_v39 }
 0x915   : > { %v2149_v40 = vpop.permute.xlu1 %2148 }
 0x916   : > { %v2154_v42 = vsel %vm1348_vm2, %v2149_v40, 0 }
 0x918   : > { %v5665_v15 = vpop.eup %5664 }
 0x919   : > { %v2032_v27 = vmul.f32 %v5665_v15, %v5655_v8  ;;  %v5418_v8 = vld [vmem:[%s6253_s2 + $0x84] ss:$8 sps:$4 sm:$0xff]  }
 0x91b   : > { %v2033_v41 = vpack.c.bf16 %v2032_v27, %v2032_v27 }
 0x91c   : > { %v5667_v16 = vpop.eup %5666 }
 0x91d   : > { %5139 = vmatmul.mubr.msk.bf16.vlgmr.msra.gmra.mrb[24].mxu1 %vm1331_vm3, %v2033_v41  ;;  %v2145_v5 = vmul.f32 %v5667_v16, %v5657_v13  ;;  %v5421_v13 = vld [vmem:[%s6253_s2 + $0x94] ss:$8 sps:$4 sm:$0xff]  }
 0x91e   : > { %5149 = vmatpush3.bf16.msra.mxu1 %v2154_v42  ;;  %5150 = vmatprep.mubr.msk.bf16.mxu1 %vm5920_vm0, %v5919_v6  ;;  %v5403_v6 = vld [vmem:[%s6253_s2 + $0x34] ss:$8 sps:$4 sm:$0xff]  }
 0x91f   : > { %v2146_v43 = vpack.c.bf16 %v2145_v5, %v2145_v5  ;;  %2405 = vmatprep.subr.bf16.mxu0 %v5403_v6  ;;  %v2498_v6 = vld [vmem:[%s6255_s30 + $0x40] sm:$0xff]  ;;  %3258 = vmatprep.subr.bf16.mxu1 %v4760_v25  ;;  %v2559_v25 = vld [vmem:[%s6255_s30 + $0x228] sm:$0xff] }
 0x920   : > { %2406 = vmatpush1.bf16.msra.mxu0 %v5401_v50 }
 0x921   : > { %2407 = vmatprep.subr.bf16.mxu0 %v5406_v51  ;;  %v2499_v51 = vld [vmem:[%s6255_s30 + $0x48] sm:$0xff] }
 0x924   : > { %2408 = vmatpush1.bf16.msra.mxu0 %v5404_v52  ;;  %v2503_v52 = vld [vmem:[%s6255_s30 + $0x68] sm:$0xff] }
 0x925   : > { %5151 = vmatmul.mubr.msk.bf16.vlgmr.msra.gmra.mrb[28].mxu1 %vm1331_vm3, %v2146_v43  ;;  %2409 = vmatprep.subr.bf16.mxu0 %v5409_v57  ;;  %v4770_v57 = vcombine.high %v2499_v51, %v2503_v52 }
 0x926   : > { %3259 = vmatpush1.bf16.msra.mxu1 %v4759_v48  ;;  %v2555_v48 = vld [vmem:[%s6255_s30 + $0x208] sm:$0xff] }
 0x928   : > { %2410 = vmatpush1.bf16.msra.mxu0 %v5407_v61 }
 0x929   : > { %2411 = vmatprep.subr.bf16.mxu0 %v5412_v62  ;;  %v4769_v62 = vcombine.low %v2499_v51, %v2503_v52  ;;  %v2563_v51 = vld [vmem:[%s6255_s30 + $0x248] sm:$0xff] }
 0x92a   : > { %v2567_v52 = vld [vmem:[%s6255_s30 + $0x268] sm:$0xff] }
 0x9bc   : > { %v1730_v54 = vpop.f32.mrb[12].mxu1 }
 0x9bd   : > { %1737 = vrot.lane.b32.xlu0 %v1730_v54, %s5921_s24  ;;  %v5104_v49 = vpop.f32.mrb[13].mxu1  ;;  %v2495_v54 = vld [vmem:[%s6255_s30 + $0x28] sm:$0xff] }
 0x9be   : > { %v1733_v20 = vpop.f32.mrb[14].mxu1  ;;  %v2502_v49 = vld [vmem:[%s6255_s30 + $0x60] sm:$0xff] }
 0x9bf   : > { %v5105_v22 = vpop.f32.mrb[15].mxu1  ;;  %v4761_v20 = vcombine.low %v2491_v47, %v2495_v54  ;;  %v4768_v50 = vcombine.high %v2498_v6, %v2502_v49  ;;  %v4767_v61 = vcombine.low %v2498_v6, %v2502_v49 }
 0x9c0   : > { %v4762_v22 = vcombine.high %v2491_v47, %v2495_v54  ;;  %v2558_v47 = vld [vmem:[%s6255_s30 + $0x220] sm:$0xff] }
 0x9c1   : > { %1508 = vrot.lane.b32.xlu0 %v6561_v12, %s5921_s24  ;;  %v5410_v12 = vld [vmem:[%s6253_s2 + $0x60] ss:$8 sps:$4 sm:$0xff]   ;;  %3260 = vmatprep.subr.bf16.mxu1 %v4768_v50  ;;  %v4824_v49 = vcombine.high %v2554_v46, %v2558_v47  ;;  %s7019_s2 = sld [smem:[#allocation25_spill]] (!%p5015_p5) }
 0x9c2   : > { %2412 = vmatpush1.bf16.msra.mxu0 %v5410_v12  ;;  %3261 = vmatpush1.bf16.msra.mxu1 %v4767_v61  ;;  %v2566_v50 = vld [vmem:[%s6255_s30 + $0x260] sm:$0xff] }
 0x9c3   : > { %2413 = vmatprep.subr.bf16.mxu0 %v5415_v0  ;;  %v2514_v0 = vld [vmem:[%s6255_s30 + $0xc0] sm:$0xff] }
 0x9c4   : > { %v1847_v56 = vpop.f32.mrb[16].mxu1  ;;  %v2574_v61 = vld [vmem:[%s6255_s30 + $0x2a0] sm:$0xff] }
 0x9c5   : > { %1853 = vst.msk [vmem:[#allocation3 + $0x10] sm:$0xff] %vm1284_vm1, %v1847_v56  ;;  %v5116_v58 = vpop.f32.mrb[17].mxu1  ;;  %v2506_v56 = vld [vmem:[%s6255_s30 + $0x80] sm:$0xff] }
 0x9c6   : > { %v1850_v59 = vpop.f32.mrb[18].mxu1  ;;  %2414 = vmatpush1.bf16.msra.mxu0 %v5413_v7  ;;  %v2510_v58 = vld [vmem:[%s6255_s30 + $0xa0] sm:$0xff] }
 0x9c7   : > { %v5117_v60 = vpop.f32.mrb[19].mxu1  ;;  %2415 = vmatprep.subr.bf16.mxu0 %v5418_v8  ;;  %v2507_v59 = vld [vmem:[%s6255_s30 + $0x88] sm:$0xff]  ;;  %v4776_v12 = vcombine.high %v2506_v56, %v2510_v58  ;;  %v4775_v7 = vcombine.low %v2506_v56, %v2510_v58  ;;  %v4823_v56 = vcombine.low %v2554_v46, %v2558_v47 }
 0x9c8   : > { %v2511_v60 = vld [vmem:[%s6255_s30 + $0xa8] sm:$0xff] }
 0x9c9   : > { %3262 = vmatprep.subr.bf16.mxu1 %v4776_v12  ;;  %v4777_v8 = vcombine.low %v2507_v59, %v2511_v60  ;;  %v2575_v12 = vld [vmem:[%s6255_s30 + $0x2a8] sm:$0xff] }
 0x9ca   : > { %2416 = vmatpush1.bf16.msra.mxu0 %v5416_v10  ;;  %3263 = vmatpush1.bf16.msra.mxu1 %v4775_v7 }
 0x9cb   : > { %2417 = vmatprep.subr.bf16.mxu0 %v5421_v13 }
 0x9cc   : > { %v1962_v63 = vpop.f32.mrb[20].mxu1 }
 0x9cd   : > { %v5128_v1 = vpop.f32.mrb[21].mxu1 }
 0x9ce   : > { %v1965_v2 = vpop.f32.mrb[22].mxu1  ;;  %2418 = vmatpush1.bf16.msra.mxu0 %v5419_v30  ;;  %v2518_v1 = vld [vmem:[%s6255_s30 + $0xe0] sm:$0xff] }
 0x9cf   : > { %v5129_v3 = vpop.f32.mrb[23].mxu1  ;;  %2419 = vmatprep.subr.bf16.mxu0 %v5424_v9  ;;  %v2515_v2 = vld [vmem:[%s6255_s30 + $0xc8] sm:$0xff]  ;;  %v4784_v10 = vcombine.high %v2514_v0, %v2518_v1  ;;  %v2522_v30 = vld [vmem:[%s6255_s30 + $0x100] sm:$0xff] }
 0x9d0   : > { %v2519_v3 = vld [vmem:[%s6255_s30 + $0xe8] sm:$0xff]  ;;  %v2526_v9 = vld [vmem:[%s6255_s30 + $0x120] sm:$0xff] }
 0x9d1   : > { %v4786_v13 = vcombine.high %v2515_v2, %v2519_v3  ;;  %3264 = vmatprep.subr.bf16.mxu1 %v4784_v10  ;;  %v5672_v10 = vld [vmem:[#allocation2] sm:$0xff] }
 0x9d2   : > { %2420 = vmatpush1.bf16.msra.mxu0 %v5422_v29  ;;  %v2523_v29 = vld [vmem:[%s6255_s30 + $0x108] sm:$0xff] }
 0x9d3   : > { %2421 = vmatprep.subr.bf16.mxu0 %v5427_v14  ;;  %v2527_v14 = vld [vmem:[%s6255_s30 + $0x128] sm:$0xff] }
 0x9d6   : > { %2422 = vmatpush1.bf16.msra.mxu0 %v5425_v17  ;;  %v4783_v17 = vcombine.low %v2514_v0, %v2518_v1  ;;  %v4833_v0 = vcombine.low %v2563_v51, %v2567_v52 }
 0x9d7   : > { %2423 = vmatprep.subr.bf16.mxu0 %v5430_v35  ;;  %v4785_v35 = vcombine.low %v2515_v2, %v2519_v3 }
 0x9d8   : > { %3265 = vmatpush1.bf16.msra.mxu1 %v4783_v17  ;;  %v5674_v17 = vld [vmem:[#allocation2 + $0x10] sm:$0xff] }
 0x9da   : > { %2424 = vmatpush1.bf16.msra.mxu0 %v5428_v4  ;;  %v4792_v4 = vcombine.high %v2522_v30, %v2526_v9 }
 0x9db   : > { %2425 = vmatprep.subr.bf16.mxu0 %v5433_v19  ;;  %v2530_v19 = vld [vmem:[%s6255_s30 + $0x140] sm:$0xff] }
 0x9dc   : > { %3266 = vmatprep.subr.bf16.mxu1 %v4792_v4 }
 0x9de   : > { %2426 = vmatpush1.bf16.msra.mxu0 %v5431_v18  ;;  %v4794_v18 = vcombine.high %v2523_v29, %v2527_v14 }
 0x9df   : > { %2427 = vmatprep.subr.bf16.mxu0 %v5436_v32  ;;  %v2535_v32 = vld [vmem:[%s6255_s30 + $0x168] sm:$0xff] }
 0x9e2   : > { %2428 = vmatpush1.bf16.msra.mxu0 %v5434_v23  ;;  %v2531_v23 = vld [vmem:[%s6255_s30 + $0x148] sm:$0xff] }
 0x9e3   : > { %2429 = vmatprep.subr.bf16.mxu0 %v5439_v26  ;;  %v4793_v26 = vcombine.low %v2523_v29, %v2527_v14 }
 0x9e6   : > { %2430 = vmatpush1.bf16.msra.mxu0 %v5437_v33  ;;  %v2538_v33 = vld [vmem:[%s6255_s30 + $0x180] sm:$0xff] }
 0x9e7   : > { %3301 = vmatprep.subr.bf16.mxu0 %v4762_v22  ;;  %v2562_v22 = vld [vmem:[%s6255_s30 + $0x240] sm:$0xff] }
 0x9e8   : > { %v4832_v58 = vcombine.high %v2562_v22, %v2566_v50 }
 0x9f0   : > { %v2075_v21 = vpop.f32.mrb[24].mxu1 }
 0x9f1   : > { %2081 = vst.msk [vmem:[#allocation3 + $0x18] sm:$0xff] %vm1284_vm1, %v2075_v21  ;;  %v5140_v24 = vpop.f32.mrb[25].mxu1  ;;  %v2534_v21 = vld [vmem:[%s6255_s30 + $0x160] sm:$0xff] }
 0x9f2   : > { %v2078_v28 = vpop.f32.mrb[26].mxu1  ;;  %v4791_v24 = vcombine.low %v2522_v30, %v2526_v9  ;;  %v5673_v9 = vld [vmem:[#allocation2 + $0x8] sm:$0xff] }
 0x9f3   : > { %v5141_v31 = vpop.f32.mrb[27].mxu1  ;;  %v4800_v28 = vcombine.high %v2530_v19, %v2534_v21 }
 0x9f4   : > { %v4802_v31 = vcombine.high %v2531_v23, %v2535_v32  ;;  %3267 = vmatpush1.bf16.msra.mxu1 %v4791_v24 }
 0x9f5   : > { %3268 = vmatprep.subr.bf16.mxu1 %v4800_v28 }
 0x9f8   : > { %v2190_v37 = vpop.f32.mrb[28].mxu1 }
 0x9f9   : > { %2197 = vrot.lane.b32.xlu1 %v2190_v37, %s5921_s24  ;;  %v5152_v38 = vpop.f32.mrb[29].mxu1  ;;  %v2542_v37 = vld [vmem:[%s6255_s30 + $0x1a0] sm:$0xff] }
 0x9fa   : > { %v2193_v34 = vpop.f32.mrb[30].mxu1  ;;  %v2539_v38 = vld [vmem:[%s6255_s30 + $0x188] sm:$0xff] }
 0x9fb   : > { %v5153_v36 = vpop.f32.mrb[31].mxu1  ;;  %v2543_v34 = vld [vmem:[%s6255_s30 + $0x1a8] sm:$0xff] }
 0x9fc   : > { %v4799_v36 = vcombine.low %v2530_v19, %v2534_v21  ;;  %v5675_v19 = vld [vmem:[#allocation2 + $0x18] sm:$0xff] }
 0x9fd   : > { %1969 = vrot.lane.b32.xlu1 %v1962_v63, %s5921_s24  ;;  %v4778_v63 = vcombine.high %v2507_v59, %v2511_v60  ;;  %v4834_v59 = vcombine.high %v2563_v51, %v2567_v52  ;;  %v2570_v60 = vld [vmem:[%s6255_s30 + $0x280] sm:$0xff] }
 0x9fe   : > { %3269 = vmatpush1.bf16.msra.mxu1 %v4799_v36  ;;  %v4840_v1 = vcombine.high %v2570_v60, %v2574_v61  ;;  %v4839_v3 = vcombine.low %v2570_v60, %v2574_v61  ;;  %v2615_v60 = vld [vmem:[%s6255_s30 + $0x3e8] sm:$0xff] }
 0xa2f   : > { %v1738_v39 = vpop.permute.xlu0 %1737 }
 0xa30   : > { %1740 = vst.msk [vmem:[#allocation3 + $0x8] sm:$0xff] %vm1511_vm4, %v1738_v39  ;;  %v4801_v39 = vcombine.low %v2531_v23, %v2535_v32 }
 0xa33   : > { %v1509_v15 = vpop.permute.xlu0 %1508 }
 0xa34   : > { %1512 = vst.msk [vmem:[#allocation3] sm:$0xff] %vm1511_vm4, %v1509_v15  ;;  %v4808_v15 = vcombine.high %v2538_v33, %v2542_v37 }
 0xa36   : > { %3270 = vmatprep.subr.bf16.mxu1 %v4808_v15 }
 0xa37   : > { %v2202_v41 = vld [vmem:[#allocation3 + $0x8] sm:$0xff] }
 0xa3b   : > { %v2201_v5 = vld [vmem:[#allocation3] sm:$0xff] }
 0xa6b   : > { %v2198_v27 = vpop.permute.xlu1 %2197 }
 0xa6c   : > { %2200 = vst.msk [vmem:[#allocation3 + $0x18] sm:$0xff] %vm1511_vm4, %v2198_v27  ;;  %v4810_v27 = vcombine.high %v2539_v38, %v2543_v34 }
 0xa6f   : > { %v1970_v40 = vpop.permute.xlu1 %1969 }
 0xa70   : > { %1972 = vst.msk [vmem:[#allocation3 + $0x10] sm:$0xff] %vm1511_vm4, %v1970_v40  ;;  %v2546_v40 = vld [vmem:[%s6255_s30 + $0x1c0] sm:$0xff] }
 0xa73   : > { %v2204_v16 = vld [vmem:[#allocation3 + $0x18] sm:$0xff] }
 0xa74   : > { %v2206_v42 = vpack.c.bf16 %v2204_v16, %v2202_v41  ;;  %v2550_v41 = vld [vmem:[%s6255_s30 + $0x1e0] sm:$0xff]  ;;  %v2547_v16 = vld [vmem:[%s6255_s30 + $0x1c8] sm:$0xff] }
 0xa75   : > { %v4815_v54 = vcombine.low %v2546_v40, %v2550_v41 }
 0xa76   : > { %2431 = vmatprep.mubr.bf16.mxu0 %v2206_v42  ;;  %v2551_v42 = vld [vmem:[%s6255_s30 + $0x1e8] sm:$0xff] }
 0xa77   : > { %v2203_v43 = vld [vmem:[#allocation3 + $0x10] sm:$0xff]  ;;  %v4818_v45 = vcombine.high %v2547_v16, %v2551_v42  ;;  %v4817_v6 = vcombine.low %v2547_v16, %v2551_v42 }
 0xa78   : > { %v2205_v44 = vpack.c.bf16 %v2203_v43, %v2201_v5  ;;  %v4807_v5 = vcombine.low %v2538_v33, %v2542_v37  ;;  %v4809_v43 = vcombine.low %v2539_v38, %v2543_v34  ;;  %v2582_v33 = vld [vmem:[%s6255_s30 + $0x2e0] sm:$0xff]  ;;  %v2579_v37 = vld [vmem:[%s6255_s30 + $0x2c8] sm:$0xff] }
 0xa79   : > { %v2583_v34 = vld [vmem:[%s6255_s30 + $0x2e8] sm:$0xff] }
 0xa7a   : > { %2432 = vmatmul.mubr.bf16.vlgmr.msra.gmra.mrb[44].mxu0 %v2205_v44  ;;  %v4816_v44 = vcombine.high %v2546_v40, %v2550_v41  ;;  %3271 = vmatpush1.bf16.msra.mxu1 %v4807_v5  ;;  %v4850_v15 = vcombine.high %v2579_v37, %v2583_v34  ;;  %v2590_v40 = vld [vmem:[%s6255_s30 + $0x320] sm:$0xff]  ;;  %v2587_v41 = vld [vmem:[%s6255_s30 + $0x308] sm:$0xff] }
 0xa7b   : > { %3302 = vmatpush1.bf16.msra.mxu0 %v4761_v20  ;;  %v4826_v20 = vcombine.high %v2555_v48, %v2559_v25  ;;  %v2591_v5 = vld [vmem:[%s6255_s30 + $0x328] sm:$0xff] }
 0xa7c   : > { %3303 = vmatprep.subr.bf16.mxu0 %v4770_v57  ;;  %3272 = vmatprep.subr.bf16.mxu1 %v4816_v44  ;;  %v4825_v57 = vcombine.low %v2555_v48, %v2559_v25  ;;  %v2598_v44 = vld [vmem:[%s6255_s30 + $0x360] sm:$0xff]  ;;  %v4858_v46 = vcombine.high %v2587_v41, %v2591_v5  ;;  %v2595_v48 = vld [vmem:[%s6255_s30 + $0x348] sm:$0xff] }
 0xa7d   : > { %v2599_v25 = vld [vmem:[%s6255_s30 + $0x368] sm:$0xff] }
 0xa7e   : > { %3273 = vmatpush1.bf16.msra.mxu1 %v4815_v54  ;;  %v2602_v54 = vld [vmem:[%s6255_s30 + $0x380] sm:$0xff]  ;;  %v4865_v51 = vcombine.low %v2595_v48, %v2599_v25 }
 0xa7f   : > { %3304 = vmatpush1.bf16.msra.mxu0 %v4769_v62  ;;  %3274 = vmatprep.subr.bf16.mxu1 %v4824_v49  ;;  %v2571_v62 = vld [vmem:[%s6255_s30 + $0x288] sm:$0xff]  ;;  %v2606_v49 = vld [vmem:[%s6255_s30 + $0x3a0] sm:$0xff] }
 0xa80   : > { %3305 = vmatprep.subr.bf16.mxu0 %v4778_v63  ;;  %v4831_v63 = vcombine.low %v2562_v22, %v2566_v50  ;;  %v4842_v2 = vcombine.high %v2571_v62, %v2575_v12  ;;  %v4841_v7 = vcombine.low %v2571_v62, %v2575_v12  ;;  %v2607_v22 = vld [vmem:[%s6255_s30 + $0x3a8] sm:$0xff]  ;;  %v4872_v52 = vcombine.high %v2602_v54, %v2606_v49 }
 0xa81   : > { %v4871_v61 = vcombine.low %v2602_v54, %v2606_v49  ;;  %v2512_v54 = vld [vmem:[%s6255_s30 + $0xb0] sm:$0xff]  ;;  %v2513_v49 = vld [vmem:[%s6255_s30 + $0xb8] sm:$0xff] }
 0xa82   : > { %3275 = vmatpush1.bf16.msra.mxu1 %v4823_v56 }
 0xa83   : > { %3306 = vmatpush1.bf16.msra.mxu0 %v4777_v8  ;;  %3276 = vmatprep.subr.bf16.mxu1 %v4832_v58  ;;  %v2614_v58 = vld [vmem:[%s6255_s30 + $0x3e0] sm:$0xff] }
 0xa84   : > { %3307 = vmatprep.subr.bf16.mxu0 %v4786_v13 }
 0xa86   : > { %3277 = vmatpush1.bf16.msra.mxu1 %v4831_v63 }
 0xa87   : > { %3308 = vmatpush1.bf16.msra.mxu0 %v4785_v35  ;;  %3278 = vmatprep.subr.bf16.mxu1 %v4840_v1 }
 0xa88   : > { %3309 = vmatprep.subr.bf16.mxu0 %v4794_v18 }
 0xa8a   : > { %3279 = vmatpush1.bf16.msra.mxu1 %v4839_v3  ;;  %v2496_v3 = vld [vmem:[%s6255_s30 + $0x30] sm:$0xff] }
 0xa8b   : > { %3310 = vmatpush1.bf16.msra.mxu0 %v4793_v26 }
 0xa8c   : > { %3311 = vmatprep.subr.bf16.mxu0 %v4802_v31  ;;  %v2578_v31 = vld [vmem:[%s6255_s30 + $0x2c0] sm:$0xff] }
 0xa8d   : > { %v4848_v38 = vcombine.high %v2578_v31, %v2582_v33  ;;  %v4847_v36 = vcombine.low %v2578_v31, %v2582_v33 }
 0xa8f   : > { %3312 = vmatpush1.bf16.msra.mxu0 %v4801_v39  ;;  %v4849_v39 = vcombine.low %v2579_v37, %v2583_v34  ;;  %3280 = vmatprep.subr.bf16.mxu1 %v4848_v38 }
 0xa90   : > { %3313 = vmatprep.subr.bf16.mxu0 %v4810_v27  ;;  %3281 = vmatpush1.bf16.msra.mxu1 %v4847_v36  ;;  %v2586_v27 = vld [vmem:[%s6255_s30 + $0x300] sm:$0xff] }
 0xa91   : > { %v4855_v16 = vcombine.low %v2586_v27, %v2590_v40  ;;  %v4856_v42 = vcombine.high %v2586_v27, %v2590_v40 }
 0xa93   : > { %3314 = vmatpush1.bf16.msra.mxu0 %v4809_v43  ;;  %v2594_v43 = vld [vmem:[%s6255_s30 + $0x340] sm:$0xff]  ;;  %3282 = vmatprep.subr.bf16.mxu1 %v4856_v42  ;;  %v2500_v42 = vld [vmem:[%s6255_s30 + $0x50] sm:$0xff] }
 0xa94   : > { %3315 = vmatprep.subr.bf16.mxu0 %v4818_v45  ;;  %v4857_v45 = vcombine.low %v2587_v41, %v2591_v5  ;;  %v4864_v47 = vcombine.high %v2594_v43, %v2598_v44  ;;  %3283 = vmatpush1.bf16.msra.mxu1 %v4855_v16  ;;  %v4863_v50 = vcombine.low %v2594_v43, %v2598_v44  ;;  %v2504_v5 = vld [vmem:[%s6255_s30 + $0x70] sm:$0xff]  ;;  %v2501_v43 = vld [vmem:[%s6255_s30 + $0x58] sm:$0xff] }
 0xa95   : > { %v2505_v44 = vld [vmem:[%s6255_s30 + $0x78] sm:$0xff] }
 0xa96   : > { %3284 = vmatprep.subr.bf16.mxu1 %v4864_v47  ;;  %v2508_v47 = vld [vmem:[%s6255_s30 + $0x90] sm:$0xff] }
 0xa97   : > { %3316 = vmatpush1.bf16.msra.mxu0 %v4817_v6  ;;  %v4866_v6 = vcombine.high %v2595_v48, %v2599_v25  ;;  %v4772_v48 = vcombine.high %v2500_v42, %v2504_v5  ;;  %v4774_v25 = vcombine.high %v2501_v43, %v2505_v44 }
 0xa98   : > { %3317 = vmatprep.subr.bf16.mxu0 %v4826_v20  ;;  %v2603_v20 = vld [vmem:[%s6255_s30 + $0x388] sm:$0xff]  ;;  %3285 = vmatpush1.bf16.msra.mxu1 %v4863_v50  ;;  %v4780_v50 = vcombine.high %v2508_v47, %v2512_v54 }
 0xa99   : > { %v4874_v56 = vcombine.high %v2603_v20, %v2607_v22  ;;  %3286 = vmatprep.subr.bf16.mxu1 %v4872_v52  ;;  %v4873_v62 = vcombine.low %v2603_v20, %v2607_v22  ;;  %v4771_v20 = vcombine.low %v2500_v42, %v2504_v5  ;;  %v4773_v22 = vcombine.low %v2501_v43, %v2505_v44  ;;  %v2516_v52 = vld [vmem:[%s6255_s30 + $0xd0] sm:$0xff]  ;;  %v2557_v42 = vld [vmem:[%s6255_s30 + $0x218] sm:$0xff] }
 0xa9a   : > { %v2561_v5 = vld [vmem:[%s6255_s30 + $0x238] sm:$0xff] }
 0xa9b   : > { %3318 = vmatpush1.bf16.msra.mxu0 %v4825_v57  ;;  %v2610_v57 = vld [vmem:[%s6255_s30 + $0x3c0] sm:$0xff] }
 0xa9c   : > { %3319 = vmatprep.subr.bf16.mxu0 %v4834_v59  ;;  %v2611_v59 = vld [vmem:[%s6255_s30 + $0x3c8] sm:$0xff]  ;;  %v4880_v12 = vcombine.high %v2610_v57, %v2614_v58  ;;  %3287 = vmatpush1.bf16.msra.mxu1 %v4871_v61 }
 0xa9d   : > { %v4882_v63 = vcombine.high %v2611_v59, %v2615_v60  ;;  %v4881_v1 = vcombine.low %v2611_v59, %v2615_v60  ;;  %v4779_v59 = vcombine.low %v2508_v47, %v2512_v54  ;;  %v4830_v47 = vcombine.high %v2557_v42, %v2561_v5  ;;  %v2565_v54 = vld [vmem:[%s6255_s30 + $0x258] sm:$0xff] }
 0xa9e   : > { %3288 = vmatprep.subr.bf16.mxu1 %v4880_v12  ;;  %v2524_v12 = vld [vmem:[%s6255_s30 + $0x110] sm:$0xff] }
 0xa9f   : > { %3320 = vmatpush1.bf16.msra.mxu0 %v4833_v0  ;;  %v4879_v0 = vcombine.low %v2610_v57, %v2614_v58  ;;  %v2517_v57 = vld [vmem:[%s6255_s30 + $0xd8] sm:$0xff] }
 0xaa0   : > { %3321 = vmatprep.subr.bf16.mxu0 %v4842_v2  ;;  %v2492_v2 = vld [vmem:[%s6255_s30 + $0x10] sm:$0xff]  ;;  %v2521_v58 = vld [vmem:[%s6255_s30 + $0xf8] sm:$0xff] }
 0xaa1   : > { %3289 = vmatpush1.bf16.msra.mxu1 %v4879_v0  ;;  %v2525_v0 = vld [vmem:[%s6255_s30 + $0x118] sm:$0xff] }
 0xaa3   : > { %3322 = vmatpush1.bf16.msra.mxu0 %v4841_v7  ;;  %v2493_v7 = vld [vmem:[%s6255_s30 + $0x18] sm:$0xff] }
 0xaa4   : > { %3323 = vmatprep.subr.bf16.mxu0 %v4850_v15 }
 0xaa7   : > { %3324 = vmatpush1.bf16.msra.mxu0 %v4849_v39 }
 0xaa8   : > { %3325 = vmatprep.subr.bf16.mxu0 %v4858_v46 }
 0xaab   : > { %3326 = vmatpush1.bf16.msra.mxu0 %v4857_v45 }
 0xaac   : > { %3327 = vmatprep.subr.bf16.mxu0 %v4866_v6  ;;  %v2509_v6 = vld [vmem:[%s6255_s30 + $0x98] sm:$0xff] }
 0xaad   : > { %v4781_v60 = vcombine.low %v2509_v6, %v2513_v49 }
 0xaaf   : > { %3328 = vmatpush1.bf16.msra.mxu0 %v4865_v51  ;;  %v4782_v51 = vcombine.high %v2509_v6, %v2513_v49  ;;  %v2569_v6 = vld [vmem:[%s6255_s30 + $0x278] sm:$0xff] }
 0xab0   : > { %3329 = vmatprep.subr.bf16.mxu0 %v4874_v56  ;;  %v2520_v56 = vld [vmem:[%s6255_s30 + $0xf0] sm:$0xff] }
 0xab1   : > { %v4788_v61 = vcombine.high %v2516_v52, %v2520_v56 }
 0xab3   : > { %3330 = vmatpush1.bf16.msra.mxu0 %v4873_v62  ;;  %v4790_v62 = vcombine.high %v2517_v57, %v2521_v58 }
 0xab4   : > { %3331 = vmatprep.subr.bf16.mxu0 %v4882_v63  ;;  %v2528_v63 = vld [vmem:[%s6255_s30 + $0x130] sm:$0xff] }
 0xab7   : > { %3332 = vmatpush1.bf16.msra.mxu0 %v4881_v1  ;;  %v2529_v1 = vld [vmem:[%s6255_s30 + $0x138] sm:$0xff] }
 0xb4d   : > { %v2433_v8 = vpop.f32.mrb[44].mxu0 }
 0xb4e   : > { %v6690_v13 = vadd.f32 %v5672_v10, %v2433_v8  ;;  %v2435_v30 = vpop.f32.mrb[45].mxu0  ;;  %v4763_v8 = vcombine.low %v2492_v2, %v2496_v3  ;;  %v4764_v10 = vcombine.high %v2492_v2, %v2496_v3  ;;  %v4787_v2 = vcombine.low %v2516_v52, %v2520_v56  ;;  %v2576_v52 = vld [vmem:[%s6255_s30 + $0x2b0] sm:$0xff]  ;;  %v2573_v56 = vld [vmem:[%s6255_s30 + $0x298] sm:$0xff] }
 0xb4f   : > { %v6692_v29 = vadd.f32 %v5673_v9, %v2435_v30  ;;  %v2437_v14 = vpop.f32.mrb[46].mxu0  ;;  %v2497_v30 = vld [vmem:[%s6255_s30 + $0x38] sm:$0xff]  ;;  %v4789_v3 = vcombine.low %v2517_v57, %v2521_v58 }
 0xb50   : > { %v6694_v35 = vadd.f32 %v5674_v17, %v2437_v14  ;;  %v2439_v4 = vpop.f32.mrb[47].mxu0  ;;  %v2446_v18 = vmul.f32 %v6690_v13, %v6690_v13  ;;  %v4765_v9 = vcombine.low %v2493_v7, %v2497_v30  ;;  %v4766_v14 = vcombine.high %v2493_v7, %v2497_v30  ;;  %3344 = vmatprep.subr.bf16.mxu1 %v4764_v10  ;;  %v2532_v10 = vld [vmem:[%s6255_s30 + $0x150] sm:$0xff]  ;;  %v2577_v57 = vld [vmem:[%s6255_s30 + $0x2b8] sm:$0xff] }
 0xb51   : > { %v6698_v21 = vadd.f32 %v5675_v19, %v2439_v4  ;;  %v2447_v23 = vmul.f32 %v6692_v29, %v6692_v29  ;;  %v4796_v7 = vcombine.high %v2524_v12, %v2528_v63  ;;  %v2536_v30 = vld [vmem:[%s6255_s30 + $0x170] sm:$0xff] }
 0xb52   : > { %v2448_v32 = vmul.f32 %v6694_v35, %v6694_v35  ;;  %3387 = vmatprep.subr.bf16.mxu0 %v4766_v14  ;;  %v2537_v14 = vld [vmem:[%s6255_s30 + $0x178] sm:$0xff] }
 0xb53   : > { %v2450_v24 = vadd.f32 %v2447_v23, %v2446_v18  ;;  %v2449_v26 = vmul.f32 %v6698_v21, %v6698_v21 }
 0xb55   : > { %2451 = vadd.xlane.f32.xlu0 %v2450_v24  ;;  %v2453_v28 = vadd.f32 %v2449_v26, %v2448_v32  ;;  %v2472_v24 = vsub.s32 3, %v6330_v53  ;;  %v5676_v26 = vld [vmem:[%s6240_s6] sm:$0xf] }
 0xb56   : > { %v2469_v31 = vrot.slane %v5676_v26, %v6559_v11 }
 0xb57   : > { %2454 = vadd.xlane.f32.xlu1 %v2453_v28  ;;  %v2473_v28 = vrot.slane %v5676_v26, %v2472_v24  ;;  %v2541_v24 = vld [vmem:[%s6255_s30 + $0x198] sm:$0xff] }
 0xb58   : > { %v2479_v36 = vrot.slane %v2469_v31, %v6559_v11  ;;  %v2545_v26 = vld [vmem:[%s6255_s30 + $0x1b8] sm:$0xff] }
 0xb59   : > { %v2483_v38 = vrot.slane %v2473_v28, %v6559_v11  ;;  %v4803_v28 = vcombine.low %v2532_v10, %v2536_v30 }
 0xbe2   : > { %v2452_v17 = vpop.xlane.xlu0 %2451 }
 0xbe3   : > { %v2456_v4 = vmul.f32 0.00390625, %v2452_v17  ;;  %v4795_v17 = vcombine.low %v2524_v12, %v2528_v63  ;;  %v2584_v12 = vld [vmem:[%s6255_s30 + $0x2f0] sm:$0xff]  ;;  %v2581_v63 = vld [vmem:[%s6255_s30 + $0x2d8] sm:$0xff] }
 0xbe4   : > { %v2455_v18 = vpop.xlane.xlu1 %2454 }
 0xbe5   : > { %v2458_v19 = vadd.f32 1e-06, %v2456_v4  ;;  %v2457_v23 = vmul.f32 0.00390625, %v2455_v18  ;;  %v4797_v4 = vcombine.low %v2525_v0, %v2529_v1  ;;  %v4804_v18 = vcombine.high %v2532_v10, %v2536_v30  ;;  %v2592_v10 = vld [vmem:[%s6255_s30 + $0x330] sm:$0xff]  ;;  %v2589_v30 = vld [vmem:[%s6255_s30 + $0x318] sm:$0xff] }
 0xbe7   : > { %5668 = vrsqrt.f32 %v2458_v19  ;;  %v2459_v32 = vadd.f32 1e-06, %v2457_v23  ;;  %v2540_v23 = vld [vmem:[%s6255_s30 + $0x190] sm:$0xff] }
 0xbe9   : > { %5670 = vrsqrt.f32 %v2459_v32  ;;  %v2544_v32 = vld [vmem:[%s6255_s30 + $0x1b0] sm:$0xff] }
 0xbf1   : > { %v5669_v33 = vpop.eup %5668 }
 0xbf2   : > { %v2463_v37 = vmul.f32 %v5669_v33, %v6692_v29  ;;  %v2462_v34 = vmul.f32 %v5669_v33, %v6690_v13  ;;  %v4812_v33 = vcombine.high %v2540_v23, %v2544_v32 }
 0xbf3   : > { %v5671_v39 = vpop.eup %5670 }
 0xbf4   : > { %v2465_v53 = vmul.f32 %v5671_v39, %v6698_v21  ;;  %v2464_v15 = vmul.f32 %v5671_v39, %v6694_v35  ;;  %v2485_v27 = vmul.f32 %v2483_v38, %v2463_v37  ;;  %v2484_v41 = vmul.f32 %v2479_v36, %v2462_v34  ;;  %v2552_v34 = vld [vmem:[%s6255_s30 + $0x1f0] sm:$0xff]  ;;  %v2553_v39 = vld [vmem:[%s6255_s30 + $0x1f8] sm:$0xff] }
 0xbf5   : > { %v4814_v37 = vcombine.high %v2541_v24, %v2545_v26 }
 0xbf6   : > { %v2487_v40 = vmul.f32 %v2483_v38, %v2465_v53  ;;  %v2486_v16 = vmul.f32 %v2479_v36, %v2464_v15  ;;  %v2548_v38 = vld [vmem:[%s6255_s30 + $0x1d0] sm:$0xff]  ;;  %v2549_v36 = vld [vmem:[%s6255_s30 + $0x1d8] sm:$0xff]  ;;  %v4811_v53 = vcombine.low %v2540_v23, %v2544_v32  ;;  %v4813_v15 = vcombine.low %v2541_v24, %v2545_v26 }
 0xbf7   : > { %v4819_v43 = vcombine.low %v2548_v38, %v2552_v34  ;;  %v4821_v44 = vcombine.low %v2549_v36, %v2553_v39  ;;  %v2600_v23 = vld [vmem:[%s6255_s30 + $0x370] sm:$0xff]  ;;  %v2597_v32 = vld [vmem:[%s6255_s30 + $0x358] sm:$0xff] }
 0xbf8   : > { %v2489_v45 = vpack.c.bf16 %v2487_v40, %v2485_v27  ;;  %v6743_v46 = vpack.c.bf16 %v2486_v16, %v2484_v41  ;;  %v4820_v27 = vcombine.high %v2548_v38, %v2552_v34  ;;  %v4822_v40 = vcombine.high %v2549_v36, %v2553_v39  ;;  %v2556_v41 = vld [vmem:[%s6255_s30 + $0x210] sm:$0xff]  ;;  %v2601_v24 = vld [vmem:[%s6255_s30 + $0x378] sm:$0xff] }
 0xbf9   : > { %v2560_v16 = vld [vmem:[%s6255_s30 + $0x230] sm:$0xff]  ;;  %v2605_v34 = vld [vmem:[%s6255_s30 + $0x398] sm:$0xff] }
 0xbfa   : > { %3290 = vmatprep.mubr.bf16.mxu1 %v2489_v45  ;;  %3333 = vmatprep.mubr.bf16.mxu0 %v2489_v45  ;;  %v4827_v49 = vcombine.low %v2556_v41, %v2560_v16  ;;  %v2608_v38 = vld [vmem:[%s6255_s30 + $0x3b0] sm:$0xff]  ;;  %v2609_v36 = vld [vmem:[%s6255_s30 + $0x3b8] sm:$0xff] }
 0xbfb   : > { %3291 = vmatmul.mubr.bf16.vlgmr.msra.gmra.mrb[32].mxu1 %v6743_v46  ;;  %3334 = vmatmul.mubr.bf16.vlgmr.msra.gmra.mrb[48].mxu0 %v6743_v46 }
 0xbfc   : > { %3345 = vmatpush1.bf16.msra.mxu1 %v4763_v8  ;;  %3388 = vmatpush1.bf16.msra.mxu0 %v4765_v9  ;;  %v4798_v8 = vcombine.high %v2525_v0, %v2529_v1  ;;  %v2533_v9 = vld [vmem:[%s6255_s30 + $0x158] sm:$0xff] }
 0xbfd   : > { %3376 = vmatprep.mubr.bf16.mxu1 %v2489_v45  ;;  %3419 = vmatprep.mubr.bf16.mxu0 %v2489_v45  ;;  %v4806_v19 = vcombine.high %v2533_v9, %v2537_v14  ;;  %v4805_v31 = vcombine.low %v2533_v9, %v2537_v14  ;;  %v4828_v45 = vcombine.high %v2556_v41, %v2560_v16  ;;  %v2585_v0 = vld [vmem:[%s6255_s30 + $0x2f8] sm:$0xff]  ;;  %v2616_v41 = vld [vmem:[%s6255_s30 + $0x3f0] sm:$0xff] }
 0xbfe   : > { %3346 = vmatprep.subr.bf16.mxu1 %v4772_v48  ;;  %3389 = vmatprep.subr.bf16.mxu0 %v4774_v25  ;;  %v2564_v48 = vld [vmem:[%s6255_s30 + $0x250] sm:$0xff]  ;;  %v2593_v9 = vld [vmem:[%s6255_s30 + $0x338] sm:$0xff] }
 0xbff   : > { %v2568_v25 = vld [vmem:[%s6255_s30 + $0x270] sm:$0xff]  ;;  %v2613_v16 = vld [vmem:[%s6255_s30 + $0x3d8] sm:$0xff] }
 0xc00   : > { %3347 = vmatpush1.bf16.msra.mxu1 %v4771_v20  ;;  %3390 = vmatpush1.bf16.msra.mxu0 %v4773_v22  ;;  %v4829_v20 = vcombine.low %v2557_v42, %v2561_v5  ;;  %v4836_v22 = vcombine.high %v2564_v48, %v2568_v25  ;;  %v4835_v58 = vcombine.low %v2564_v48, %v2568_v25  ;;  %v2617_v42 = vld [vmem:[%s6255_s30 + $0x3f8] sm:$0xff]  ;;  %v5442_v25 = vld [vmem:[%s6261_s23 + $0x4] ss:$8 sps:$4 sm:$0xff]  }
 0xc01   : > { %3348 = vmatprep.subr.bf16.mxu1 %v4780_v50  ;;  %3391 = vmatprep.subr.bf16.mxu0 %v4782_v51  ;;  %v4838_v50 = vcombine.high %v2565_v54, %v2569_v6  ;;  %v2572_v51 = vld [vmem:[%s6255_s30 + $0x290] sm:$0xff]  ;;  %v4885_v48 = vcombine.low %v2613_v16, %v2617_v42 }
 0xc02   : > { %v4843_v1 = vcombine.low %v2572_v51, %v2576_v52 }
 0xc04   : > { %3349 = vmatpush1.bf16.msra.mxu1 %v4779_v59  ;;  %3392 = vmatpush1.bf16.msra.mxu0 %v4781_v60  ;;  %v4837_v59 = vcombine.low %v2565_v54, %v2569_v6  ;;  %v4844_v60 = vcombine.high %v2572_v51, %v2576_v52  ;;  %v5440_v54 = vld [vmem:[%s6261_s23] ss:$8 sps:$4 sm:$0xff]   ;;  %v5445_v6 = vld [vmem:[%s6261_s23 + $0x14] ss:$8 sps:$4 sm:$0xff]   ;;  %v5449_v51 = vld [vmem:[%s6261_s23 + $0x30] ss:$8 sps:$4 sm:$0xff]  }
 0xc05   : > { %3350 = vmatprep.subr.bf16.mxu1 %v4788_v61  ;;  %3393 = vmatprep.subr.bf16.mxu0 %v4790_v62  ;;  %v4846_v61 = vcombine.high %v2573_v56, %v2577_v57  ;;  %v2580_v62 = vld [vmem:[%s6255_s30 + $0x2d0] sm:$0xff]  ;;  %v5454_v52 = vld [vmem:[%s6261_s23 + $0x44] ss:$8 sps:$4 sm:$0xff]  }
 0xc06   : > { %v4851_v14 = vcombine.low %v2580_v62, %v2584_v12 }
 0xc08   : > { %3351 = vmatpush1.bf16.msra.mxu1 %v4787_v2  ;;  %3394 = vmatpush1.bf16.msra.mxu0 %v4789_v3  ;;  %v4845_v2 = vcombine.low %v2573_v56, %v2577_v57  ;;  %v4852_v3 = vcombine.high %v2580_v62, %v2584_v12  ;;  %v5457_v56 = vld [vmem:[%s6261_s23 + $0x54] ss:$8 sps:$4 sm:$0xff]   ;;  %v5455_v57 = vld [vmem:[%s6261_s23 + $0x50] ss:$8 sps:$4 sm:$0xff]   ;;  %v5466_v62 = vld [vmem:[%s6261_s23 + $0x84] ss:$8 sps:$4 sm:$0xff]  }
 0xc09   : > { %3352 = vmatprep.subr.bf16.mxu1 %v4796_v7  ;;  %3395 = vmatprep.subr.bf16.mxu0 %v4798_v8  ;;  %v4854_v7 = vcombine.high %v2581_v63, %v2585_v0  ;;  %v2588_v8 = vld [vmem:[%s6255_s30 + $0x310] sm:$0xff]  ;;  %v5464_v12 = vld [vmem:[%s6261_s23 + $0x80] ss:$8 sps:$4 sm:$0xff]  }
 0xc0a   : > { %v4859_v26 = vcombine.low %v2588_v8, %v2592_v10 }
 0xc0c   : > { %3353 = vmatpush1.bf16.msra.mxu1 %v4795_v17  ;;  %3396 = vmatpush1.bf16.msra.mxu0 %v4797_v4  ;;  %v4853_v17 = vcombine.low %v2581_v63, %v2585_v0  ;;  %v4860_v4 = vcombine.high %v2588_v8, %v2592_v10  ;;  %v5469_v63 = vld [vmem:[%s6261_s23 + $0x94] ss:$8 sps:$4 sm:$0xff]   ;;  %v5467_v0 = vld [vmem:[%s6261_s23 + $0x90] ss:$8 sps:$4 sm:$0xff]   ;;  %v5478_v8 = vld [vmem:[%s6261_s23 + $0xc4] ss:$8 sps:$4 sm:$0xff]  }
 0xc0d   : > { %3354 = vmatprep.subr.bf16.mxu1 %v4804_v18  ;;  %3397 = vmatprep.subr.bf16.mxu0 %v4806_v19  ;;  %v4862_v18 = vcombine.high %v2589_v30, %v2593_v9  ;;  %v2596_v19 = vld [vmem:[%s6255_s30 + $0x350] sm:$0xff]  ;;  %v5476_v10 = vld [vmem:[%s6261_s23 + $0xc0] ss:$8 sps:$4 sm:$0xff]  }
 0xc0e   : > { %v4867_v39 = vcombine.low %v2596_v19, %v2600_v23 }
 0xc10   : > { %3355 = vmatpush1.bf16.msra.mxu1 %v4803_v28  ;;  %3398 = vmatpush1.bf16.msra.mxu0 %v4805_v31  ;;  %v4861_v28 = vcombine.low %v2589_v30, %v2593_v9  ;;  %v4868_v31 = vcombine.high %v2596_v19, %v2600_v23  ;;  %v5481_v30 = vld [vmem:[%s6261_s23 + $0xd4] ss:$8 sps:$4 sm:$0xff]   ;;  %v5479_v9 = vld [vmem:[%s6261_s23 + $0xd0] ss:$8 sps:$4 sm:$0xff]   ;;  %v5490_v19 = vld [vmem:[%s6261_s23 + $0x104] ss:$8 sps:$4 sm:$0xff]  }
 0xc11   : > { %3356 = vmatprep.subr.bf16.mxu1 %v4812_v33  ;;  %3399 = vmatprep.subr.bf16.mxu0 %v4814_v37  ;;  %v4870_v33 = vcombine.high %v2597_v32, %v2601_v24  ;;  %v2604_v37 = vld [vmem:[%s6255_s30 + $0x390] sm:$0xff] }
 0xc12   : > { %v4875_v5 = vcombine.low %v2604_v37, %v2608_v38 }
 0xc14   : > { %3357 = vmatpush1.bf16.msra.mxu1 %v4811_v53  ;;  %3400 = vmatpush1.bf16.msra.mxu0 %v4813_v15  ;;  %v4869_v53 = vcombine.low %v2597_v32, %v2601_v24  ;;  %v4876_v15 = vcombine.high %v2604_v37, %v2608_v38 }
 0xc15   : > { %3358 = vmatprep.subr.bf16.mxu1 %v4820_v27  ;;  %3401 = vmatprep.subr.bf16.mxu0 %v4822_v40  ;;  %v4878_v27 = vcombine.high %v2605_v34, %v2609_v36  ;;  %v2612_v40 = vld [vmem:[%s6255_s30 + $0x3d0] sm:$0xff] }
 0xc18   : > { %3359 = vmatpush1.bf16.msra.mxu1 %v4819_v43  ;;  %3402 = vmatpush1.bf16.msra.mxu0 %v4821_v44  ;;  %v4877_v43 = vcombine.low %v2605_v34, %v2609_v36  ;;  %v4884_v44 = vcombine.high %v2612_v40, %v2616_v41 }
 0xc19   : > { %3360 = vmatprep.subr.bf16.mxu1 %v4828_v45  ;;  %3403 = vmatprep.subr.bf16.mxu0 %v4830_v47  ;;  %v4886_v45 = vcombine.high %v2613_v16, %v2617_v42  ;;  %v4883_v47 = vcombine.low %v2612_v40, %v2616_v41 }
 0xc1c   : > { %3361 = vmatpush1.bf16.msra.mxu1 %v4827_v49  ;;  %3404 = vmatpush1.bf16.msra.mxu0 %v4829_v20  ;;  %v5443_v49 = vld [vmem:[%s6261_s23 + $0x10] ss:$8 sps:$4 sm:$0xff]   ;;  %v5448_v20 = vld [vmem:[%s6261_s23 + $0x24] ss:$8 sps:$4 sm:$0xff]  }
 0xc1d   : > { %3362 = vmatprep.subr.bf16.mxu1 %v4836_v22  ;;  %3405 = vmatprep.subr.bf16.mxu0 %v4838_v50  ;;  %v5446_v22 = vld [vmem:[%s6261_s23 + $0x20] ss:$8 sps:$4 sm:$0xff]   ;;  %v5451_v50 = vld [vmem:[%s6261_s23 + $0x34] ss:$8 sps:$4 sm:$0xff]  }
 0xc20   : > { %3363 = vmatpush1.bf16.msra.mxu1 %v4835_v58  ;;  %3406 = vmatpush1.bf16.msra.mxu0 %v4837_v59  ;;  %v5460_v58 = vld [vmem:[%s6261_s23 + $0x64] ss:$8 sps:$4 sm:$0xff]   ;;  %v5458_v59 = vld [vmem:[%s6261_s23 + $0x60] ss:$8 sps:$4 sm:$0xff]  }
 0xc21   : > { %3364 = vmatprep.subr.bf16.mxu1 %v4844_v60  ;;  %3407 = vmatprep.subr.bf16.mxu0 %v4846_v61  ;;  %v5463_v60 = vld [vmem:[%s6261_s23 + $0x74] ss:$8 sps:$4 sm:$0xff]   ;;  %v5461_v61 = vld [vmem:[%s6261_s23 + $0x70] ss:$8 sps:$4 sm:$0xff]  }
 0xc24   : > { %3365 = vmatpush1.bf16.msra.mxu1 %v4843_v1  ;;  %3408 = vmatpush1.bf16.msra.mxu0 %v4845_v2  ;;  %v5472_v1 = vld [vmem:[%s6261_s23 + $0xa4] ss:$8 sps:$4 sm:$0xff]   ;;  %v5470_v2 = vld [vmem:[%s6261_s23 + $0xa0] ss:$8 sps:$4 sm:$0xff]  }
 0xc25   : > { %3366 = vmatprep.subr.bf16.mxu1 %v4852_v3  ;;  %3409 = vmatprep.subr.bf16.mxu0 %v4854_v7  ;;  %v5475_v3 = vld [vmem:[%s6261_s23 + $0xb4] ss:$8 sps:$4 sm:$0xff]   ;;  %v5473_v7 = vld [vmem:[%s6261_s23 + $0xb0] ss:$8 sps:$4 sm:$0xff]  }
 0xc28   : > { %3367 = vmatpush1.bf16.msra.mxu1 %v4851_v14  ;;  %3410 = vmatpush1.bf16.msra.mxu0 %v4853_v17  ;;  %v5484_v14 = vld [vmem:[%s6261_s23 + $0xe4] ss:$8 sps:$4 sm:$0xff]   ;;  %v5482_v17 = vld [vmem:[%s6261_s23 + $0xe0] ss:$8 sps:$4 sm:$0xff]  }
 0xc29   : > { %3368 = vmatprep.subr.bf16.mxu1 %v4860_v4  ;;  %3411 = vmatprep.subr.bf16.mxu0 %v4862_v18  ;;  %v5487_v4 = vld [vmem:[%s6261_s23 + $0xf4] ss:$8 sps:$4 sm:$0xff]   ;;  %v5485_v18 = vld [vmem:[%s6261_s23 + $0xf0] ss:$8 sps:$4 sm:$0xff]  }
 0xc2c   : > { %3369 = vmatpush1.bf16.msra.mxu1 %v4859_v26  ;;  %3412 = vmatpush1.bf16.msra.mxu0 %v4861_v28 }
 0xc2d   : > { %3370 = vmatprep.subr.bf16.mxu1 %v4868_v31  ;;  %3413 = vmatprep.subr.bf16.mxu0 %v4870_v33 }
 0xc30   : > { %3371 = vmatpush1.bf16.msra.mxu1 %v4867_v39  ;;  %3414 = vmatpush1.bf16.msra.mxu0 %v4869_v53 }
 0xc31   : > { %3372 = vmatprep.subr.bf16.mxu1 %v4876_v15  ;;  %3415 = vmatprep.subr.bf16.mxu0 %v4878_v27 }
 0xc34   : > { %3373 = vmatpush1.bf16.msra.mxu1 %v4875_v5  ;;  %3416 = vmatpush1.bf16.msra.mxu0 %v4877_v43  ;;  %v5488_v43 = vld [vmem:[%s6261_s23 + $0x100] ss:$8 sps:$4 sm:$0xff]  }
 0xc35   : > { %3374 = vmatprep.subr.bf16.mxu1 %v4884_v44  ;;  %3417 = vmatprep.subr.bf16.mxu0 %v4886_v45  ;;  %v5493_v44 = vld [vmem:[%s6261_s23 + $0x114] ss:$8 sps:$4 sm:$0xff]   ;;  %v5491_v45 = vld [vmem:[%s6261_s23 + $0x110] ss:$8 sps:$4 sm:$0xff]  }
 0xc38   : > { %3375 = vmatpush1.bf16.msra.mxu1 %v4883_v47  ;;  %3418 = vmatpush1.bf16.msra.mxu0 %v4885_v48  ;;  %v5496_v47 = vld [vmem:[%s6261_s23 + $0x124] ss:$8 sps:$4 sm:$0xff]   ;;  %v5494_v48 = vld [vmem:[%s6261_s23 + $0x120] ss:$8 sps:$4 sm:$0xff]  }
 0xc39   : > { %4222 = vmatprep.subr.bf16.mxu1 %v5442_v25  ;;  %v5499_v25 = vld [vmem:[%s6261_s23 + $0x134] ss:$8 sps:$4 sm:$0xff]  }
 0xc3b   : > { %3377 = vmatmul.mubr.bf16.vlgmr.msra.gmra.mrb[36].mxu1 %v6743_v46  ;;  %3420 = vmatmul.mubr.bf16.vlgmr.msra.gmra.mrb[52].mxu0 %v6743_v46  ;;  %v5452_v46 = vld [vmem:[%s6261_s23 + $0x40] ss:$8 sps:$4 sm:$0xff]  }
 0xc3c   : > { %4223 = vmatpush1.bf16.msra.mxu1 %v5440_v54  ;;  %v5497_v54 = vld [vmem:[%s6261_s23 + $0x130] ss:$8 sps:$4 sm:$0xff]  }
 0xc3d   : > { %4224 = vmatprep.subr.bf16.mxu1 %v5445_v6  ;;  %v5502_v6 = vld [vmem:[%s6261_s23 + $0x144] ss:$8 sps:$4 sm:$0xff]  }
 0xc40   : > { %4225 = vmatpush1.bf16.msra.mxu1 %v5443_v49  ;;  %v5500_v49 = vld [vmem:[%s6261_s23 + $0x140] ss:$8 sps:$4 sm:$0xff]  }
 0xc41   : > { %4226 = vmatprep.subr.bf16.mxu1 %v5448_v20  ;;  %v5505_v20 = vld [vmem:[%s6261_s23 + $0x154] ss:$8 sps:$4 sm:$0xff]  }
 0xc44   : > { %4227 = vmatpush1.bf16.msra.mxu1 %v5446_v22  ;;  %v5503_v22 = vld [vmem:[%s6261_s23 + $0x150] ss:$8 sps:$4 sm:$0xff]  }
 0xc45   : > { %4228 = vmatprep.subr.bf16.mxu1 %v5451_v50  ;;  %v5508_v50 = vld [vmem:[%s6261_s23 + $0x164] ss:$8 sps:$4 sm:$0xff]  }
 0xc48   : > { %4229 = vmatpush1.bf16.msra.mxu1 %v5449_v51  ;;  %v5506_v51 = vld [vmem:[%s6261_s23 + $0x160] ss:$8 sps:$4 sm:$0xff]  }
 0xc49   : > { %4230 = vmatprep.subr.bf16.mxu1 %v5454_v52  ;;  %v5511_v52 = vld [vmem:[%s6261_s23 + $0x174] ss:$8 sps:$4 sm:$0xff]  }
 0xc4c   : > { %4231 = vmatpush1.bf16.msra.mxu1 %v5452_v46  ;;  %v5509_v46 = vld [vmem:[%s6261_s23 + $0x170] ss:$8 sps:$4 sm:$0xff]  }
 0xc4d   : > { %4232 = vmatprep.subr.bf16.mxu1 %v5457_v56  ;;  %v5514_v56 = vld [vmem:[%s6261_s23 + $0x184] ss:$8 sps:$4 sm:$0xff]  }
 0xc50   : > { %4233 = vmatpush1.bf16.msra.mxu1 %v5455_v57  ;;  %v5512_v57 = vld [vmem:[%s6261_s23 + $0x180] ss:$8 sps:$4 sm:$0xff]  }
 0xc51   : > { %4234 = vmatprep.subr.bf16.mxu1 %v5460_v58  ;;  %v5517_v58 = vld [vmem:[%s6261_s23 + $0x194] ss:$8 sps:$4 sm:$0xff]  }
 0xc54   : > { %4235 = vmatpush1.bf16.msra.mxu1 %v5458_v59  ;;  %v5515_v59 = vld [vmem:[%s6261_s23 + $0x190] ss:$8 sps:$4 sm:$0xff]  }
 0xc55   : > { %4236 = vmatprep.subr.bf16.mxu1 %v5463_v60  ;;  %v5520_v60 = vld [vmem:[%s6261_s23 + $0x1a4] ss:$8 sps:$4 sm:$0xff]  }
 0xc58   : > { %4237 = vmatpush1.bf16.msra.mxu1 %v5461_v61  ;;  %v5518_v61 = vld [vmem:[%s6261_s23 + $0x1a0] ss:$8 sps:$4 sm:$0xff]  }
 0xc59   : > { %4238 = vmatprep.subr.bf16.mxu1 %v5466_v62  ;;  %v5523_v62 = vld [vmem:[%s6261_s23 + $0x1b4] ss:$8 sps:$4 sm:$0xff]  }
 0xc5c   : > { %4239 = vmatpush1.bf16.msra.mxu1 %v5464_v12  ;;  %v5521_v12 = vld [vmem:[%s6261_s23 + $0x1b0] ss:$8 sps:$4 sm:$0xff]  }
 0xc5d   : > { %4240 = vmatprep.subr.bf16.mxu1 %v5469_v63  ;;  %v5526_v63 = vld [vmem:[%s6261_s23 + $0x1c4] ss:$8 sps:$4 sm:$0xff]  }
 0xc60   : > { %4241 = vmatpush1.bf16.msra.mxu1 %v5467_v0  ;;  %v5524_v0 = vld [vmem:[%s6261_s23 + $0x1c0] ss:$8 sps:$4 sm:$0xff]  }
 0xc61   : > { %4242 = vmatprep.subr.bf16.mxu1 %v5472_v1  ;;  %v5529_v1 = vld [vmem:[%s6261_s23 + $0x1d4] ss:$8 sps:$4 sm:$0xff]  }
 0xc64   : > { %4243 = vmatpush1.bf16.msra.mxu1 %v5470_v2  ;;  %v5527_v2 = vld [vmem:[%s6261_s23 + $0x1d0] ss:$8 sps:$4 sm:$0xff]  }
 0xc65   : > { %4244 = vmatprep.subr.bf16.mxu1 %v5475_v3  ;;  %v5532_v3 = vld [vmem:[%s6261_s23 + $0x1e4] ss:$8 sps:$4 sm:$0xff]  }
 0xc68   : > { %4245 = vmatpush1.bf16.msra.mxu1 %v5473_v7  ;;  %v5530_v7 = vld [vmem:[%s6261_s23 + $0x1e0] ss:$8 sps:$4 sm:$0xff]  }
 0xc69   : > { %4246 = vmatprep.subr.bf16.mxu1 %v5478_v8  ;;  %v5535_v8 = vld [vmem:[%s6261_s23 + $0x1f4] ss:$8 sps:$4 sm:$0xff]  }
 0xc6c   : > { %4247 = vmatpush1.bf16.msra.mxu1 %v5476_v10 }
 0xc6d   : > { %4248 = vmatprep.subr.bf16.mxu1 %v5481_v30 }
 0xc70   : > { %4249 = vmatpush1.bf16.msra.mxu1 %v5479_v9 }
 0xc71   : > { %4250 = vmatprep.subr.bf16.mxu1 %v5484_v14 }
 0xc74   : > { %4251 = vmatpush1.bf16.msra.mxu1 %v5482_v17 }
 0xc75   : > { %4252 = vmatprep.subr.bf16.mxu1 %v5487_v4 }
 0xc78   : > { %4253 = vmatpush1.bf16.msra.mxu1 %v5485_v18  ;;  %v5533_v18 = vld [vmem:[%s6261_s23 + $0x1f0] ss:$8 sps:$4 sm:$0xff]  }
 0xc79   : > { %4265 = vmatprep.subr.bf16.mxu1 %v5490_v19  ;;  %v5538_v19 = vld [vmem:[%s6261_s23 + $0x204] ss:$8 sps:$4 sm:$0xff]  }
 0xcce   : > { %v3292_v23 = vpop.f32.mrb[32].mxu1  ;;  %v3335_v32 = vpop.f32.mrb[48].mxu0 }
 0xccf   : > { %v3294_v24 = vpop.f32.mrb[33].mxu1  ;;  %v3337_v26 = vpop.f32.mrb[49].mxu0  ;;  %v3430_v33 = vmax.f32 %v3292_v23, 0.0  ;;  %v3432_v37 = vmax.f32 %v3335_v32, 0.0 }
 0xcd0   : > { %v3296_v28 = vpop.f32.mrb[34].mxu1  ;;  %v3339_v31 = vpop.f32.mrb[50].mxu0  ;;  %v3431_v53 = vmax.f32 %v3294_v24, 0.0  ;;  %v3433_v15 = vmax.f32 %v3337_v26, 0.0 }
 0xcd1   : > { %v3438_v38 = vmax.f32 %v3296_v28, 0.0  ;;  %v3440_v34 = vmax.f32 %v3339_v31, 0.0  ;;  %v3298_v36 = vpop.f32.mrb[35].mxu1  ;;  %v3341_v39 = vpop.f32.mrb[51].mxu0 }
 0xcd2   : > { %v3439_v27 = vmax.f32 %v3298_v36, 0.0  ;;  %v3441_v40 = vmax.f32 %v3341_v39, 0.0 }
 0xcd3   : > { %v3446_v41 = vpack.c.bf16 %v3438_v38, %v3430_v33  ;;  %v6838_v16 = vpack.c.bf16 %v3440_v34, %v3432_v37 }
 0xcd4   : > { %v3447_v42 = vpack.c.bf16 %v3439_v27, %v3431_v53  ;;  %v3449_v5 = vpack.c.bf16 %v3441_v40, %v3433_v15  ;;  %v5536_v27 = vld [vmem:[%s6261_s23 + $0x200] ss:$8 sps:$4 sm:$0xff]   ;;  %v5541_v40 = vld [vmem:[%s6261_s23 + $0x214] ss:$8 sps:$4 sm:$0xff]  }
 0xcd6   : > { %4254 = vmatprep.mubr.bf16.mxu1 %v3447_v42  ;;  %v5544_v42 = vld [vmem:[%s6261_s23 + $0x224] ss:$8 sps:$4 sm:$0xff]  }
 0xcd7   : > { %4255 = vmatmul.mubr.bf16.vlgmr.msra.gmra.mrb[40].mxu1 %v3446_v41  ;;  %v5539_v41 = vld [vmem:[%s6261_s23 + $0x210] ss:$8 sps:$4 sm:$0xff]  }
 0xcd8   : > { %4266 = vmatpush1.bf16.msra.mxu1 %v5488_v43  ;;  %4297 = vmatprep.mubr.bf16.mxu1 %v3449_v5  ;;  %v5542_v5 = vld [vmem:[%s6261_s23 + $0x220] ss:$8 sps:$4 sm:$0xff]   ;;  %v5547_v43 = vld [vmem:[%s6261_s23 + $0x234] ss:$8 sps:$4 sm:$0xff]  }
 0xcd9   : > { %4267 = vmatprep.subr.bf16.mxu1 %v5493_v44  ;;  %v5545_v44 = vld [vmem:[%s6261_s23 + $0x230] ss:$8 sps:$4 sm:$0xff]  }
 0xcdc   : > { %4268 = vmatpush1.bf16.msra.mxu1 %v5491_v45  ;;  %v5550_v45 = vld [vmem:[%s6261_s23 + $0x244] ss:$8 sps:$4 sm:$0xff]  }
 0xcdd   : > { %4269 = vmatprep.subr.bf16.mxu1 %v5496_v47  ;;  %v5553_v47 = vld [vmem:[%s6261_s23 + $0x254] ss:$8 sps:$4 sm:$0xff]  }
 0xce0   : > { %4270 = vmatpush1.bf16.msra.mxu1 %v5494_v48  ;;  %v5551_v48 = vld [vmem:[%s6261_s23 + $0x250] ss:$8 sps:$4 sm:$0xff]  }
 0xce1   : > { %4271 = vmatprep.subr.bf16.mxu1 %v5499_v25  ;;  %v5556_v25 = vld [vmem:[%s6261_s23 + $0x264] ss:$8 sps:$4 sm:$0xff]  }
 0xce4   : > { %4272 = vmatpush1.bf16.msra.mxu1 %v5497_v54  ;;  %v5554_v54 = vld [vmem:[%s6261_s23 + $0x260] ss:$8 sps:$4 sm:$0xff]  }
 0xce5   : > { %4273 = vmatprep.subr.bf16.mxu1 %v5502_v6  ;;  %v5559_v6 = vld [vmem:[%s6261_s23 + $0x274] ss:$8 sps:$4 sm:$0xff]  }
 0xce8   : > { %4274 = vmatpush1.bf16.msra.mxu1 %v5500_v49  ;;  %v5557_v49 = vld [vmem:[%s6261_s23 + $0x270] ss:$8 sps:$4 sm:$0xff]  }
 0xce9   : > { %4275 = vmatprep.subr.bf16.mxu1 %v5505_v20  ;;  %v5562_v20 = vld [vmem:[%s6261_s23 + $0x284] ss:$8 sps:$4 sm:$0xff]  }
 0xcec   : > { %4276 = vmatpush1.bf16.msra.mxu1 %v5503_v22  ;;  %v5560_v22 = vld [vmem:[%s6261_s23 + $0x280] ss:$8 sps:$4 sm:$0xff]  }
 0xced   : > { %4277 = vmatprep.subr.bf16.mxu1 %v5508_v50  ;;  %v5565_v50 = vld [vmem:[%s6261_s23 + $0x294] ss:$8 sps:$4 sm:$0xff]  }
 0xcf0   : > { %4278 = vmatpush1.bf16.msra.mxu1 %v5506_v51  ;;  %v5563_v51 = vld [vmem:[%s6261_s23 + $0x290] ss:$8 sps:$4 sm:$0xff]  }
 0xcf1   : > { %4279 = vmatprep.subr.bf16.mxu1 %v5511_v52  ;;  %v5568_v52 = vld [vmem:[%s6261_s23 + $0x2a4] ss:$8 sps:$4 sm:$0xff]  }
 0xcf4   : > { %4280 = vmatpush1.bf16.msra.mxu1 %v5509_v46  ;;  %v5566_v46 = vld [vmem:[%s6261_s23 + $0x2a0] ss:$8 sps:$4 sm:$0xff]  }
 0xcf5   : > { %4281 = vmatprep.subr.bf16.mxu1 %v5514_v56  ;;  %v5571_v56 = vld [vmem:[%s6261_s23 + $0x2b4] ss:$8 sps:$4 sm:$0xff]  }
 0xcf8   : > { %4282 = vmatpush1.bf16.msra.mxu1 %v5512_v57  ;;  %v5569_v57 = vld [vmem:[%s6261_s23 + $0x2b0] ss:$8 sps:$4 sm:$0xff]  }
 0xcf9   : > { %4283 = vmatprep.subr.bf16.mxu1 %v5517_v58  ;;  %v5574_v58 = vld [vmem:[%s6261_s23 + $0x2c4] ss:$8 sps:$4 sm:$0xff]  }
 0xcfc   : > { %4284 = vmatpush1.bf16.msra.mxu1 %v5515_v59  ;;  %v5572_v59 = vld [vmem:[%s6261_s23 + $0x2c0] ss:$8 sps:$4 sm:$0xff]  }
 0xcfd   : > { %4285 = vmatprep.subr.bf16.mxu1 %v5520_v60  ;;  %v5577_v60 = vld [vmem:[%s6261_s23 + $0x2d4] ss:$8 sps:$4 sm:$0xff]  }
 0xd00   : > { %4286 = vmatpush1.bf16.msra.mxu1 %v5518_v61  ;;  %v5575_v61 = vld [vmem:[%s6261_s23 + $0x2d0] ss:$8 sps:$4 sm:$0xff]  }
 0xd01   : > { %4287 = vmatprep.subr.bf16.mxu1 %v5523_v62  ;;  %v5580_v62 = vld [vmem:[%s6261_s23 + $0x2e4] ss:$8 sps:$4 sm:$0xff]  }
 0xd04   : > { %4288 = vmatpush1.bf16.msra.mxu1 %v5521_v12  ;;  %v5578_v12 = vld [vmem:[%s6261_s23 + $0x2e0] ss:$8 sps:$4 sm:$0xff]  }
 0xd05   : > { %4289 = vmatprep.subr.bf16.mxu1 %v5526_v63  ;;  %v5583_v63 = vld [vmem:[%s6261_s23 + $0x2f4] ss:$8 sps:$4 sm:$0xff]  }
 0xd08   : > { %4290 = vmatpush1.bf16.msra.mxu1 %v5524_v0  ;;  %v5581_v0 = vld [vmem:[%s6261_s23 + $0x2f0] ss:$8 sps:$4 sm:$0xff]  }
 0xd09   : > { %4291 = vmatprep.subr.bf16.mxu1 %v5529_v1  ;;  %v5586_v1 = vld [vmem:[%s6261_s23 + $0x304] ss:$8 sps:$4 sm:$0xff]  }
 0xd0c   : > { %4292 = vmatpush1.bf16.msra.mxu1 %v5527_v2  ;;  %v5584_v2 = vld [vmem:[%s6261_s23 + $0x300] ss:$8 sps:$4 sm:$0xff]  }
 0xd0d   : > { %4293 = vmatprep.subr.bf16.mxu1 %v5532_v3  ;;  %v5589_v3 = vld [vmem:[%s6261_s23 + $0x314] ss:$8 sps:$4 sm:$0xff]  }
 0xd0e   : > { %v3378_v10 = vpop.f32.mrb[36].mxu1  ;;  %v3421_v30 = vpop.f32.mrb[52].mxu0 }
 0xd0f   : > { %v3380_v9 = vpop.f32.mrb[37].mxu1  ;;  %v3423_v14 = vpop.f32.mrb[53].mxu0  ;;  %v3434_v23 = vmax.f32 %v3378_v10, 0.0  ;;  %v3436_v32 = vmax.f32 %v3421_v30, 0.0  ;;  %v5590_v10 = vld [vmem:[%s6261_s23 + $0x320] ss:$8 sps:$4 sm:$0xff]  }
 0xd10   : > { %v3382_v17 = vpop.f32.mrb[38].mxu1  ;;  %v3425_v4 = vpop.f32.mrb[54].mxu0  ;;  %4294 = vmatpush1.bf16.msra.mxu1 %v5530_v7  ;;  %v3435_v33 = vmax.f32 %v3380_v9, 0.0  ;;  %v3437_v37 = vmax.f32 %v3423_v14, 0.0  ;;  %v5587_v7 = vld [vmem:[%s6261_s23 + $0x310] ss:$8 sps:$4 sm:$0xff]  }
 0xd11   : > { %v3442_v24 = vmax.f32 %v3382_v17, 0.0  ;;  %v3444_v26 = vmax.f32 %v3425_v4, 0.0  ;;  %v3384_v28 = vpop.f32.mrb[39].mxu1  ;;  %v3427_v31 = vpop.f32.mrb[55].mxu0  ;;  %4295 = vmatprep.subr.bf16.mxu1 %v5535_v8  ;;  %v5592_v8 = vld [vmem:[%s6261_s23 + $0x324] ss:$8 sps:$4 sm:$0xff]  }
 0xd12   : > { %v3443_v38 = vmax.f32 %v3384_v28, 0.0  ;;  %v3445_v34 = vmax.f32 %v3427_v31, 0.0  ;;  %v5595_v30 = vld [vmem:[%s6261_s23 + $0x334] ss:$8 sps:$4 sm:$0xff]   ;;  %v5593_v9 = vld [vmem:[%s6261_s23 + $0x330] ss:$8 sps:$4 sm:$0xff]  }
 0xd13   : > { %v6872_v36 = vpack.c.bf16 %v3442_v24, %v3434_v23  ;;  %v6874_v39 = vpack.c.bf16 %v3444_v26, %v3436_v32  ;;  %v5598_v14 = vld [vmem:[%s6261_s23 + $0x344] ss:$8 sps:$4 sm:$0xff]   ;;  %v5596_v17 = vld [vmem:[%s6261_s23 + $0x340] ss:$8 sps:$4 sm:$0xff]   ;;  %v5601_v4 = vld [vmem:[%s6261_s23 + $0x354] ss:$8 sps:$4 sm:$0xff]  }
 0xd14   : > { %v3451_v53 = vpack.c.bf16 %v3443_v38, %v3435_v33  ;;  %v6876_v15 = vpack.c.bf16 %v3445_v34, %v3437_v37  ;;  %4296 = vmatpush1.bf16.msra.mxu1 %v5533_v18  ;;  %v5599_v18 = vld [vmem:[%s6261_s23 + $0x350] ss:$8 sps:$4 sm:$0xff]   ;;  %v5602_v23 = vld [vmem:[%s6261_s23 + $0x360] ss:$8 sps:$4 sm:$0xff]   ;;  %v5607_v32 = vld [vmem:[%s6261_s23 + $0x374] ss:$8 sps:$4 sm:$0xff]  }
 0xd15   : > { %4308 = vmatprep.subr.bf16.mxu1 %v5538_v19  ;;  %v5604_v19 = vld [vmem:[%s6261_s23 + $0x364] ss:$8 sps:$4 sm:$0xff]   ;;  %v5605_v24 = vld [vmem:[%s6261_s23 + $0x370] ss:$8 sps:$4 sm:$0xff]   ;;  %v5608_v28 = vld [vmem:[%s6261_s23 + $0x380] ss:$8 sps:$4 sm:$0xff]  }
 0xd16   : > { %v5610_v26 = vld [vmem:[%s6261_s23 + $0x384] ss:$8 sps:$4 sm:$0xff]   ;;  %v5613_v31 = vld [vmem:[%s6261_s23 + $0x394] ss:$8 sps:$4 sm:$0xff]   ;;  %v5611_v33 = vld [vmem:[%s6261_s23 + $0x390] ss:$8 sps:$4 sm:$0xff]  }
 0xd17   : > { %4298 = vmatmul.mubr.bf16.vlgmr.msra.gmra.mrb[40].mxu1 %v6838_v16  ;;  %v5548_v16 = vld [vmem:[%s6261_s23 + $0x240] ss:$8 sps:$4 sm:$0xff]   ;;  %v5616_v37 = vld [vmem:[%s6261_s23 + $0x3a4] ss:$8 sps:$4 sm:$0xff]   ;;  %v5619_v34 = vld [vmem:[%s6261_s23 + $0x3b4] ss:$8 sps:$4 sm:$0xff]  }
 0xd18   : > { %4309 = vmatpush1.bf16.msra.mxu1 %v5536_v27  ;;  %4340 = vmatprep.mubr.bf16.mxu1 %v3451_v53  ;;  %v5614_v38 = vld [vmem:[%s6261_s23 + $0x3a0] ss:$8 sps:$4 sm:$0xff]   ;;  %v5622_v53 = vld [vmem:[%s6261_s23 + $0x3c4] ss:$8 sps:$4 sm:$0xff]   ;;  %v5625_v27 = vld [vmem:[%s6261_s23 + $0x3d4] ss:$8 sps:$4 sm:$0xff]  }
 0xd19   : > { %4310 = vmatprep.subr.bf16.mxu1 %v5541_v40  ;;  %v5623_v40 = vld [vmem:[%s6261_s23 + $0x3d0] ss:$8 sps:$4 sm:$0xff]  }
 0xd1c   : > { %4311 = vmatpush1.bf16.msra.mxu1 %v5539_v41  ;;  %v5628_v41 = vld [vmem:[%s6261_s23 + $0x3e4] ss:$8 sps:$4 sm:$0xff]  }
 0xd1d   : > { %4312 = vmatprep.subr.bf16.mxu1 %v5544_v42  ;;  %v5626_v42 = vld [vmem:[%s6261_s23 + $0x3e0] ss:$8 sps:$4 sm:$0xff]  }
 0xd20   : > { %4313 = vmatpush1.bf16.msra.mxu1 %v5542_v5  ;;  %v5631_v5 = vld [vmem:[%s6261_s23 + $0x3f4] ss:$8 sps:$4 sm:$0xff]  }
 0xd21   : > { %4314 = vmatprep.subr.bf16.mxu1 %v5547_v43  ;;  %v5629_v43 = vld [vmem:[%s6261_s23 + $0x3f0] ss:$8 sps:$4 sm:$0xff]  }
 0xd24   : > { %4315 = vmatpush1.bf16.msra.mxu1 %v5545_v44 }
 0xd25   : > { %4316 = vmatprep.subr.bf16.mxu1 %v5550_v45 }
 0xd28   : > { %4317 = vmatpush1.bf16.msra.mxu1 %v5548_v16 }
 0xd29   : > { %4318 = vmatprep.subr.bf16.mxu1 %v5553_v47 }
 0xd2c   : > { %4319 = vmatpush1.bf16.msra.mxu1 %v5551_v48 }
 0xd2d   : > { %4320 = vmatprep.subr.bf16.mxu1 %v5556_v25 }
 0xd30   : > { %4321 = vmatpush1.bf16.msra.mxu1 %v5554_v54 }
 0xd31   : > { %4322 = vmatprep.subr.bf16.mxu1 %v5559_v6 }
 0xd34   : > { %4323 = vmatpush1.bf16.msra.mxu1 %v5557_v49 }
 0xd35   : > { %4324 = vmatprep.subr.bf16.mxu1 %v5562_v20 }
 0xd38   : > { %4325 = vmatpush1.bf16.msra.mxu1 %v5560_v22 }
 0xd39   : > { %4326 = vmatprep.subr.bf16.mxu1 %v5565_v50 }
 0xd3c   : > { %4327 = vmatpush1.bf16.msra.mxu1 %v5563_v51 }
 0xd3d   : > { %4328 = vmatprep.subr.bf16.mxu1 %v5568_v52 }
 0xd40   : > { %4329 = vmatpush1.bf16.msra.mxu1 %v5566_v46 }
 0xd41   : > { %4330 = vmatprep.subr.bf16.mxu1 %v5571_v56  ;;  %v4406_v56 = vld [vmem:[#allocation12] sm:$0x3] (!%p5015_p5) }
 0xd44   : > { %4331 = vmatpush1.bf16.msra.mxu1 %v5569_v57  ;;  %v4431_v57 = vrot.slane (!%p5015_p5), %v4406_v56, %v6333_v55 }
 0xd45   : > { %4332 = vmatprep.subr.bf16.mxu1 %v5574_v58  ;;  %v4435_v58 = vrot.slane (!%p5015_p5), %v4406_v56, %v6559_v11 }
 0xd48   : > { %4333 = vmatpush1.bf16.msra.mxu1 %v5572_v59 }
 0xd49   : > { %4334 = vmatprep.subr.bf16.mxu1 %v5577_v60 }
 0xd4c   : > { %4335 = vmatpush1.bf16.msra.mxu1 %v5575_v61 }
 0xd4d   : > { %4336 = vmatprep.subr.bf16.mxu1 %v5580_v62 }
 0xd50   : > { %4337 = vmatpush1.bf16.msra.mxu1 %v5578_v12 }
 0xd51   : > { %4338 = vmatprep.subr.bf16.mxu1 %v5583_v63 }
 0xd54   : > { %4339 = vmatpush1.bf16.msra.mxu1 %v5581_v0 }
 0xd55   : > { %4351 = vmatprep.subr.bf16.mxu1 %v5586_v1 }
 0xd57   : > { %4341 = vmatmul.mubr.bf16.vlgmr.msra.gmra.mrb[40].mxu1 %v6872_v36  ;;  %v5617_v36 = vld [vmem:[%s6261_s23 + $0x3b0] ss:$8 sps:$4 sm:$0xff]  }
 0xd58   : > { %4352 = vmatpush1.bf16.msra.mxu1 %v5584_v2  ;;  %4383 = vmatprep.mubr.bf16.mxu1 %v6876_v15  ;;  %v5620_v15 = vld [vmem:[%s6261_s23 + $0x3c0] ss:$8 sps:$4 sm:$0xff]  }
 0xd59   : > { %4353 = vmatprep.subr.bf16.mxu1 %v5589_v3 }
 0xd5c   : > { %4354 = vmatpush1.bf16.msra.mxu1 %v5587_v7 }
 0xd5d   : > { %4355 = vmatprep.subr.bf16.mxu1 %v5592_v8 }
 0xd60   : > { %4356 = vmatpush1.bf16.msra.mxu1 %v5590_v10 }
 0xd61   : > { %4357 = vmatprep.subr.bf16.mxu1 %v5595_v30 }
 0xd64   : > { %4358 = vmatpush1.bf16.msra.mxu1 %v5593_v9 }
 0xd65   : > { %4359 = vmatprep.subr.bf16.mxu1 %v5598_v14 }
 0xd68   : > { %4360 = vmatpush1.bf16.msra.mxu1 %v5596_v17 }
 0xd69   : > { %4361 = vmatprep.subr.bf16.mxu1 %v5601_v4 }
 0xd6c   : > { %4362 = vmatpush1.bf16.msra.mxu1 %v5599_v18 }
 0xd6d   : > { %4363 = vmatprep.subr.bf16.mxu1 %v5604_v19 }
 0xd70   : > { %4364 = vmatpush1.bf16.msra.mxu1 %v5602_v23 }
 0xd71   : > { %4365 = vmatprep.subr.bf16.mxu1 %v5607_v32 }
 0xd74   : > { %4366 = vmatpush1.bf16.msra.mxu1 %v5605_v24 }
 0xd75   : > { %4367 = vmatprep.subr.bf16.mxu1 %v5610_v26 }
 0xd78   : > { %4368 = vmatpush1.bf16.msra.mxu1 %v5608_v28 }
 0xd79   : > { %4369 = vmatprep.subr.bf16.mxu1 %v5613_v31 }
 0xd7c   : > { %4370 = vmatpush1.bf16.msra.mxu1 %v5611_v33 }
 0xd7d   : > { %4371 = vmatprep.subr.bf16.mxu1 %v5616_v37 }
 0xd80   : > { %4372 = vmatpush1.bf16.msra.mxu1 %v5614_v38 }
 0xd81   : > { %4373 = vmatprep.subr.bf16.mxu1 %v5619_v34 }
 0xd84   : > { %4374 = vmatpush1.bf16.msra.mxu1 %v5617_v36 }
 0xd85   : > { %4375 = vmatprep.subr.bf16.mxu1 %v5622_v53 }
 0xd88   : > { %4376 = vmatpush1.bf16.msra.mxu1 %v5620_v15 }
 0xd89   : > { %4377 = vmatprep.subr.bf16.mxu1 %v5625_v27 }
 0xd8c   : > { %4378 = vmatpush1.bf16.msra.mxu1 %v5623_v40 }
 0xd8d   : > { %4379 = vmatprep.subr.bf16.mxu1 %v5628_v41 }
 0xd90   : > { %4380 = vmatpush1.bf16.msra.mxu1 %v5626_v42 }
 0xd91   : > { %4381 = vmatprep.subr.bf16.mxu1 %v5631_v5 }
 0xd94   : > { %4382 = vmatpush1.bf16.msra.mxu1 %v5629_v43 }
 0xd97   : > { %4384 = vmatmul.mubr.bf16.vlgmr.msra.gmra.mrb[40].mxu1 %v6874_v39 }
 0xe6a   : > { %v4385_v44 = vpop.f32.mrb[40].mxu1  ;;  %4405 = sbr.rel (%p5015_p5) target bundleno = 3866 (0xf1a), region = 88 }
 0xe6b   : > { %v4394_v45 = vadd.f32 %v4385_v44, %v6690_v13  ;;  %v4387_v16 = vpop.f32.mrb[41].mxu1 }
 0xe6c   : > { %v4395_v47 = vadd.f32 %v4387_v16, %v6692_v29  ;;  %v4389_v48 = vpop.f32.mrb[42].mxu1 }
 0xe6d   : > { %4398 = vst [vmem:[#allocation2] sm:$0xff] %v4394_v45  ;;  %v4396_v25 = vadd.f32 %v4389_v48, %v6694_v35  ;;  %v4391_v54 = vpop.f32.mrb[43].mxu1  ;;  %v4407_v39 = vmul.f32 (!%p5015_p5), %v4394_v45, %v4394_v45 }
 0xe6e   : > { %4399 = vst [vmem:[#allocation2 + $0x8] sm:$0xff] %v4395_v47  ;;  %v4397_v6 = vadd.f32 %v4391_v54, %v6698_v21  ;;  %v4408_v49 = vmul.f32 (!%p5015_p5), %v4395_v47, %v4395_v47 }
 0xe6f   : > { %4400 = vst [vmem:[#allocation2 + $0x10] sm:$0xff] %v4396_v25  ;;  %v4409_v20 = vmul.f32 (!%p5015_p5), %v4396_v25, %v4396_v25 }
 0xe70   : > { %4401 = vst [vmem:[#allocation2 + $0x18] sm:$0xff] %v4397_v6  ;;  %v4410_v13 = vmul.f32 (!%p5015_p5), %v4397_v6, %v4397_v6  ;;  %v4411_v22 = vadd.f32 (!%p5015_p5), %v4408_v49, %v4407_v39 }
 0xe72   : > { %4412 = vadd.xlane.f32.xlu0 %v4411_v22  ;;  %v4414_v29 = vadd.f32 %v4410_v13, %v4409_v20 }
 0xe76   : > { %4415 = vadd.xlane.f32.xlu0 %v4414_v29 }
 0xeff   : > { %v4413_v50 = vpop.xlane.xlu0 %4412 }
 0xf00   : > { %v4417_v51 = vmul.f32 0.00390625, %v4413_v50 }
 0xf02   : > { %v4419_v35 = vadd.f32 1e-06, %v4417_v51 }
 0xf03   : > { %v4416_v52 = vpop.xlane.xlu0 %4415 }
 0xf04   : > { %5677 = vrsqrt.f32 %v4419_v35  ;;  %v4418_v46 = vmul.f32 0.00390625, %v4416_v52 }
 0xf06   : > { %v4420_v21 = vadd.f32 1e-06, %v4418_v46 }
 0xf08   : > { %5679 = vrsqrt.f32 %v4420_v21 }
 0xf0e   : > { %v5678_v59 = vpop.eup %5677 }
 0xf0f   : > { %v4423_v60 = vmul.f32 %v5678_v59, %v4394_v45  ;;  %v4424_v61 = vmul.f32 %v5678_v59, %v4395_v47 }
 0xf11   : > { %v4438_v62 = vmul.f32 %v4431_v57, %v4423_v60  ;;  %v4439_v12 = vmul.f32 %v4435_v58, %v4424_v61 }
 0xf12   : > { %v5680_v63 = vpop.eup %5679 }
 0xf13   : > { %v5024_v0 = vpack.c.bf16 %v4439_v12, %v4438_v62  ;;  %v4425_v1 = vmul.f32 %v5680_v63, %v4396_v25  ;;  %v4426_v2 = vmul.f32 %v5680_v63, %v4397_v6 }
 0xf15   : > { %4454 = vst [vmem:[%s7019_s2] sm:$0xff] %v5024_v0  ;;  %v4440_v3 = vmul.f32 %v4431_v57, %v4425_v1  ;;  %v4441_v7 = vmul.f32 %v4435_v58, %v4426_v2 }
 0xf17   : > { %v5025_v8 = vpack.c.bf16 %v4441_v7, %v4440_v3 }
 0xf19   : > { %4455 = vst [vmem:[%s7019_s2 + $0x8] sm:$0xff] %v5025_v8 }
 0xf1a PF: > { %s7020_s12 = sld [smem:[#allocation19_spill]]  ;;  %s7021_s14 = sld [smem:[#allocation18_spill]] }
 0xf1b   : > { %s7022_s11 = sld [smem:[#allocation20_spill]]  ;;  %s7023_s30 = smov %s5897_s10 }
 0xf20   : > { %p26_p7 = scmp.ge.s32.totalorder %s7020_s12, 6   ;;  %s7024_s10 = smov %s7021_s14 }
 0xf22   :  { %28 = sbr.rel (!%p26_p7) target bundleno = 14 (0xe), region = 152 }
 0xf29   :  { %4467 = vsyncpa [#allocation5], 1 }
 0xf2a   :  { %4469 = vsyncpa [#allocation5 + $0x1], 1 }
 0xf2b   :  { %4470 = vsyncpa [#allocation7], 1 }
 0xf2c   :  { %4472 = vsyncpa [#allocation7 + $0x1], 1 }
 0xf2d   :  { %4473 = vsyncpa [#allocation10], 1 }
 0xf2e   :  { %4475 = vsyncpa [#allocation10 + $0x1], 1 }
 0xf2f   :  { %4476 = vsyncpa [#allocation13], 1 }

// kernel: t5_forward.3
= control target key start
LH: loop header
LB: loop body
LE: loop exit
PB: predicated region body
PF: predicated region fallthrough
CT: control target
= control target key end

     0   :  { %s10379_s0 = inlined_call_operand.vmem [shape: f32[16,256], index: 0, kind: input, shape index: {}]   ;;  %s10380_s1 = inlined_call_operand.vmem [shape: bf16[16,256], index: 1, kind: input, shape index: {}]   ;;  %s10381_s2 = inlined_call_operand.vmem [shape: f32[4,8,8], index: 2, kind: input, shape index: {}]   ;;  %s10382_s3 = inlined_call_operand.vmem [shape: f32[2,8], index: 3, kind: input, shape index: {}]   ;;  %s10383_s4 = inlined_call_operand.vmem [shape: f32[4,3,256], index: 4, kind: input, shape index: {}]   ;;  %s10384_s5 = inlined_call_operand.vmem [shape: bf16[4,256,768], index: 5, kind: input, shape index: {}]   ;;  %s10385_s6 = inlined_call_operand.vmem [shape: bf16[4,256,256], index: 6, kind: input, shape index: {}]   ;;  %s10386_s7 = inlined_call_operand.hbm [shape: bf16[4,256,256], index: 7, kind: input, shape index: {}]   ;;  %s10387_s8 = inlined_call_operand.vmem [shape: bf16[4,256,512], index: 8, kind: input, shape index: {}]   ;;  %s10388_s9 = inlined_call_operand.hbm [shape: bf16[4,256,256], index: 9, kind: input, shape index: {}]   ;;  %s10389_s10 = inlined_call_operand.vmem [shape: bf16[4,256,1024], index: 10, kind: input, shape index: {}]   ;;  %s10390_s11 = inlined_call_operand.vmem [shape: bf16[4,1024,256], index: 11, kind: input, shape index: {}]   ;;  %s10391_s12 = inlined_call_operand.vmem [shape: f32[1,256], index: 12, kind: input, shape index: {}]   ;;  %s10392_s13 = inlined_call_operand.hbm [shape: bf16[256,512], index: 13, kind: input, shape index: {}]   ;;  %s10393_s14 = inlined_call_operand.vmem [shape: f32[16,512], index: 14, kind: output, shape index: {}]  }
   0x1   :  { %10401 = sst [smem:[#allocation14_spill]] %s10380_s1 }
   0x2   :  { %10402 = sst [smem:[#allocation15_spill]] %s10382_s3 }
   0x3   :  { %10403 = sst [smem:[#allocation16_spill]] %s10386_s7 }
   0x4   :  { %10404 = sst [smem:[#allocation17_spill]] %s10388_s9 }
   0x5   :  { %10405 = sst [smem:[#allocation18_spill]] %s10391_s12 }
   0x6   :  { %10406 = sst [smem:[#allocation19_spill]] %s10392_s13 }
   0x7   :  { %10407 = sst [smem:[#allocation20_spill]] %s10393_s14 }
   0x8   :  { %19 = vsyncpa [#allocation5], 0 }
   0x9   :  { %21 = vsyncpa [#allocation5 + $0x1], 0 }
   0xa   :  { %22 = vsyncpa [#allocation7], 0 }
   0xb   :  { %24 = vsyncpa [#allocation7 + $0x1], 0  ;;  %s9066_s29 = smov 0   ;;  %s9068_s30 = smov 0  }
   0xc   :  { %s9070_s15 = smov 0   ;;  %s9072_s16 = smov 0  }
   0xd LB: > { %s9085_s17 = sadd.s32 4294967295, %s8979_s16   ;;  %p212_p0 = scmp.ne.s32.totalorder %s8971_s30, %s8967_s29  ;;  %s8979_s16 = sphi %s9072_s16, %s10427_s16   ;;  %s8975_s15 = sphi %s9070_s15, %s10431_s15   ;;  %s8971_s30 = sphi %s9068_s30, %s10430_s30   ;;  %s8967_s29 = sphi %s9066_s29, %s10429_s29  }
   0xe   : > { %p10395_p1 = scmp.eq.s32.totalorder %s9085_s17, 0  ;;  %p7112_p2 = scmp.ge.s32.totalorder %s8979_s16, 1 }
   0xf   : > { %p390_p3 = scmp.lt.s32.totalorder %s8979_s16, 5  ;;  %s8981_s20 = smov [#allocation8]  }
  0x10   : > { %p9094_p5 = por %p10395_p1, %p212_p0  ;;  %s417_s21 = sshll.u32 %s8981_s20, 4  ;;  %s418_s21 = int_to_ptr.vmem [resolvable:$true] %s417_s21 }
  0x11   : > { %p9098_p6 = pnand %p7112_p2, %p390_p3  ;;  %s9111_s23 = sadd.s32 1, %s8979_s16  }
  0x12   : > { %s10408_s18 = scalar_select %p9094_p5, 1, 0 }
  0x13   : > { %s10409_s19 = scalar_select %p9098_p6, 1, 0 }
  0x14   : > { %p8034_p7 = pneg %p9098_p6  ;;  %10411 = sst [smem:[#allocation12_spill]] %s9111_s23 }
  0x15   : > { %s199_s24 = sadd.s32 1, %s8975_s15  ;;  %s196_s25 = ssub.s32 %s8979_s16, %s9111_s23 }
  0x16   : > { %p9106_p8 = pnand %p8034_p7, %p10395_p1  ;;  %s10412_s13 = sld [smem:[#allocation19_spill]] }
  0x18   : > { %p8851_p10 = pneg %p9106_p8 }
  0x1c   : > { %s8849_s28 = scalar_lea.hbm %s10412_s13, 8192 }
  0x1d   : > { %p8850_p9 = scmp.ne.s32.totalorder %s10412_s13, %s8849_s28  ;;  %p8856_p13 = scmp.lt.u32.totalorder %s8849_s28, %s10412_s13 }
  0x1f   : > { %p8852_p11 = pnand %p8851_p10, %p8850_p9 }
  0x21   : > { %p8853_p12 = pneg %p8852_p11 }
  0x23   : > { %p8858_p0 = pnand %p8856_p13, %p8853_p12 }
  0x25   : > { %8861 = shalt.err (!%p8858_p0)
}
  0x26   : > { %s8862_s3 = scalar_lea.vmem %s418_s21, 8192  ;;  %p8870_p4 = scmp.lt.s32.totalorder %s418_s21, %s418_s21 }
  0x27   : > { %p8863_p2 = scmp.ne.s32.totalorder %s418_s21, %s8862_s3  ;;  %p8871_p1 = scmp.lt.s32.totalorder %s8862_s3, %s8862_s3 }
  0x29   : > { %p8865_p3 = pnand %p8863_p2, %p8851_p10  ;;  %p8872_p5 = por %p8871_p1, %p8870_p4 }
  0x2b   : > { %p8866_p7 = pneg %p8865_p3 }
  0x2d   : > { %p8873_p6 = pnand %p8872_p5, %p8866_p7 }
  0x2f   : > { %8876 = shalt.err (!%p8873_p6)
}
  0x30   : > { %s8982_s26 = smov 256   ;;  %s8983_s12 = smov 16  }
  0x31   : > { %8037 = dma.hbm_to_vmem [thread:$0]  (!%p9106_p8), %s10412_s13, 8192, %s418_s21, [#allocation7], %s8982_s26, %s8982_s26, %s8983_s12  }
  0x32   : > { %p197_p9 = scmp.eq.s32.totalorder %s196_s25, 0  ;;  %p206_p1 = scmp.ne.s32.totalorder %s8975_s15, %s8971_s30 }
  0x33   : > { %p207_p4 = scmp.eq.s32.totalorder %s8979_s16, 0  ;;  %p8046_p5 = scmp.lt.s32.totalorder %s8979_s16, 4 }
  0x34   : > { %s9137_s3 = scalar_select %p197_p9, %s8975_s15, %s199_s24  }
  0x35   : > { %p208_p6 = por %p207_p4, %p206_p1  ;;  %s455_s28 = sand.u32 1, %s8975_s15  }
  0x36   : > { %10413 = sst [smem:[#allocation13_spill]] %s9137_s3  ;;  %s9140_s29 = sshll.u32 %s455_s28, 8 }
  0x37   : > { %s7750_s20 = sshll.u32 %s8979_s16, 12  ;;  %s10414_s7 = sld [smem:[#allocation16_spill]] }
  0x38   : > { %s459_s21 = scalar_lea.vmem [#allocation4], %s9140_s29  ;;  %p9153_p8 = pnand %p8046_p5, %p208_p6 }
  0x39   : > { %s466_s25 = sshll.u32 %s459_s21, 4  ;;  %s9157_s26 = scalar_lea.sflag [#allocation5], %s455_s28  ;;  %s9151_s25 = int_to_ptr.vmem [resolvable:$true] %s466_s25 }
  0x3a   : > { %p8879_p11 = pneg %p9153_p8 }
  0x3d   : > { %s9148_s22 = scalar_lea.hbm %s10414_s7, %s7750_s20  ;;  %s8882_s14 = scalar_lea.hbm %s10414_s7, 16384 }
  0x3e   : > { %s8877_s12 = scalar_lea.hbm %s9148_s22, 4096  ;;  %p8883_p0 = scmp.lt.u32.totalorder %s9148_s22, %s10414_s7 }
  0x3f   : > { %p8878_p10 = scmp.ne.s32.totalorder %s9148_s22, %s8877_s12  ;;  %p8884_p2 = scmp.lt.u32.totalorder %s8882_s14, %s8877_s12 }
  0x40   : > { %p8886_p7 = scmp.lt.u32.totalorder %s8877_s12, %s9148_s22 }
  0x41   : > { %p8880_p12 = pnand %p8879_p11, %p8878_p10  ;;  %p8885_p3 = por %p8884_p2, %p8883_p0 }
  0x43   : > { %p8881_p13 = pneg %p8880_p12  ;;  %p8887_p9 = por %p8886_p7, %p8885_p3 }
  0x45   : > { %p8888_p1 = pnand %p8887_p9, %p8881_p13 }
  0x47   : > { %8891 = shalt.err (!%p8888_p1)
}
  0x48   : > { %s8892_s28 = scalar_lea.vmem %s9151_s25, 4096  ;;  %s8984_s1 = smov [#allocation4]  }
  0x49   : > { %p8893_p4 = scmp.ne.s32.totalorder %s9151_s25, %s8892_s28  ;;  %s8897_s23 = sshll.u32 %s8984_s1, 4  ;;  %s8898_s23 = int_to_ptr.vmem [resolvable:$false] %s8897_s23 }
  0x4a   : > { %s8899_s27 = scalar_lea.vmem %s8898_s23, 8192  ;;  %p8900_p10 = scmp.lt.s32.totalorder %s9151_s25, %s8898_s23 }
  0x4b   : > { %p8895_p5 = pnand %p8893_p4, %p8879_p11  ;;  %p8901_p12 = scmp.lt.s32.totalorder %s8899_s27, %s8892_s28 }
  0x4d   : > { %p8896_p6 = pneg %p8895_p5  ;;  %p8902_p0 = por %p8901_p12, %p8900_p10 }
  0x4f   : > { %p8903_p2 = pnand %p8902_p0, %p8896_p6 }
  0x51   : > { %8906 = shalt.err (!%p8903_p2)
}
  0x52   : > { %s8985_s12 = smov 128   ;;  %s8986_s14 = smov 8  }
  0x53   : > { %8041 = dma.hbm_to_vmem [thread:$0]  (!%p9153_p8), %s9148_s22, 4096, %s9151_s25, %s9157_s26, %s8985_s12, %s8985_s12, %s8986_s14  }
  0x54   : > { %s10416_s9 = sld [smem:[#allocation17_spill]]  ;;  %s488_s23 = scalar_lea.vmem [#allocation6], %s9140_s29 }
  0x55   : > { %s495_s27 = sshll.u32 %s488_s23, 4  ;;  %s484_s7 = sand.u32 1, %s8979_s16   ;;  %s9196_s27 = int_to_ptr.vmem [resolvable:$true] %s495_s27 }
  0x56   : > { %s9199_s13 = scalar_lea.sflag [#allocation7], %s484_s7 }
  0x5a   : > { %s9193_s1 = scalar_lea.hbm %s10416_s9, %s7750_s20  ;;  %s8912_s25 = scalar_lea.hbm %s10416_s9, 16384 }
  0x5b   : > { %s8907_s3 = scalar_lea.hbm %s9193_s1, 4096  ;;  %p8913_p9 = scmp.lt.u32.totalorder %s9193_s1, %s10416_s9 }
  0x5c   : > { %p8908_p13 = scmp.ne.s32.totalorder %s9193_s1, %s8907_s3  ;;  %p8914_p1 = scmp.lt.u32.totalorder %s8912_s25, %s8907_s3 }
  0x5d   : > { %p8916_p5 = scmp.lt.u32.totalorder %s8907_s3, %s9193_s1 }
  0x5e   : > { %p8910_p3 = pnand %p8908_p13, %p8879_p11  ;;  %p8915_p4 = por %p8914_p1, %p8913_p9 }
  0x60   : > { %p8911_p7 = pneg %p8910_p3  ;;  %p8917_p6 = por %p8916_p5, %p8915_p4 }
  0x62   : > { %p8918_p10 = pnand %p8917_p6, %p8911_p7 }
  0x64   : > { %8921 = shalt.err (!%p8918_p10)
}
  0x65   : > { %s8922_s7 = scalar_lea.vmem %s9196_s27, 4096  ;;  %s8987_s16 = smov [#allocation6]  }
  0x66   : > { %p8923_p12 = scmp.ne.s32.totalorder %s9196_s27, %s8922_s7  ;;  %s8927_s29 = sshll.u32 %s8987_s16, 4  ;;  %s8928_s29 = int_to_ptr.vmem [resolvable:$false] %s8927_s29 }
  0x67   : > { %s8929_s28 = scalar_lea.vmem %s8928_s29, 8192  ;;  %p8930_p13 = scmp.lt.s32.totalorder %s9196_s27, %s8928_s29 }
  0x68   : > { %p8925_p0 = pnand %p8923_p12, %p8879_p11  ;;  %p8931_p3 = scmp.lt.s32.totalorder %s8929_s28, %s8922_s7 }
  0x6a   : > { %p8926_p2 = pneg %p8925_p0  ;;  %p8932_p9 = por %p8931_p3, %p8930_p13 }
  0x6c   : > { %p8933_p1 = pnand %p8932_p9, %p8926_p2 }
  0x6e   : > { %8936 = shalt.err (!%p8933_p1)
}
  0x6f   : > { %8044 = dma.hbm_to_vmem [thread:$0]  (!%p9153_p8), %s9193_s1, 4096, %s9196_s27, %s9199_s13, %s8985_s12, %s8985_s12, %s8986_s14  }
  0x70   : > { %p10417_p11 = scmp.ne.s32.totalorder %s10409_s19, 0 }
  0x71   : > { %s525_s3 = sand.u32 (!%p10417_p11), 1, %s8971_s30   ;;  %p10418_p7 = scmp.ne.s32.totalorder (!%p10417_p11), %s10408_s18, 0 }
  0x72   : > { %523 = sbr.rel (%p10417_p11) target bundleno = 5676 (0x162c), region = 76  ;;  %s7122_s23 = sshll.u32 (!%p10417_p11), %s525_s3, 8 }
  0x73   : > { %s526_s22 = scalar_lea.sflag (!%p10417_p11), [#allocation5], %s525_s3  ;;  %s9231_s20 = scalar_lea.vmem (!%p10417_p11), [#allocation4], %s7122_s23 }
  0x79   : > { %8954 = dma.done.wait (%p10418_p7), %s526_s22, 4096  }
  0x7a   : > { %8956 = vsyncadd (%p10418_p7), %s526_s22, 4294963200  ;;  %s534_s24 = sand.u32 1, %s9085_s17   ;;  %s9238_s13 = scalar_lea.vmem [#allocation6], %s7122_s23 }
  0x7b   : > { %s535_s25 = scalar_lea.sflag [#allocation7], %s534_s24 }
  0x7c   : > { %8958 = dma.done.wait (%p10418_p7), %s535_s25, 4096  }
  0x7d   : > { %8960 = vsyncadd (%p10418_p7), %s535_s25, 4294963200  ;;  %p10419_p8 = scmp.eq.s32.totalorder %s9085_s17, 0 }
  0x7f   : > { %8962 = dma.done.wait (%p10419_p8), [#allocation7], 8192   ;;  %p10420_p4 = pmov %p10419_p8 }
  0x80   : > { %p617_p5 = scmp.lt.s32.totalorder %s9085_s17, 3  ;;  %p10421_p6 = scmp.ne.s32.totalorder %s9085_s17, 0 }
  0x81   : > { %8964 = vsyncadd (%p10420_p4), [#allocation7], 4294959104  ;;  %v652_v0 = vld [vmem:[%s10379_s0] sm:$0xff] (!%p10421_p6)  ;;  %v653_v1 = vld [vmem:[%s10379_s0 + $0x8] sm:$0xff] (!%p10421_p6) }
  0x82   : > { %s618_s19 = scalar_select %p617_p5, %s9085_s17, 3 }
  0x83   : > { %651 = sbr.rel (%p10421_p6) target bundleno = 138 (0x8a), region = 92  ;;  %v654_v2 = vld [vmem:[%s10379_s0 + $0x10] sm:$0xff] (!%p10421_p6)  ;;  %656 = vst [vmem:[#allocation2] sm:$0xff] (!%p10421_p6), %v652_v0  ;;  %657 = vst [vmem:[#allocation2 + $0x8] sm:$0xff] (!%p10421_p6), %v653_v1  ;;  %v655_v3 = vld [vmem:[%s10379_s0 + $0x18] sm:$0xff] (!%p10421_p6) }
  0x84   : > { %s7752_s12 = sshll.u32 %s618_s19, 3  ;;  %s8025_s14 = smul.u32 768, %s618_s19  ;;  %658 = vst [vmem:[#allocation2 + $0x10] sm:$0xff] (!%p10421_p6), %v654_v2  ;;  %659 = vst [vmem:[#allocation2 + $0x18] sm:$0xff] (!%p10421_p6), %v655_v3 }
  0x85   : > { %s9253_s26 = scalar_lea.vmem %s10383_s4, %s7752_s12  ;;  %s7753_s21 = sshll.u32 %s618_s19, 8 }
  0x86   : > { %s9258_s16 = scalar_lea.vmem %s10384_s5, %s8025_s14  ;;  %s9263_s3 = scalar_lea.vmem %s10385_s6, %s7753_s21 }
  0x87   : > { %s7754_s23 = sshll.u32 %s618_s19, 9  ;;  %s7755_s22 = sshll.u32 %s618_s19, 10 }
  0x88   : > { %s9268_s9 = scalar_lea.vmem %s10387_s8, %s7754_s23  ;;  %s9273_s27 = scalar_lea.vmem %s10389_s10, %s7755_s22 }
  0x89   : > { %s9278_s7 = scalar_lea.vmem %s10390_s11, %s7755_s22 }
  0x8a PF: > { %v9294_v4 = vld [vmem:[#allocation2] sm:$0xff]  ;;  %v9296_v5 = vld [vmem:[#allocation2 + $0x8] sm:$0xff]  ;;  %v694_v49 = vlaneseq  ;;  %vm8989_vm0 = vmmov 0   ;;  %vm1425_vm1 = vcmask 523264   ;;  %vm1489_vm2 = vcmask 1043456   ;;  %s10422_s24 = sld [smem:[#allocation14_spill]] }
  0x8b   : > { %v9298_v6 = vld [vmem:[#allocation2 + $0x10] sm:$0xff]  ;;  %v672_v7 = vmul.f32 %v9294_v4, %v9294_v4  ;;  %v673_v8 = vmul.f32 %v9296_v5, %v9296_v5  ;;  %v9304_v9 = vld [vmem:[#allocation2 + $0x18] sm:$0xff]  ;;  %v8138_v46 = vld [vmem:[%s9258_s16 + $0xc] ss:$24 sps:$4 sm:$0xff]   ;;  %vm1472_vm3 = vcmask 64512   ;;  %vm1651_vm4 = vcmask 1048064  }
  0x8c   : > { %v674_v10 = vmul.f32 %v9298_v6, %v9298_v6  ;;  %v675_v11 = vmul.f32 %v9304_v9, %v9304_v9  ;;  %v8088_v12 = vld [vmem:[%s9258_s16 + $0x4] ss:$24 sps:$4 sm:$0xff]   ;;  %v8090_v13 = vld [vmem:[%s9258_s16] ss:$24 sps:$4 sm:$0xff]   ;;  %v8091_v15 = vld [vmem:[%s9258_s16 + $0x34] ss:$24 sps:$4 sm:$0xff]  }
  0x8d   : > { %v676_v14 = vadd.f32 %v673_v8, %v672_v7  ;;  %1294 = vmatprep.subr.bf16.mxu0 %v8088_v12  ;;  %v8093_v17 = vld [vmem:[%s9258_s16 + $0x30] ss:$24 sps:$4 sm:$0xff]   ;;  %v8094_v18 = vld [vmem:[%s9258_s16 + $0x64] ss:$24 sps:$4 sm:$0xff]   ;;  %v8096_v19 = vld [vmem:[%s9258_s16 + $0x60] ss:$24 sps:$4 sm:$0xff]  }
  0x8e   : > { %v679_v16 = vadd.f32 %v675_v11, %v674_v10  ;;  %1295 = vmatpush1.bf16.msra.mxu0 %v8090_v13  ;;  %v8097_v20 = vld [vmem:[%s9258_s16 + $0x94] ss:$24 sps:$4 sm:$0xff]   ;;  %v8099_v21 = vld [vmem:[%s9258_s16 + $0x90] ss:$24 sps:$4 sm:$0xff]   ;;  %v8100_v22 = vld [vmem:[%s9258_s16 + $0xc4] ss:$24 sps:$4 sm:$0xff]  }
  0x8f   : > { %677 = vadd.xlane.f32.xlu0 %v676_v14  ;;  %1296 = vmatprep.subr.bf16.mxu0 %v8091_v15  ;;  %v8102_v23 = vld [vmem:[%s9258_s16 + $0xc0] ss:$24 sps:$4 sm:$0xff]   ;;  %v8103_v24 = vld [vmem:[%s9258_s16 + $0xf4] ss:$24 sps:$4 sm:$0xff]   ;;  %v8105_v25 = vld [vmem:[%s9258_s16 + $0xf0] ss:$24 sps:$4 sm:$0xff]  }
  0x90   : > { %v8106_v26 = vld [vmem:[%s9258_s16 + $0x124] ss:$24 sps:$4 sm:$0xff]   ;;  %v8108_v27 = vld [vmem:[%s9258_s16 + $0x120] ss:$24 sps:$4 sm:$0xff]   ;;  %v8109_v28 = vld [vmem:[%s9258_s16 + $0x154] ss:$24 sps:$4 sm:$0xff]  }
  0x91   : > { %v8111_v29 = vld [vmem:[%s9258_s16 + $0x150] ss:$24 sps:$4 sm:$0xff]   ;;  %v8112_v30 = vld [vmem:[%s9258_s16 + $0x184] ss:$24 sps:$4 sm:$0xff]   ;;  %v8114_v31 = vld [vmem:[%s9258_s16 + $0x180] ss:$24 sps:$4 sm:$0xff]  }
  0x92   : > { %1297 = vmatpush1.bf16.msra.mxu0 %v8093_v17  ;;  %v8115_v32 = vld [vmem:[%s9258_s16 + $0x1b4] ss:$24 sps:$4 sm:$0xff]   ;;  %v8117_v33 = vld [vmem:[%s9258_s16 + $0x1b0] ss:$24 sps:$4 sm:$0xff]   ;;  %v8118_v34 = vld [vmem:[%s9258_s16 + $0x1e4] ss:$24 sps:$4 sm:$0xff]  }
  0x93   : > { %680 = vadd.xlane.f32.xlu0 %v679_v16  ;;  %1298 = vmatprep.subr.bf16.mxu0 %v8094_v18  ;;  %v8120_v35 = vld [vmem:[%s9258_s16 + $0x1e0] ss:$24 sps:$4 sm:$0xff]   ;;  %v8121_v36 = vld [vmem:[%s9258_s16 + $0x214] ss:$24 sps:$4 sm:$0xff]   ;;  %v8123_v37 = vld [vmem:[%s9258_s16 + $0x210] ss:$24 sps:$4 sm:$0xff]  }
  0x94   : > { %v8124_v38 = vld [vmem:[%s9258_s16 + $0x244] ss:$24 sps:$4 sm:$0xff]   ;;  %v8126_v39 = vld [vmem:[%s9258_s16 + $0x240] ss:$24 sps:$4 sm:$0xff]   ;;  %v8127_v40 = vld [vmem:[%s9258_s16 + $0x274] ss:$24 sps:$4 sm:$0xff]  }
  0x95   : > { %v8129_v41 = vld [vmem:[%s9258_s16 + $0x270] ss:$24 sps:$4 sm:$0xff]   ;;  %v8130_v42 = vld [vmem:[%s9258_s16 + $0x2a4] ss:$24 sps:$4 sm:$0xff]   ;;  %v8132_v43 = vld [vmem:[%s9258_s16 + $0x2a0] ss:$24 sps:$4 sm:$0xff]  }
  0x96   : > { %1299 = vmatpush1.bf16.msra.mxu0 %v8096_v19  ;;  %v8133_v44 = vld [vmem:[%s9258_s16 + $0x2d4] ss:$24 sps:$4 sm:$0xff]   ;;  %v8135_v45 = vld [vmem:[%s9258_s16 + $0x2d0] ss:$24 sps:$4 sm:$0xff]   ;;  %v9343_v53 = vshrl.u32 %v694_v49, 7  ;;  %s10423_s12 = sld [smem:[#allocation15_spill]] }
  0x97   : > { %1300 = vmatprep.subr.bf16.mxu0 %v8097_v20  ;;  %v664_v55 = vld [vmem:[%s9253_s26] sm:$0x77]  ;;  %v8141_v13 = vld [vmem:[%s9258_s16 + $0x3c] ss:$24 sps:$4 sm:$0xff]   ;;  %v8145_v16 = vld [vmem:[%s9258_s16 + $0x98] ss:$24 sps:$4 sm:$0xff]  }
  0x98   : > { %v9347_v56 = vsub.s32 0, %v9343_v53  ;;  %v700_v57 = vsub.s32 4, %v9343_v53  ;;  %v8136_v12 = vld [vmem:[%s9258_s16 + $0x8] ss:$24 sps:$4 sm:$0xff]   ;;  %v8147_v15 = vld [vmem:[%s9258_s16 + $0x9c] ss:$24 sps:$4 sm:$0xff]  }
  0x99   : > { %v8142_v14 = vld [vmem:[%s9258_s16 + $0x68] ss:$24 sps:$4 sm:$0xff]   ;;  %v8150_v17 = vld [vmem:[%s9258_s16 + $0xcc] ss:$24 sps:$4 sm:$0xff]   ;;  %v8153_v19 = vld [vmem:[%s9258_s16 + $0xfc] ss:$24 sps:$4 sm:$0xff]  }
  0x9a   : > { %1301 = vmatpush1.bf16.msra.mxu0 %v8099_v21  ;;  %v701_v58 = vrot.slane %v664_v55, %v700_v57  ;;  %v697_v59 = vrot.slane %v664_v55, %v9347_v56  ;;  %v8148_v18 = vld [vmem:[%s9258_s16 + $0xc8] ss:$24 sps:$4 sm:$0xff]   ;;  %v8151_v20 = vld [vmem:[%s9258_s16 + $0xf8] ss:$24 sps:$4 sm:$0xff]   ;;  %v8156_v21 = vld [vmem:[%s9258_s16 + $0x12c] ss:$24 sps:$4 sm:$0xff]  }
  0x9b   : > { %1302 = vmatprep.subr.bf16.mxu0 %v8100_v22  ;;  %v8154_v22 = vld [vmem:[%s9258_s16 + $0x128] ss:$24 sps:$4 sm:$0xff]   ;;  %v8198_v49 = vld [vmem:[%s9258_s16 + $0xd4] ss:$24 sps:$4 sm:$0xff]   ;;  %v8207_v57 = vld [vmem:[%s9258_s16 + $0x164] ss:$24 sps:$4 sm:$0xff]  }
  0x9c   : > { %v711_v62 = vrot.slane %v701_v58, %v9347_v56  ;;  %v707_v0 = vrot.slane %v697_v59, %v9347_v56  ;;  %v8202_v55 = vld [vmem:[%s9258_s16 + $0x130] ss:$24 sps:$4 sm:$0xff]   ;;  %v8205_v58 = vld [vmem:[%s9258_s16 + $0x160] ss:$24 sps:$4 sm:$0xff]   ;;  %v8210_v59 = vld [vmem:[%s9258_s16 + $0x194] ss:$24 sps:$4 sm:$0xff]  }
  0x9d   : > { %p7683_p10 = scmp.ne.s32.totalorder %s9085_s17, 3 }
  0x9e   : > { %1303 = vmatpush1.bf16.msra.mxu0 %v8102_v23  ;;  %v8159_v23 = vld [vmem:[%s9258_s16 + $0x15c] ss:$24 sps:$4 sm:$0xff]  }
  0x9f   : > { %1304 = vmatprep.subr.bf16.mxu0 %v8103_v24  ;;  %v8157_v24 = vld [vmem:[%s9258_s16 + $0x158] ss:$24 sps:$4 sm:$0xff]  }
  0xa2   : > { %1305 = vmatpush1.bf16.msra.mxu0 %v8105_v25  ;;  %v8162_v25 = vld [vmem:[%s9258_s16 + $0x18c] ss:$24 sps:$4 sm:$0xff]  }
  0xa3   : > { %1306 = vmatprep.subr.bf16.mxu0 %v8106_v26  ;;  %v8160_v26 = vld [vmem:[%s9258_s16 + $0x188] ss:$24 sps:$4 sm:$0xff]  }
  0xa6   : > { %1307 = vmatpush1.bf16.msra.mxu0 %v8108_v27  ;;  %v8165_v27 = vld [vmem:[%s9258_s16 + $0x1bc] ss:$24 sps:$4 sm:$0xff]  }
  0xa7   : > { %1308 = vmatprep.subr.bf16.mxu0 %v8109_v28  ;;  %v8163_v28 = vld [vmem:[%s9258_s16 + $0x1b8] ss:$24 sps:$4 sm:$0xff]  }
  0xaa   : > { %1309 = vmatpush1.bf16.msra.mxu0 %v8111_v29  ;;  %v8168_v29 = vld [vmem:[%s9258_s16 + $0x1ec] ss:$24 sps:$4 sm:$0xff]  }
  0xab   : > { %1310 = vmatprep.subr.bf16.mxu0 %v8112_v30  ;;  %v8166_v30 = vld [vmem:[%s9258_s16 + $0x1e8] ss:$24 sps:$4 sm:$0xff]  }
  0xae   : > { %1311 = vmatpush1.bf16.msra.mxu0 %v8114_v31  ;;  %v8171_v31 = vld [vmem:[%s9258_s16 + $0x21c] ss:$24 sps:$4 sm:$0xff]  }
  0xaf   : > { %1312 = vmatprep.subr.bf16.mxu0 %v8115_v32  ;;  %v8169_v32 = vld [vmem:[%s9258_s16 + $0x218] ss:$24 sps:$4 sm:$0xff]  }
  0xb2   : > { %1313 = vmatpush1.bf16.msra.mxu0 %v8117_v33  ;;  %v8174_v33 = vld [vmem:[%s9258_s16 + $0x24c] ss:$24 sps:$4 sm:$0xff]  }
  0xb3   : > { %1314 = vmatprep.subr.bf16.mxu0 %v8118_v34  ;;  %v8172_v34 = vld [vmem:[%s9258_s16 + $0x248] ss:$24 sps:$4 sm:$0xff]  }
  0xb6   : > { %1315 = vmatpush1.bf16.msra.mxu0 %v8120_v35  ;;  %v8177_v35 = vld [vmem:[%s9258_s16 + $0x27c] ss:$24 sps:$4 sm:$0xff]  }
  0xb7   : > { %1316 = vmatprep.subr.bf16.mxu0 %v8121_v36  ;;  %v8175_v36 = vld [vmem:[%s9258_s16 + $0x278] ss:$24 sps:$4 sm:$0xff]  }
  0xba   : > { %1317 = vmatpush1.bf16.msra.mxu0 %v8123_v37  ;;  %v8180_v37 = vld [vmem:[%s9258_s16 + $0x2ac] ss:$24 sps:$4 sm:$0xff]  }
  0xbb   : > { %1318 = vmatprep.subr.bf16.mxu0 %v8124_v38  ;;  %v8178_v38 = vld [vmem:[%s9258_s16 + $0x2a8] ss:$24 sps:$4 sm:$0xff]  }
  0xbe   : > { %1319 = vmatpush1.bf16.msra.mxu0 %v8126_v39  ;;  %v8183_v39 = vld [vmem:[%s9258_s16 + $0x2dc] ss:$24 sps:$4 sm:$0xff]  }
  0xbf   : > { %1320 = vmatprep.subr.bf16.mxu0 %v8127_v40  ;;  %v8181_v40 = vld [vmem:[%s9258_s16 + $0x2d8] ss:$24 sps:$4 sm:$0xff]  }
  0xc2   : > { %1321 = vmatpush1.bf16.msra.mxu0 %v8129_v41  ;;  %v8186_v41 = vld [vmem:[%s9258_s16 + $0x14] ss:$24 sps:$4 sm:$0xff]  }
  0xc3   : > { %1322 = vmatprep.subr.bf16.mxu0 %v8130_v42  ;;  %v8184_v42 = vld [vmem:[%s9258_s16 + $0x10] ss:$24 sps:$4 sm:$0xff]  }
  0xc6   : > { %1323 = vmatpush1.bf16.msra.mxu0 %v8132_v43  ;;  %v8189_v43 = vld [vmem:[%s9258_s16 + $0x44] ss:$24 sps:$4 sm:$0xff]  }
  0xc7   : > { %1324 = vmatprep.subr.bf16.mxu0 %v8133_v44  ;;  %v8187_v44 = vld [vmem:[%s9258_s16 + $0x40] ss:$24 sps:$4 sm:$0xff]  }
  0xca   : > { %1325 = vmatpush1.bf16.msra.mxu0 %v8135_v45  ;;  %v8192_v45 = vld [vmem:[%s9258_s16 + $0x74] ss:$24 sps:$4 sm:$0xff]  }
  0xcb   : > { %1337 = vmatprep.subr.bf16.mxu0 %v8138_v46  ;;  %v8190_v46 = vld [vmem:[%s9258_s16 + $0x70] ss:$24 sps:$4 sm:$0xff]  }
 0x11c   : > { %v678_v47 = vpop.xlane.xlu0 %677 }
 0x11d   : > { %v683_v48 = vmul.f32 0.00390625, %v678_v47  ;;  %v8195_v47 = vld [vmem:[%s9258_s16 + $0xa4] ss:$24 sps:$4 sm:$0xff]  }
 0x11f   : > { %v685_v50 = vadd.f32 1e-06, %v683_v48  ;;  %v8193_v48 = vld [vmem:[%s9258_s16 + $0xa0] ss:$24 sps:$4 sm:$0xff]  }
 0x120   : > { %v681_v51 = vpop.xlane.xlu0 %680 }
 0x121   : > { %8667 = vrsqrt.f32 %v685_v50  ;;  %v684_v52 = vmul.f32 0.00390625, %v681_v51  ;;  %v8196_v50 = vld [vmem:[%s9258_s16 + $0xd0] ss:$24 sps:$4 sm:$0xff]   ;;  %v8201_v51 = vld [vmem:[%s9258_s16 + $0x104] ss:$24 sps:$4 sm:$0xff]  }
 0x123   : > { %v686_v54 = vadd.f32 1e-06, %v684_v52  ;;  %v8199_v52 = vld [vmem:[%s9258_s16 + $0x100] ss:$24 sps:$4 sm:$0xff]  }
 0x125   : > { %8669 = vrsqrt.f32 %v686_v54  ;;  %v8204_v54 = vld [vmem:[%s9258_s16 + $0x134] ss:$24 sps:$4 sm:$0xff]  }
 0x12b   : > { %v8668_v60 = vpop.eup %8667 }
 0x12c   : > { %v690_v61 = vmul.f32 %v8668_v60, %v9296_v5  ;;  %v689_v63 = vmul.f32 %v8668_v60, %v9294_v4  ;;  %v8208_v60 = vld [vmem:[%s9258_s16 + $0x190] ss:$24 sps:$4 sm:$0xff]  }
 0x12e   : > { %v713_v7 = vmul.f32 %v711_v62, %v690_v61  ;;  %v712_v10 = vmul.f32 %v707_v0, %v689_v63  ;;  %v8213_v61 = vld [vmem:[%s9258_s16 + $0x1c4] ss:$24 sps:$4 sm:$0xff]   ;;  %v8216_v63 = vld [vmem:[%s9258_s16 + $0x1f4] ss:$24 sps:$4 sm:$0xff]  }
 0x12f   : > { %v8670_v1 = vpop.eup %8669 }
 0x130   : > { %v692_v2 = vmul.f32 %v8670_v1, %v9304_v9  ;;  %v691_v3 = vmul.f32 %v8670_v1, %v9298_v6  ;;  %v8139_v6 = vld [vmem:[%s9258_s16 + $0x38] ss:$24 sps:$4 sm:$0xff]   ;;  %v8144_v9 = vld [vmem:[%s9258_s16 + $0x6c] ss:$24 sps:$4 sm:$0xff]  }
 0x131   : > { %v8219_v1 = vld [vmem:[%s9258_s16 + $0x224] ss:$24 sps:$4 sm:$0xff]  }
 0x132   : > { %v715_v8 = vmul.f32 %v711_v62, %v692_v2  ;;  %v714_v11 = vmul.f32 %v707_v0, %v691_v3  ;;  %v8211_v62 = vld [vmem:[%s9258_s16 + $0x1c0] ss:$24 sps:$4 sm:$0xff]   ;;  %v8214_v0 = vld [vmem:[%s9258_s16 + $0x1f0] ss:$24 sps:$4 sm:$0xff]   ;;  %v8222_v3 = vld [vmem:[%s9258_s16 + $0x254] ss:$24 sps:$4 sm:$0xff]  }
 0x133   : > { %v8217_v2 = vld [vmem:[%s9258_s16 + $0x220] ss:$24 sps:$4 sm:$0xff]  }
 0x134   : > { %v9357_v5 = vpack.c.bf16 %v715_v8, %v713_v7  ;;  %v9360_v4 = vpack.c.bf16 %v714_v11, %v712_v10  ;;  %v8220_v7 = vld [vmem:[%s9258_s16 + $0x250] ss:$24 sps:$4 sm:$0xff]   ;;  %v8225_v8 = vld [vmem:[%s9258_s16 + $0x284] ss:$24 sps:$4 sm:$0xff]   ;;  %v8223_v10 = vld [vmem:[%s9258_s16 + $0x280] ss:$24 sps:$4 sm:$0xff]  }
 0x135   : > { %v8228_v11 = vld [vmem:[%s9258_s16 + $0x2b4] ss:$24 sps:$4 sm:$0xff]  }
 0x136   : > { %1326 = vmatprep.mubr.bf16.mxu0 %v9357_v5 }
 0x137   : > { %1327 = vmatmul.mubr.bf16.vlgmr.msra.gmra.mrb[0].mxu0 %v9360_v4 }
 0x138   : > { %1338 = vmatpush1.bf16.msra.mxu0 %v8136_v12  ;;  %1369 = vmatprep.mubr.bf16.mxu0 %v9357_v5  ;;  %v8231_v12 = vld [vmem:[%s9258_s16 + $0x2e4] ss:$24 sps:$4 sm:$0xff]  }
 0x139   : > { %1339 = vmatprep.subr.bf16.mxu0 %v8141_v13  ;;  %v8229_v13 = vld [vmem:[%s9258_s16 + $0x2e0] ss:$24 sps:$4 sm:$0xff]  }
 0x13c   : > { %1340 = vmatpush1.bf16.msra.mxu0 %v8139_v6  ;;  %v8988_v6 = vmov 0.0  }
 0x13d   : > { %1341 = vmatprep.subr.bf16.mxu0 %v8144_v9  ;;  %7845 = vmatprep.subr.bf16.mxu1 %v8988_v6 }
 0x13e   : > { %7847 = vmatprep.mubr.msk.bf16.mxu1 %vm8989_vm0, %v8988_v6 }
 0x140   : > { %1342 = vmatpush1.bf16.msra.mxu0 %v8142_v14 }
 0x141   : > { %1343 = vmatprep.subr.bf16.mxu0 %v8147_v15 }
 0x144   : > { %1344 = vmatpush1.bf16.msra.mxu0 %v8145_v16 }
 0x145   : > { %1345 = vmatprep.subr.bf16.mxu0 %v8150_v17 }
 0x148   : > { %1346 = vmatpush1.bf16.msra.mxu0 %v8148_v18 }
 0x149   : > { %1347 = vmatprep.subr.bf16.mxu0 %v8153_v19 }
 0x14c   : > { %1348 = vmatpush1.bf16.msra.mxu0 %v8151_v20 }
 0x14d   : > { %1349 = vmatprep.subr.bf16.mxu0 %v8156_v21 }
 0x150   : > { %1350 = vmatpush1.bf16.msra.mxu0 %v8154_v22 }
 0x151   : > { %1351 = vmatprep.subr.bf16.mxu0 %v8159_v23 }
 0x154   : > { %1352 = vmatpush1.bf16.msra.mxu0 %v8157_v24 }
 0x155   : > { %1353 = vmatprep.subr.bf16.mxu0 %v8162_v25 }
 0x158   : > { %1354 = vmatpush1.bf16.msra.mxu0 %v8160_v26 }
 0x159   : > { %1355 = vmatprep.subr.bf16.mxu0 %v8165_v27 }
 0x15c   : > { %1356 = vmatpush1.bf16.msra.mxu0 %v8163_v28 }
 0x15d   : > { %1357 = vmatprep.subr.bf16.mxu0 %v8168_v29 }
 0x160   : > { %1358 = vmatpush1.bf16.msra.mxu0 %v8166_v30 }
 0x161   : > { %1359 = vmatprep.subr.bf16.mxu0 %v8171_v31 }
 0x164   : > { %1360 = vmatpush1.bf16.msra.mxu0 %v8169_v32 }
 0x165   : > { %1361 = vmatprep.subr.bf16.mxu0 %v8174_v33 }
 0x168   : > { %1362 = vmatpush1.bf16.msra.mxu0 %v8172_v34  ;;  %v9475_v34 = vld [vmem:[%s10381_s2] sm:$0xff] }
 0x169   : > { %1363 = vmatprep.subr.bf16.mxu0 %v8177_v35 }
 0x16c   : > { %1364 = vmatpush1.bf16.msra.mxu0 %v8175_v36 }
 0x16d   : > { %1365 = vmatprep.subr.bf16.mxu0 %v8180_v37 }
 0x170   : > { %1366 = vmatpush1.bf16.msra.mxu0 %v8178_v38 }
 0x171   : > { %1367 = vmatprep.subr.bf16.mxu0 %v8183_v39 }
 0x174   : > { %1368 = vmatpush1.bf16.msra.mxu0 %v8181_v40 }
 0x175   : > { %1380 = vmatprep.subr.bf16.mxu0 %v8186_v41 }
 0x177   : > { %1370 = vmatmul.mubr.bf16.vlgmr.msra.gmra.mrb[4].mxu0 %v9360_v4 }
 0x178   : > { %1381 = vmatpush1.bf16.msra.mxu0 %v8184_v42  ;;  %1412 = vmatprep.mubr.bf16.mxu0 %v9357_v5  ;;  %v8226_v5 = vld [vmem:[%s9258_s16 + $0x2b0] ss:$24 sps:$4 sm:$0xff]   ;;  %s8990_s16 = smov 64  }
 0x179   : > { %1382 = vmatprep.subr.bf16.mxu0 %v8189_v43 }
 0x17c   : > { %1383 = vmatpush1.bf16.msra.mxu0 %v8187_v44 }
 0x17d   : > { %1384 = vmatprep.subr.bf16.mxu0 %v8192_v45 }
 0x180   : > { %1385 = vmatpush1.bf16.msra.mxu0 %v8190_v46 }
 0x181   : > { %1386 = vmatprep.subr.bf16.mxu0 %v8195_v47 }
 0x184   : > { %1387 = vmatpush1.bf16.msra.mxu0 %v8193_v48 }
 0x185   : > { %1388 = vmatprep.subr.bf16.mxu0 %v8198_v49 }
 0x188   : > { %1389 = vmatpush1.bf16.msra.mxu0 %v8196_v50  ;;  %v9484_v50 = vld [vmem:[%s10381_s2 + $0x10] sm:$0xff] }
 0x189   : > { %1390 = vmatprep.subr.bf16.mxu0 %v8201_v51 }
 0x18c   : > { %1391 = vmatpush1.bf16.msra.mxu0 %v8199_v52 }
 0x18d   : > { %1392 = vmatprep.subr.bf16.mxu0 %v8204_v54 }
 0x190   : > { %1393 = vmatpush1.bf16.msra.mxu0 %v8202_v55 }
 0x191   : > { %1394 = vmatprep.subr.bf16.mxu0 %v8207_v57 }
 0x194   : > { %1395 = vmatpush1.bf16.msra.mxu0 %v8205_v58 }
 0x195   : > { %1396 = vmatprep.subr.bf16.mxu0 %v8210_v59 }
 0x198   : > { %1397 = vmatpush1.bf16.msra.mxu0 %v8208_v60 }
 0x199   : > { %1398 = vmatprep.subr.bf16.mxu0 %v8213_v61 }
 0x19c   : > { %1399 = vmatpush1.bf16.msra.mxu0 %v8211_v62 }
 0x19d   : > { %1400 = vmatprep.subr.bf16.mxu0 %v8216_v63 }
 0x1a0   : > { %1401 = vmatpush1.bf16.msra.mxu0 %v8214_v0 }
 0x1a1   : > { %1402 = vmatprep.subr.bf16.mxu0 %v8219_v1 }
 0x1a4   : > { %1403 = vmatpush1.bf16.msra.mxu0 %v8217_v2 }
 0x1a5   : > { %1404 = vmatprep.subr.bf16.mxu0 %v8222_v3 }
 0x1a8   : > { %1405 = vmatpush1.bf16.msra.mxu0 %v8220_v7 }
 0x1a9   : > { %1406 = vmatprep.subr.bf16.mxu0 %v8225_v8  ;;  %v9501_v8 = vld [vmem:[%s10381_s2 + $0x8] sm:$0xff] }
 0x1ac   : > { %1407 = vmatpush1.bf16.msra.mxu0 %v8223_v10 }
 0x1ad   : > { %1408 = vmatprep.subr.bf16.mxu0 %v8228_v11 }
 0x1b0   : > { %1409 = vmatpush1.bf16.msra.mxu0 %v8226_v5 }
 0x1b1   : > { %1410 = vmatprep.subr.bf16.mxu0 %v8231_v12 }
 0x1b4   : > { %1411 = vmatpush1.bf16.msra.mxu0 %v8229_v13 }
 0x1b5   : > { %7821 = vmatprep.subr.bf16.mxu0 %v8988_v6 }
 0x1b7   : > { %1413 = vmatmul.mubr.bf16.vlgmr.msra.gmra.mrb[8].mxu0 %v9360_v4 }
 0x1b8   : > { %7823 = vmatprep.mubr.msk.bf16.mxu0 %vm8989_vm0, %v8988_v6 }
 0x20a   : > { %v1328_v9 = vpop.f32.mrb[0].mxu0 }
 0x20b   : > { %v1330_v14 = vpop.f32.mrb[1].mxu0  ;;  %v1423_v24 = vpack.c.bf16 %v1328_v9, %v1328_v9 }
 0x20c   : > { %v9436_v15 = vpop.f32.mrb[2].mxu0  ;;  %v9449_v25 = vpack.c.bf16 %v1330_v14, %v1330_v14 }
 0x20d   : > { %v9438_v16 = vpop.f32.mrb[3].mxu0 }
 0x24a   : > { %v1371_v17 = vpop.f32.mrb[4].mxu0 }
 0x24b   : > { %v1424_v4 = vpack.c.bf16 %v1371_v17, %v1371_v17  ;;  %v1373_v18 = vpop.f32.mrb[5].mxu0 }
 0x24c   : > { %v1654_v19 = vpack.c.bf16 %v1373_v18, %v1373_v18  ;;  %v9440_v20 = vpop.f32.mrb[6].mxu0  ;;  %v2105_v18 = vpack.c.bf16 %v9438_v16, %v9438_v16 }
 0x24d   : > { %v1430_v21 = vsel %vm1425_vm1, %v1424_v4, 0  ;;  %1538 = vrot.lane.b32.xlu0 %v1424_v4, %s8990_s16  ;;  %v9444_v22 = vpop.f32.mrb[7].mxu0  ;;  %v1879_v4 = vpack.c.bf16 %v9436_v15, %v9436_v15 }
 0x24e   : > { %7822 = vmatpush3.bf16.xpose.msra.mxu0 %v1430_v21  ;;  %v1659_v23 = vsel %vm1425_vm1, %v1654_v19, 0 }
 0x24f   : > { %7846 = vmatpush3.bf16.xpose.msra.mxu1 %v1659_v23  ;;  %7827 = vmatprep.subr.bf16.mxu0 %v8988_v6 }
 0x250   : > { %7851 = vmatprep.subr.bf16.mxu1 %v8988_v6 }
 0x255   : > { %7824 = vmatmul.mubr.msk.bf16.vlgmr.msra.gmra.mrb[12].mxu0 %vm1425_vm1, %v1423_v24 }
 0x256   : > { %7848 = vmatmul.mubr.msk.bf16.vlgmr.msra.gmra.mrb[0].mxu1 %vm1425_vm1, %v9449_v25  ;;  %7829 = vmatprep.mubr.msk.bf16.mxu0 %vm8989_vm0, %v8988_v6 }
 0x257   : > { %7853 = vmatprep.mubr.msk.bf16.mxu1 %vm8989_vm0, %v8988_v6 }
 0x28a   : > { %v1414_v26 = vpop.f32.mrb[8].mxu0 }
 0x28b   : > { %v9458_v27 = vpack.c.bf16 %v1414_v26, %v1414_v26  ;;  %v1416_v28 = vpop.f32.mrb[9].mxu0 }
 0x28c   : > { %v9460_v29 = vpack.c.bf16 %v1416_v28, %v1416_v28  ;;  %v9462_v30 = vpop.f32.mrb[10].mxu0 }
 0x28d   : > { %v1491_v31 = vsel %vm1489_vm2, %v9458_v27, 0  ;;  %v9466_v32 = vpop.f32.mrb[11].mxu0 }
 0x28e   : > { %v1718_v33 = vsel %vm1489_vm2, %v9460_v29, 0  ;;  %7828 = vmatpush3.bf16.msra.mxu0 %v1491_v31 }
 0x28f   : > { %7852 = vmatpush3.bf16.msra.mxu1 %v1718_v33  ;;  %7833 = vmatprep.subr.bf16.mxu0 %v8988_v6 }
 0x290   : > { %7857 = vmatprep.subr.bf16.mxu1 %v8988_v6 }
 0x2bf   : > { %v1539_v58 = vpop.permute.xlu0 %1538 }
 0x2c0   : > { %v1544_v60 = vsel %vm1425_vm1, %v1539_v58, 0 }
 0x328   : > { %v1466_v35 = vpop.f32.mrb[12].mxu0 }
 0x329   : > { %v1467_v36 = vadd.f32 %v1466_v35, %v9475_v34  ;;  %v7825_v37 = vpop.f32.mrb[13].mxu0  ;;  %v1695_v38 = vpop.f32.mrb[0].mxu1 }
 0x32a   : > { %v1469_v39 = vpop.f32.mrb[14].mxu0  ;;  %v7849_v40 = vpop.f32.mrb[1].mxu1  ;;  %v1696_v51 = vadd.f32 %v1695_v38, %v9484_v50  ;;  %v1880_v37 = vpack.c.bf16 %v9440_v20, %v9440_v20  ;;  %v2106_v38 = vpack.c.bf16 %v9444_v22, %v9444_v22 }
 0x32b   : > { %v7826_v41 = vpop.f32.mrb[15].mxu0  ;;  %v1698_v42 = vpop.f32.mrb[2].mxu1  ;;  %v1473_v43 = vsel %vm1472_vm3, %v1467_v36, -inf }
 0x32c   : > { %v7850_v44 = vpop.f32.mrb[3].mxu1  ;;  %1474 = vmax.xlane.f32.xlu1 %v1473_v43  ;;  %v1701_v52 = vsel %vm1472_vm3, %v1696_v51, -inf  ;;  %v1885_v20 = vsel %vm1425_vm1, %v1880_v37, 0 }
 0x3b9   : > { %v1475_v45 = vpop.xlane.xlu1 %1474 }
 0x3ba   : > { %v1476_v46 = vsub.f32 %v1467_v36, %v1475_v45  ;;  %v2111_v45 = vsel %vm1425_vm1, %v2106_v38, 0 }
 0x3bc   : > { %v1477_v47 = vmul.f32 1.442695, %v1476_v46 }
 0x3be   : > { %8671 = vpow2.f32 %v1477_v47 }
 0x3c8   : > { %v8672_v48 = vpop.eup %8671 }
 0x3c9   : > { %v1479_v49 = vsel %vm1472_vm3, %v8672_v48, 0.0 }
 0x3ca   : > { %1480 = vadd.xlane.f32.xlu1 %v1479_v49 }
 0x3db   : > { %1535 = vrot.lane.b32.xlu1 %v1423_v24, %s8990_s16 }
 0x3ff   : > { %1702 = vmax.xlane.f32.xlu1 %v1701_v52 }
 0x410   : > { %1765 = vrot.lane.b32.xlu1 %v1654_v19, %s8990_s16 }
 0x457   : > { %v1481_v54 = vpop.xlane.xlu1 %1480 }
 0x458   : > { %8673 = vrcp.f32 %v1481_v54 }
 0x45b   : > { %v1536_v61 = vpop.permute.xlu1 %1535 }
 0x462   : > { %v8674_v55 = vpop.eup %8673 }
 0x463   : > { %v1483_v57 = vmul.f32 %v8674_v55, %v8672_v48  ;;  %v668_v55 = vld [vmem:[%s10381_s2 + $0x18] sm:$0xff] }
 0x465   : > { %v1484_v59 = vpack.c.bf16 %v1483_v57, %v1483_v57 }
 0x467   : > { %7830 = vmatmul.mubr.msk.bf16.vlgmr.msra.gmra.mrb[16].mxu0 %vm1472_vm3, %v1484_v59 }
 0x468   : > { %7834 = vmatpush3.bf16.xpose.msra.mxu0 %v1544_v60  ;;  %7835 = vmatprep.mubr.msk.bf16.mxu0 %vm8989_vm0, %v8988_v6 }
 0x469   : > { %7839 = vmatprep.subr.bf16.mxu0 %v8988_v6 }
 0x46f   : > { %7836 = vmatmul.mubr.msk.bf16.vlgmr.msra.gmra.mrb[20].mxu0 %vm1425_vm1, %v1536_v61 }
 0x470   : > { %7841 = vmatprep.mubr.msk.bf16.mxu0 %vm8989_vm0, %v8988_v6 }
 0x48c   : > { %v1703_v62 = vpop.xlane.xlu1 %1702 }
 0x48d   : > { %v1704_v63 = vsub.f32 %v1696_v51, %v1703_v62 }
 0x48f   : > { %v1705_v0 = vmul.f32 1.442695, %v1704_v63 }
 0x490   : > { %v1766_v16 = vpop.permute.xlu1 %1765 }
 0x491   : > { %8675 = vpow2.f32 %v1705_v0  ;;  %v1771_v36 = vsel %vm1425_vm1, %v1766_v16, 0 }
 0x49b   : > { %v8676_v14 = vpop.eup %8675 }
 0x49c   : > { %v1707_v17 = vsel %vm1472_vm3, %v8676_v14, 0.0 }
 0x53a   : > { %v1527_v1 = vpop.f32.mrb[16].mxu0 }
 0x53b   : > { %1533 = vst.msk [vmem:[#allocation3] sm:$0xff] %vm1425_vm1, %v1527_v1  ;;  %v7831_v2 = vpop.f32.mrb[17].mxu0 }
 0x53c   : > { %v1530_v3 = vpop.f32.mrb[18].mxu0 }
 0x53d   : > { %v7832_v7 = vpop.f32.mrb[19].mxu0 }
 0x542   : > { %v1580_v10 = vpop.f32.mrb[20].mxu0 }
 0x543   : > { %v1581_v11 = vadd.f32 %v1580_v10, %v9501_v8  ;;  %v7837_v5 = vpop.f32.mrb[21].mxu0 }
 0x544   : > { %v1583_v12 = vpop.f32.mrb[22].mxu0 }
 0x545   : > { %v7838_v13 = vpop.f32.mrb[23].mxu0  ;;  %v1586_v9 = vsel %vm1472_vm3, %v1581_v11, -inf }
 0x546   : > { %1587 = vmax.xlane.f32.xlu0 %v1586_v9 }
 0x54a   : > { %1708 = vadd.xlane.f32.xlu0 %v1707_v17 }
 0x560   : > { %1599 = vrot.lane.b32.xlu0 %v9458_v27, %s8990_s16 }
 0x564   : > { %1988 = vrot.lane.b32.xlu0 %v1879_v4, %s8990_s16 }
 0x568   : > { %2214 = vrot.lane.b32.xlu0 %v2105_v18, %s8990_s16 }
 0x5d3   : > { %v1588_v19 = vpop.xlane.xlu0 %1587 }
 0x5d4   : > { %v1589_v21 = vsub.f32 %v1581_v11, %v1588_v19 }
 0x5d6   : > { %v1590_v23 = vmul.f32 1.442695, %v1589_v21 }
 0x5d7   : > { %v1709_v24 = vpop.xlane.xlu0 %1708 }
 0x5d8   : > { %8677 = vpow2.f32 %v1590_v23 }
 0x5d9   : > { %8679 = vrcp.f32 %v1709_v24 }
 0x5db   : > { %v1600_v26 = vpop.permute.xlu0 %1599 }
 0x5dc   : > { %v1605_v28 = vsel %vm1489_vm2, %v1600_v26, 0 }
 0x5dd   : > { %7840 = vmatpush3.bf16.msra.mxu0 %v1605_v28 }
 0x5de   : > { %7869 = vmatprep.subr.bf16.mxu0 %v8988_v6 }
 0x5df   : > { %v1989_v44 = vpop.permute.xlu0 %1988 }
 0x5e2   : > { %v8678_v15 = vpop.eup %8677 }
 0x5e3   : > { %v8680_v27 = vpop.eup %8679  ;;  %v1592_v31 = vsel %vm1472_vm3, %v8678_v15, 0.0  ;;  %v2215_v48 = vpop.permute.xlu0 %2214 }
 0x5e4   : > { %v1711_v33 = vmul.f32 %v8680_v27, %v8676_v14  ;;  %1593 = vadd.xlane.f32.xlu1 %v1592_v31 }
 0x5e6   : > { %v1712_v35 = vpack.c.bf16 %v1711_v33, %v1711_v33 }
 0x5e8   : > { %7854 = vmatmul.mubr.msk.bf16.vlgmr.msra.gmra.mrb[4].mxu1 %vm1472_vm3, %v1712_v35 }
 0x5e9   : > { %7858 = vmatpush3.bf16.xpose.msra.mxu1 %v1771_v36  ;;  %7859 = vmatprep.mubr.msk.bf16.mxu1 %vm8989_vm0, %v8988_v6 }
 0x5ea   : > { %7863 = vmatprep.subr.bf16.mxu1 %v8988_v6 }
 0x5f5   : > { %1762 = vrot.lane.b32.xlu1 %v9449_v25, %s8990_s16 }
 0x5f9   : > { %1991 = vrot.lane.b32.xlu1 %v1880_v37, %s8990_s16 }
 0x5fd   : > { %2217 = vrot.lane.b32.xlu1 %v2106_v38, %s8990_s16 }
 0x671   : > { %v1594_v39 = vpop.xlane.xlu1 %1593 }
 0x672   : > { %8681 = vrcp.f32 %v1594_v39 }
 0x675   : > { %v1763_v40 = vpop.permute.xlu1 %1762 }
 0x676   : > { %7860 = vmatmul.mubr.msk.bf16.vlgmr.msra.gmra.mrb[8].mxu1 %vm1425_vm1, %v1763_v40 }
 0x677   : > { %7865 = vmatprep.mubr.msk.bf16.mxu1 %vm8989_vm0, %v8988_v6 }
 0x679   : > { %v1992_v22 = vpop.permute.xlu1 %1991 }
 0x67a   : > { %v1997_v43 = vsel %vm1425_vm1, %v1992_v22, 0 }
 0x67c   : > { %v8682_v41 = vpop.eup %8681 }
 0x67d   : > { %v1596_v25 = vmul.f32 %v8682_v41, %v8678_v15  ;;  %v2218_v46 = vpop.permute.xlu1 %2217 }
 0x67e   : > { %v2223_v47 = vsel %vm1425_vm1, %v2218_v46, 0 }
 0x67f   : > { %v1597_v42 = vpack.c.bf16 %v1596_v25, %v1596_v25 }
 0x681   : > { %7842 = vmatmul.mubr.msk.bf16.vlgmr.msra.gmra.mrb[24].mxu0 %vm1472_vm3, %v1597_v42 }
 0x682   : > { %7870 = vmatpush3.bf16.xpose.msra.mxu0 %v1885_v20  ;;  %7871 = vmatprep.mubr.msk.bf16.mxu0 %vm8989_vm0, %v8988_v6 }
 0x683   : > { %7881 = vmatprep.subr.bf16.mxu0 %v8988_v6 }
 0x689   : > { %7872 = vmatmul.mubr.msk.bf16.vlgmr.msra.gmra.mrb[28].mxu0 %vm1425_vm1, %v1879_v4 }
 0x68a   : > { %7882 = vmatpush3.bf16.xpose.msra.mxu0 %v1997_v43  ;;  %7883 = vmatprep.mubr.msk.bf16.mxu0 %vm8989_vm0, %v8988_v6 }
 0x68b   : > { %7893 = vmatprep.subr.bf16.mxu0 %v8988_v6 }
 0x691   : > { %7884 = vmatmul.mubr.msk.bf16.vlgmr.msra.gmra.mrb[32].mxu0 %vm1425_vm1, %v1989_v44 }
 0x692   : > { %7894 = vmatpush3.bf16.xpose.msra.mxu0 %v2111_v45  ;;  %7895 = vmatprep.mubr.msk.bf16.mxu0 %vm8989_vm0, %v8988_v6  ;;  %v1939_v45 = vpack.c.bf16 %v9462_v30, %v9462_v30 }
 0x693   : > { %7905 = vmatprep.subr.bf16.mxu0 %v8988_v6 }
 0x699   : > { %7896 = vmatmul.mubr.msk.bf16.vlgmr.msra.gmra.mrb[36].mxu0 %vm1425_vm1, %v2105_v18 }
 0x69a   : > { %7906 = vmatpush3.bf16.xpose.msra.mxu0 %v2223_v47  ;;  %7907 = vmatprep.mubr.msk.bf16.mxu0 %vm8989_vm0, %v8988_v6 }
 0x6a1   : > { %7908 = vmatmul.mubr.msk.bf16.vlgmr.msra.gmra.mrb[40].mxu0 %vm1425_vm1, %v2215_v48 }
 0x6bb   : > { %v1754_v49 = vpop.f32.mrb[4].mxu1 }
 0x6bc   : > { %1760 = vst.msk [vmem:[#allocation3 + $0x8] sm:$0xff] %vm1425_vm1, %v1754_v49  ;;  %v7855_v51 = vpop.f32.mrb[5].mxu1 }
 0x6bd   : > { %v1757_v52 = vpop.f32.mrb[6].mxu1 }
 0x6be   : > { %v7856_v54 = vpop.f32.mrb[7].mxu1 }
 0x749   : > { %v1807_v57 = vpop.f32.mrb[8].mxu1 }
 0x74a   : > { %v1808_v58 = vadd.f32 %v1807_v57, %v668_v55  ;;  %v7861_v59 = vpop.f32.mrb[9].mxu1 }
 0x74b   : > { %v1810_v60 = vpop.f32.mrb[10].mxu1 }
 0x74c   : > { %v7862_v61 = vpop.f32.mrb[11].mxu1  ;;  %v1813_v62 = vsel %vm1472_vm3, %v1808_v58, -inf }
 0x74d   : > { %1814 = vmax.xlane.f32.xlu1 %v1813_v62 }
 0x754   : > { %v9558_v63 = vpop.f32.mrb[24].mxu0 }
 0x755   : > { %v7843_v0 = vpop.f32.mrb[25].mxu0 }
 0x756   : > { %v1644_v1 = vpop.f32.mrb[26].mxu0 }
 0x757   : > { %v7844_v2 = vpop.f32.mrb[27].mxu0 }
 0x75c   : > { %v1921_v3 = vpop.f32.mrb[28].mxu0 }
 0x75d   : > { %v1922_v7 = vadd.f32 %v1921_v3, %v9475_v34  ;;  %v7873_v10 = vpop.f32.mrb[29].mxu0 }
 0x75e   : > { %v1924_v11 = vpop.f32.mrb[30].mxu0 }
 0x75f   : > { %v7874_v5 = vpop.f32.mrb[31].mxu0  ;;  %v1927_v12 = vsel %vm1472_vm3, %v1922_v7, -inf }
 0x760   : > { %1928 = vmax.xlane.f32.xlu0 %v1927_v12 }
 0x764   : > { %v2033_v13 = vpop.f32.mrb[32].mxu0 }
 0x765   : > { %v2034_v9 = vadd.f32 %v2033_v13, %v9501_v8  ;;  %v7885_v14 = vpop.f32.mrb[33].mxu0 }
 0x766   : > { %v2036_v17 = vpop.f32.mrb[34].mxu0 }
 0x767   : > { %v7886_v4 = vpop.f32.mrb[35].mxu0  ;;  %v2039_v18 = vsel %vm1472_vm3, %v2034_v9, -inf }
 0x768   : > { %2040 = vmax.xlane.f32.xlu0 %v2039_v18 }
 0x76c   : > { %v2147_v19 = vpop.f32.mrb[36].mxu0 }
 0x76d   : > { %v2148_v21 = vadd.f32 %v2147_v19, %v9484_v50  ;;  %v7897_v23 = vpop.f32.mrb[37].mxu0 }
 0x76e   : > { %v2150_v34 = vpop.f32.mrb[38].mxu0 }
 0x76f   : > { %v7898_v24 = vpop.f32.mrb[39].mxu0  ;;  %v2153_v26 = vsel %vm1472_vm3, %v2148_v21, -inf }
 0x770   : > { %2154 = vmax.xlane.f32.xlu0 %v2153_v26 }
 0x774   : > { %v2259_v28 = vpop.f32.mrb[40].mxu0 }
 0x775   : > { %v2260_v15 = vadd.f32 %v2259_v28, %v668_v55  ;;  %v7909_v27 = vpop.f32.mrb[41].mxu0 }
 0x776   : > { %v2262_v31 = vpop.f32.mrb[42].mxu0  ;;  %v8234_v27 = vld [vmem:[%s9263_s3 + $0x4] ss:$8 sps:$4 sm:$0xff]  }
 0x777   : > { %v7910_v8 = vpop.f32.mrb[43].mxu0  ;;  %v2265_v33 = vsel %vm1472_vm3, %v2260_v15, -inf  ;;  %v8237_v31 = vld [vmem:[%s9263_s3 + $0x14] ss:$8 sps:$4 sm:$0xff]   ;;  %2529 = vmatprep.subr.bf16.mxu0 %v8234_v27  ;;  %v8280_v27 = vld [vmem:[%s9268_s9] ss:$16 sps:$4 sm:$0xff]  }
 0x778   : > { %2266 = vmax.xlane.f32.xlu1 %v2265_v33  ;;  %v8235_v8 = vld [vmem:[%s9263_s3 + $0x10] ss:$8 sps:$4 sm:$0xff]   ;;  %v8240_v33 = vld [vmem:[%s9263_s3 + $0x24] ss:$8 sps:$4 sm:$0xff]  }
 0x7da   : > { %v1815_v16 = vpop.xlane.xlu1 %1814 }
 0x7db   : > { %v1816_v35 = vsub.f32 %v1808_v58, %v1815_v16  ;;  %v2165_v58 = vpack.c.bf16 %v9466_v32, %v9466_v32  ;;  %v1944_v32 = vsel %vm1489_vm2, %v1939_v45, 0  ;;  %v8238_v16 = vld [vmem:[%s9263_s3 + $0x20] ss:$8 sps:$4 sm:$0xff]  }
 0x7dd   : > { %v1817_v36 = vmul.f32 1.442695, %v1816_v35  ;;  %v2170_v14 = vsel %vm1489_vm2, %v2165_v58, 0 }
 0x7df   : > { %8683 = vpow2.f32 %v1817_v36  ;;  %v8243_v36 = vld [vmem:[%s9263_s3 + $0x34] ss:$8 sps:$4 sm:$0xff]  }
 0x7e9   : > { %v8684_v37 = vpop.eup %8683 }
 0x7ea   : > { %v1819_v50 = vsel %vm1472_vm3, %v8684_v37, 0.0 }
 0x7eb   : > { %1820 = vadd.xlane.f32.xlu0 %v1819_v50 }
 0x7ed   : > { %v1929_v38 = vpop.xlane.xlu0 %1928 }
 0x7ee   : > { %v1930_v39 = vsub.f32 %v1922_v7, %v1929_v38 }
 0x7f0   : > { %v1931_v40 = vmul.f32 1.442695, %v1930_v39  ;;  %v8241_v39 = vld [vmem:[%s9263_s3 + $0x30] ss:$8 sps:$4 sm:$0xff]  }
 0x7f2   : > { %8685 = vpow2.f32 %v1931_v40  ;;  %v8246_v40 = vld [vmem:[%s9263_s3 + $0x44] ss:$8 sps:$4 sm:$0xff]  }
 0x7f5   : > { %v2041_v41 = vpop.xlane.xlu0 %2040 }
 0x7f6   : > { %v2042_v25 = vsub.f32 %v2034_v9, %v2041_v41  ;;  %v8244_v41 = vld [vmem:[%s9263_s3 + $0x40] ss:$8 sps:$4 sm:$0xff]  }
 0x7f8   : > { %v2043_v42 = vmul.f32 1.442695, %v2042_v25 }
 0x7fa   : > { %8687 = vpow2.f32 %v2043_v42  ;;  %v8249_v42 = vld [vmem:[%s9263_s3 + $0x54] ss:$8 sps:$4 sm:$0xff]  }
 0x7fc   : > { %v8686_v20 = vpop.eup %8685 }
 0x7fd   : > { %v1933_v22 = vsel %vm1472_vm3, %v8686_v20, 0.0  ;;  %v2155_v46 = vpop.xlane.xlu0 %2154 }
 0x7fe   : > { %1934 = vadd.xlane.f32.xlu1 %v1933_v22  ;;  %v2156_v47 = vsub.f32 %v2148_v21, %v2155_v46 }
 0x800   : > { %v2157_v49 = vmul.f32 1.442695, %v2156_v47  ;;  %v8255_v47 = vld [vmem:[%s9263_s3 + $0x74] ss:$8 sps:$4 sm:$0xff]  }
 0x802   : > { %8689 = vpow2.f32 %v2157_v49 }
 0x804   : > { %v8688_v43 = vpop.eup %8687 }
 0x805   : > { %v2045_v44 = vsel %vm1472_vm3, %v8688_v43, 0.0  ;;  %v2267_v48 = vpop.xlane.xlu1 %2266 }
 0x806   : > { %2046 = vadd.xlane.f32.xlu0 %v2045_v44  ;;  %v2268_v51 = vsub.f32 %v2260_v15, %v2267_v48  ;;  %v8232_v15 = vld [vmem:[%s9263_s3] ss:$8 sps:$4 sm:$0xff]   ;;  %v8247_v44 = vld [vmem:[%s9263_s3 + $0x50] ss:$8 sps:$4 sm:$0xff]  }
 0x807   : > { %2530 = vmatpush1.bf16.msra.mxu0 %v8232_v15 }
 0x808   : > { %v2269_v52 = vmul.f32 1.442695, %v2268_v51  ;;  %2531 = vmatprep.subr.bf16.mxu0 %v8237_v31  ;;  %v8282_v31 = vld [vmem:[%s9268_s9 + $0x4] ss:$16 sps:$4 sm:$0xff]  }
 0x80a   : > { %8691 = vpow2.f32 %v2269_v52  ;;  %v8253_v52 = vld [vmem:[%s9263_s3 + $0x70] ss:$8 sps:$4 sm:$0xff]  }
 0x80b   : > { %2532 = vmatpush1.bf16.msra.mxu0 %v8235_v8  ;;  %v8285_v8 = vld [vmem:[%s9268_s9 + $0x24] ss:$16 sps:$4 sm:$0xff]  }
 0x80c   : > { %v8690_v54 = vpop.eup %8689  ;;  %2533 = vmatprep.subr.bf16.mxu0 %v8240_v33  ;;  %v8283_v33 = vld [vmem:[%s9268_s9 + $0x20] ss:$16 sps:$4 sm:$0xff]  }
 0x80d   : > { %v2159_v55 = vsel %vm1472_vm3, %v8690_v54, 0.0 }
 0x80f   : > { %2052 = vrot.lane.b32.xlu1 %v1939_v45, %s8990_s16  ;;  %2534 = vmatpush1.bf16.msra.mxu0 %v8238_v16  ;;  %v8252_v45 = vld [vmem:[%s9263_s3 + $0x64] ss:$8 sps:$4 sm:$0xff]   ;;  %v8295_v16 = vld [vmem:[%s9231_s20] ss:$8 sps:$4 sm:$0xff]  }
 0x810   : > { %2535 = vmatprep.subr.bf16.mxu0 %v8243_v36  ;;  %v8288_v36 = vld [vmem:[%s9268_s9 + $0x44] ss:$16 sps:$4 sm:$0xff]  }
 0x813   : > { %2536 = vmatpush1.bf16.msra.mxu0 %v8241_v39  ;;  %v8309_v39 = vld [vmem:[%s9231_s20 + $0x24] ss:$8 sps:$4 sm:$0xff]  }
 0x814   : > { %v8692_v57 = vpop.eup %8691  ;;  %2537 = vmatprep.subr.bf16.mxu0 %v8246_v40  ;;  %v8291_v40 = vld [vmem:[%s9268_s9 + $0x64] ss:$16 sps:$4 sm:$0xff]  }
 0x815   : > { %v2271_v30 = vsel %vm1472_vm3, %v8692_v57, 0.0 }
 0x817   : > { %2538 = vmatpush1.bf16.msra.mxu0 %v8244_v41  ;;  %v8307_v41 = vld [vmem:[%s9231_s20 + $0x20] ss:$8 sps:$4 sm:$0xff]  }
 0x818   : > { %2539 = vmatprep.subr.bf16.mxu0 %v8249_v42  ;;  %v8315_v42 = vld [vmem:[%s9231_s20 + $0x34] ss:$8 sps:$4 sm:$0xff]  }
 0x81b   : > { %2540 = vmatpush1.bf16.msra.mxu0 %v8247_v44  ;;  %v8321_v44 = vld [vmem:[%s9231_s20 + $0x44] ss:$8 sps:$4 sm:$0xff]  }
 0x81c   : > { %1826 = vrot.lane.b32.xlu0 %v9460_v29, %s8990_s16  ;;  %2541 = vmatprep.subr.bf16.mxu0 %v8252_v45  ;;  %v8300_v45 = vld [vmem:[%s9268_s9 + $0xa4] ss:$16 sps:$4 sm:$0xff]  }
 0x833   : > { %2160 = vadd.xlane.f32.xlu1 %v2159_v55  ;;  %v8256_v55 = vld [vmem:[%s9263_s3 + $0x80] ss:$8 sps:$4 sm:$0xff]  }
 0x837   : > { %2272 = vadd.xlane.f32.xlu1 %v2271_v30  ;;  %v8259_v30 = vld [vmem:[%s9263_s3 + $0x90] ss:$8 sps:$4 sm:$0xff]  }
 0x848   : > { %2278 = vrot.lane.b32.xlu1 %v2165_v58, %s8990_s16  ;;  %v8264_v58 = vld [vmem:[%s9263_s3 + $0xa4] ss:$8 sps:$4 sm:$0xff]  }
 0x878   : > { %v1821_v29 = vpop.xlane.xlu0 %1820 }
 0x879   : > { %8693 = vrcp.f32 %v1821_v29  ;;  %v8262_v29 = vld [vmem:[%s9263_s3 + $0xa0] ss:$8 sps:$4 sm:$0xff]  }
 0x883   : > { %v8694_v60 = vpop.eup %8693 }
 0x884   : > { %v1823_v62 = vmul.f32 %v8694_v60, %v8684_v37  ;;  %v8265_v60 = vld [vmem:[%s9263_s3 + $0xb0] ss:$8 sps:$4 sm:$0xff]  }
 0x886   : > { %v1824_v2 = vpack.c.bf16 %v1823_v62, %v1823_v62  ;;  %v8268_v62 = vld [vmem:[%s9263_s3 + $0xc0] ss:$8 sps:$4 sm:$0xff]  }
 0x88b   : > { %v1935_v59 = vpop.xlane.xlu1 %1934 }
 0x88c   : > { %8695 = vrcp.f32 %v1935_v59  ;;  %v8267_v59 = vld [vmem:[%s9263_s3 + $0xb4] ss:$8 sps:$4 sm:$0xff]  }
 0x88f   : > { %v2053_v10 = vpop.permute.xlu1 %2052 }
 0x890   : > { %v2058_v12 = vsel %vm1489_vm2, %v2053_v10, 0  ;;  %v8279_v10 = vld [vmem:[%s9263_s3 + $0xf4] ss:$8 sps:$4 sm:$0xff]  }
 0x893   : > { %v2047_v61 = vpop.xlane.xlu0 %2046 }
 0x894   : > { %8697 = vrcp.f32 %v2047_v61  ;;  %v8270_v61 = vld [vmem:[%s9263_s3 + $0xc4] ss:$8 sps:$4 sm:$0xff]  }
 0x896   : > { %v8696_v3 = vpop.eup %8695 }
 0x897   : > { %v1827_v0 = vpop.permute.xlu0 %1826  ;;  %v1937_v7 = vmul.f32 %v8696_v3, %v8686_v20  ;;  %v8274_v3 = vld [vmem:[%s9263_s3 + $0xe0] ss:$8 sps:$4 sm:$0xff]  }
 0x898   : > { %v1832_v1 = vsel %vm1489_vm2, %v1827_v0, 0  ;;  %v8271_v0 = vld [vmem:[%s9263_s3 + $0xd0] ss:$8 sps:$4 sm:$0xff]  }
 0x899   : > { %7864 = vmatpush3.bf16.msra.mxu1 %v1832_v1  ;;  %v1938_v11 = vpack.c.bf16 %v1937_v7, %v1937_v7  ;;  %v8273_v1 = vld [vmem:[%s9263_s3 + $0xd4] ss:$8 sps:$4 sm:$0xff]  }
 0x89a   : > { %7875 = vmatprep.subr.bf16.mxu1 %v8988_v6 }
 0x89c   : > { %7866 = vmatmul.mubr.msk.bf16.vlgmr.msra.gmra.mrb[12].mxu1 %vm1472_vm3, %v1824_v2 }
 0x89d   : > { %7876 = vmatpush3.bf16.msra.mxu1 %v1944_v32  ;;  %7877 = vmatprep.mubr.msk.bf16.mxu1 %vm8989_vm0, %v8988_v6  ;;  %v8276_v32 = vld [vmem:[%s9263_s3 + $0xe4] ss:$8 sps:$4 sm:$0xff]  }
 0x89e   : > { %7887 = vmatprep.subr.bf16.mxu1 %v8988_v6  ;;  %v8698_v5 = vpop.eup %8697 }
 0x89f   : > { %v2049_v13 = vmul.f32 %v8698_v5, %v8688_v43 }
 0x8a1   : > { %v2050_v9 = vpack.c.bf16 %v2049_v13, %v2049_v13 }
 0x8a4   : > { %7878 = vmatmul.mubr.msk.bf16.vlgmr.msra.gmra.mrb[16].mxu1 %vm1472_vm3, %v1938_v11 }
 0x8a5   : > { %7888 = vmatpush3.bf16.msra.mxu1 %v2058_v12  ;;  %7889 = vmatprep.mubr.msk.bf16.mxu1 %vm8989_vm0, %v8988_v6  ;;  %v8277_v12 = vld [vmem:[%s9263_s3 + $0xf0] ss:$8 sps:$4 sm:$0xff]  }
 0x8a6   : > { %7899 = vmatprep.subr.bf16.mxu1 %v8988_v6 }
 0x8ac   : > { %7890 = vmatmul.mubr.msk.bf16.vlgmr.msra.gmra.mrb[20].mxu1 %vm1472_vm3, %v2050_v9 }
 0x8ad   : > { %7900 = vmatpush3.bf16.msra.mxu1 %v2170_v14  ;;  %7901 = vmatprep.mubr.msk.bf16.mxu1 %vm8989_vm0, %v8988_v6 }
 0x8ae   : > { %7911 = vmatprep.subr.bf16.mxu1 %v8988_v6 }
 0x8c0   : > { %v2161_v17 = vpop.xlane.xlu1 %2160 }
 0x8c1   : > { %8699 = vrcp.f32 %v2161_v17 }
 0x8c4   : > { %v2273_v4 = vpop.xlane.xlu1 %2272 }
 0x8c5   : > { %8701 = vrcp.f32 %v2273_v4 }
 0x8c8   : > { %v2279_v21 = vpop.permute.xlu1 %2278 }
 0x8c9   : > { %v2284_v24 = vsel %vm1489_vm2, %v2279_v21, 0 }
 0x8cb   : > { %v8700_v18 = vpop.eup %8699 }
 0x8cc   : > { %v2163_v19 = vmul.f32 %v8700_v18, %v8690_v54  ;;  %v8258_v54 = vld [vmem:[%s9263_s3 + $0x84] ss:$8 sps:$4 sm:$0xff]  }
 0x8ce   : > { %v2164_v23 = vpack.c.bf16 %v2163_v19, %v2163_v19 }
 0x8cf   : > { %v8702_v34 = vpop.eup %8701 }
 0x8d0   : > { %7902 = vmatmul.mubr.msk.bf16.vlgmr.msra.gmra.mrb[24].mxu1 %vm1472_vm3, %v2164_v23  ;;  %v2275_v26 = vmul.f32 %v8702_v34, %v8692_v57  ;;  %v8261_v57 = vld [vmem:[%s9263_s3 + $0x94] ss:$8 sps:$4 sm:$0xff]  }
 0x8d1   : > { %7912 = vmatpush3.bf16.msra.mxu1 %v2284_v24  ;;  %7913 = vmatprep.mubr.msk.bf16.mxu1 %vm8989_vm0, %v8988_v6 }
 0x8d2   : > { %v2276_v28 = vpack.c.bf16 %v2275_v26, %v2275_v26 }
 0x8d8   : > { %7914 = vmatmul.mubr.msk.bf16.vlgmr.msra.gmra.mrb[28].mxu1 %vm1472_vm3, %v2276_v28 }
 0x96f   : > { %v1868_v35 = vpop.f32.mrb[12].mxu1 }
 0x970   : > { %1875 = vrot.lane.b32.xlu0 %v1868_v35, %s8990_s16  ;;  %v7867_v37 = vpop.f32.mrb[13].mxu1  ;;  %v8297_v35 = vld [vmem:[%s9231_s20 + $0x4] ss:$8 sps:$4 sm:$0xff]  }
 0x971   : > { %v1871_v50 = vpop.f32.mrb[14].mxu1  ;;  %2812 = vmatprep.subr.bf16.mxu1 %v8297_v35  ;;  %v8303_v37 = vld [vmem:[%s9231_s20 + $0x14] ss:$8 sps:$4 sm:$0xff]  }
 0x972   : > { %v7868_v38 = vpop.f32.mrb[15].mxu1  ;;  %2813 = vmatpush1.bf16.msra.mxu1 %v8295_v16  ;;  %v8301_v50 = vld [vmem:[%s9231_s20 + $0x10] ss:$8 sps:$4 sm:$0xff]  }
 0x973   : > { %v8286_v38 = vld [vmem:[%s9268_s9 + $0x40] ss:$16 sps:$4 sm:$0xff]   ;;  %2814 = vmatprep.subr.bf16.mxu1 %v8303_v37  ;;  %v8357_v37 = vld [vmem:[%s9231_s20 + $0xa4] ss:$8 sps:$4 sm:$0xff]  }
 0x974   : > { %1648 = vrot.lane.b32.xlu0 %v9558_v63, %s8990_s16  ;;  %v8250_v63 = vld [vmem:[%s9263_s3 + $0x60] ss:$8 sps:$4 sm:$0xff]  }
 0x975   : > { %2542 = vmatpush1.bf16.msra.mxu0 %v8250_v63  ;;  %v8319_v63 = vld [vmem:[%s9231_s20 + $0x40] ss:$8 sps:$4 sm:$0xff]  }
 0x976   : > { %2543 = vmatprep.subr.bf16.mxu0 %v8255_v47  ;;  %2815 = vmatpush1.bf16.msra.mxu1 %v8301_v50  ;;  %v8327_v47 = vld [vmem:[%s9231_s20 + $0x54] ss:$8 sps:$4 sm:$0xff]  }
 0x977   : > { %v1980_v25 = vpop.f32.mrb[16].mxu1  ;;  %2816 = vmatprep.subr.bf16.mxu1 %v8309_v39  ;;  %v8360_v50 = vld [vmem:[%s9268_s9 + $0x1e4] ss:$16 sps:$4 sm:$0xff]   ;;  %v8358_v39 = vld [vmem:[%s9268_s9 + $0x1e0] ss:$16 sps:$4 sm:$0xff]  }
 0x978   : > { %1986 = vst.msk [vmem:[#allocation3 + $0x10] sm:$0xff] %vm1425_vm1, %v1980_v25  ;;  %v7879_v20 = vpop.f32.mrb[17].mxu1  ;;  %v8289_v25 = vld [vmem:[%s9268_s9 + $0x60] ss:$16 sps:$4 sm:$0xff]  }
 0x979   : > { %v1983_v22 = vpop.f32.mrb[18].mxu1  ;;  %2544 = vmatpush1.bf16.msra.mxu0 %v8253_v52  ;;  %v8294_v20 = vld [vmem:[%s9268_s9 + $0x84] ss:$16 sps:$4 sm:$0xff]  }
 0x97a   : > { %v7880_v43 = vpop.f32.mrb[19].mxu1  ;;  %2545 = vmatprep.subr.bf16.mxu0 %v8258_v54  ;;  %2817 = vmatpush1.bf16.msra.mxu1 %v8307_v41  ;;  %v8313_v22 = vld [vmem:[%s9231_s20 + $0x30] ss:$8 sps:$4 sm:$0xff]   ;;  %v8333_v52 = vld [vmem:[%s9231_s20 + $0x64] ss:$8 sps:$4 sm:$0xff]  }
 0x97b   : > { %v8292_v43 = vld [vmem:[%s9268_s9 + $0x80] ss:$16 sps:$4 sm:$0xff]   ;;  %2818 = vmatprep.subr.bf16.mxu1 %v8315_v42  ;;  %v8312_v54 = vld [vmem:[%s9268_s9 + $0xe4] ss:$16 sps:$4 sm:$0xff]  }
 0x97c   : > { %v9721_v41 = vld [vmem:[%s10422_s24] ss:$8 sps:$4 sm:$0xff]   ;;  %v8364_v42 = vld [vmem:[%s9231_s20 + $0xb0] ss:$8 sps:$4 sm:$0xff]  }
 0x97d   : > { %2546 = vmatpush1.bf16.msra.mxu0 %v8256_v55  ;;  %v8331_v55 = vld [vmem:[%s9231_s20 + $0x60] ss:$8 sps:$4 sm:$0xff]  }
 0x97e   : > { %2547 = vmatprep.subr.bf16.mxu0 %v8261_v57  ;;  %2819 = vmatpush1.bf16.msra.mxu1 %v8313_v22  ;;  %v8310_v57 = vld [vmem:[%s9268_s9 + $0xe0] ss:$16 sps:$4 sm:$0xff]  }
 0x97f   : > { %v2094_v46 = vpop.f32.mrb[20].mxu1  ;;  %2820 = vmatprep.subr.bf16.mxu1 %v8321_v44  ;;  %v8367_v22 = vld [vmem:[%s9231_s20 + $0xc0] ss:$8 sps:$4 sm:$0xff]   ;;  %v8370_v44 = vld [vmem:[%s9231_s20 + $0xd0] ss:$8 sps:$4 sm:$0xff]  }
 0x980   : > { %v7891_v48 = vpop.f32.mrb[21].mxu1 }
 0x981   : > { %v2097_v49 = vpop.f32.mrb[22].mxu1  ;;  %2548 = vmatpush1.bf16.msra.mxu0 %v8259_v30  ;;  %v8306_v48 = vld [vmem:[%s9268_s9 + $0xc4] ss:$16 sps:$4 sm:$0xff]  }
 0x982   : > { %v7892_v51 = vpop.f32.mrb[23].mxu1  ;;  %2549 = vmatprep.subr.bf16.mxu0 %v8264_v58  ;;  %2821 = vmatpush1.bf16.msra.mxu1 %v8319_v63  ;;  %v8325_v49 = vld [vmem:[%s9231_s20 + $0x50] ss:$8 sps:$4 sm:$0xff]   ;;  %v8339_v30 = vld [vmem:[%s9231_s20 + $0x74] ss:$8 sps:$4 sm:$0xff]  }
 0x983   : > { %v8304_v51 = vld [vmem:[%s9268_s9 + $0xc0] ss:$16 sps:$4 sm:$0xff]   ;;  %2822 = vmatprep.subr.bf16.mxu1 %v8327_v47  ;;  %v8318_v58 = vld [vmem:[%s9268_s9 + $0x104] ss:$16 sps:$4 sm:$0xff]  }
 0x984   : > { %v8373_v63 = vld [vmem:[%s9231_s20 + $0xe0] ss:$8 sps:$4 sm:$0xff]   ;;  %v8376_v47 = vld [vmem:[%s9231_s20 + $0xf0] ss:$8 sps:$4 sm:$0xff]  }
 0x985   : > { %2550 = vmatpush1.bf16.msra.mxu0 %v8262_v29  ;;  %v8337_v29 = vld [vmem:[%s9231_s20 + $0x70] ss:$8 sps:$4 sm:$0xff]  }
 0x986   : > { %2551 = vmatprep.subr.bf16.mxu0 %v8267_v59  ;;  %2823 = vmatpush1.bf16.msra.mxu1 %v8325_v49  ;;  %v8316_v59 = vld [vmem:[%s9268_s9 + $0x100] ss:$16 sps:$4 sm:$0xff]  }
 0x987   : > { %2824 = vmatprep.subr.bf16.mxu1 %v8333_v52 }
 0x989   : > { %2552 = vmatpush1.bf16.msra.mxu0 %v8265_v60  ;;  %v8345_v60 = vld [vmem:[%s9231_s20 + $0x84] ss:$8 sps:$4 sm:$0xff]  }
 0x98a   : > { %2553 = vmatprep.subr.bf16.mxu0 %v8270_v61  ;;  %2825 = vmatpush1.bf16.msra.mxu1 %v8331_v55  ;;  %v8324_v61 = vld [vmem:[%s9268_s9 + $0x124] ss:$16 sps:$4 sm:$0xff]  }
 0x98b   : > { %2826 = vmatprep.subr.bf16.mxu1 %v8339_v30  ;;  %v2602_v30 = vsub.s32 5, %v9343_v53 }
 0x98d   : > { %2554 = vmatpush1.bf16.msra.mxu0 %v8268_v62  ;;  %v8343_v62 = vld [vmem:[%s9231_s20 + $0x80] ss:$8 sps:$4 sm:$0xff]  }
 0x98e   : > { %2555 = vmatprep.subr.bf16.mxu0 %v8273_v1  ;;  %2827 = vmatpush1.bf16.msra.mxu1 %v8337_v29  ;;  %v8351_v1 = vld [vmem:[%s9231_s20 + $0x94] ss:$8 sps:$4 sm:$0xff]  }
 0x98f   : > { %2828 = vmatprep.subr.bf16.mxu1 %v8345_v60 }
 0x991   : > { %2556 = vmatpush1.bf16.msra.mxu0 %v8271_v0  ;;  %v8322_v0 = vld [vmem:[%s9268_s9 + $0x120] ss:$16 sps:$4 sm:$0xff]  }
 0x992   : > { %2557 = vmatprep.subr.bf16.mxu0 %v8276_v32  ;;  %2829 = vmatpush1.bf16.msra.mxu1 %v8343_v62  ;;  %v8328_v32 = vld [vmem:[%s9268_s9 + $0x140] ss:$16 sps:$4 sm:$0xff]  }
 0x993   : > { %2830 = vmatprep.subr.bf16.mxu1 %v8351_v1 }
 0x995   : > { %2558 = vmatpush1.bf16.msra.mxu0 %v8274_v3  ;;  %v8349_v3 = vld [vmem:[%s9231_s20 + $0x90] ss:$8 sps:$4 sm:$0xff]  }
 0x996   : > { %2559 = vmatprep.subr.bf16.mxu0 %v8279_v10  ;;  %2831 = vmatpush1.bf16.msra.mxu1 %v8349_v3  ;;  %v8334_v10 = vld [vmem:[%s9268_s9 + $0x160] ss:$16 sps:$4 sm:$0xff]  }
 0x997   : > { %2832 = vmatprep.subr.bf16.mxu1 %v8357_v37 }
 0x999   : > { %2560 = vmatpush1.bf16.msra.mxu0 %v8277_v12  ;;  %v8348_v12 = vld [vmem:[%s9268_s9 + $0x1a4] ss:$16 sps:$4 sm:$0xff]  }
 0x99a   : > { %3249 = vmatprep.subr.bf16.mxu0 %v8282_v31 }
 0x9a3   : > { %v2206_v2 = vpop.f32.mrb[24].mxu1 }
 0x9a4   : > { %2212 = vst.msk [vmem:[#allocation3 + $0x18] sm:$0xff] %vm1425_vm1, %v2206_v2  ;;  %v7903_v7 = vpop.f32.mrb[25].mxu1  ;;  %v8330_v2 = vld [vmem:[%s9268_s9 + $0x144] ss:$16 sps:$4 sm:$0xff]  }
 0x9a5   : > { %v2209_v11 = vpop.f32.mrb[26].mxu1  ;;  %v8336_v7 = vld [vmem:[%s9268_s9 + $0x164] ss:$16 sps:$4 sm:$0xff]  }
 0x9a6   : > { %v7904_v5 = vpop.f32.mrb[27].mxu1  ;;  %v8342_v11 = vld [vmem:[%s9268_s9 + $0x184] ss:$16 sps:$4 sm:$0xff]  }
 0x9a7   : > { %v8340_v5 = vld [vmem:[%s9268_s9 + $0x180] ss:$16 sps:$4 sm:$0xff]  }
 0x9ab   : > { %v2320_v13 = vpop.f32.mrb[28].mxu1 }
 0x9ac   : > { %2327 = vrot.lane.b32.xlu1 %v2320_v13, %s8990_s16  ;;  %v7915_v9 = vpop.f32.mrb[29].mxu1  ;;  %v8346_v13 = vld [vmem:[%s9268_s9 + $0x1a0] ss:$16 sps:$4 sm:$0xff]  }
 0x9ad   : > { %v2323_v14 = vpop.f32.mrb[30].mxu1  ;;  %v8354_v9 = vld [vmem:[%s9268_s9 + $0x1c4] ss:$16 sps:$4 sm:$0xff]  }
 0x9ae   : > { %v7916_v17 = vpop.f32.mrb[31].mxu1  ;;  %v8352_v14 = vld [vmem:[%s9268_s9 + $0x1c0] ss:$16 sps:$4 sm:$0xff]  }
 0x9b0   : > { %2101 = vrot.lane.b32.xlu1 %v2094_v46, %s8990_s16  ;;  %v8298_v46 = vld [vmem:[%s9268_s9 + $0xa0] ss:$16 sps:$4 sm:$0xff]  }
 0x9e2   : > { %v1876_v4 = vpop.permute.xlu0 %1875 }
 0x9e3   : > { %1878 = vst.msk [vmem:[#allocation3 + $0x8] sm:$0xff] %vm1651_vm4, %v1876_v4  ;;  %v8743_v4 = vld [vmem:[#allocation2] sm:$0xff] }
 0x9e6   : > { %v1649_v18 = vpop.permute.xlu0 %1648 }
 0x9e7   : > { %1652 = vst.msk [vmem:[#allocation3] sm:$0xff] %vm1651_vm4, %v1649_v18 }
 0x9ea   : > { %v2332_v23 = vld [vmem:[#allocation3 + $0x8] sm:$0xff] }
 0x9ee   : > { %v2331_v26 = vld [vmem:[#allocation3] sm:$0xff] }
 0xa1e   : > { %v2328_v19 = vpop.permute.xlu1 %2327 }
 0xa1f   : > { %2330 = vst.msk [vmem:[#allocation3 + $0x18] sm:$0xff] %vm1651_vm4, %v2328_v19 }
 0xa22   : > { %v2102_v21 = vpop.permute.xlu1 %2101 }
 0xa23   : > { %2104 = vst.msk [vmem:[#allocation3 + $0x10] sm:$0xff] %vm1651_vm4, %v2102_v21  ;;  %v8744_v21 = vld [vmem:[#allocation2 + $0x8] sm:$0xff] }
 0xa26   : > { %v2334_v34 = vld [vmem:[#allocation3 + $0x18] sm:$0xff] }
 0xa27   : > { %v2336_v24 = vpack.c.bf16 %v2334_v34, %v2332_v23 }
 0xa29   : > { %2561 = vmatprep.mubr.bf16.mxu0 %v2336_v24  ;;  %v8745_v24 = vld [vmem:[#allocation2 + $0x10] sm:$0xff] }
 0xa2a   : > { %v2333_v28 = vld [vmem:[#allocation3 + $0x10] sm:$0xff] }
 0xa2b   : > { %v2335_v15 = vpack.c.bf16 %v2333_v28, %v2331_v26 }
 0xa2d   : > { %2562 = vmatmul.mubr.bf16.vlgmr.msra.gmra.mrb[44].mxu0 %v2335_v15 }
 0xa2e   : > { %3250 = vmatpush1.bf16.msra.mxu0 %v8280_v27  ;;  %v8746_v27 = vld [vmem:[#allocation2 + $0x18] sm:$0xff] }
 0xa2f   : > { %3251 = vmatprep.subr.bf16.mxu0 %v8285_v8 }
 0xa32   : > { %3252 = vmatpush1.bf16.msra.mxu0 %v8283_v33 }
 0xa33   : > { %3253 = vmatprep.subr.bf16.mxu0 %v8288_v36 }
 0xa36   : > { %3254 = vmatpush1.bf16.msra.mxu0 %v8286_v38  ;;  %v8355_v38 = vld [vmem:[%s9231_s20 + $0xa0] ss:$8 sps:$4 sm:$0xff]  }
 0xa37   : > { %3255 = vmatprep.subr.bf16.mxu0 %v8291_v40  ;;  %2833 = vmatpush1.bf16.msra.mxu1 %v8355_v38  ;;  %v8363_v40 = vld [vmem:[%s10422_s24 + $0x4] ss:$8 sps:$4 sm:$0xff]  }
 0xa38   : > { %3281 = vmatprep.mubr.bf16.mxu0 %v8363_v40 }
 0xa3a   : > { %3256 = vmatpush1.bf16.msra.mxu0 %v8289_v25  ;;  %v8366_v25 = vld [vmem:[%s9231_s20 + $0xb4] ss:$8 sps:$4 sm:$0xff]  }
 0xa3b   : > { %3257 = vmatprep.subr.bf16.mxu0 %v8294_v20  ;;  %2834 = vmatprep.subr.bf16.mxu1 %v8366_v25  ;;  %v8369_v20 = vld [vmem:[%s9231_s20 + $0xc4] ss:$8 sps:$4 sm:$0xff]  }
 0xa3c   : > { %2835 = vmatpush1.bf16.msra.mxu1 %v8364_v42  ;;  %v8384_v25 = vld [vmem:[%s9268_s9 + $0x2c] ss:$16 sps:$4 sm:$0xff]   ;;  %v8382_v42 = vld [vmem:[%s9268_s9 + $0x28] ss:$16 sps:$4 sm:$0xff]  }
 0xa3d   : > { %2836 = vmatprep.subr.bf16.mxu1 %v8369_v20  ;;  %v8387_v20 = vld [vmem:[%s9268_s9 + $0x4c] ss:$16 sps:$4 sm:$0xff]  }
 0xa3e   : > { %3258 = vmatpush1.bf16.msra.mxu0 %v8292_v43  ;;  %v8372_v43 = vld [vmem:[%s9231_s20 + $0xd4] ss:$8 sps:$4 sm:$0xff]  }
 0xa3f   : > { %3259 = vmatprep.subr.bf16.mxu0 %v8300_v45  ;;  %v8375_v45 = vld [vmem:[%s9231_s20 + $0xe4] ss:$8 sps:$4 sm:$0xff]  }
 0xa40   : > { %2837 = vmatpush1.bf16.msra.mxu1 %v8367_v22  ;;  %v8385_v22 = vld [vmem:[%s9268_s9 + $0x48] ss:$16 sps:$4 sm:$0xff]  }
 0xa41   : > { %2838 = vmatprep.subr.bf16.mxu1 %v8372_v43  ;;  %v8390_v43 = vld [vmem:[%s9268_s9 + $0x6c] ss:$16 sps:$4 sm:$0xff]  }
 0xa42   : > { %3260 = vmatpush1.bf16.msra.mxu0 %v8298_v46  ;;  %v8378_v46 = vld [vmem:[%s9231_s20 + $0xf4] ss:$8 sps:$4 sm:$0xff]  }
 0xa43   : > { %3261 = vmatprep.subr.bf16.mxu0 %v8306_v48 }
 0xa44   : > { %2839 = vmatpush1.bf16.msra.mxu1 %v8370_v44  ;;  %v8388_v44 = vld [vmem:[%s9268_s9 + $0x68] ss:$16 sps:$4 sm:$0xff]  }
 0xa45   : > { %2840 = vmatprep.subr.bf16.mxu1 %v8375_v45  ;;  %v8393_v45 = vld [vmem:[%s9268_s9 + $0x8c] ss:$16 sps:$4 sm:$0xff]  }
 0xa46   : > { %3262 = vmatpush1.bf16.msra.mxu0 %v8304_v51 }
 0xa47   : > { %3263 = vmatprep.subr.bf16.mxu0 %v8312_v54 }
 0xa48   : > { %2841 = vmatpush1.bf16.msra.mxu1 %v8373_v63  ;;  %v8391_v63 = vld [vmem:[%s9268_s9 + $0x88] ss:$16 sps:$4 sm:$0xff]  }
 0xa49   : > { %2842 = vmatprep.subr.bf16.mxu1 %v8378_v46  ;;  %v8396_v46 = vld [vmem:[%s9268_s9 + $0xac] ss:$16 sps:$4 sm:$0xff]  }
 0xa4a   : > { %3264 = vmatpush1.bf16.msra.mxu0 %v8310_v57  ;;  %v9738_v57 = vsub.s32 1, %v9343_v53 }
 0xa4b   : > { %3265 = vmatprep.subr.bf16.mxu0 %v8318_v58  ;;  %v8747_v58 = vld [vmem:[%s9253_s26] sm:$0x77] }
 0xa4c   : > { %2843 = vmatpush1.bf16.msra.mxu1 %v8376_v47  ;;  %v2603_v29 = vrot.slane %v8747_v58, %v2602_v30  ;;  %v8394_v47 = vld [vmem:[%s9268_s9 + $0xa8] ss:$16 sps:$4 sm:$0xff]   ;;  %v8405_v30 = vld [vmem:[%s9268_s9 + $0x10c] ss:$16 sps:$4 sm:$0xff]  }
 0xa4e   : > { %3266 = vmatpush1.bf16.msra.mxu0 %v8316_v59  ;;  %v2599_v59 = vrot.slane %v8747_v58, %v9738_v57  ;;  %v2613_v62 = vrot.slane %v2603_v29, %v9738_v57  ;;  %v8403_v58 = vld [vmem:[%s9268_s9 + $0x108] ss:$16 sps:$4 sm:$0xff]   ;;  %v8408_v29 = vld [vmem:[%s9268_s9 + $0x12c] ss:$16 sps:$4 sm:$0xff]  }
 0xa4f   : > { %3267 = vmatprep.subr.bf16.mxu0 %v8324_v61 }
 0xa50   : > { %v2609_v1 = vrot.slane %v2599_v59, %v9738_v57 }
 0xa52   : > { %3268 = vmatpush1.bf16.msra.mxu0 %v8322_v0 }
 0xa53   : > { %3269 = vmatprep.subr.bf16.mxu0 %v8330_v2 }
 0xa56   : > { %3270 = vmatpush1.bf16.msra.mxu0 %v8328_v32 }
 0xa57   : > { %3271 = vmatprep.subr.bf16.mxu0 %v8336_v7 }
 0xa5a   : > { %3272 = vmatpush1.bf16.msra.mxu0 %v8334_v10 }
 0xa5b   : > { %3273 = vmatprep.subr.bf16.mxu0 %v8342_v11 }
 0xa5e   : > { %3274 = vmatpush1.bf16.msra.mxu0 %v8340_v5 }
 0xa5f   : > { %3275 = vmatprep.subr.bf16.mxu0 %v8348_v12 }
 0xa62   : > { %3276 = vmatpush1.bf16.msra.mxu0 %v8346_v13 }
 0xa63   : > { %3277 = vmatprep.subr.bf16.mxu0 %v8354_v9 }
 0xa66   : > { %3278 = vmatpush1.bf16.msra.mxu0 %v8352_v14 }
 0xa67   : > { %3279 = vmatprep.subr.bf16.mxu0 %v8360_v50 }
 0xa6a   : > { %3280 = vmatpush1.bf16.msra.mxu0 %v8358_v39  ;;  %v8379_v39 = vld [vmem:[%s9268_s9 + $0x8] ss:$16 sps:$4 sm:$0xff]  }
 0xa6b   : > { %7917 = vmatprep.subr.bf16.mxu0 %v8988_v6 }
 0xa6d   : > { %3282 = vmatmul.mubr.bf16.vlgmr.msra.gmra.mrb[48].mxu0 %v9721_v41 }
 0xa6e   : > { %7919 = vmatprep.mubr.msk.bf16.mxu0 %vm8989_vm0, %v8988_v6 }
 0xb00   : > { %v2563_v17 = vpop.f32.mrb[44].mxu0 }
 0xb01   : > { %v9695_v18 = vadd.f32 %v8743_v4, %v2563_v17  ;;  %v2565_v19 = vpop.f32.mrb[45].mxu0 }
 0xb02   : > { %v9697_v23 = vadd.f32 %v8744_v21, %v2565_v19  ;;  %v2567_v34 = vpop.f32.mrb[46].mxu0 }
 0xb03   : > { %v9699_v26 = vadd.f32 %v8745_v24, %v2567_v34  ;;  %v2569_v28 = vpop.f32.mrb[47].mxu0  ;;  %v2576_v15 = vmul.f32 %v9695_v18, %v9695_v18 }
 0xb04   : > { %v9703_v31 = vadd.f32 %v8746_v27, %v2569_v28  ;;  %v2577_v8 = vmul.f32 %v9697_v23, %v9697_v23 }
 0xb05   : > { %v2578_v33 = vmul.f32 %v9699_v26, %v9699_v26 }
 0xb06   : > { %v2580_v16 = vadd.f32 %v2577_v8, %v2576_v15  ;;  %v2579_v35 = vmul.f32 %v9703_v31, %v9703_v31 }
 0xb08   : > { %2581 = vadd.xlane.f32.xlu0 %v2580_v16  ;;  %v2583_v36 = vadd.f32 %v2579_v35, %v2578_v33 }
 0xb0a   : > { %2584 = vadd.xlane.f32.xlu1 %v2583_v36 }
 0xb40   : > { %v3283_v9 = vpop.f32.mrb[48].mxu0 }
 0xb41   : > { %v3336_v14 = vpack.c.bf16 %v3283_v9, %v3283_v9  ;;  %v3285_v17 = vpop.f32.mrb[49].mxu0  ;;  %v8423_v9 = vld [vmem:[%s9268_s9 + $0x1cc] ss:$16 sps:$4 sm:$0xff]  }
 0xb42   : > { %v3287_v4 = vpop.f32.mrb[50].mxu0  ;;  %v3566_v21 = vpack.c.bf16 %v3285_v17, %v3285_v17  ;;  %v8426_v17 = vld [vmem:[%s9268_s9 + $0x1ec] ss:$16 sps:$4 sm:$0xff]  }
 0xb43   : > { %v3345_v19 = vsel %vm1425_vm1, %v3336_v14, 0  ;;  %3451 = vrot.lane.b32.xlu0 %v3336_v14, %s8990_s16  ;;  %v3289_v34 = vpop.f32.mrb[51].mxu0  ;;  %v9753_v24 = vpack.c.bf16 %v3287_v4, %v3287_v4  ;;  %v8421_v14 = vld [vmem:[%s9268_s9 + $0x1c8] ss:$16 sps:$4 sm:$0xff]  }
 0xb44   : > { %7918 = vmatpush3.bf16.xpose.msra.mxu0 %v3345_v19  ;;  %v9757_v28 = vpack.c.bf16 %v3289_v34, %v3289_v34  ;;  %v8424_v19 = vld [vmem:[%s9268_s9 + $0x1e8] ss:$16 sps:$4 sm:$0xff]  }
 0xb45   : > { %7929 = vmatprep.subr.bf16.mxu0 %v8988_v6 }
 0xb47   : > { %3677 = vrot.lane.b32.xlu0 %v3566_v21, %s8990_s16 }
 0xb4b   : > { %3907 = vrot.lane.b32.xlu0 %v9753_v24, %s8990_s16 }
 0xb4f   : > { %4133 = vrot.lane.b32.xlu0 %v9757_v28, %s8990_s16 }
 0xb95   : > { %v2582_v48 = vpop.xlane.xlu0 %2581 }
 0xb96   : > { %v2586_v49 = vmul.f32 0.00390625, %v2582_v48  ;;  %v8399_v48 = vld [vmem:[%s9268_s9 + $0xcc] ss:$16 sps:$4 sm:$0xff]  }
 0xb97   : > { %v2585_v51 = vpop.xlane.xlu1 %2584 }
 0xb98   : > { %v2588_v52 = vadd.f32 1e-06, %v2586_v49  ;;  %v2587_v54 = vmul.f32 0.00390625, %v2585_v51  ;;  %v8397_v49 = vld [vmem:[%s9268_s9 + $0xc8] ss:$16 sps:$4 sm:$0xff]  }
 0xb99   : > { %v8402_v51 = vld [vmem:[%s9268_s9 + $0xec] ss:$16 sps:$4 sm:$0xff]  }
 0xb9a   : > { %8703 = vrsqrt.f32 %v2588_v52  ;;  %v2589_v55 = vadd.f32 1e-06, %v2587_v54  ;;  %v8400_v54 = vld [vmem:[%s9268_s9 + $0xe8] ss:$16 sps:$4 sm:$0xff]  }
 0xb9c   : > { %8705 = vrsqrt.f32 %v2589_v55  ;;  %v3571_v55 = vsel %vm1425_vm1, %v3566_v21, 0  ;;  %v4027_v21 = vsel %vm1425_vm1, %v9757_v28, 0 }
 0xba4   : > { %v8704_v60 = vpop.eup %8703 }
 0xba5   : > { %v2593_v61 = vmul.f32 %v8704_v60, %v9697_v23  ;;  %v2592_v0 = vmul.f32 %v8704_v60, %v9695_v18  ;;  %v8406_v60 = vld [vmem:[%s9268_s9 + $0x128] ss:$16 sps:$4 sm:$0xff]  }
 0xba6   : > { %v8706_v2 = vpop.eup %8705 }
 0xba7   : > { %v2595_v3 = vmul.f32 %v8706_v2, %v9703_v31  ;;  %v2594_v32 = vmul.f32 %v8706_v2, %v9699_v26  ;;  %v2615_v7 = vmul.f32 %v2613_v62, %v2593_v61  ;;  %v2614_v11 = vmul.f32 %v2609_v1, %v2592_v0  ;;  %v8409_v0 = vld [vmem:[%s9268_s9 + $0x148] ss:$16 sps:$4 sm:$0xff]  }
 0xba9   : > { %v2617_v10 = vmul.f32 %v2613_v62, %v2595_v3  ;;  %v2616_v5 = vmul.f32 %v2609_v1, %v2594_v32  ;;  %v8411_v62 = vld [vmem:[%s9268_s9 + $0x14c] ss:$16 sps:$4 sm:$0xff]   ;;  %v8412_v3 = vld [vmem:[%s9268_s9 + $0x168] ss:$16 sps:$4 sm:$0xff]   ;;  %v3801_v32 = vsel %vm1425_vm1, %v9753_v24, 0 }
 0xbaa   : > { %v8414_v1 = vld [vmem:[%s9268_s9 + $0x16c] ss:$16 sps:$4 sm:$0xff]  }
 0xbab   : > { %v2619_v12 = vpack.c.bf16 %v2617_v10, %v2615_v7  ;;  %v2618_v13 = vpack.c.bf16 %v2616_v5, %v2614_v11  ;;  %v8417_v7 = vld [vmem:[%s9268_s9 + $0x18c] ss:$16 sps:$4 sm:$0xff]   ;;  %v8415_v10 = vld [vmem:[%s9268_s9 + $0x188] ss:$16 sps:$4 sm:$0xff]  }
 0xbac   : > { %v8420_v11 = vld [vmem:[%s9268_s9 + $0x1ac] ss:$16 sps:$4 sm:$0xff]  }
 0xbad   : > { %2844 = vmatprep.mubr.bf16.mxu1 %v2619_v12  ;;  %v8418_v12 = vld [vmem:[%s9268_s9 + $0x1a8] ss:$16 sps:$4 sm:$0xff]  }
 0xbae   : > { %2845 = vmatmul.mubr.bf16.vlgmr.msra.gmra.mrb[32].mxu1 %v2618_v13 }
 0xbaf   : > { %3324 = vmatprep.mubr.bf16.mxu1 %v8363_v40  ;;  %v8381_v40 = vld [vmem:[%s9268_s9 + $0xc] ss:$16 sps:$4 sm:$0xff]  }
 0xbb0   : > { %3292 = vmatprep.subr.bf16.mxu1 %v8381_v40 }
 0xbb1   : > { %3293 = vmatpush1.bf16.msra.mxu1 %v8379_v39 }
 0xbb2   : > { %3294 = vmatprep.subr.bf16.mxu1 %v8384_v25 }
 0xbb5   : > { %v3452_v27 = vpop.permute.xlu0 %3451  ;;  %3295 = vmatpush1.bf16.msra.mxu1 %v8382_v42 }
 0xbb6   : > { %v3457_v16 = vsel %vm1425_vm1, %v3452_v27, 0  ;;  %3296 = vmatprep.subr.bf16.mxu1 %v8387_v20 }
 0xbb9   : > { %3297 = vmatpush1.bf16.msra.mxu1 %v8385_v22  ;;  %v3678_v59 = vpop.permute.xlu0 %3677 }
 0xbba   : > { %3298 = vmatprep.subr.bf16.mxu1 %v8390_v43  ;;  %v3683_v61 = vsel %vm1425_vm1, %v3678_v59, 0 }
 0xbbd   : > { %3299 = vmatpush1.bf16.msra.mxu1 %v8388_v44  ;;  %v3908_v5 = vpop.permute.xlu0 %3907 }
 0xbbe   : > { %3300 = vmatprep.subr.bf16.mxu1 %v8393_v45  ;;  %v3913_v13 = vsel %vm1425_vm1, %v3908_v5, 0 }
 0xbc1   : > { %3301 = vmatpush1.bf16.msra.mxu1 %v8391_v63  ;;  %v4134_v34 = vpop.permute.xlu0 %4133 }
 0xbc2   : > { %3302 = vmatprep.subr.bf16.mxu1 %v8396_v46  ;;  %v4139_v24 = vsel %vm1425_vm1, %v4134_v34, 0 }
 0xbc5   : > { %3303 = vmatpush1.bf16.msra.mxu1 %v8394_v47 }
 0xbc6   : > { %3304 = vmatprep.subr.bf16.mxu1 %v8399_v48 }
 0xbc9   : > { %3305 = vmatpush1.bf16.msra.mxu1 %v8397_v49 }
 0xbca   : > { %3306 = vmatprep.subr.bf16.mxu1 %v8402_v51 }
 0xbcd   : > { %3307 = vmatpush1.bf16.msra.mxu1 %v8400_v54 }
 0xbce   : > { %3308 = vmatprep.subr.bf16.mxu1 %v8405_v30 }
 0xbd1   : > { %3309 = vmatpush1.bf16.msra.mxu1 %v8403_v58 }
 0xbd2   : > { %3310 = vmatprep.subr.bf16.mxu1 %v8408_v29 }
 0xbd5   : > { %3311 = vmatpush1.bf16.msra.mxu1 %v8406_v60 }
 0xbd6   : > { %3312 = vmatprep.subr.bf16.mxu1 %v8411_v62 }
 0xbd9   : > { %3313 = vmatpush1.bf16.msra.mxu1 %v8409_v0 }
 0xbda   : > { %3314 = vmatprep.subr.bf16.mxu1 %v8414_v1 }
 0xbdd   : > { %3315 = vmatpush1.bf16.msra.mxu1 %v8412_v3 }
 0xbde   : > { %3316 = vmatprep.subr.bf16.mxu1 %v8417_v7 }
 0xbe1   : > { %3317 = vmatpush1.bf16.msra.mxu1 %v8415_v10 }
 0xbe2   : > { %3318 = vmatprep.subr.bf16.mxu1 %v8420_v11 }
 0xbe5   : > { %3319 = vmatpush1.bf16.msra.mxu1 %v8418_v12 }
 0xbe6   : > { %3320 = vmatprep.subr.bf16.mxu1 %v8423_v9 }
 0xbe9   : > { %3321 = vmatpush1.bf16.msra.mxu1 %v8421_v14 }
 0xbea   : > { %3322 = vmatprep.subr.bf16.mxu1 %v8426_v17 }
 0xbed   : > { %3323 = vmatpush1.bf16.msra.mxu1 %v8424_v19 }
 0xbee   : > { %7923 = vmatprep.subr.bf16.mxu1 %v8988_v6 }
 0xbf0   : > { %3325 = vmatmul.mubr.bf16.vlgmr.msra.gmra.mrb[36].mxu1 %v9721_v41 }
 0xbf1   : > { %7925 = vmatprep.mubr.msk.bf16.mxu1 %vm8989_vm0, %v8988_v6 }
 0xc81   : > { %v2846_v15 = vpop.f32.mrb[32].mxu1 }
 0xc82   : > { %v3335_v8 = vpack.c.bf16 %v2846_v15, %v2846_v15  ;;  %v2848_v33 = vpop.f32.mrb[33].mxu1  ;;  %v669_v15 = vld [vmem:[%s10423_s12] sm:$0x3] }
 0xc83   : > { %v2850_v35 = vpop.f32.mrb[34].mxu1  ;;  %v3565_v37 = vpack.c.bf16 %v2848_v33, %v2848_v33  ;;  %v3340_v41 = vrot.slane %v669_v15, %v9347_v56 }
 0xc84   : > { %3448 = vrot.lane.b32.xlu1 %v3335_v8, %s8990_s16  ;;  %v2852_v36 = vpop.f32.mrb[35].mxu1  ;;  %7920 = vmatmul.mubr.msk.bf16.vlgmr.msra.gmra.mrb[52].mxu0 %vm1425_vm1, %v3335_v8  ;;  %v9768_v50 = vpack.c.bf16 %v2850_v35, %v2850_v35 }
 0xc85   : > { %7930 = vmatpush3.bf16.xpose.msra.mxu0 %v3457_v16  ;;  %7931 = vmatprep.mubr.msk.bf16.mxu0 %vm8989_vm0, %v8988_v6  ;;  %v9772_v38 = vpack.c.bf16 %v2852_v36, %v2852_v36 }
 0xc86   : > { %7941 = vmatprep.subr.bf16.mxu0 %v8988_v6 }
 0xc88   : > { %3674 = vrot.lane.b32.xlu1 %v3565_v37, %s8990_s16 }
 0xc8c   : > { %3904 = vrot.lane.b32.xlu1 %v9768_v50, %s8990_s16 }
 0xc90   : > { %4130 = vrot.lane.b32.xlu1 %v9772_v38, %s8990_s16 }
 0xcf6   : > { %v3449_v52 = vpop.permute.xlu1 %3448 }
 0xcf7   : > { %7932 = vmatmul.mubr.msk.bf16.vlgmr.msra.gmra.mrb[56].mxu0 %vm1425_vm1, %v3449_v52  ;;  %v3796_v52 = vrot.slane %v669_v15, %v9738_v57  ;;  %v3326_v15 = vpop.f32.mrb[36].mxu1 }
 0xcf8   : > { %7942 = vmatpush3.bf16.xpose.msra.mxu0 %v3571_v55  ;;  %7943 = vmatprep.mubr.msk.bf16.mxu0 %vm8989_vm0, %v8988_v6 }
 0xcf9   : > { %7953 = vmatprep.subr.bf16.mxu0 %v8988_v6 }
 0xcfa   : > { %v3675_v2 = vpop.permute.xlu1 %3674 }
 0xcfe   : > { %v3905_v4 = vpop.permute.xlu1 %3904 }
 0xcff   : > { %7944 = vmatmul.mubr.msk.bf16.vlgmr.msra.gmra.mrb[60].mxu0 %vm1425_vm1, %v3565_v37 }
 0xd00   : > { %7954 = vmatpush3.bf16.xpose.msra.mxu0 %v3683_v61  ;;  %7955 = vmatprep.mubr.msk.bf16.mxu0 %vm8989_vm0, %v8988_v6 }
 0xd01   : > { %7965 = vmatprep.subr.bf16.mxu0 %v8988_v6 }
 0xd02   : > { %v4131_v28 = vpop.permute.xlu1 %4130 }
 0xd07   : > { %7956 = vmatmul.mubr.msk.bf16.vlgmr.msra.gmra.mrb[64].mxu0 %vm1425_vm1, %v3675_v2 }
 0xd08   : > { %7966 = vmatpush3.bf16.xpose.msra.mxu0 %v3801_v32  ;;  %7967 = vmatprep.mubr.msk.bf16.mxu0 %vm8989_vm0, %v8988_v6 }
 0xd09   : > { %7977 = vmatprep.subr.bf16.mxu0 %v8988_v6 }
 0xd0f   : > { %7968 = vmatmul.mubr.msk.bf16.vlgmr.msra.gmra.mrb[68].mxu0 %vm1425_vm1, %v9768_v50 }
 0xd10   : > { %7978 = vmatpush3.bf16.xpose.msra.mxu0 %v3913_v13  ;;  %7979 = vmatprep.mubr.msk.bf16.mxu0 %vm8989_vm0, %v8988_v6 }
 0xd11   : > { %7989 = vmatprep.subr.bf16.mxu0 %v8988_v6 }
 0xd17   : > { %7980 = vmatmul.mubr.msk.bf16.vlgmr.msra.gmra.mrb[72].mxu0 %vm1425_vm1, %v3905_v4 }
 0xd18   : > { %7990 = vmatpush3.bf16.xpose.msra.mxu0 %v4027_v21  ;;  %7991 = vmatprep.mubr.msk.bf16.mxu0 %vm8989_vm0, %v8988_v6 }
 0xd19   : > { %8001 = vmatprep.subr.bf16.mxu0 %v8988_v6 }
 0xd1f   : > { %7992 = vmatmul.mubr.msk.bf16.vlgmr.msra.gmra.mrb[76].mxu0 %vm1425_vm1, %v9772_v38 }
 0xd20   : > { %8002 = vmatpush3.bf16.xpose.msra.mxu0 %v4139_v24  ;;  %8003 = vmatprep.mubr.msk.bf16.mxu0 %vm8989_vm0, %v8988_v6 }
 0xd27   : > { %8004 = vmatmul.mubr.msk.bf16.vlgmr.msra.gmra.mrb[80].mxu0 %vm1425_vm1, %v4131_v28 }
 0xd57   : > { %v3381_v27 = vpop.f32.mrb[52].mxu0 }
 0xd58   : > { %v3382_v8 = vadd.f32 %v3381_v27, %v3340_v41  ;;  %v7921_v33 = vpop.f32.mrb[53].mxu0 }
 0xd59   : > { %v3384_v16 = vpop.f32.mrb[54].mxu0 }
 0xd5a   : > { %v7922_v35 = vpop.f32.mrb[55].mxu0  ;;  %v3387_v36 = vsel %vm1472_vm3, %v3382_v8, -inf }
 0xd5b   : > { %3388 = vmax.xlane.f32.xlu0 %v3387_v36 }
 0xdca   : > { %v3493_v37 = vpop.f32.mrb[56].mxu0 }
 0xdcb   : > { %v9851_v50 = vadd.f32 %v3493_v37, %v3340_v41  ;;  %v7933_v38 = vpop.f32.mrb[57].mxu0 }
 0xdcc   : > { %v3496_v39 = vpop.f32.mrb[58].mxu0 }
 0xdcd   : > { %v7934_v40 = vpop.f32.mrb[59].mxu0  ;;  %v3499_v25 = vsel %vm1472_vm3, %v9851_v50, -inf }
 0xdce   : > { %3500 = vmax.xlane.f32.xlu1 %v3499_v25 }
 0xdd2   : > { %v3607_v42 = vpop.f32.mrb[60].mxu0 }
 0xdd3   : > { %v9855_v20 = vadd.f32 %v3607_v42, %v3340_v41  ;;  %v7945_v22 = vpop.f32.mrb[61].mxu0 }
 0xdd4   : > { %v3610_v43 = vpop.f32.mrb[62].mxu0 }
 0xdd5   : > { %v7946_v44 = vpop.f32.mrb[63].mxu0  ;;  %v3613_v45 = vsel %vm1472_vm3, %v9855_v20, -inf }
 0xdd6   : > { %3614 = vmax.xlane.f32.xlu0 %v3613_v45 }
 0xdda   : > { %v3719_v63 = vpop.f32.mrb[64].mxu0 }
 0xddb   : > { %v9859_v46 = vadd.f32 %v3719_v63, %v3340_v41  ;;  %v7957_v47 = vpop.f32.mrb[65].mxu0  ;;  %v3328_v41 = vpop.f32.mrb[37].mxu1 }
 0xddc   : > { %v3722_v48 = vpop.f32.mrb[66].mxu0  ;;  %v9878_v27 = vpop.f32.mrb[38].mxu1 }
 0xddd   : > { %v7958_v49 = vpop.f32.mrb[67].mxu0  ;;  %v3725_v51 = vsel %vm1472_vm3, %v9859_v46, -inf  ;;  %v9880_v33 = vpop.f32.mrb[39].mxu1 }
 0xdde   : > { %3726 = vmax.xlane.f32.xlu0 %v3725_v51  ;;  %v3625_v49 = vpack.c.bf16 %v3328_v41, %v3328_v41 }
 0xde0   : > { %v3630_v41 = vsel %vm1489_vm2, %v3625_v49, 0 }
 0xde2   : > { %v3837_v54 = vpop.f32.mrb[68].mxu0 }
 0xde3   : > { %v9864_v55 = vadd.f32 %v3837_v54, %v3796_v52  ;;  %v7969_v30 = vpop.f32.mrb[69].mxu0 }
 0xde4   : > { %v3840_v58 = vpop.f32.mrb[70].mxu0 }
 0xde5   : > { %v7970_v29 = vpop.f32.mrb[71].mxu0  ;;  %v3843_v59 = vsel %vm1472_vm3, %v9864_v55, -inf }
 0xde6   : > { %3844 = vmax.xlane.f32.xlu0 %v3843_v59 }
 0xde8   : > { %v3389_v60 = vpop.xlane.xlu0 %3388 }
 0xde9   : > { %v3390_v61 = vsub.f32 %v3382_v8, %v3389_v60  ;;  %v3399_v8 = vpack.c.bf16 %v3326_v15, %v3326_v15 }
 0xdea   : > { %v3949_v62 = vpop.f32.mrb[72].mxu0 }
 0xdeb   : > { %v3391_v0 = vmul.f32 1.442695, %v3390_v61  ;;  %v9868_v1 = vadd.f32 %v3949_v62, %v3796_v52  ;;  %v7981_v2 = vpop.f32.mrb[73].mxu0  ;;  %v3404_v16 = vsel %vm1489_vm2, %v3399_v8, 0 }
 0xdec   : > { %v3952_v3 = vpop.f32.mrb[74].mxu0  ;;  %7924 = vmatpush3.bf16.msra.mxu1 %v3404_v16 }
 0xded   : > { %8707 = vpow2.f32 %v3391_v0  ;;  %v7982_v32 = vpop.f32.mrb[75].mxu0  ;;  %v3955_v7 = vsel %vm1472_vm3, %v9868_v1, -inf  ;;  %7935 = vmatprep.subr.bf16.mxu1 %v8988_v6 }
 0xdee   : > { %3956 = vmax.xlane.f32.xlu1 %v3955_v7 }
 0xdf2   : > { %v4063_v10 = vpop.f32.mrb[76].mxu0 }
 0xdf3   : > { %v9872_v11 = vadd.f32 %v4063_v10, %v3796_v52  ;;  %v7993_v5 = vpop.f32.mrb[77].mxu0 }
 0xdf4   : > { %v4066_v12 = vpop.f32.mrb[78].mxu0 }
 0xdf5   : > { %v7994_v13 = vpop.f32.mrb[79].mxu0  ;;  %v4069_v9 = vsel %vm1472_vm3, %v9872_v11, -inf }
 0xdf6   : > { %4070 = vmax.xlane.f32.xlu0 %v4069_v9  ;;  %v3855_v13 = vpack.c.bf16 %v9878_v27, %v9878_v27  ;;  %v4081_v9 = vpack.c.bf16 %v9880_v33, %v9880_v33 }
 0xdf7   : > { %v8708_v14 = vpop.eup %8707 }
 0xdf8   : > { %v3393_v17 = vsel %vm1472_vm3, %v8708_v14, 0.0 }
 0xdfa   : > { %3394 = vadd.xlane.f32.xlu0 %v3393_v17  ;;  %v4175_v4 = vpop.f32.mrb[80].mxu0 }
 0xdfb   : > { %v4176_v19 = vadd.f32 %v4175_v4, %v3796_v52  ;;  %v8005_v21 = vpop.f32.mrb[81].mxu0 }
 0xdfc   : > { %v4178_v34 = vpop.f32.mrb[82].mxu0 }
 0xdfd   : > { %v8006_v24 = vpop.f32.mrb[83].mxu0  ;;  %v4181_v28 = vsel %vm1472_vm3, %v4176_v19, -inf }
 0xdfe   : > { %4182 = vmax.xlane.f32.xlu1 %v4181_v28 }
 0xe5b   : > { %v3501_v35 = vpop.xlane.xlu1 %3500 }
 0xe5c   : > { %v3502_v36 = vsub.f32 %v9851_v50, %v3501_v35 }
 0xe5e   : > { %v3503_v37 = vmul.f32 1.442695, %v3502_v36 }
 0xe60   : > { %8709 = vpow2.f32 %v3503_v37 }
 0xe63   : > { %v3615_v38 = vpop.xlane.xlu0 %3614 }
 0xe64   : > { %v3616_v39 = vsub.f32 %v9855_v20, %v3615_v38  ;;  %v3860_v38 = vsel %vm1489_vm2, %v3855_v13, 0 }
 0xe66   : > { %v3617_v40 = vmul.f32 1.442695, %v3616_v39 }
 0xe68   : > { %8711 = vpow2.f32 %v3617_v40 }
 0xe6a   : > { %v8710_v25 = vpop.eup %8709 }
 0xe6b   : > { %v3727_v42 = vpop.xlane.xlu0 %3726  ;;  %v3505_v22 = vsel %vm1472_vm3, %v8710_v25, 0.0 }
 0xe6c   : > { %v3728_v43 = vsub.f32 %v9859_v46, %v3727_v42  ;;  %3506 = vadd.xlane.f32.xlu1 %v3505_v22 }
 0xe6e   : > { %v3729_v44 = vmul.f32 1.442695, %v3728_v43 }
 0xe70   : > { %8713 = vpow2.f32 %v3729_v44 }
 0xe72   : > { %v9888_v45 = vpop.eup %8711 }
 0xe73   : > { %v3619_v50 = vsel %vm1472_vm3, %v9888_v45, 0.0  ;;  %v3845_v47 = vpop.xlane.xlu0 %3844 }
 0xe74   : > { %3620 = vadd.xlane.f32.xlu0 %v3619_v50  ;;  %v3846_v52 = vsub.f32 %v9864_v55, %v3845_v47 }
 0xe76   : > { %v3847_v29 = vmul.f32 1.442695, %v3846_v52 }
 0xe7a   : > { %v9892_v63 = vpop.eup %8713 }
 0xe7b   : > { %v3731_v20 = vsel %vm1472_vm3, %v9892_v63, 0.0  ;;  %v3957_v54 = vpop.xlane.xlu1 %3956 }
 0xe7c   : > { %3732 = vadd.xlane.f32.xlu1 %v3731_v20  ;;  %v3958_v59 = vsub.f32 %v9868_v1, %v3957_v54 }
 0xe7e   : > { %v3959_v62 = vmul.f32 1.442695, %v3958_v59 }
 0xe83   : > { %v4071_v48 = vpop.xlane.xlu0 %4070 }
 0xe84   : > { %v4072_v61 = vsub.f32 %v9872_v11, %v4071_v48 }
 0xe86   : > { %v4073_v2 = vmul.f32 1.442695, %v4072_v61 }
 0xe87   : > { %v3395_v51 = vpop.xlane.xlu0 %3394 }
 0xe88   : > { %8715 = vrcp.f32 %v3395_v51 }
 0xe89   : > { %8717 = vpow2.f32 %v3847_v29 }
 0xe8a   : > { %3738 = vrot.lane.b32.xlu0 %v3625_v49, %s8990_s16  ;;  %8719 = vpow2.f32 %v3959_v62  ;;  %v4086_v49 = vsel %vm1489_vm2, %v4081_v9, 0 }
 0xe8b   : > { %v4183_v60 = vpop.xlane.xlu1 %4182  ;;  %8721 = vpow2.f32 %v4073_v2 }
 0xe8c   : > { %v4184_v0 = vsub.f32 %v4176_v19, %v4183_v60 }
 0xe8d   : > { %3512 = vrot.lane.b32.xlu1 %v3399_v8, %s8990_s16 }
 0xe8e   : > { %v4185_v55 = vmul.f32 1.442695, %v4184_v0 }
 0xe90   : > { %8723 = vpow2.f32 %v4185_v55 }
 0xe92   : > { %v8716_v46 = vpop.eup %8715 }
 0xe93   : > { %v3397_v30 = vmul.f32 %v8716_v46, %v8708_v14  ;;  %v8718_v3 = vpop.eup %8717 }
 0xe94   : > { %v3849_v32 = vsel %vm1472_vm3, %v8718_v3, 0.0  ;;  %v9905_v1 = vpop.eup %8719 }
 0xe95   : > { %v3398_v58 = vpack.c.bf16 %v3397_v30, %v3397_v30  ;;  %v9907_v7 = vpop.eup %8721  ;;  %v3961_v10 = vsel %vm1472_vm3, %v9905_v1, 0.0 }
 0xe96   : > { %v4075_v12 = vsel %vm1472_vm3, %v9907_v7, 0.0 }
 0xe97   : > { %7926 = vmatmul.mubr.msk.bf16.vlgmr.msra.gmra.mrb[40].mxu1 %vm1472_vm3, %v3398_v58 }
 0xe98   : > { %7937 = vmatprep.mubr.msk.bf16.mxu1 %vm8989_vm0, %v8988_v6 }
 0xe9a   : > { %v9911_v11 = vpop.eup %8723 }
 0xe9b   : > { %v4187_v5 = vsel %vm1472_vm3, %v9911_v11, 0.0 }
 0xea9   : > { %3850 = vadd.xlane.f32.xlu0 %v3849_v32  ;;  %v8429_v32 = vld [vmem:[%s9238_s13 + $0x4] ss:$8 sps:$4 sm:$0xff]  }
 0xeaa   : > { %4445 = vmatprep.subr.bf16.mxu0 %v8429_v32 }
 0xead   : > { %3962 = vadd.xlane.f32.xlu0 %v3961_v10 }
 0xeb1   : > { %4188 = vadd.xlane.f32.xlu1 %v4187_v5  ;;  %4076 = vadd.xlane.f32.xlu0 %v4075_v12 }
 0xec7   : > { %3968 = vrot.lane.b32.xlu0 %v3855_v13, %s8990_s16 }
 0xecb   : > { %4194 = vrot.lane.b32.xlu0 %v4081_v9, %s8990_s16  ;;  %v8433_v9 = vld [vmem:[%s9238_s13 + $0x20] ss:$8 sps:$4 sm:$0xff]  }
 0xef9   : > { %v3507_v14 = vpop.xlane.xlu1 %3506 }
 0xefa   : > { %8725 = vrcp.f32 %v3507_v14  ;;  %v8438_v14 = vld [vmem:[%s9238_s13 + $0x34] ss:$8 sps:$4 sm:$0xff]  }
 0xf01   : > { %v3621_v17 = vpop.xlane.xlu0 %3620 }
 0xf02   : > { %8727 = vrcp.f32 %v3621_v17  ;;  %v8436_v17 = vld [vmem:[%s9238_s13 + $0x30] ss:$8 sps:$4 sm:$0xff]  }
 0xf04   : > { %v8726_v4 = vpop.eup %8725 }
 0xf05   : > { %v3509_v21 = vmul.f32 %v8726_v4, %v8710_v25  ;;  %v3739_v8 = vpop.permute.xlu0 %3738 }
 0xf06   : > { %v3744_v35 = vsel %vm1489_vm2, %v3739_v8, 0  ;;  %v8445_v8 = vld [vmem:[%s9238_s13 + $0x60] ss:$8 sps:$4 sm:$0xff]  }
 0xf07   : > { %v3510_v28 = vpack.c.bf16 %v3509_v21, %v3509_v21 }
 0xf09   : > { %v3733_v19 = vpop.xlane.xlu1 %3732 }
 0xf0a   : > { %8729 = vrcp.f32 %v3733_v19  ;;  %v8441_v19 = vld [vmem:[%s9238_s13 + $0x44] ss:$8 sps:$4 sm:$0xff]  }
 0xf0c   : > { %v8728_v15 = vpop.eup %8727 }
 0xf0d   : > { %v3513_v34 = vpop.permute.xlu1 %3512  ;;  %v3623_v27 = vmul.f32 %v8728_v15, %v9888_v45  ;;  %v8444_v15 = vld [vmem:[%s9238_s13 + $0x54] ss:$8 sps:$4 sm:$0xff]  }
 0xf0e   : > { %v3518_v24 = vsel %vm1489_vm2, %v3513_v34, 0 }
 0xf0f   : > { %7936 = vmatpush3.bf16.msra.mxu1 %v3518_v24  ;;  %v3624_v33 = vpack.c.bf16 %v3623_v27, %v3623_v27  ;;  %v8447_v27 = vld [vmem:[%s9238_s13 + $0x64] ss:$8 sps:$4 sm:$0xff]  }
 0xf10   : > { %7947 = vmatprep.subr.bf16.mxu1 %v8988_v6 }
 0xf12   : > { %7938 = vmatmul.mubr.msk.bf16.vlgmr.msra.gmra.mrb[44].mxu1 %vm1472_vm3, %v3510_v28  ;;  %v8439_v28 = vld [vmem:[%s9238_s13 + $0x40] ss:$8 sps:$4 sm:$0xff]  }
 0xf13   : > { %7948 = vmatpush3.bf16.msra.mxu1 %v3630_v41  ;;  %7949 = vmatprep.mubr.msk.bf16.mxu1 %vm8989_vm0, %v8988_v6  ;;  %v8442_v41 = vld [vmem:[%s9238_s13 + $0x50] ss:$8 sps:$4 sm:$0xff]  }
 0xf14   : > { %7959 = vmatprep.subr.bf16.mxu1 %v8988_v6  ;;  %v8730_v16 = vpop.eup %8729 }
 0xf15   : > { %v3735_v36 = vmul.f32 %v8730_v16, %v9892_v63  ;;  %v8448_v16 = vld [vmem:[%s9238_s13 + $0x70] ss:$8 sps:$4 sm:$0xff]  }
 0xf17   : > { %v3736_v37 = vpack.c.bf16 %v3735_v36, %v3735_v36  ;;  %v8451_v36 = vld [vmem:[%s9238_s13 + $0x80] ss:$8 sps:$4 sm:$0xff]  }
 0xf1a   : > { %7950 = vmatmul.mubr.msk.bf16.vlgmr.msra.gmra.mrb[48].mxu1 %vm1472_vm3, %v3624_v33  ;;  %v8450_v33 = vld [vmem:[%s9238_s13 + $0x74] ss:$8 sps:$4 sm:$0xff]  }
 0xf1b   : > { %7960 = vmatpush3.bf16.msra.mxu1 %v3744_v35  ;;  %7961 = vmatprep.mubr.msk.bf16.mxu1 %vm8989_vm0, %v8988_v6  ;;  %v8453_v35 = vld [vmem:[%s9238_s13 + $0x84] ss:$8 sps:$4 sm:$0xff]  }
 0xf1c   : > { %7971 = vmatprep.subr.bf16.mxu1 %v8988_v6 }
 0xf22   : > { %7962 = vmatmul.mubr.msk.bf16.vlgmr.msra.gmra.mrb[52].mxu1 %vm1472_vm3, %v3736_v37  ;;  %v8454_v37 = vld [vmem:[%s9238_s13 + $0x90] ss:$8 sps:$4 sm:$0xff]  }
 0xf23   : > { %7972 = vmatpush3.bf16.msra.mxu1 %v3860_v38  ;;  %7973 = vmatprep.mubr.msk.bf16.mxu1 %vm8989_vm0, %v8988_v6  ;;  %v8456_v38 = vld [vmem:[%s9238_s13 + $0x94] ss:$8 sps:$4 sm:$0xff]  }
 0xf24   : > { %7983 = vmatprep.subr.bf16.mxu1 %v8988_v6 }
 0xf36   : > { %v3851_v39 = vpop.xlane.xlu0 %3850 }
 0xf37   : > { %8731 = vrcp.f32 %v3851_v39  ;;  %v8459_v39 = vld [vmem:[%s9238_s13 + $0xa4] ss:$8 sps:$4 sm:$0xff]  }
 0xf3a   : > { %v3963_v40 = vpop.xlane.xlu0 %3962 }
 0xf3b   : > { %8733 = vrcp.f32 %v3963_v40  ;;  %v8457_v40 = vld [vmem:[%s9238_s13 + $0xa0] ss:$8 sps:$4 sm:$0xff]  }
 0xf3e   : > { %v4077_v25 = vpop.xlane.xlu0 %4076  ;;  %v4189_v20 = vpop.xlane.xlu1 %4188 }
 0xf3f   : > { %8735 = vrcp.f32 %v4077_v25 }
 0xf40   : > { %8737 = vrcp.f32 %v4189_v20 }
 0xf41   : > { %v8732_v42 = vpop.eup %8731 }
 0xf42   : > { %v3853_v22 = vmul.f32 %v8732_v42, %v8718_v3  ;;  %v3969_v43 = vpop.permute.xlu0 %3968  ;;  %v8462_v42 = vld [vmem:[%s9238_s13 + $0xb4] ss:$8 sps:$4 sm:$0xff]  }
 0xf43   : > { %v3974_v50 = vsel %vm1489_vm2, %v3969_v43, 0 }
 0xf44   : > { %v3854_v44 = vpack.c.bf16 %v3853_v22, %v3853_v22 }
 0xf45   : > { %v8734_v45 = vpop.eup %8733 }
 0xf46   : > { %7974 = vmatmul.mubr.msk.bf16.vlgmr.msra.gmra.mrb[56].mxu1 %vm1472_vm3, %v3854_v44  ;;  %v3965_v63 = vmul.f32 %v8734_v45, %v9905_v1  ;;  %v4195_v46 = vpop.permute.xlu0 %4194  ;;  %v8432_v1 = vld [vmem:[%s9238_s13 + $0x14] ss:$8 sps:$4 sm:$0xff]   ;;  %v8460_v45 = vld [vmem:[%s9238_s13 + $0xb0] ss:$8 sps:$4 sm:$0xff]  }
 0xf47   : > { %7984 = vmatpush3.bf16.msra.mxu1 %v3974_v50  ;;  %7985 = vmatprep.mubr.msk.bf16.mxu1 %vm8989_vm0, %v8988_v6  ;;  %v4200_v30 = vsel %vm1489_vm2, %v4195_v46, 0  ;;  %v8465_v50 = vld [vmem:[%s9238_s13 + $0xc4] ss:$8 sps:$4 sm:$0xff]   ;;  %v8468_v46 = vld [vmem:[%s9238_s13 + $0xd4] ss:$8 sps:$4 sm:$0xff]  }
 0xf48   : > { %7995 = vmatprep.subr.bf16.mxu1 %v8988_v6  ;;  %v3966_v47 = vpack.c.bf16 %v3965_v63, %v3965_v63  ;;  %v8463_v63 = vld [vmem:[%s9238_s13 + $0xc0] ss:$8 sps:$4 sm:$0xff]  }
 0xf49   : > { %v8736_v48 = vpop.eup %8735 }
 0xf4a   : > { %v4079_v51 = vmul.f32 %v8736_v48, %v9907_v7  ;;  %v8738_v54 = vpop.eup %8737  ;;  %v8430_v7 = vld [vmem:[%s9238_s13 + $0x10] ss:$8 sps:$4 sm:$0xff]  }
 0xf4b   : > { %v4191_v58 = vmul.f32 %v8738_v54, %v9911_v11  ;;  %v8435_v11 = vld [vmem:[%s9238_s13 + $0x24] ss:$8 sps:$4 sm:$0xff]   ;;  %v8469_v54 = vld [vmem:[%s9238_s13 + $0xe0] ss:$8 sps:$4 sm:$0xff]  }
 0xf4c   : > { %v4080_v52 = vpack.c.bf16 %v4079_v51, %v4079_v51  ;;  %v8466_v51 = vld [vmem:[%s9238_s13 + $0xd0] ss:$8 sps:$4 sm:$0xff]  }
 0xf4d   : > { %v4192_v29 = vpack.c.bf16 %v4191_v58, %v4191_v58 }
 0xf4e   : > { %7986 = vmatmul.mubr.msk.bf16.vlgmr.msra.gmra.mrb[60].mxu1 %vm1472_vm3, %v3966_v47 }
 0xf4f   : > { %7996 = vmatpush3.bf16.msra.mxu1 %v4086_v49  ;;  %7997 = vmatprep.mubr.msk.bf16.mxu1 %vm8989_vm0, %v8988_v6 }
 0xf50   : > { %8007 = vmatprep.subr.bf16.mxu1 %v8988_v6 }
 0xf56   : > { %7998 = vmatmul.mubr.msk.bf16.vlgmr.msra.gmra.mrb[64].mxu1 %vm1472_vm3, %v4080_v52 }
 0xf57   : > { %8008 = vmatpush3.bf16.msra.mxu1 %v4200_v30  ;;  %8009 = vmatprep.mubr.msk.bf16.mxu1 %vm8989_vm0, %v8988_v6  ;;  %v8427_v6 = vld [vmem:[%s9238_s13] ss:$8 sps:$4 sm:$0xff]   ;;  %v8471_v30 = vld [vmem:[%s9238_s13 + $0xe4] ss:$8 sps:$4 sm:$0xff]  }
 0xf58   : > { %4446 = vmatpush1.bf16.msra.mxu0 %v8427_v6 }
 0xf59   : > { %4447 = vmatprep.subr.bf16.mxu0 %v8432_v1 }
 0xf5c   : > { %4448 = vmatpush1.bf16.msra.mxu0 %v8430_v7 }
 0xf5d   : > { %4449 = vmatprep.subr.bf16.mxu0 %v8435_v11 }
 0xf5e   : > { %8010 = vmatmul.mubr.msk.bf16.vlgmr.msra.gmra.mrb[68].mxu1 %vm1472_vm3, %v4192_v29  ;;  %v8474_v29 = vld [vmem:[%s9238_s13 + $0xf4] ss:$8 sps:$4 sm:$0xff]  }
 0xf60   : > { %4450 = vmatpush1.bf16.msra.mxu0 %v8433_v9  ;;  %v4536_v9 = vld [vmem:[%s9273_s27] sm:$0xff] }
 0xf61   : > { %4451 = vmatprep.subr.bf16.mxu0 %v8438_v14  ;;  %v4540_v14 = vld [vmem:[%s9273_s27 + $0x20] sm:$0xff] }
 0xf64   : > { %4452 = vmatpush1.bf16.msra.mxu0 %v8436_v17  ;;  %v4537_v17 = vld [vmem:[%s9273_s27 + $0x8] sm:$0xff] }
 0xf65   : > { %4453 = vmatprep.subr.bf16.mxu0 %v8441_v19  ;;  %v7428_v19 = vcombine.high %v4536_v9, %v4540_v14 }
 0xf67   : > { %5304 = vmatprep.subr.bf16.mxu1 %v7428_v19 }
 0xf68   : > { %4454 = vmatpush1.bf16.msra.mxu0 %v8439_v28 }
 0xf69   : > { %4455 = vmatprep.subr.bf16.mxu0 %v8444_v15 }
 0xf6a   : > { %v3440_v59 = vpop.f32.mrb[40].mxu1 }
 0xf6b   : > { %3446 = vst.msk [vmem:[#allocation3] sm:$0xff] %vm1425_vm1, %v3440_v59  ;;  %v7927_v60 = vpop.f32.mrb[41].mxu1 }
 0xf6c   : > { %v3443_v61 = vpop.f32.mrb[42].mxu1  ;;  %4456 = vmatpush1.bf16.msra.mxu0 %v8442_v41 }
 0xf6d   : > { %v7928_v62 = vpop.f32.mrb[43].mxu1  ;;  %4457 = vmatprep.subr.bf16.mxu0 %v8447_v27  ;;  %v8472_v61 = vld [vmem:[%s9238_s13 + $0xf0] ss:$8 sps:$4 sm:$0xff]   ;;  %v4545_v27 = vld [vmem:[%s9273_s27 + $0x48] sm:$0xff] }
 0xf70   : > { %4458 = vmatpush1.bf16.msra.mxu0 %v8445_v8  ;;  %v4549_v8 = vld [vmem:[%s9273_s27 + $0x68] sm:$0xff] }
 0xf71   : > { %4459 = vmatprep.subr.bf16.mxu0 %v8450_v33  ;;  %v4552_v33 = vld [vmem:[%s9273_s27 + $0x80] sm:$0xff] }
 0xf74   : > { %4460 = vmatpush1.bf16.msra.mxu0 %v8448_v16  ;;  %v7438_v16 = vcombine.high %v4545_v27, %v4549_v8 }
 0xf75   : > { %4461 = vmatprep.subr.bf16.mxu0 %v8453_v35  ;;  %v4556_v35 = vld [vmem:[%s9273_s27 + $0xa0] sm:$0xff] }
 0xf78   : > { %4462 = vmatpush1.bf16.msra.mxu0 %v8451_v36  ;;  %v4553_v36 = vld [vmem:[%s9273_s27 + $0x88] sm:$0xff] }
 0xf79   : > { %4463 = vmatprep.subr.bf16.mxu0 %v8456_v38 }
 0xf7c   : > { %4464 = vmatpush1.bf16.msra.mxu0 %v8454_v37  ;;  %v4557_v37 = vld [vmem:[%s9273_s27 + $0xa8] sm:$0xff] }
 0xf7d   : > { %4465 = vmatprep.subr.bf16.mxu0 %v8459_v39  ;;  %v7437_v39 = vcombine.low %v4545_v27, %v4549_v8 }
 0xf80   : > { %4466 = vmatpush1.bf16.msra.mxu0 %v8457_v40  ;;  %v7444_v40 = vcombine.high %v4552_v33, %v4556_v35 }
 0xf81   : > { %4467 = vmatprep.subr.bf16.mxu0 %v8462_v42  ;;  %v4560_v42 = vld [vmem:[%s9273_s27 + $0xc0] sm:$0xff] }
 0xf84   : > { %4468 = vmatpush1.bf16.msra.mxu0 %v8460_v45  ;;  %v7443_v45 = vcombine.low %v4552_v33, %v4556_v35  ;;  %v4608_v33 = vld [vmem:[%s9273_s27 + $0x240] sm:$0xff]  ;;  %v4609_v35 = vld [vmem:[%s9273_s27 + $0x248] sm:$0xff] }
 0xf85   : > { %4469 = vmatprep.subr.bf16.mxu0 %v8465_v50  ;;  %v7445_v50 = vcombine.low %v4553_v36, %v4557_v37 }
 0xf88   : > { %4470 = vmatpush1.bf16.msra.mxu0 %v8463_v63 }
 0xf89   : > { %4471 = vmatprep.subr.bf16.mxu0 %v8468_v46 }
 0xf8c   : > { %4472 = vmatpush1.bf16.msra.mxu0 %v8466_v51  ;;  %v4573_v51 = vld [vmem:[%s9273_s27 + $0x128] sm:$0xff] }
 0xf8d   : > { %4473 = vmatprep.subr.bf16.mxu0 %v8471_v30 }
 0xf90   : > { %4474 = vmatpush1.bf16.msra.mxu0 %v8469_v54 }
 0xf91   : > { %4475 = vmatprep.subr.bf16.mxu0 %v8474_v29  ;;  %v4580_v29 = vld [vmem:[%s9273_s27 + $0x160] sm:$0xff] }
 0xf94   : > { %4476 = vmatpush1.bf16.msra.mxu0 %v8472_v61 }
 0xfe5   : > { %v9961_v0 = vpop.f32.mrb[44].mxu1 }
 0xfe6   : > { %v7939_v2 = vpop.f32.mrb[45].mxu1 }
 0xfe7   : > { %v3557_v55 = vpop.f32.mrb[46].mxu1 }
 0xfe8   : > { %v7940_v3 = vpop.f32.mrb[47].mxu1 }
 0xfed   : > { %v3666_v10 = vpop.f32.mrb[48].mxu1 }
 0xfee   : > { %3672 = vst.msk [vmem:[#allocation3 + $0x8] sm:$0xff] %vm1425_vm1, %v3666_v10  ;;  %v7951_v5 = vpop.f32.mrb[49].mxu1 }
 0xfef   : > { %v3669_v12 = vpop.f32.mrb[50].mxu1 }
 0xff0   : > { %v7952_v13 = vpop.f32.mrb[51].mxu1 }
 0xff5   : > { %v3780_v4 = vpop.f32.mrb[52].mxu1 }
 0xff6   : > { %3787 = vrot.lane.b32.xlu0 %v3780_v4, %s8990_s16  ;;  %v7963_v21 = vpop.f32.mrb[53].mxu1  ;;  %v7427_v4 = vcombine.low %v4536_v9, %v4540_v14  ;;  %v4597_v9 = vld [vmem:[%s9273_s27 + $0x1e8] sm:$0xff] }
 0xff7   : > { %v3783_v34 = vpop.f32.mrb[54].mxu1  ;;  %v4541_v21 = vld [vmem:[%s9273_s27 + $0x28] sm:$0xff] }
 0xff8   : > { %v7964_v24 = vpop.f32.mrb[55].mxu1  ;;  %v4544_v34 = vld [vmem:[%s9273_s27 + $0x40] sm:$0xff]  ;;  %v7429_v28 = vcombine.low %v4537_v17, %v4541_v21  ;;  %v7430_v15 = vcombine.high %v4537_v17, %v4541_v21  ;;  %5305 = vmatpush1.bf16.msra.mxu1 %v7427_v4 }
 0xff9   : > { %v4548_v24 = vld [vmem:[%s9273_s27 + $0x60] sm:$0xff] }
 0xffa   : > { %v7436_v41 = vcombine.high %v4544_v34, %v4548_v24  ;;  %5347 = vmatprep.subr.bf16.mxu0 %v7430_v15  ;;  %v7435_v38 = vcombine.low %v4544_v34, %v4548_v24  ;;  %v4600_v21 = vld [vmem:[%s9273_s27 + $0x200] sm:$0xff]  ;;  %v4601_v24 = vld [vmem:[%s9273_s27 + $0x208] sm:$0xff] }
 0xffb   : > { %v4604_v34 = vld [vmem:[%s9273_s27 + $0x220] sm:$0xff] }
 0xffc   : > { %5306 = vmatprep.subr.bf16.mxu1 %v7436_v41  ;;  %v7492_v27 = vcombine.high %v4600_v21, %v4604_v34 }
 0xffd   : > { %5307 = vmatpush1.bf16.msra.mxu1 %v7435_v38 }
 0xffe   : > { %5308 = vmatprep.subr.bf16.mxu1 %v7444_v40 }
0x1001   : > { %5309 = vmatpush1.bf16.msra.mxu1 %v7443_v45 }
0x1019   : > { %v3896_v25 = vpop.f32.mrb[56].mxu1 }
0x101a   : > { %3902 = vst.msk [vmem:[#allocation3 + $0x10] sm:$0xff] %vm1425_vm1, %v3896_v25  ;;  %v7975_v22 = vpop.f32.mrb[57].mxu1  ;;  %v7446_v25 = vcombine.high %v4553_v36, %v4557_v37  ;;  %v4613_v36 = vld [vmem:[%s9273_s27 + $0x268] sm:$0xff]  ;;  %v7491_v37 = vcombine.low %v4600_v21, %v4604_v34  ;;  %v4648_v21 = vld [vmem:[%s9273_s27 + $0x380] sm:$0xff] }
0x101b   : > { %v3899_v43 = vpop.f32.mrb[58].mxu1  ;;  %v4564_v22 = vld [vmem:[%s9273_s27 + $0xe0] sm:$0xff]  ;;  %v7502_v40 = vcombine.high %v4609_v35, %v4613_v36  ;;  %v7501_v45 = vcombine.low %v4609_v35, %v4613_v36  ;;  %v4657_v36 = vld [vmem:[%s9273_s27 + $0x3c8] sm:$0xff] }
0x101c   : > { %v7976_v44 = vpop.f32.mrb[59].mxu1  ;;  %v4561_v43 = vld [vmem:[%s9273_s27 + $0xc8] sm:$0xff]  ;;  %v7452_v63 = vcombine.high %v4560_v42, %v4564_v22  ;;  %v7451_v46 = vcombine.low %v4560_v42, %v4564_v22  ;;  %v4620_v42 = vld [vmem:[%s9273_s27 + $0x2a0] sm:$0xff] }
0x101d   : > { %v4565_v44 = vld [vmem:[%s9273_s27 + $0xe8] sm:$0xff]  ;;  %v4660_v35 = vld [vmem:[%s9273_s27 + $0x3e0] sm:$0xff] }
0x101e   : > { %5310 = vmatprep.subr.bf16.mxu1 %v7452_v63  ;;  %v4617_v22 = vld [vmem:[%s9273_s27 + $0x288] sm:$0xff] }
0x101f   : > { %5311 = vmatpush1.bf16.msra.mxu1 %v7451_v46 }
0x1021   : > { %v4010_v20 = vpop.f32.mrb[60].mxu1 }
0x1022   : > { %4017 = vrot.lane.b32.xlu1 %v4010_v20, %s8990_s16  ;;  %v7987_v47 = vpop.f32.mrb[61].mxu1  ;;  %v7454_v20 = vcombine.high %v4561_v43, %v4565_v44 }
0x1023   : > { %v4013_v48 = vpop.f32.mrb[62].mxu1  ;;  %v4568_v47 = vld [vmem:[%s9273_s27 + $0x100] sm:$0xff] }
0x1024   : > { %v7988_v49 = vpop.f32.mrb[63].mxu1  ;;  %v4572_v48 = vld [vmem:[%s9273_s27 + $0x120] sm:$0xff] }
0x1025   : > { %v4569_v49 = vld [vmem:[%s9273_s27 + $0x108] sm:$0xff]  ;;  %v7460_v54 = vcombine.high %v4568_v47, %v4572_v48  ;;  %v7459_v61 = vcombine.low %v4568_v47, %v4572_v48 }
0x1026   : > { %v7462_v30 = vcombine.high %v4569_v49, %v4573_v51 }
0x1027   : > { %5312 = vmatprep.subr.bf16.mxu1 %v7460_v54 }
0x1028   : > { %5313 = vmatpush1.bf16.msra.mxu1 %v7459_v61  ;;  %v4624_v61 = vld [vmem:[%s9273_s27 + $0x2c0] sm:$0xff] }
0x1029   : > { %v4122_v52 = vpop.f32.mrb[64].mxu1 }
0x102a   : > { %4128 = vst.msk [vmem:[#allocation3 + $0x18] sm:$0xff] %vm1425_vm1, %v4122_v52  ;;  %v7999_v58 = vpop.f32.mrb[65].mxu1  ;;  %v7453_v52 = vcombine.low %v4561_v43, %v4565_v44  ;;  %v4621_v43 = vld [vmem:[%s9273_s27 + $0x2a8] sm:$0xff] }
0x102b   : > { %v4125_v59 = vpop.f32.mrb[66].mxu1  ;;  %v4576_v58 = vld [vmem:[%s9273_s27 + $0x140] sm:$0xff]  ;;  %v7510_v63 = vcombine.high %v4617_v22, %v4621_v43  ;;  %v7509_v47 = vcombine.low %v4617_v22, %v4621_v43  ;;  %v4538_v43 = vld [vmem:[%s9273_s27 + $0x10] sm:$0xff] }
0x102c   : > { %v8000_v60 = vpop.f32.mrb[67].mxu1  ;;  %v4577_v59 = vld [vmem:[%s9273_s27 + $0x148] sm:$0xff] }
0x102d   : > { %v4581_v60 = vld [vmem:[%s9273_s27 + $0x168] sm:$0xff] }
0x1031   : > { %v4236_v62 = vpop.f32.mrb[68].mxu1 }
0x1032   : > { %4243 = vrot.lane.b32.xlu0 %v4236_v62, %s8990_s16  ;;  %v8011_v2 = vpop.f32.mrb[69].mxu1  ;;  %v7461_v62 = vcombine.low %v4569_v49, %v4573_v51 }
0x1033   : > { %v4239_v55 = vpop.f32.mrb[70].mxu1  ;;  %v7468_v2 = vcombine.high %v4576_v58, %v4580_v29 }
0x1034   : > { %v8012_v3 = vpop.f32.mrb[71].mxu1  ;;  %v7470_v55 = vcombine.high %v4577_v59, %v4581_v60 }
0x1035   : > { %v4584_v3 = vld [vmem:[%s9273_s27 + $0x180] sm:$0xff]  ;;  %5314 = vmatprep.subr.bf16.mxu1 %v7468_v2 }
0x1036   : > { %3561 = vrot.lane.b32.xlu0 %v9961_v0, %s8990_s16  ;;  %s10425_s16 = sld [smem:[#allocation20_spill]] (!%p7683_p10) }
0x103c   : > { %s10426_s1 = smov (!%p7683_p10), %s10425_s16 }
0x1068   : > { %v3788_v6 = vpop.permute.xlu0 %3787 }
0x1069   : > { %3790 = vst.msk [vmem:[#allocation3 + $0x8] sm:$0xff] %vm1651_vm4, %v3788_v6  ;;  %v4588_v6 = vld [vmem:[%s9273_s27 + $0x1a0] sm:$0xff] }
0x106a   : > { %v7475_v14 = vcombine.low %v4584_v3, %v4588_v6 }
0x1070   : > { %v4248_v10 = vld [vmem:[#allocation3 + $0x8] sm:$0xff] }
0x1094   : > { %v4018_v32 = vpop.permute.xlu1 %4017 }
0x1095   : > { %4020 = vst.msk [vmem:[#allocation3 + $0x10] sm:$0xff] %vm1651_vm4, %v4018_v32  ;;  %v4585_v32 = vld [vmem:[%s9273_s27 + $0x188] sm:$0xff] }
0x109c   : > { %v4249_v12 = vld [vmem:[#allocation3 + $0x10] sm:$0xff] }
0x10a4   : > { %v4244_v1 = vpop.permute.xlu0 %4243 }
0x10a5   : > { %4246 = vst.msk [vmem:[#allocation3 + $0x18] sm:$0xff] %vm1651_vm4, %v4244_v1  ;;  %v4589_v1 = vld [vmem:[%s9273_s27 + $0x1a8] sm:$0xff] }
0x10a6   : > { %v7477_v17 = vcombine.low %v4585_v32, %v4589_v1 }
0x10a8   : > { %v3562_v7 = vpop.permute.xlu0 %3561 }
0x10a9   : > { %3564 = vst.msk [vmem:[#allocation3] sm:$0xff] %vm1651_vm4, %v3562_v7  ;;  %v7467_v7 = vcombine.low %v4576_v58, %v4580_v29 }
0x10ab   : > { %5315 = vmatpush1.bf16.msra.mxu1 %v7467_v7  ;;  %v4636_v7 = vld [vmem:[%s9273_s27 + $0x320] sm:$0xff] }
0x10ac   : > { %v4250_v0 = vld [vmem:[#allocation3 + $0x18] sm:$0xff] }
0x10ad   : > { %v4252_v11 = vpack.c.bf16 %v4250_v0, %v4248_v10  ;;  %v7469_v10 = vcombine.low %v4577_v59, %v4581_v60  ;;  %v7476_v0 = vcombine.high %v4584_v3, %v4588_v6 }
0x10af   : > { %4477 = vmatprep.mubr.bf16.mxu0 %v4252_v11  ;;  %v7478_v11 = vcombine.high %v4585_v32, %v4589_v1  ;;  %5316 = vmatprep.subr.bf16.mxu1 %v7476_v0  ;;  %v4632_v1 = vld [vmem:[%s9273_s27 + $0x300] sm:$0xff] }
0x10b0   : > { %v4247_v5 = vld [vmem:[#allocation3] sm:$0xff]  ;;  %5317 = vmatpush1.bf16.msra.mxu1 %v7475_v14  ;;  %v7523_v0 = vcombine.low %v4632_v1, %v4636_v7 }
0x10b1   : > { %v4251_v13 = vpack.c.bf16 %v4249_v12, %v4247_v5  ;;  %v4592_v5 = vld [vmem:[%s9273_s27 + $0x1c0] sm:$0xff] }
0x10b2   : > { %v4596_v12 = vld [vmem:[%s9273_s27 + $0x1e0] sm:$0xff] }
0x10b3   : > { %4478 = vmatmul.mubr.bf16.vlgmr.msra.gmra.mrb[84].mxu0 %v4251_v13  ;;  %v4593_v13 = vld [vmem:[%s9273_s27 + $0x1c8] sm:$0xff]  ;;  %v7484_v4 = vcombine.high %v4592_v5, %v4596_v12  ;;  %v7483_v15 = vcombine.low %v4592_v5, %v4596_v12  ;;  %v4640_v12 = vld [vmem:[%s9273_s27 + $0x340] sm:$0xff] }
0x10b4   : > { %5348 = vmatpush1.bf16.msra.mxu0 %v7429_v28  ;;  %v7486_v19 = vcombine.high %v4593_v13, %v4597_v9  ;;  %v4605_v28 = vld [vmem:[%s9273_s27 + $0x228] sm:$0xff]  ;;  %v7485_v41 = vcombine.low %v4593_v13, %v4597_v9  ;;  %v4644_v13 = vld [vmem:[%s9273_s27 + $0x360] sm:$0xff] }
0x10b5   : > { %5349 = vmatprep.subr.bf16.mxu0 %v7438_v16  ;;  %5318 = vmatprep.subr.bf16.mxu1 %v7484_v4  ;;  %v7494_v8 = vcombine.high %v4601_v24, %v4605_v28  ;;  %v4612_v16 = vld [vmem:[%s9273_s27 + $0x260] sm:$0xff]  ;;  %v7493_v38 = vcombine.low %v4601_v24, %v4605_v28  ;;  %v4637_v5 = vld [vmem:[%s9273_s27 + $0x328] sm:$0xff] }
0x10b6   : > { %5319 = vmatpush1.bf16.msra.mxu1 %v7483_v15  ;;  %v7499_v44 = vcombine.low %v4608_v33, %v4612_v16  ;;  %v4641_v4 = vld [vmem:[%s9273_s27 + $0x348] sm:$0xff]  ;;  %v4652_v24 = vld [vmem:[%s9273_s27 + $0x3a0] sm:$0xff] }
0x10b7   : > { %5320 = vmatprep.subr.bf16.mxu1 %v7492_v27  ;;  %v4649_v28 = vld [vmem:[%s9273_s27 + $0x388] sm:$0xff] }
0x10b8   : > { %5350 = vmatpush1.bf16.msra.mxu0 %v7437_v39  ;;  %v7500_v39 = vcombine.high %v4608_v33, %v4612_v16  ;;  %v4653_v15 = vld [vmem:[%s9273_s27 + $0x3a8] sm:$0xff]  ;;  %v4656_v16 = vld [vmem:[%s9273_s27 + $0x3c0] sm:$0xff] }
0x10b9   : > { %5351 = vmatprep.subr.bf16.mxu0 %v7446_v25  ;;  %v4616_v25 = vld [vmem:[%s9273_s27 + $0x280] sm:$0xff]  ;;  %v7542_v33 = vcombine.high %v4649_v28, %v4653_v15 }
0x10ba   : > { %5321 = vmatpush1.bf16.msra.mxu1 %v7491_v37  ;;  %v4661_v37 = vld [vmem:[%s9273_s27 + $0x3e8] sm:$0xff] }
0x10bb   : > { %5322 = vmatprep.subr.bf16.mxu1 %v7500_v39  ;;  %v7541_v39 = vcombine.low %v4649_v28, %v4653_v15  ;;  %v7549_v22 = vcombine.low %v4657_v36, %v4661_v37  ;;  %v4559_v28 = vld [vmem:[%s9273_s27 + $0xb8] sm:$0xff] }
0x10bc   : > { %5352 = vmatpush1.bf16.msra.mxu0 %v7445_v50  ;;  %v7508_v50 = vcombine.high %v4616_v25, %v4620_v42 }
0x10bd   : > { %5353 = vmatprep.subr.bf16.mxu0 %v7454_v20  ;;  %v7507_v20 = vcombine.low %v4616_v25, %v4620_v42  ;;  %v7550_v25 = vcombine.high %v4657_v36, %v4661_v37  ;;  %v7547_v42 = vcombine.low %v4656_v16, %v4660_v35  ;;  %v4567_v36 = vld [vmem:[%s9273_s27 + $0xf8] sm:$0xff] }
0x10be   : > { %5323 = vmatpush1.bf16.msra.mxu1 %v7499_v44  ;;  %v4542_v44 = vld [vmem:[%s9273_s27 + $0x30] sm:$0xff] }
0x10bf   : > { %5324 = vmatprep.subr.bf16.mxu1 %v7508_v50  ;;  %v7431_v50 = vcombine.low %v4538_v43, %v4542_v44 }
0x10c0   : > { %5354 = vmatpush1.bf16.msra.mxu0 %v7453_v52 }
0x10c1   : > { %5355 = vmatprep.subr.bf16.mxu0 %v7462_v30 }
0x10c2   : > { %5325 = vmatpush1.bf16.msra.mxu1 %v7507_v20  ;;  %v4543_v20 = vld [vmem:[%s9273_s27 + $0x38] sm:$0xff] }
0x10c4   : > { %5356 = vmatpush1.bf16.msra.mxu0 %v7461_v62  ;;  %v4628_v62 = vld [vmem:[%s9273_s27 + $0x2e0] sm:$0xff] }
0x10c5   : > { %5357 = vmatprep.subr.bf16.mxu0 %v7470_v55  ;;  %v7516_v2 = vcombine.high %v4624_v61, %v4628_v62  ;;  %v4629_v55 = vld [vmem:[%s9273_s27 + $0x2e8] sm:$0xff]  ;;  %v7515_v3 = vcombine.low %v4624_v61, %v4628_v62 }
0x10c7   : > { %5326 = vmatprep.subr.bf16.mxu1 %v7516_v2 }
0x10c8   : > { %5358 = vmatpush1.bf16.msra.mxu0 %v7469_v10  ;;  %5327 = vmatpush1.bf16.msra.mxu1 %v7515_v3  ;;  %v4633_v10 = vld [vmem:[%s9273_s27 + $0x308] sm:$0xff] }
0x10c9   : > { %5359 = vmatprep.subr.bf16.mxu0 %v7478_v11  ;;  %v7524_v11 = vcombine.high %v4632_v1, %v4636_v7  ;;  %v7525_v9 = vcombine.low %v4633_v10, %v4637_v5  ;;  %v7526_v14 = vcombine.high %v4633_v10, %v4637_v5  ;;  %v4546_v5 = vld [vmem:[%s9273_s27 + $0x50] sm:$0xff] }
0x10cb   : > { %5328 = vmatprep.subr.bf16.mxu1 %v7524_v11 }
0x10cc   : > { %5360 = vmatpush1.bf16.msra.mxu0 %v7477_v17  ;;  %v7532_v17 = vcombine.high %v4640_v12, %v4644_v13  ;;  %5329 = vmatpush1.bf16.msra.mxu1 %v7523_v0 }
0x10cd   : > { %5361 = vmatprep.subr.bf16.mxu0 %v7486_v19  ;;  %v4645_v19 = vld [vmem:[%s9273_s27 + $0x368] sm:$0xff] }
0x10ce   : > { %v7534_v34 = vcombine.high %v4641_v4, %v4645_v19  ;;  %5330 = vmatprep.subr.bf16.mxu1 %v7532_v17  ;;  %v7533_v27 = vcombine.low %v4641_v4, %v4645_v19  ;;  %v4554_v4 = vld [vmem:[%s9273_s27 + $0x90] sm:$0xff] }
0x10d0   : > { %5362 = vmatpush1.bf16.msra.mxu0 %v7485_v41  ;;  %v7531_v41 = vcombine.low %v4640_v12, %v4644_v13  ;;  %v4550_v12 = vld [vmem:[%s9273_s27 + $0x70] sm:$0xff]  ;;  %v4547_v13 = vld [vmem:[%s9273_s27 + $0x58] sm:$0xff] }
0x10d1   : > { %5363 = vmatprep.subr.bf16.mxu0 %v7494_v8  ;;  %v7540_v8 = vcombine.high %v4648_v21, %v4652_v24  ;;  %v7440_v19 = vcombine.high %v4546_v5, %v4550_v12  ;;  %v7439_v15 = vcombine.low %v4546_v5, %v4550_v12  ;;  %v4603_v5 = vld [vmem:[%s9273_s27 + $0x218] sm:$0xff] }
0x10d2   : > { %5331 = vmatpush1.bf16.msra.mxu1 %v7531_v41  ;;  %v4607_v12 = vld [vmem:[%s9273_s27 + $0x238] sm:$0xff] }
0x10d3   : > { %5332 = vmatprep.subr.bf16.mxu1 %v7540_v8 }
0x10d4   : > { %5364 = vmatpush1.bf16.msra.mxu0 %v7493_v38  ;;  %v7539_v38 = vcombine.low %v4648_v21, %v4652_v24  ;;  %v4555_v24 = vld [vmem:[%s9273_s27 + $0x98] sm:$0xff] }
0x10d5   : > { %5365 = vmatprep.subr.bf16.mxu0 %v7502_v40  ;;  %v7548_v40 = vcombine.high %v4656_v16, %v4660_v35  ;;  %v7450_v8 = vcombine.high %v4555_v24, %v4559_v28  ;;  %v4566_v16 = vld [vmem:[%s9273_s27 + $0xf0] sm:$0xff]  ;;  %v4563_v35 = vld [vmem:[%s9273_s27 + $0xd8] sm:$0xff] }
0x10d6   : > { %5333 = vmatpush1.bf16.msra.mxu1 %v7539_v38  ;;  %v7449_v38 = vcombine.low %v4555_v24, %v4559_v28  ;;  %v4615_v24 = vld [vmem:[%s9273_s27 + $0x278] sm:$0xff] }
0x10d7   : > { %5334 = vmatprep.subr.bf16.mxu1 %v7548_v40  ;;  %v7458_v40 = vcombine.high %v4563_v35, %v4567_v36 }
0x10d8   : > { %5366 = vmatpush1.bf16.msra.mxu0 %v7501_v45  ;;  %v4539_v45 = vld [vmem:[%s9273_s27 + $0x18] sm:$0xff] }
0x10d9   : > { %5367 = vmatprep.subr.bf16.mxu0 %v7510_v63  ;;  %v7432_v63 = vcombine.high %v4538_v43, %v4542_v44  ;;  %v4575_v43 = vld [vmem:[%s9273_s27 + $0x138] sm:$0xff] }
0x10da   : > { %5335 = vmatpush1.bf16.msra.mxu1 %v7547_v42  ;;  %v4574_v42 = vld [vmem:[%s9273_s27 + $0x130] sm:$0xff] }
0x10db   : > { %5390 = vmatprep.subr.bf16.mxu1 %v7432_v63 }
0x10dc   : > { %5368 = vmatpush1.bf16.msra.mxu0 %v7509_v47  ;;  %v7433_v47 = vcombine.low %v4539_v45, %v4543_v20 }
0x1186   : > { %v4479_v48 = vpop.f32.mrb[84].mxu0 }
0x1187   : > { %v10052_v49 = vadd.f32 %v4479_v48, %v9695_v18  ;;  %v4481_v51 = vpop.f32.mrb[85].mxu0  ;;  %v7434_v48 = vcombine.high %v4539_v45, %v4543_v20  ;;  %v7457_v45 = vcombine.low %v4563_v35, %v4567_v36  ;;  %v4578_v20 = vld [vmem:[%s9273_s27 + $0x150] sm:$0xff]  ;;  %v4623_v35 = vld [vmem:[%s9273_s27 + $0x2b8] sm:$0xff] }
0x1188   : > { %v10055_v46 = vadd.f32 %v4481_v51, %v9697_v23  ;;  %v4483_v52 = vpop.f32.mrb[86].mxu0 }
0x1189   : > { %v10058_v54 = vadd.f32 %v4483_v52, %v9699_v26  ;;  %v4485_v30 = vpop.f32.mrb[87].mxu0  ;;  %v4492_v58 = vmul.f32 %v10052_v49, %v10052_v49 }
0x118a   : > { %v10063_v29 = vadd.f32 %v4485_v30, %v9703_v31  ;;  %v4493_v18 = vmul.f32 %v10055_v46, %v10055_v46  ;;  %v4625_v31 = vld [vmem:[%s9273_s27 + $0x2c8] sm:$0xff] }
0x118b   : > { %v4494_v59 = vmul.f32 %v10058_v54, %v10058_v54  ;;  %v7517_v6 = vcombine.low %v4625_v31, %v4629_v55  ;;  %v7518_v32 = vcombine.high %v4625_v31, %v4629_v55 }
0x118c   : > { %v4496_v23 = vadd.f32 %v4493_v18, %v4492_v58  ;;  %v4495_v60 = vmul.f32 %v10063_v29, %v10063_v29 }
0x118d   : > { %5369 = vmatprep.subr.bf16.mxu0 %v7518_v32 }
0x118e   : > { %4497 = vadd.xlane.f32.xlu0 %v4496_v23  ;;  %v4499_v26 = vadd.f32 %v4495_v60, %v4494_v59  ;;  %5370 = vmatpush1.bf16.msra.mxu0 %v7517_v6  ;;  %v4514_v23 = vsub.s32 2, %v9343_v53  ;;  %v4518_v60 = vsub.s32 6, %v9343_v53 }
0x118f   : > { %5371 = vmatprep.subr.bf16.mxu0 %v7526_v14 }
0x1190   : > { %4500 = vadd.xlane.f32.xlu1 %v4499_v26  ;;  %v8748_v26 = vld [vmem:[%s9253_s26] sm:$0x77]  ;;  %s10424_s26 = sld [smem:[#allocation18_spill]] (!%p7683_p10) }
0x1191   : > { %v4519_v61 = vrot.slane %v8748_v26, %v4518_v60  ;;  %v4515_v62 = vrot.slane %v8748_v26, %v4514_v23  ;;  %v4587_v60 = vld [vmem:[%s9273_s27 + $0x198] sm:$0xff] }
0x1192   : > { %5372 = vmatpush1.bf16.msra.mxu0 %v7525_v9  ;;  %v4551_v9 = vld [vmem:[%s9273_s27 + $0x78] sm:$0xff] }
0x1193   : > { %5373 = vmatprep.subr.bf16.mxu0 %v7534_v34  ;;  %v4529_v55 = vrot.slane %v4519_v61, %v4514_v23  ;;  %v4525_v6 = vrot.slane %v4515_v62, %v4514_v23  ;;  %v7442_v21 = vcombine.high %v4547_v13, %v4551_v9  ;;  %v4558_v34 = vld [vmem:[%s9273_s27 + $0xb0] sm:$0xff]  ;;  %v7441_v41 = vcombine.low %v4547_v13, %v4551_v9  ;;  %v4591_v26 = vld [vmem:[%s9273_s27 + $0x1b8] sm:$0xff] }
0x1194   : > { %v7447_v37 = vcombine.low %v4554_v4, %v4558_v34  ;;  %v4590_v23 = vld [vmem:[%s9273_s27 + $0x1b0] sm:$0xff] }
0x1196   : > { %5374 = vmatpush1.bf16.msra.mxu0 %v7533_v27  ;;  %v7448_v27 = vcombine.high %v4554_v4, %v4558_v34  ;;  %v7498_v4 = vcombine.high %v4603_v5, %v4607_v12  ;;  %v4611_v34 = vld [vmem:[%s9273_s27 + $0x258] sm:$0xff] }
0x1197   : > { %5375 = vmatprep.subr.bf16.mxu0 %v7542_v33  ;;  %v4562_v33 = vld [vmem:[%s9273_s27 + $0xd0] sm:$0xff] }
0x1198   : > { %v7455_v44 = vcombine.low %v4562_v33, %v4566_v16 }
0x119a   : > { %5376 = vmatpush1.bf16.msra.mxu0 %v7541_v39  ;;  %v7456_v39 = vcombine.high %v4562_v33, %v4566_v16  ;;  %v4622_v33 = vld [vmem:[%s9273_s27 + $0x2b0] sm:$0xff]  ;;  %v4619_v16 = vld [vmem:[%s9273_s27 + $0x298] sm:$0xff] }
0x119b   : > { %5377 = vmatprep.subr.bf16.mxu0 %v7550_v25  ;;  %v4570_v25 = vld [vmem:[%s9273_s27 + $0x110] sm:$0xff] }
0x119e   : > { %5378 = vmatpush1.bf16.msra.mxu0 %v7549_v22  ;;  %v4571_v22 = vld [vmem:[%s9273_s27 + $0x118] sm:$0xff] }
0x119f   : > { %5433 = vmatprep.subr.bf16.mxu0 %v7434_v48  ;;  %v7466_v63 = vcombine.high %v4571_v22, %v4575_v43  ;;  %v4579_v48 = vld [vmem:[%s9273_s27 + $0x158] sm:$0xff] }
0x121b   : > { %v4498_v51 = vpop.xlane.xlu0 %4497 }
0x121c   : > { %v4502_v52 = vmul.f32 0.00390625, %v4498_v51  ;;  %v4583_v51 = vld [vmem:[%s9273_s27 + $0x178] sm:$0xff] }
0x121d   : > { %v4501_v30 = vpop.xlane.xlu1 %4500  ;;  %v7473_v62 = vcombine.low %v4579_v48, %v4583_v51 }
0x121e   : > { %v4504_v58 = vadd.f32 1e-06, %v4502_v52  ;;  %v4503_v18 = vmul.f32 0.00390625, %v4501_v30  ;;  %v7463_v52 = vcombine.low %v4570_v25, %v4574_v42  ;;  %v7465_v30 = vcombine.low %v4571_v22, %v4575_v43  ;;  %v4631_v22 = vld [vmem:[%s9273_s27 + $0x2f8] sm:$0xff] }
0x1220   : > { %8739 = vrsqrt.f32 %v4504_v58  ;;  %v4505_v59 = vadd.f32 1e-06, %v4503_v18  ;;  %v7474_v18 = vcombine.high %v4579_v48, %v4583_v51  ;;  %v4639_v48 = vld [vmem:[%s9273_s27 + $0x338] sm:$0xff] }
0x1222   : > { %8741 = vrsqrt.f32 %v4505_v59  ;;  %v4586_v59 = vld [vmem:[%s9273_s27 + $0x190] sm:$0xff] }
0x122a   : > { %v8740_v31 = vpop.eup %8739 }
0x122b   : > { %v4509_v2 = vmul.f32 %v8740_v31, %v10055_v46  ;;  %v4508_v3 = vmul.f32 %v8740_v31, %v10052_v49  ;;  %v7480_v31 = vcombine.high %v4586_v59, %v4590_v23 }
0x122c   : > { %v8742_v32 = vpop.eup %8741 }
0x122d   : > { %v4511_v1 = vmul.f32 %v8742_v32, %v10063_v29  ;;  %v4510_v53 = vmul.f32 %v8742_v32, %v10058_v54  ;;  %v4531_v7 = vmul.f32 %v4529_v55, %v4509_v2  ;;  %v4530_v0 = vmul.f32 %v4525_v6, %v4508_v3  ;;  %v4598_v3 = vld [vmem:[%s9273_s27 + $0x1f0] sm:$0xff]  ;;  %v4599_v32 = vld [vmem:[%s9273_s27 + $0x1f8] sm:$0xff] }
0x122e   : > { %v7482_v2 = vcombine.high %v4587_v60, %v4591_v26 }
0x122f   : > { %v4533_v10 = vmul.f32 %v4529_v55, %v4511_v1  ;;  %v4532_v11 = vmul.f32 %v4525_v6, %v4510_v53  ;;  %v4594_v55 = vld [vmem:[%s9273_s27 + $0x1d0] sm:$0xff]  ;;  %v4595_v6 = vld [vmem:[%s9273_s27 + $0x1d8] sm:$0xff]  ;;  %v7479_v1 = vcombine.low %v4586_v59, %v4590_v23  ;;  %v7481_v53 = vcombine.low %v4587_v60, %v4591_v26 }
0x1230   : > { %v7487_v13 = vcombine.low %v4594_v55, %v4598_v3  ;;  %v7489_v9 = vcombine.low %v4595_v6, %v4599_v32  ;;  %v4646_v59 = vld [vmem:[%s9273_s27 + $0x370] sm:$0xff]  ;;  %v4643_v23 = vld [vmem:[%s9273_s27 + $0x358] sm:$0xff] }
0x1231   : > { %v4535_v14 = vpack.c.bf16 %v4533_v10, %v4531_v7  ;;  %v10106_v17 = vpack.c.bf16 %v4532_v11, %v4530_v0  ;;  %v7488_v7 = vcombine.high %v4594_v55, %v4598_v3  ;;  %v7490_v10 = vcombine.high %v4595_v6, %v4599_v32  ;;  %v4602_v0 = vld [vmem:[%s9273_s27 + $0x210] sm:$0xff]  ;;  %v4647_v60 = vld [vmem:[%s9273_s27 + $0x378] sm:$0xff] }
0x1232   : > { %v4606_v11 = vld [vmem:[%s9273_s27 + $0x230] sm:$0xff]  ;;  %v4651_v3 = vld [vmem:[%s9273_s27 + $0x398] sm:$0xff] }
0x1233   : > { %5336 = vmatprep.mubr.bf16.mxu1 %v4535_v14  ;;  %5379 = vmatprep.mubr.bf16.mxu0 %v4535_v14  ;;  %v7495_v28 = vcombine.low %v4602_v0, %v4606_v11  ;;  %v4654_v55 = vld [vmem:[%s9273_s27 + $0x3b0] sm:$0xff]  ;;  %v4655_v6 = vld [vmem:[%s9273_s27 + $0x3b8] sm:$0xff] }
0x1234   : > { %5337 = vmatmul.mubr.bf16.vlgmr.msra.gmra.mrb[72].mxu1 %v10106_v17  ;;  %5380 = vmatmul.mubr.bf16.vlgmr.msra.gmra.mrb[88].mxu0 %v10106_v17 }
0x1235   : > { %5391 = vmatpush1.bf16.msra.mxu1 %v7431_v50  ;;  %5434 = vmatpush1.bf16.msra.mxu0 %v7433_v47  ;;  %v7464_v50 = vcombine.high %v4570_v25, %v4574_v42  ;;  %v4582_v47 = vld [vmem:[%s9273_s27 + $0x170] sm:$0xff]  ;;  %v4627_v42 = vld [vmem:[%s9273_s27 + $0x2d8] sm:$0xff] }
0x1236   : > { %5422 = vmatprep.mubr.bf16.mxu1 %v4535_v14  ;;  %5465 = vmatprep.mubr.bf16.mxu0 %v4535_v14  ;;  %v7472_v58 = vcombine.high %v4578_v20, %v4582_v47  ;;  %v7471_v61 = vcombine.low %v4578_v20, %v4582_v47  ;;  %v7496_v14 = vcombine.high %v4602_v0, %v4606_v11  ;;  %v4630_v25 = vld [vmem:[%s9273_s27 + $0x2f0] sm:$0xff]  ;;  %v4635_v47 = vld [vmem:[%s9273_s27 + $0x318] sm:$0xff] }
0x1237   : > { %5392 = vmatprep.subr.bf16.mxu1 %v7440_v19  ;;  %5435 = vmatprep.subr.bf16.mxu0 %v7442_v21  ;;  %v4610_v19 = vld [vmem:[%s9273_s27 + $0x250] sm:$0xff]  ;;  %v4659_v11 = vld [vmem:[%s9273_s27 + $0x3d8] sm:$0xff] }
0x1238   : > { %v4614_v21 = vld [vmem:[%s9273_s27 + $0x270] sm:$0xff] }
0x1239   : > { %5393 = vmatpush1.bf16.msra.mxu1 %v7439_v15  ;;  %5436 = vmatpush1.bf16.msra.mxu0 %v7441_v41  ;;  %v7497_v15 = vcombine.low %v4603_v5, %v4607_v12  ;;  %v7504_v41 = vcombine.high %v4610_v19, %v4614_v21  ;;  %v7503_v36 = vcombine.low %v4610_v19, %v4614_v21  ;;  %v4638_v20 = vld [vmem:[%s9273_s27 + $0x330] sm:$0xff]  ;;  %v4663_v5 = vld [vmem:[%s9273_s27 + $0x3f8] sm:$0xff]  ;;  %v8477_v21 = vld [vmem:[%s9278_s7 + $0x4] ss:$8 sps:$4 sm:$0xff]  }
0x123a   : > { %5394 = vmatprep.subr.bf16.mxu1 %v7448_v27  ;;  %5437 = vmatprep.subr.bf16.mxu0 %v7450_v8  ;;  %v7506_v27 = vcombine.high %v4611_v34, %v4615_v24  ;;  %v4618_v8 = vld [vmem:[%s9273_s27 + $0x290] sm:$0xff]  ;;  %v7553_v19 = vcombine.low %v4659_v11, %v4663_v5 }
0x123b   : > { %v7511_v43 = vcombine.low %v4618_v8, %v4622_v33  ;;  %v4662_v0 = vld [vmem:[%s9273_s27 + $0x3f0] sm:$0xff] }
0x123d   : > { %5395 = vmatpush1.bf16.msra.mxu1 %v7447_v37  ;;  %5438 = vmatpush1.bf16.msra.mxu0 %v7449_v38  ;;  %v7505_v37 = vcombine.low %v4611_v34, %v4615_v24  ;;  %v7512_v38 = vcombine.high %v4618_v8, %v4622_v33  ;;  %v8475_v34 = vld [vmem:[%s9278_s7] ss:$8 sps:$4 sm:$0xff]   ;;  %v8480_v24 = vld [vmem:[%s9278_s7 + $0x14] ss:$8 sps:$4 sm:$0xff]   ;;  %v8484_v8 = vld [vmem:[%s9278_s7 + $0x30] ss:$8 sps:$4 sm:$0xff]  }
0x123e   : > { %5396 = vmatprep.subr.bf16.mxu1 %v7456_v39  ;;  %5439 = vmatprep.subr.bf16.mxu0 %v7458_v40  ;;  %v7514_v39 = vcombine.high %v4619_v16, %v4623_v35  ;;  %v4626_v40 = vld [vmem:[%s9273_s27 + $0x2d0] sm:$0xff]  ;;  %v8489_v33 = vld [vmem:[%s9278_s7 + $0x44] ss:$8 sps:$4 sm:$0xff]  }
0x123f   : > { %v7519_v51 = vcombine.low %v4626_v40, %v4630_v25 }
0x1241   : > { %5397 = vmatpush1.bf16.msra.mxu1 %v7455_v44  ;;  %5440 = vmatpush1.bf16.msra.mxu0 %v7457_v45  ;;  %v7513_v44 = vcombine.low %v4619_v16, %v4623_v35  ;;  %v7520_v45 = vcombine.high %v4626_v40, %v4630_v25  ;;  %v8492_v16 = vld [vmem:[%s9278_s7 + $0x54] ss:$8 sps:$4 sm:$0xff]   ;;  %v8490_v35 = vld [vmem:[%s9278_s7 + $0x50] ss:$8 sps:$4 sm:$0xff]   ;;  %v8501_v40 = vld [vmem:[%s9278_s7 + $0x84] ss:$8 sps:$4 sm:$0xff]  }
0x1242   : > { %5398 = vmatprep.subr.bf16.mxu1 %v7464_v50  ;;  %5441 = vmatprep.subr.bf16.mxu0 %v7466_v63  ;;  %v7522_v50 = vcombine.high %v4627_v42, %v4631_v22  ;;  %v4634_v63 = vld [vmem:[%s9273_s27 + $0x310] sm:$0xff]  ;;  %v8499_v25 = vld [vmem:[%s9278_s7 + $0x80] ss:$8 sps:$4 sm:$0xff]  }
0x1243   : > { %v7527_v26 = vcombine.low %v4634_v63, %v4638_v20 }
0x1245   : > { %5399 = vmatpush1.bf16.msra.mxu1 %v7463_v52  ;;  %5442 = vmatpush1.bf16.msra.mxu0 %v7465_v30  ;;  %v7521_v52 = vcombine.low %v4627_v42, %v4631_v22  ;;  %v7528_v30 = vcombine.high %v4634_v63, %v4638_v20  ;;  %v8504_v42 = vld [vmem:[%s9278_s7 + $0x94] ss:$8 sps:$4 sm:$0xff]   ;;  %v8502_v22 = vld [vmem:[%s9278_s7 + $0x90] ss:$8 sps:$4 sm:$0xff]   ;;  %v8513_v63 = vld [vmem:[%s9278_s7 + $0xc4] ss:$8 sps:$4 sm:$0xff]  }
0x1246   : > { %5400 = vmatprep.subr.bf16.mxu1 %v7472_v58  ;;  %5443 = vmatprep.subr.bf16.mxu0 %v7474_v18  ;;  %v7530_v58 = vcombine.high %v4635_v47, %v4639_v48  ;;  %v4642_v18 = vld [vmem:[%s9273_s27 + $0x350] sm:$0xff]  ;;  %v8511_v20 = vld [vmem:[%s9278_s7 + $0xc0] ss:$8 sps:$4 sm:$0xff]  }
0x1247   : > { %v7535_v32 = vcombine.low %v4642_v18, %v4646_v59 }
0x1249   : > { %5401 = vmatpush1.bf16.msra.mxu1 %v7471_v61  ;;  %5444 = vmatpush1.bf16.msra.mxu0 %v7473_v62  ;;  %v7529_v61 = vcombine.low %v4635_v47, %v4639_v48  ;;  %v7536_v62 = vcombine.high %v4642_v18, %v4646_v59  ;;  %v8516_v47 = vld [vmem:[%s9278_s7 + $0xd4] ss:$8 sps:$4 sm:$0xff]   ;;  %v8514_v48 = vld [vmem:[%s9278_s7 + $0xd0] ss:$8 sps:$4 sm:$0xff]   ;;  %v8525_v18 = vld [vmem:[%s9278_s7 + $0x104] ss:$8 sps:$4 sm:$0xff]  }
0x124a   : > { %5402 = vmatprep.subr.bf16.mxu1 %v7480_v31  ;;  %5445 = vmatprep.subr.bf16.mxu0 %v7482_v2  ;;  %v7538_v31 = vcombine.high %v4643_v23, %v4647_v60  ;;  %v4650_v2 = vld [vmem:[%s9273_s27 + $0x390] sm:$0xff] }
0x124b   : > { %v7543_v12 = vcombine.low %v4650_v2, %v4654_v55 }
0x124d   : > { %5403 = vmatpush1.bf16.msra.mxu1 %v7479_v1  ;;  %5446 = vmatpush1.bf16.msra.mxu0 %v7481_v53  ;;  %v7537_v1 = vcombine.low %v4643_v23, %v4647_v60  ;;  %v7544_v53 = vcombine.high %v4650_v2, %v4654_v55 }
0x124e   : > { %5404 = vmatprep.subr.bf16.mxu1 %v7488_v7  ;;  %5447 = vmatprep.subr.bf16.mxu0 %v7490_v10  ;;  %v7546_v7 = vcombine.high %v4651_v3, %v4655_v6  ;;  %v4658_v10 = vld [vmem:[%s9273_s27 + $0x3d0] sm:$0xff] }
0x1251   : > { %5405 = vmatpush1.bf16.msra.mxu1 %v7487_v13  ;;  %5448 = vmatpush1.bf16.msra.mxu0 %v7489_v9  ;;  %v7545_v13 = vcombine.low %v4651_v3, %v4655_v6  ;;  %v7552_v9 = vcombine.high %v4658_v10, %v4662_v0 }
0x1252   : > { %5406 = vmatprep.subr.bf16.mxu1 %v7496_v14  ;;  %5449 = vmatprep.subr.bf16.mxu0 %v7498_v4  ;;  %v7554_v14 = vcombine.high %v4659_v11, %v4663_v5  ;;  %v7551_v4 = vcombine.low %v4658_v10, %v4662_v0 }
0x1255   : > { %5407 = vmatpush1.bf16.msra.mxu1 %v7495_v28  ;;  %5450 = vmatpush1.bf16.msra.mxu0 %v7497_v15  ;;  %v8478_v28 = vld [vmem:[%s9278_s7 + $0x10] ss:$8 sps:$4 sm:$0xff]   ;;  %v8483_v15 = vld [vmem:[%s9278_s7 + $0x24] ss:$8 sps:$4 sm:$0xff]  }
0x1256   : > { %5408 = vmatprep.subr.bf16.mxu1 %v7504_v41  ;;  %5451 = vmatprep.subr.bf16.mxu0 %v7506_v27  ;;  %v8481_v41 = vld [vmem:[%s9278_s7 + $0x20] ss:$8 sps:$4 sm:$0xff]   ;;  %v8486_v27 = vld [vmem:[%s9278_s7 + $0x34] ss:$8 sps:$4 sm:$0xff]  }
0x1259   : > { %5409 = vmatpush1.bf16.msra.mxu1 %v7503_v36  ;;  %5452 = vmatpush1.bf16.msra.mxu0 %v7505_v37  ;;  %v8495_v36 = vld [vmem:[%s9278_s7 + $0x64] ss:$8 sps:$4 sm:$0xff]   ;;  %v8493_v37 = vld [vmem:[%s9278_s7 + $0x60] ss:$8 sps:$4 sm:$0xff]  }
0x125a   : > { %5410 = vmatprep.subr.bf16.mxu1 %v7512_v38  ;;  %5453 = vmatprep.subr.bf16.mxu0 %v7514_v39  ;;  %v8498_v38 = vld [vmem:[%s9278_s7 + $0x74] ss:$8 sps:$4 sm:$0xff]   ;;  %v8496_v39 = vld [vmem:[%s9278_s7 + $0x70] ss:$8 sps:$4 sm:$0xff]  }
0x125d   : > { %5411 = vmatpush1.bf16.msra.mxu1 %v7511_v43  ;;  %5454 = vmatpush1.bf16.msra.mxu0 %v7513_v44  ;;  %v8507_v43 = vld [vmem:[%s9278_s7 + $0xa4] ss:$8 sps:$4 sm:$0xff]   ;;  %v8505_v44 = vld [vmem:[%s9278_s7 + $0xa0] ss:$8 sps:$4 sm:$0xff]  }
0x125e   : > { %5412 = vmatprep.subr.bf16.mxu1 %v7520_v45  ;;  %5455 = vmatprep.subr.bf16.mxu0 %v7522_v50  ;;  %v8510_v45 = vld [vmem:[%s9278_s7 + $0xb4] ss:$8 sps:$4 sm:$0xff]   ;;  %v8508_v50 = vld [vmem:[%s9278_s7 + $0xb0] ss:$8 sps:$4 sm:$0xff]  }
0x1261   : > { %5413 = vmatpush1.bf16.msra.mxu1 %v7519_v51  ;;  %5456 = vmatpush1.bf16.msra.mxu0 %v7521_v52  ;;  %v8519_v51 = vld [vmem:[%s9278_s7 + $0xe4] ss:$8 sps:$4 sm:$0xff]   ;;  %v8517_v52 = vld [vmem:[%s9278_s7 + $0xe0] ss:$8 sps:$4 sm:$0xff]  }
0x1262   : > { %5414 = vmatprep.subr.bf16.mxu1 %v7528_v30  ;;  %5457 = vmatprep.subr.bf16.mxu0 %v7530_v58  ;;  %v8522_v30 = vld [vmem:[%s9278_s7 + $0xf4] ss:$8 sps:$4 sm:$0xff]   ;;  %v8520_v58 = vld [vmem:[%s9278_s7 + $0xf0] ss:$8 sps:$4 sm:$0xff]  }
0x1265   : > { %5415 = vmatpush1.bf16.msra.mxu1 %v7527_v26  ;;  %5458 = vmatpush1.bf16.msra.mxu0 %v7529_v61 }
0x1266   : > { %5416 = vmatprep.subr.bf16.mxu1 %v7536_v62  ;;  %5459 = vmatprep.subr.bf16.mxu0 %v7538_v31 }
0x1269   : > { %5417 = vmatpush1.bf16.msra.mxu1 %v7535_v32  ;;  %5460 = vmatpush1.bf16.msra.mxu0 %v7537_v1 }
0x126a   : > { %5418 = vmatprep.subr.bf16.mxu1 %v7544_v53  ;;  %5461 = vmatprep.subr.bf16.mxu0 %v7546_v7 }
0x126d   : > { %5419 = vmatpush1.bf16.msra.mxu1 %v7543_v12  ;;  %5462 = vmatpush1.bf16.msra.mxu0 %v7545_v13  ;;  %v8523_v13 = vld [vmem:[%s9278_s7 + $0x100] ss:$8 sps:$4 sm:$0xff]  }
0x126e   : > { %5420 = vmatprep.subr.bf16.mxu1 %v7552_v9  ;;  %5463 = vmatprep.subr.bf16.mxu0 %v7554_v14  ;;  %v8528_v9 = vld [vmem:[%s9278_s7 + $0x114] ss:$8 sps:$4 sm:$0xff]   ;;  %v8526_v14 = vld [vmem:[%s9278_s7 + $0x110] ss:$8 sps:$4 sm:$0xff]  }
0x1271   : > { %5421 = vmatpush1.bf16.msra.mxu1 %v7551_v4  ;;  %5464 = vmatpush1.bf16.msra.mxu0 %v7553_v19  ;;  %v8531_v4 = vld [vmem:[%s9278_s7 + $0x124] ss:$8 sps:$4 sm:$0xff]   ;;  %v8529_v19 = vld [vmem:[%s9278_s7 + $0x120] ss:$8 sps:$4 sm:$0xff]  }
0x1272   : > { %6268 = vmatprep.subr.bf16.mxu1 %v8477_v21  ;;  %v8534_v21 = vld [vmem:[%s9278_s7 + $0x134] ss:$8 sps:$4 sm:$0xff]  }
0x1274   : > { %5423 = vmatmul.mubr.bf16.vlgmr.msra.gmra.mrb[76].mxu1 %v10106_v17  ;;  %5466 = vmatmul.mubr.bf16.vlgmr.msra.gmra.mrb[92].mxu0 %v10106_v17  ;;  %v8487_v17 = vld [vmem:[%s9278_s7 + $0x40] ss:$8 sps:$4 sm:$0xff]  }
0x1275   : > { %6269 = vmatpush1.bf16.msra.mxu1 %v8475_v34  ;;  %v8532_v34 = vld [vmem:[%s9278_s7 + $0x130] ss:$8 sps:$4 sm:$0xff]  }
0x1276   : > { %6270 = vmatprep.subr.bf16.mxu1 %v8480_v24  ;;  %v8537_v24 = vld [vmem:[%s9278_s7 + $0x144] ss:$8 sps:$4 sm:$0xff]  }
0x1279   : > { %6271 = vmatpush1.bf16.msra.mxu1 %v8478_v28  ;;  %v8535_v28 = vld [vmem:[%s9278_s7 + $0x140] ss:$8 sps:$4 sm:$0xff]  }
0x127a   : > { %6272 = vmatprep.subr.bf16.mxu1 %v8483_v15  ;;  %v8540_v15 = vld [vmem:[%s9278_s7 + $0x154] ss:$8 sps:$4 sm:$0xff]  }
0x127d   : > { %6273 = vmatpush1.bf16.msra.mxu1 %v8481_v41  ;;  %v8538_v41 = vld [vmem:[%s9278_s7 + $0x150] ss:$8 sps:$4 sm:$0xff]  }
0x127e   : > { %6274 = vmatprep.subr.bf16.mxu1 %v8486_v27  ;;  %v8543_v27 = vld [vmem:[%s9278_s7 + $0x164] ss:$8 sps:$4 sm:$0xff]  }
0x1281   : > { %6275 = vmatpush1.bf16.msra.mxu1 %v8484_v8  ;;  %v8541_v8 = vld [vmem:[%s9278_s7 + $0x160] ss:$8 sps:$4 sm:$0xff]  }
0x1282   : > { %6276 = vmatprep.subr.bf16.mxu1 %v8489_v33  ;;  %v8546_v33 = vld [vmem:[%s9278_s7 + $0x174] ss:$8 sps:$4 sm:$0xff]  }
0x1285   : > { %6277 = vmatpush1.bf16.msra.mxu1 %v8487_v17  ;;  %v8544_v17 = vld [vmem:[%s9278_s7 + $0x170] ss:$8 sps:$4 sm:$0xff]  }
0x1286   : > { %6278 = vmatprep.subr.bf16.mxu1 %v8492_v16  ;;  %v8549_v16 = vld [vmem:[%s9278_s7 + $0x184] ss:$8 sps:$4 sm:$0xff]  }
0x1289   : > { %6279 = vmatpush1.bf16.msra.mxu1 %v8490_v35  ;;  %v8547_v35 = vld [vmem:[%s9278_s7 + $0x180] ss:$8 sps:$4 sm:$0xff]  }
0x128a   : > { %6280 = vmatprep.subr.bf16.mxu1 %v8495_v36  ;;  %v8552_v36 = vld [vmem:[%s9278_s7 + $0x194] ss:$8 sps:$4 sm:$0xff]  }
0x128d   : > { %6281 = vmatpush1.bf16.msra.mxu1 %v8493_v37  ;;  %v8550_v37 = vld [vmem:[%s9278_s7 + $0x190] ss:$8 sps:$4 sm:$0xff]  }
0x128e   : > { %6282 = vmatprep.subr.bf16.mxu1 %v8498_v38  ;;  %v8555_v38 = vld [vmem:[%s9278_s7 + $0x1a4] ss:$8 sps:$4 sm:$0xff]  }
0x1291   : > { %6283 = vmatpush1.bf16.msra.mxu1 %v8496_v39  ;;  %v8553_v39 = vld [vmem:[%s9278_s7 + $0x1a0] ss:$8 sps:$4 sm:$0xff]  }
0x1292   : > { %6284 = vmatprep.subr.bf16.mxu1 %v8501_v40  ;;  %v8558_v40 = vld [vmem:[%s9278_s7 + $0x1b4] ss:$8 sps:$4 sm:$0xff]  }
0x1295   : > { %6285 = vmatpush1.bf16.msra.mxu1 %v8499_v25  ;;  %v8556_v25 = vld [vmem:[%s9278_s7 + $0x1b0] ss:$8 sps:$4 sm:$0xff]  }
0x1296   : > { %6286 = vmatprep.subr.bf16.mxu1 %v8504_v42  ;;  %v8561_v42 = vld [vmem:[%s9278_s7 + $0x1c4] ss:$8 sps:$4 sm:$0xff]  }
0x1299   : > { %6287 = vmatpush1.bf16.msra.mxu1 %v8502_v22  ;;  %v8559_v22 = vld [vmem:[%s9278_s7 + $0x1c0] ss:$8 sps:$4 sm:$0xff]  }
0x129a   : > { %6288 = vmatprep.subr.bf16.mxu1 %v8507_v43  ;;  %v8564_v43 = vld [vmem:[%s9278_s7 + $0x1d4] ss:$8 sps:$4 sm:$0xff]  }
0x129d   : > { %6289 = vmatpush1.bf16.msra.mxu1 %v8505_v44  ;;  %v8562_v44 = vld [vmem:[%s9278_s7 + $0x1d0] ss:$8 sps:$4 sm:$0xff]  }
0x129e   : > { %6290 = vmatprep.subr.bf16.mxu1 %v8510_v45  ;;  %v8567_v45 = vld [vmem:[%s9278_s7 + $0x1e4] ss:$8 sps:$4 sm:$0xff]  }
0x12a1   : > { %6291 = vmatpush1.bf16.msra.mxu1 %v8508_v50  ;;  %v8565_v50 = vld [vmem:[%s9278_s7 + $0x1e0] ss:$8 sps:$4 sm:$0xff]  }
0x12a2   : > { %6292 = vmatprep.subr.bf16.mxu1 %v8513_v63  ;;  %v8570_v63 = vld [vmem:[%s9278_s7 + $0x1f4] ss:$8 sps:$4 sm:$0xff]  }
0x12a5   : > { %6293 = vmatpush1.bf16.msra.mxu1 %v8511_v20 }
0x12a6   : > { %6294 = vmatprep.subr.bf16.mxu1 %v8516_v47 }
0x12a9   : > { %6295 = vmatpush1.bf16.msra.mxu1 %v8514_v48 }
0x12aa   : > { %6296 = vmatprep.subr.bf16.mxu1 %v8519_v51 }
0x12ad   : > { %6297 = vmatpush1.bf16.msra.mxu1 %v8517_v52 }
0x12ae   : > { %6298 = vmatprep.subr.bf16.mxu1 %v8522_v30 }
0x12b1   : > { %6299 = vmatpush1.bf16.msra.mxu1 %v8520_v58  ;;  %v8568_v58 = vld [vmem:[%s9278_s7 + $0x1f0] ss:$8 sps:$4 sm:$0xff]  }
0x12b2   : > { %6311 = vmatprep.subr.bf16.mxu1 %v8525_v18  ;;  %v8573_v18 = vld [vmem:[%s9278_s7 + $0x204] ss:$8 sps:$4 sm:$0xff]  }
0x1307   : > { %v5338_v59 = vpop.f32.mrb[72].mxu1  ;;  %v5381_v23 = vpop.f32.mrb[88].mxu0 }
0x1308   : > { %v5340_v60 = vpop.f32.mrb[73].mxu1  ;;  %v5383_v26 = vpop.f32.mrb[89].mxu0  ;;  %v5476_v31 = vmax.f32 %v5338_v59, 0.0  ;;  %v5478_v2 = vmax.f32 %v5381_v23, 0.0 }
0x1309   : > { %v5342_v61 = vpop.f32.mrb[74].mxu1  ;;  %v5385_v62 = vpop.f32.mrb[90].mxu0  ;;  %v5477_v1 = vmax.f32 %v5340_v60, 0.0  ;;  %v5479_v53 = vmax.f32 %v5383_v26, 0.0 }
0x130a   : > { %v5484_v55 = vmax.f32 %v5342_v61, 0.0  ;;  %v5486_v3 = vmax.f32 %v5385_v62, 0.0  ;;  %v5344_v6 = vpop.f32.mrb[75].mxu1  ;;  %v5387_v32 = vpop.f32.mrb[91].mxu0 }
0x130b   : > { %v5485_v7 = vmax.f32 %v5344_v6, 0.0  ;;  %v5487_v10 = vmax.f32 %v5387_v32, 0.0 }
0x130c   : > { %v5492_v0 = vpack.c.bf16 %v5484_v55, %v5476_v31  ;;  %v10201_v11 = vpack.c.bf16 %v5486_v3, %v5478_v2 }
0x130d   : > { %v5493_v5 = vpack.c.bf16 %v5485_v7, %v5477_v1  ;;  %v5495_v12 = vpack.c.bf16 %v5487_v10, %v5479_v53  ;;  %v8571_v7 = vld [vmem:[%s9278_s7 + $0x200] ss:$8 sps:$4 sm:$0xff]   ;;  %v8576_v10 = vld [vmem:[%s9278_s7 + $0x214] ss:$8 sps:$4 sm:$0xff]  }
0x130f   : > { %6300 = vmatprep.mubr.bf16.mxu1 %v5493_v5  ;;  %v8579_v5 = vld [vmem:[%s9278_s7 + $0x224] ss:$8 sps:$4 sm:$0xff]  }
0x1310   : > { %6301 = vmatmul.mubr.bf16.vlgmr.msra.gmra.mrb[80].mxu1 %v5492_v0  ;;  %v8574_v0 = vld [vmem:[%s9278_s7 + $0x210] ss:$8 sps:$4 sm:$0xff]  }
0x1311   : > { %6312 = vmatpush1.bf16.msra.mxu1 %v8523_v13  ;;  %6343 = vmatprep.mubr.bf16.mxu1 %v5495_v12  ;;  %v8577_v12 = vld [vmem:[%s9278_s7 + $0x220] ss:$8 sps:$4 sm:$0xff]   ;;  %v8582_v13 = vld [vmem:[%s9278_s7 + $0x234] ss:$8 sps:$4 sm:$0xff]  }
0x1312   : > { %6313 = vmatprep.subr.bf16.mxu1 %v8528_v9  ;;  %v8580_v9 = vld [vmem:[%s9278_s7 + $0x230] ss:$8 sps:$4 sm:$0xff]  }
0x1315   : > { %6314 = vmatpush1.bf16.msra.mxu1 %v8526_v14  ;;  %v8585_v14 = vld [vmem:[%s9278_s7 + $0x244] ss:$8 sps:$4 sm:$0xff]  }
0x1316   : > { %6315 = vmatprep.subr.bf16.mxu1 %v8531_v4  ;;  %v8588_v4 = vld [vmem:[%s9278_s7 + $0x254] ss:$8 sps:$4 sm:$0xff]  }
0x1319   : > { %6316 = vmatpush1.bf16.msra.mxu1 %v8529_v19  ;;  %v8586_v19 = vld [vmem:[%s9278_s7 + $0x250] ss:$8 sps:$4 sm:$0xff]  }
0x131a   : > { %6317 = vmatprep.subr.bf16.mxu1 %v8534_v21  ;;  %v8591_v21 = vld [vmem:[%s9278_s7 + $0x264] ss:$8 sps:$4 sm:$0xff]  }
0x131d   : > { %6318 = vmatpush1.bf16.msra.mxu1 %v8532_v34  ;;  %v8589_v34 = vld [vmem:[%s9278_s7 + $0x260] ss:$8 sps:$4 sm:$0xff]  }
0x131e   : > { %6319 = vmatprep.subr.bf16.mxu1 %v8537_v24  ;;  %v8594_v24 = vld [vmem:[%s9278_s7 + $0x274] ss:$8 sps:$4 sm:$0xff]  }
0x1321   : > { %6320 = vmatpush1.bf16.msra.mxu1 %v8535_v28  ;;  %v8592_v28 = vld [vmem:[%s9278_s7 + $0x270] ss:$8 sps:$4 sm:$0xff]  }
0x1322   : > { %6321 = vmatprep.subr.bf16.mxu1 %v8540_v15  ;;  %v8597_v15 = vld [vmem:[%s9278_s7 + $0x284] ss:$8 sps:$4 sm:$0xff]  }
0x1325   : > { %6322 = vmatpush1.bf16.msra.mxu1 %v8538_v41  ;;  %v8595_v41 = vld [vmem:[%s9278_s7 + $0x280] ss:$8 sps:$4 sm:$0xff]  }
0x1326   : > { %6323 = vmatprep.subr.bf16.mxu1 %v8543_v27  ;;  %v8600_v27 = vld [vmem:[%s9278_s7 + $0x294] ss:$8 sps:$4 sm:$0xff]  }
0x1329   : > { %6324 = vmatpush1.bf16.msra.mxu1 %v8541_v8  ;;  %v8598_v8 = vld [vmem:[%s9278_s7 + $0x290] ss:$8 sps:$4 sm:$0xff]  }
0x132a   : > { %6325 = vmatprep.subr.bf16.mxu1 %v8546_v33  ;;  %v8603_v33 = vld [vmem:[%s9278_s7 + $0x2a4] ss:$8 sps:$4 sm:$0xff]  }
0x132d   : > { %6326 = vmatpush1.bf16.msra.mxu1 %v8544_v17  ;;  %v8601_v17 = vld [vmem:[%s9278_s7 + $0x2a0] ss:$8 sps:$4 sm:$0xff]  }
0x132e   : > { %6327 = vmatprep.subr.bf16.mxu1 %v8549_v16  ;;  %v8606_v16 = vld [vmem:[%s9278_s7 + $0x2b4] ss:$8 sps:$4 sm:$0xff]  }
0x1331   : > { %6328 = vmatpush1.bf16.msra.mxu1 %v8547_v35  ;;  %v8604_v35 = vld [vmem:[%s9278_s7 + $0x2b0] ss:$8 sps:$4 sm:$0xff]  }
0x1332   : > { %6329 = vmatprep.subr.bf16.mxu1 %v8552_v36  ;;  %v8609_v36 = vld [vmem:[%s9278_s7 + $0x2c4] ss:$8 sps:$4 sm:$0xff]  }
0x1335   : > { %6330 = vmatpush1.bf16.msra.mxu1 %v8550_v37  ;;  %v8607_v37 = vld [vmem:[%s9278_s7 + $0x2c0] ss:$8 sps:$4 sm:$0xff]  }
0x1336   : > { %6331 = vmatprep.subr.bf16.mxu1 %v8555_v38  ;;  %v8612_v38 = vld [vmem:[%s9278_s7 + $0x2d4] ss:$8 sps:$4 sm:$0xff]  }
0x1339   : > { %6332 = vmatpush1.bf16.msra.mxu1 %v8553_v39  ;;  %v8610_v39 = vld [vmem:[%s9278_s7 + $0x2d0] ss:$8 sps:$4 sm:$0xff]  }
0x133a   : > { %6333 = vmatprep.subr.bf16.mxu1 %v8558_v40  ;;  %v8615_v40 = vld [vmem:[%s9278_s7 + $0x2e4] ss:$8 sps:$4 sm:$0xff]  }
0x133d   : > { %6334 = vmatpush1.bf16.msra.mxu1 %v8556_v25  ;;  %v8613_v25 = vld [vmem:[%s9278_s7 + $0x2e0] ss:$8 sps:$4 sm:$0xff]  }
0x133e   : > { %6335 = vmatprep.subr.bf16.mxu1 %v8561_v42  ;;  %v8618_v42 = vld [vmem:[%s9278_s7 + $0x2f4] ss:$8 sps:$4 sm:$0xff]  }
0x1341   : > { %6336 = vmatpush1.bf16.msra.mxu1 %v8559_v22  ;;  %v8616_v22 = vld [vmem:[%s9278_s7 + $0x2f0] ss:$8 sps:$4 sm:$0xff]  }
0x1342   : > { %6337 = vmatprep.subr.bf16.mxu1 %v8564_v43  ;;  %v8621_v43 = vld [vmem:[%s9278_s7 + $0x304] ss:$8 sps:$4 sm:$0xff]  }
0x1345   : > { %6338 = vmatpush1.bf16.msra.mxu1 %v8562_v44  ;;  %v8619_v44 = vld [vmem:[%s9278_s7 + $0x300] ss:$8 sps:$4 sm:$0xff]  }
0x1346   : > { %6339 = vmatprep.subr.bf16.mxu1 %v8567_v45  ;;  %v8624_v45 = vld [vmem:[%s9278_s7 + $0x314] ss:$8 sps:$4 sm:$0xff]  }
0x1347   : > { %v5424_v20 = vpop.f32.mrb[76].mxu1  ;;  %v5467_v47 = vpop.f32.mrb[92].mxu0 }
0x1348   : > { %v5426_v48 = vpop.f32.mrb[77].mxu1  ;;  %v5469_v51 = vpop.f32.mrb[93].mxu0  ;;  %v5480_v59 = vmax.f32 %v5424_v20, 0.0  ;;  %v5482_v23 = vmax.f32 %v5467_v47, 0.0  ;;  %v8625_v20 = vld [vmem:[%s9278_s7 + $0x320] ss:$8 sps:$4 sm:$0xff]  }
0x1349   : > { %v5428_v52 = vpop.f32.mrb[78].mxu1  ;;  %v5471_v30 = vpop.f32.mrb[94].mxu0  ;;  %6340 = vmatpush1.bf16.msra.mxu1 %v8565_v50  ;;  %v5481_v31 = vmax.f32 %v5426_v48, 0.0  ;;  %v5483_v2 = vmax.f32 %v5469_v51, 0.0  ;;  %v8622_v50 = vld [vmem:[%s9278_s7 + $0x310] ss:$8 sps:$4 sm:$0xff]  }
0x134a   : > { %v5488_v60 = vmax.f32 %v5428_v52, 0.0  ;;  %v5490_v26 = vmax.f32 %v5471_v30, 0.0  ;;  %v5430_v61 = vpop.f32.mrb[79].mxu1  ;;  %v5473_v62 = vpop.f32.mrb[95].mxu0  ;;  %6341 = vmatprep.subr.bf16.mxu1 %v8570_v63  ;;  %v8627_v63 = vld [vmem:[%s9278_s7 + $0x324] ss:$8 sps:$4 sm:$0xff]  }
0x134b   : > { %v5489_v55 = vmax.f32 %v5430_v61, 0.0  ;;  %v5491_v3 = vmax.f32 %v5473_v62, 0.0  ;;  %v8630_v47 = vld [vmem:[%s9278_s7 + $0x334] ss:$8 sps:$4 sm:$0xff]   ;;  %v8628_v48 = vld [vmem:[%s9278_s7 + $0x330] ss:$8 sps:$4 sm:$0xff]  }
0x134c   : > { %v10235_v6 = vpack.c.bf16 %v5488_v60, %v5480_v59  ;;  %v10237_v32 = vpack.c.bf16 %v5490_v26, %v5482_v23  ;;  %v8633_v51 = vld [vmem:[%s9278_s7 + $0x344] ss:$8 sps:$4 sm:$0xff]   ;;  %v8631_v52 = vld [vmem:[%s9278_s7 + $0x340] ss:$8 sps:$4 sm:$0xff]   ;;  %v8636_v30 = vld [vmem:[%s9278_s7 + $0x354] ss:$8 sps:$4 sm:$0xff]  }
0x134d   : > { %v5497_v1 = vpack.c.bf16 %v5489_v55, %v5481_v31  ;;  %v10239_v53 = vpack.c.bf16 %v5491_v3, %v5483_v2  ;;  %6342 = vmatpush1.bf16.msra.mxu1 %v8568_v58  ;;  %v8634_v58 = vld [vmem:[%s9278_s7 + $0x350] ss:$8 sps:$4 sm:$0xff]   ;;  %v8637_v59 = vld [vmem:[%s9278_s7 + $0x360] ss:$8 sps:$4 sm:$0xff]   ;;  %v8642_v23 = vld [vmem:[%s9278_s7 + $0x374] ss:$8 sps:$4 sm:$0xff]  }
0x134e   : > { %6354 = vmatprep.subr.bf16.mxu1 %v8573_v18  ;;  %v8639_v18 = vld [vmem:[%s9278_s7 + $0x364] ss:$8 sps:$4 sm:$0xff]   ;;  %v8640_v60 = vld [vmem:[%s9278_s7 + $0x370] ss:$8 sps:$4 sm:$0xff]   ;;  %v8643_v61 = vld [vmem:[%s9278_s7 + $0x380] ss:$8 sps:$4 sm:$0xff]  }
0x134f   : > { %v8645_v26 = vld [vmem:[%s9278_s7 + $0x384] ss:$8 sps:$4 sm:$0xff]   ;;  %v8648_v62 = vld [vmem:[%s9278_s7 + $0x394] ss:$8 sps:$4 sm:$0xff]   ;;  %v8646_v31 = vld [vmem:[%s9278_s7 + $0x390] ss:$8 sps:$4 sm:$0xff]  }
0x1350   : > { %6344 = vmatmul.mubr.bf16.vlgmr.msra.gmra.mrb[80].mxu1 %v10201_v11  ;;  %v8583_v11 = vld [vmem:[%s9278_s7 + $0x240] ss:$8 sps:$4 sm:$0xff]   ;;  %v8651_v2 = vld [vmem:[%s9278_s7 + $0x3a4] ss:$8 sps:$4 sm:$0xff]   ;;  %v8654_v3 = vld [vmem:[%s9278_s7 + $0x3b4] ss:$8 sps:$4 sm:$0xff]  }
0x1351   : > { %6355 = vmatpush1.bf16.msra.mxu1 %v8571_v7  ;;  %6386 = vmatprep.mubr.bf16.mxu1 %v5497_v1  ;;  %v8649_v55 = vld [vmem:[%s9278_s7 + $0x3a0] ss:$8 sps:$4 sm:$0xff]   ;;  %v8657_v1 = vld [vmem:[%s9278_s7 + $0x3c4] ss:$8 sps:$4 sm:$0xff]   ;;  %v8660_v7 = vld [vmem:[%s9278_s7 + $0x3d4] ss:$8 sps:$4 sm:$0xff]  }
0x1352   : > { %6356 = vmatprep.subr.bf16.mxu1 %v8576_v10  ;;  %v8658_v10 = vld [vmem:[%s9278_s7 + $0x3d0] ss:$8 sps:$4 sm:$0xff]  }
0x1355   : > { %6357 = vmatpush1.bf16.msra.mxu1 %v8574_v0  ;;  %v8663_v0 = vld [vmem:[%s9278_s7 + $0x3e4] ss:$8 sps:$4 sm:$0xff]  }
0x1356   : > { %6358 = vmatprep.subr.bf16.mxu1 %v8579_v5  ;;  %v8661_v5 = vld [vmem:[%s9278_s7 + $0x3e0] ss:$8 sps:$4 sm:$0xff]  }
0x1359   : > { %6359 = vmatpush1.bf16.msra.mxu1 %v8577_v12  ;;  %v8666_v12 = vld [vmem:[%s9278_s7 + $0x3f4] ss:$8 sps:$4 sm:$0xff]  }
0x135a   : > { %6360 = vmatprep.subr.bf16.mxu1 %v8582_v13  ;;  %v8664_v13 = vld [vmem:[%s9278_s7 + $0x3f0] ss:$8 sps:$4 sm:$0xff]  }
0x135d   : > { %6361 = vmatpush1.bf16.msra.mxu1 %v8580_v9 }
0x135e   : > { %6362 = vmatprep.subr.bf16.mxu1 %v8585_v14 }
0x1361   : > { %6363 = vmatpush1.bf16.msra.mxu1 %v8583_v11 }
0x1362   : > { %6364 = vmatprep.subr.bf16.mxu1 %v8588_v4 }
0x1365   : > { %6365 = vmatpush1.bf16.msra.mxu1 %v8586_v19 }
0x1366   : > { %6366 = vmatprep.subr.bf16.mxu1 %v8591_v21 }
0x1369   : > { %6367 = vmatpush1.bf16.msra.mxu1 %v8589_v34 }
0x136a   : > { %6368 = vmatprep.subr.bf16.mxu1 %v8594_v24 }
0x136d   : > { %6369 = vmatpush1.bf16.msra.mxu1 %v8592_v28  ;;  %v8751_v28 = vld [vmem:[#allocation8 + $0xc] ss:$16 sps:$4 sm:$0xff] (!%p7683_p10)  }
0x136e   : > { %6370 = vmatprep.subr.bf16.mxu1 %v8597_v15 }
0x1371   : > { %6371 = vmatpush1.bf16.msra.mxu1 %v8595_v41  ;;  %v8753_v41 = vld [vmem:[#allocation8] ss:$16 sps:$4 sm:$0xff] (!%p7683_p10)  }
0x1372   : > { %6372 = vmatprep.subr.bf16.mxu1 %v8600_v27  ;;  %v8754_v27 = vld [vmem:[#allocation8 + $0x8] ss:$16 sps:$4 sm:$0xff] (!%p7683_p10)  }
0x1375   : > { %6373 = vmatpush1.bf16.msra.mxu1 %v8598_v8  ;;  %v8755_v8 = vld [vmem:[#allocation8 + $0x24] ss:$16 sps:$4 sm:$0xff] (!%p7683_p10)  }
0x1376   : > { %6374 = vmatprep.subr.bf16.mxu1 %v8603_v33 }
0x1379   : > { %6375 = vmatpush1.bf16.msra.mxu1 %v8601_v17  ;;  %v8757_v17 = vld [vmem:[#allocation8 + $0x2c] ss:$16 sps:$4 sm:$0xff] (!%p7683_p10)  }
0x137a   : > { %6376 = vmatprep.subr.bf16.mxu1 %v8606_v16  ;;  %v8759_v16 = vld [vmem:[#allocation8 + $0x20] ss:$16 sps:$4 sm:$0xff] (!%p7683_p10)  }
0x137d   : > { %6377 = vmatpush1.bf16.msra.mxu1 %v8604_v35  ;;  %v8760_v35 = vld [vmem:[#allocation8 + $0x28] ss:$16 sps:$4 sm:$0xff] (!%p7683_p10)  }
0x137e   : > { %6378 = vmatprep.subr.bf16.mxu1 %v8609_v36  ;;  %v8761_v36 = vld [vmem:[#allocation8 + $0x44] ss:$16 sps:$4 sm:$0xff] (!%p7683_p10)  }
0x1381   : > { %6379 = vmatpush1.bf16.msra.mxu1 %v8607_v37  ;;  %v8763_v37 = vld [vmem:[#allocation8 + $0x4c] ss:$16 sps:$4 sm:$0xff] (!%p7683_p10)  }
0x1382   : > { %6380 = vmatprep.subr.bf16.mxu1 %v8612_v38  ;;  %v8765_v38 = vld [vmem:[#allocation8 + $0x40] ss:$16 sps:$4 sm:$0xff] (!%p7683_p10)  }
0x1385   : > { %6381 = vmatpush1.bf16.msra.mxu1 %v8610_v39  ;;  %v8766_v39 = vld [vmem:[#allocation8 + $0x48] ss:$16 sps:$4 sm:$0xff] (!%p7683_p10)  }
0x1386   : > { %6382 = vmatprep.subr.bf16.mxu1 %v8615_v40  ;;  %v8767_v40 = vld [vmem:[#allocation8 + $0x64] ss:$16 sps:$4 sm:$0xff] (!%p7683_p10)  }
0x1389   : > { %6383 = vmatpush1.bf16.msra.mxu1 %v8613_v25  ;;  %v8769_v25 = vld [vmem:[#allocation8 + $0x6c] ss:$16 sps:$4 sm:$0xff] (!%p7683_p10)  }
0x138a   : > { %6384 = vmatprep.subr.bf16.mxu1 %v8618_v42  ;;  %v8771_v42 = vld [vmem:[#allocation8 + $0x60] ss:$16 sps:$4 sm:$0xff] (!%p7683_p10)  }
0x138d   : > { %6385 = vmatpush1.bf16.msra.mxu1 %v8616_v22  ;;  %v8772_v22 = vld [vmem:[#allocation8 + $0x68] ss:$16 sps:$4 sm:$0xff] (!%p7683_p10)  }
0x138e   : > { %6397 = vmatprep.subr.bf16.mxu1 %v8621_v43  ;;  %v8773_v43 = vld [vmem:[#allocation8 + $0x84] ss:$16 sps:$4 sm:$0xff] (!%p7683_p10)  }
0x1390   : > { %6387 = vmatmul.mubr.bf16.vlgmr.msra.gmra.mrb[80].mxu1 %v10235_v6  ;;  %v8652_v6 = vld [vmem:[%s9278_s7 + $0x3b0] ss:$8 sps:$4 sm:$0xff]  }
0x1391   : > { %6398 = vmatpush1.bf16.msra.mxu1 %v8619_v44  ;;  %6429 = vmatprep.mubr.bf16.mxu1 %v10239_v53  ;;  %v8655_v53 = vld [vmem:[%s9278_s7 + $0x3c0] ss:$8 sps:$4 sm:$0xff]   ;;  %v8775_v44 = vld [vmem:[#allocation8 + $0x8c] ss:$16 sps:$4 sm:$0xff] (!%p7683_p10)  }
0x1392   : > { %6399 = vmatprep.subr.bf16.mxu1 %v8624_v45  ;;  %v8777_v45 = vld [vmem:[#allocation8 + $0x80] ss:$16 sps:$4 sm:$0xff] (!%p7683_p10)  }
0x1395   : > { %6400 = vmatpush1.bf16.msra.mxu1 %v8622_v50  ;;  %v8778_v50 = vld [vmem:[#allocation8 + $0x88] ss:$16 sps:$4 sm:$0xff] (!%p7683_p10)  }
0x1396   : > { %6401 = vmatprep.subr.bf16.mxu1 %v8627_v63  ;;  %v8779_v63 = vld [vmem:[#allocation8 + $0xa4] ss:$16 sps:$4 sm:$0xff] (!%p7683_p10)  }
0x1399   : > { %6402 = vmatpush1.bf16.msra.mxu1 %v8625_v20  ;;  %v8781_v20 = vld [vmem:[#allocation8 + $0xac] ss:$16 sps:$4 sm:$0xff] (!%p7683_p10)  }
0x139a   : > { %6403 = vmatprep.subr.bf16.mxu1 %v8630_v47  ;;  %v8783_v47 = vld [vmem:[#allocation8 + $0xa0] ss:$16 sps:$4 sm:$0xff] (!%p7683_p10)  }
0x139d   : > { %6404 = vmatpush1.bf16.msra.mxu1 %v8628_v48  ;;  %v8784_v48 = vld [vmem:[#allocation8 + $0xa8] ss:$16 sps:$4 sm:$0xff] (!%p7683_p10)  }
0x139e   : > { %6405 = vmatprep.subr.bf16.mxu1 %v8633_v51  ;;  %v8785_v51 = vld [vmem:[#allocation8 + $0xc4] ss:$16 sps:$4 sm:$0xff] (!%p7683_p10)  }
0x13a1   : > { %6406 = vmatpush1.bf16.msra.mxu1 %v8631_v52  ;;  %v8787_v52 = vld [vmem:[#allocation8 + $0xcc] ss:$16 sps:$4 sm:$0xff] (!%p7683_p10)  }
0x13a2   : > { %6407 = vmatprep.subr.bf16.mxu1 %v8636_v30  ;;  %v8789_v30 = vld [vmem:[#allocation8 + $0xc0] ss:$16 sps:$4 sm:$0xff] (!%p7683_p10)  }
0x13a5   : > { %6408 = vmatpush1.bf16.msra.mxu1 %v8634_v58  ;;  %v8790_v58 = vld [vmem:[#allocation8 + $0xc8] ss:$16 sps:$4 sm:$0xff] (!%p7683_p10)  }
0x13a6   : > { %6409 = vmatprep.subr.bf16.mxu1 %v8639_v18  ;;  %v8791_v18 = vld [vmem:[#allocation8 + $0xe4] ss:$16 sps:$4 sm:$0xff] (!%p7683_p10)  }
0x13a9   : > { %6410 = vmatpush1.bf16.msra.mxu1 %v8637_v59  ;;  %v8793_v59 = vld [vmem:[#allocation8 + $0xec] ss:$16 sps:$4 sm:$0xff] (!%p7683_p10)  }
0x13aa   : > { %6411 = vmatprep.subr.bf16.mxu1 %v8642_v23  ;;  %v8795_v23 = vld [vmem:[#allocation8 + $0xe0] ss:$16 sps:$4 sm:$0xff] (!%p7683_p10)  }
0x13ad   : > { %6412 = vmatpush1.bf16.msra.mxu1 %v8640_v60  ;;  %v8796_v60 = vld [vmem:[#allocation8 + $0xe8] ss:$16 sps:$4 sm:$0xff] (!%p7683_p10)  }
0x13ae   : > { %6413 = vmatprep.subr.bf16.mxu1 %v8645_v26  ;;  %v8797_v26 = vld [vmem:[#allocation8 + $0x104] ss:$16 sps:$4 sm:$0xff] (!%p7683_p10)  }
0x13b1   : > { %6414 = vmatpush1.bf16.msra.mxu1 %v8643_v61  ;;  %v8799_v61 = vld [vmem:[#allocation8 + $0x10c] ss:$16 sps:$4 sm:$0xff] (!%p7683_p10)  }
0x13b2   : > { %6415 = vmatprep.subr.bf16.mxu1 %v8648_v62  ;;  %v8801_v62 = vld [vmem:[#allocation8 + $0x100] ss:$16 sps:$4 sm:$0xff] (!%p7683_p10)  }
0x13b5   : > { %6416 = vmatpush1.bf16.msra.mxu1 %v8646_v31  ;;  %v8802_v31 = vld [vmem:[#allocation8 + $0x108] ss:$16 sps:$4 sm:$0xff] (!%p7683_p10)  }
0x13b6   : > { %6417 = vmatprep.subr.bf16.mxu1 %v8651_v2  ;;  %v8803_v2 = vld [vmem:[#allocation8 + $0x124] ss:$16 sps:$4 sm:$0xff] (!%p7683_p10)  }
0x13b9   : > { %6418 = vmatpush1.bf16.msra.mxu1 %v8649_v55  ;;  %v8805_v55 = vld [vmem:[#allocation8 + $0x12c] ss:$16 sps:$4 sm:$0xff] (!%p7683_p10)  }
0x13ba   : > { %6419 = vmatprep.subr.bf16.mxu1 %v8654_v3  ;;  %v8807_v3 = vld [vmem:[#allocation8 + $0x120] ss:$16 sps:$4 sm:$0xff] (!%p7683_p10)  }
0x13bd   : > { %6420 = vmatpush1.bf16.msra.mxu1 %v8652_v6  ;;  %v8808_v6 = vld [vmem:[#allocation8 + $0x128] ss:$16 sps:$4 sm:$0xff] (!%p7683_p10)  }
0x13be   : > { %6421 = vmatprep.subr.bf16.mxu1 %v8657_v1  ;;  %v8809_v1 = vld [vmem:[#allocation8 + $0x144] ss:$16 sps:$4 sm:$0xff] (!%p7683_p10)  }
0x13c1   : > { %6422 = vmatpush1.bf16.msra.mxu1 %v8655_v53  ;;  %v8811_v53 = vld [vmem:[#allocation8 + $0x14c] ss:$16 sps:$4 sm:$0xff] (!%p7683_p10)  }
0x13c2   : > { %6423 = vmatprep.subr.bf16.mxu1 %v8660_v7  ;;  %v8813_v7 = vld [vmem:[#allocation8 + $0x140] ss:$16 sps:$4 sm:$0xff] (!%p7683_p10)  }
0x13c5   : > { %6424 = vmatpush1.bf16.msra.mxu1 %v8658_v10  ;;  %v8814_v10 = vld [vmem:[#allocation8 + $0x148] ss:$16 sps:$4 sm:$0xff] (!%p7683_p10)  }
0x13c6   : > { %6425 = vmatprep.subr.bf16.mxu1 %v8663_v0  ;;  %v8815_v0 = vld [vmem:[#allocation8 + $0x164] ss:$16 sps:$4 sm:$0xff] (!%p7683_p10)  }
0x13c9   : > { %6426 = vmatpush1.bf16.msra.mxu1 %v8661_v5  ;;  %v8817_v5 = vld [vmem:[#allocation8 + $0x16c] ss:$16 sps:$4 sm:$0xff] (!%p7683_p10)  }
0x13ca   : > { %6427 = vmatprep.subr.bf16.mxu1 %v8666_v12  ;;  %v8819_v12 = vld [vmem:[#allocation8 + $0x160] ss:$16 sps:$4 sm:$0xff] (!%p7683_p10)  }
0x13cd   : > { %6428 = vmatpush1.bf16.msra.mxu1 %v8664_v13  ;;  %v8820_v13 = vld [vmem:[#allocation8 + $0x168] ss:$16 sps:$4 sm:$0xff] (!%p7683_p10)  }
0x13ce   : > { %6917 = vmatprep.subr.bf16.mxu1 (!%p7683_p10), %v8751_v28  ;;  %v8835_v28 = vld [vmem:[#allocation8 + $0x1cc] ss:$16 sps:$4 sm:$0xff] (!%p7683_p10)  }
0x13d0   : > { %6430 = vmatmul.mubr.bf16.vlgmr.msra.gmra.mrb[80].mxu1 %v10237_v32  ;;  %v8749_v32 = vld [vmem:[#allocation8 + $0x4] ss:$16 sps:$4 sm:$0xff] (!%p7683_p10)  }
0x13d1   : > { %6874 = vmatprep.subr.bf16.mxu0 (!%p7683_p10), %v8749_v32  ;;  %6918 = vmatpush1.bf16.msra.mxu1 (!%p7683_p10), %v8754_v27  ;;  %v8833_v32 = vld [vmem:[#allocation8 + $0x1c4] ss:$16 sps:$4 sm:$0xff] (!%p7683_p10)  }
0x13d2   : > { %6875 = vmatpush1.bf16.msra.mxu0 (!%p7683_p10), %v8753_v41  ;;  %6919 = vmatprep.subr.bf16.mxu1 (!%p7683_p10), %v8757_v17  ;;  %v8838_v41 = vld [vmem:[#allocation8 + $0x1c8] ss:$16 sps:$4 sm:$0xff] (!%p7683_p10)   ;;  %v8839_v27 = vld [vmem:[#allocation8 + $0x1e4] ss:$16 sps:$4 sm:$0xff] (!%p7683_p10)  }
0x13d3   : > { %6876 = vmatprep.subr.bf16.mxu0 (!%p7683_p10), %v8755_v8  ;;  %v8841_v8 = vld [vmem:[#allocation8 + $0x1ec] ss:$16 sps:$4 sm:$0xff] (!%p7683_p10)   ;;  %v8844_v17 = vld [vmem:[#allocation8 + $0x1e8] ss:$16 sps:$4 sm:$0xff] (!%p7683_p10)  }
0x13d5   : > { %6920 = vmatpush1.bf16.msra.mxu1 (!%p7683_p10), %v8760_v35 }
0x13d6   : > { %6877 = vmatpush1.bf16.msra.mxu0 (!%p7683_p10), %v8759_v16  ;;  %6921 = vmatprep.subr.bf16.mxu1 (!%p7683_p10), %v8763_v37 }
0x13d7   : > { %6878 = vmatprep.subr.bf16.mxu0 (!%p7683_p10), %v8761_v36 }
0x13d9   : > { %6922 = vmatpush1.bf16.msra.mxu1 (!%p7683_p10), %v8766_v39 }
0x13da   : > { %6879 = vmatpush1.bf16.msra.mxu0 (!%p7683_p10), %v8765_v38  ;;  %6923 = vmatprep.subr.bf16.mxu1 (!%p7683_p10), %v8769_v25  ;;  %v6452_v25 = vld [vmem:[%s10424_s26] sm:$0x3] (!%p7683_p10) }
0x13db   : > { %6880 = vmatprep.subr.bf16.mxu0 (!%p7683_p10), %v8767_v40 }
0x13dd   : > { %6924 = vmatpush1.bf16.msra.mxu1 (!%p7683_p10), %v8772_v22  ;;  %v6477_v22 = vrot.slane (!%p7683_p10), %v6452_v25, %v9347_v56 }
0x13de   : > { %6881 = vmatpush1.bf16.msra.mxu0 (!%p7683_p10), %v8771_v42  ;;  %6925 = vmatprep.subr.bf16.mxu1 (!%p7683_p10), %v8775_v44 }
0x13df   : > { %6882 = vmatprep.subr.bf16.mxu0 (!%p7683_p10), %v8773_v43  ;;  %v6481_v43 = vrot.slane (!%p7683_p10), %v6452_v25, %v9738_v57 }
0x13e1   : > { %6926 = vmatpush1.bf16.msra.mxu1 (!%p7683_p10), %v8778_v50 }
0x13e2   : > { %6883 = vmatpush1.bf16.msra.mxu0 (!%p7683_p10), %v8777_v45  ;;  %6927 = vmatprep.subr.bf16.mxu1 (!%p7683_p10), %v8781_v20 }
0x13e3   : > { %6884 = vmatprep.subr.bf16.mxu0 (!%p7683_p10), %v8779_v63 }
0x13e5   : > { %6928 = vmatpush1.bf16.msra.mxu1 (!%p7683_p10), %v8784_v48 }
0x13e6   : > { %6885 = vmatpush1.bf16.msra.mxu0 (!%p7683_p10), %v8783_v47  ;;  %6929 = vmatprep.subr.bf16.mxu1 (!%p7683_p10), %v8787_v52 }
0x13e7   : > { %6886 = vmatprep.subr.bf16.mxu0 (!%p7683_p10), %v8785_v51 }
0x13e9   : > { %6930 = vmatpush1.bf16.msra.mxu1 (!%p7683_p10), %v8790_v58 }
0x13ea   : > { %6887 = vmatpush1.bf16.msra.mxu0 (!%p7683_p10), %v8789_v30  ;;  %6931 = vmatprep.subr.bf16.mxu1 (!%p7683_p10), %v8793_v59 }
0x13eb   : > { %6888 = vmatprep.subr.bf16.mxu0 (!%p7683_p10), %v8791_v18 }
0x13ed   : > { %6932 = vmatpush1.bf16.msra.mxu1 (!%p7683_p10), %v8796_v60 }
0x13ee   : > { %6889 = vmatpush1.bf16.msra.mxu0 (!%p7683_p10), %v8795_v23  ;;  %6933 = vmatprep.subr.bf16.mxu1 (!%p7683_p10), %v8799_v61 }
0x13ef   : > { %6890 = vmatprep.subr.bf16.mxu0 (!%p7683_p10), %v8797_v26 }
0x13f1   : > { %6934 = vmatpush1.bf16.msra.mxu1 (!%p7683_p10), %v8802_v31 }
0x13f2   : > { %6891 = vmatpush1.bf16.msra.mxu0 (!%p7683_p10), %v8801_v62  ;;  %6935 = vmatprep.subr.bf16.mxu1 (!%p7683_p10), %v8805_v55 }
0x13f3   : > { %6892 = vmatprep.subr.bf16.mxu0 (!%p7683_p10), %v8803_v2 }
0x13f5   : > { %6936 = vmatpush1.bf16.msra.mxu1 (!%p7683_p10), %v8808_v6 }
0x13f6   : > { %6893 = vmatpush1.bf16.msra.mxu0 (!%p7683_p10), %v8807_v3  ;;  %6937 = vmatprep.subr.bf16.mxu1 (!%p7683_p10), %v8811_v53 }
0x13f7   : > { %6894 = vmatprep.subr.bf16.mxu0 (!%p7683_p10), %v8809_v1 }
0x13f9   : > { %6938 = vmatpush1.bf16.msra.mxu1 (!%p7683_p10), %v8814_v10 }
0x13fa   : > { %6895 = vmatpush1.bf16.msra.mxu0 (!%p7683_p10), %v8813_v7  ;;  %6939 = vmatprep.subr.bf16.mxu1 (!%p7683_p10), %v8817_v5 }
0x13fb   : > { %6896 = vmatprep.subr.bf16.mxu0 (!%p7683_p10), %v8815_v0 }
0x13fd   : > { %6940 = vmatpush1.bf16.msra.mxu1 (!%p7683_p10), %v8820_v13 }
0x13fe   : > { %6897 = vmatpush1.bf16.msra.mxu0 (!%p7683_p10), %v8819_v12 }
0x14a3   : > { %v6431_v9 = vpop.f32.mrb[80].mxu1  ;;  %6451 = sbr.rel (%p7683_p10) target bundleno = 5676 (0x162c), region = 96 }
0x14a4   : > { %v10309_v14 = vadd.f32 %v6431_v9, %v10052_v49  ;;  %v6433_v11 = vpop.f32.mrb[81].mxu1  ;;  %v8821_v9 = vld [vmem:[#allocation8 + $0x184] ss:$16 sps:$4 sm:$0xff] (!%p7683_p10)  }
0x14a5   : > { %v10312_v4 = vadd.f32 %v6433_v11, %v10055_v46  ;;  %v6435_v19 = vpop.f32.mrb[82].mxu1  ;;  %v8823_v11 = vld [vmem:[#allocation8 + $0x18c] ss:$16 sps:$4 sm:$0xff] (!%p7683_p10)   ;;  %6898 = vmatprep.subr.bf16.mxu0 (!%p7683_p10), %v8821_v9 }
0x14a6   : > { %6444 = vst [vmem:[#allocation2] sm:$0xff] %v10309_v14  ;;  %v10316_v21 = vadd.f32 %v6435_v19, %v10058_v54  ;;  %v6437_v34 = vpop.f32.mrb[83].mxu1  ;;  %v6453_v49 = vmul.f32 (!%p7683_p10), %v10309_v14, %v10309_v14  ;;  %v8825_v19 = vld [vmem:[#allocation8 + $0x180] ss:$16 sps:$4 sm:$0xff] (!%p7683_p10)   ;;  %6941 = vmatprep.subr.bf16.mxu1 (!%p7683_p10), %v8823_v11 }
0x14a7   : > { %6445 = vst [vmem:[#allocation2 + $0x8] sm:$0xff] %v10312_v4  ;;  %v10320_v24 = vadd.f32 %v6437_v34, %v10063_v29  ;;  %v6454_v46 = vmul.f32 (!%p7683_p10), %v10312_v4, %v10312_v4  ;;  %v8826_v34 = vld [vmem:[#allocation8 + $0x188] ss:$16 sps:$4 sm:$0xff] (!%p7683_p10)   ;;  %6899 = vmatpush1.bf16.msra.mxu0 (!%p7683_p10), %v8825_v19 }
0x14a8   : > { %6446 = vst [vmem:[#allocation2 + $0x10] sm:$0xff] %v10316_v21  ;;  %v6455_v54 = vmul.f32 (!%p7683_p10), %v10316_v21, %v10316_v21  ;;  %6942 = vmatpush1.bf16.msra.mxu1 (!%p7683_p10), %v8826_v34 }
0x14a9   : > { %6447 = vst [vmem:[#allocation2 + $0x18] sm:$0xff] %v10320_v24  ;;  %v6456_v29 = vmul.f32 (!%p7683_p10), %v10320_v24, %v10320_v24  ;;  %v6457_v15 = vadd.f32 (!%p7683_p10), %v6454_v46, %v6453_v49  ;;  %v8827_v49 = vld [vmem:[#allocation8 + $0x1a4] ss:$16 sps:$4 sm:$0xff] (!%p7683_p10)   ;;  %v8829_v46 = vld [vmem:[#allocation8 + $0x1ac] ss:$16 sps:$4 sm:$0xff] (!%p7683_p10)  }
0x14aa   : > { %6900 = vmatprep.subr.bf16.mxu0 %v8827_v49  ;;  %6943 = vmatprep.subr.bf16.mxu1 %v8829_v46 }
0x14ab   : > { %6458 = vadd.xlane.f32.xlu0 %v6457_v15  ;;  %v6460_v33 = vadd.f32 %v6456_v29, %v6455_v54  ;;  %v8831_v54 = vld [vmem:[#allocation8 + $0x1a0] ss:$16 sps:$4 sm:$0xff]   ;;  %v8832_v29 = vld [vmem:[#allocation8 + $0x1a8] ss:$16 sps:$4 sm:$0xff]  }
0x14ac   : > { %6901 = vmatpush1.bf16.msra.mxu0 %v8831_v54  ;;  %v8837_v15 = vld [vmem:[#allocation8 + $0x1c0] ss:$16 sps:$4 sm:$0xff]   ;;  %6944 = vmatpush1.bf16.msra.mxu1 %v8832_v29 }
0x14ad   : > { %6902 = vmatprep.subr.bf16.mxu0 %v8833_v32  ;;  %6945 = vmatprep.subr.bf16.mxu1 %v8835_v28 }
0x14af   : > { %6461 = vadd.xlane.f32.xlu0 %v6460_v33  ;;  %v8843_v33 = vld [vmem:[#allocation8 + $0x1e0] ss:$16 sps:$4 sm:$0xff]  }
0x14b0   : > { %6903 = vmatpush1.bf16.msra.mxu0 %v8837_v15  ;;  %6946 = vmatpush1.bf16.msra.mxu1 %v8838_v41 }
0x14b1   : > { %6904 = vmatprep.subr.bf16.mxu0 %v8839_v27  ;;  %6947 = vmatprep.subr.bf16.mxu1 %v8841_v8 }
0x14b4   : > { %6905 = vmatpush1.bf16.msra.mxu0 %v8843_v33  ;;  %6948 = vmatpush1.bf16.msra.mxu1 %v8844_v17 }
0x1538   : > { %v6459_v16 = vpop.xlane.xlu0 %6458 }
0x1539   : > { %v6463_v35 = vmul.f32 0.00390625, %v6459_v16 }
0x153b   : > { %v6465_v36 = vadd.f32 1e-06, %v6463_v35 }
0x153c   : > { %v6462_v37 = vpop.xlane.xlu0 %6461 }
0x153d   : > { %8845 = vrsqrt.f32 %v6465_v36  ;;  %v6464_v38 = vmul.f32 0.00390625, %v6462_v37 }
0x153f   : > { %v6466_v39 = vadd.f32 1e-06, %v6464_v38 }
0x1541   : > { %8847 = vrsqrt.f32 %v6466_v39 }
0x1547   : > { %v8846_v40 = vpop.eup %8845 }
0x1548   : > { %v6470_v42 = vmul.f32 %v8846_v40, %v10312_v4  ;;  %v6469_v44 = vmul.f32 %v8846_v40, %v10309_v14 }
0x154a   : > { %v6485_v20 = vmul.f32 %v6481_v43, %v6470_v42  ;;  %v6484_v48 = vmul.f32 %v6477_v22, %v6469_v44 }
0x154b   : > { %v8848_v45 = vpop.eup %8847 }
0x154c   : > { %v6472_v50 = vmul.f32 %v8848_v45, %v10320_v24  ;;  %v6471_v63 = vmul.f32 %v8848_v45, %v10316_v21 }
0x154e   : > { %v6487_v47 = vmul.f32 %v6481_v43, %v6472_v50  ;;  %v6486_v51 = vmul.f32 %v6477_v22, %v6471_v63 }
0x1550   : > { %v6489_v52 = vpack.c.bf16 %v6487_v47, %v6485_v20  ;;  %v6488_v30 = vpack.c.bf16 %v6486_v51, %v6484_v48 }
0x1552   : > { %6906 = vmatprep.mubr.bf16.mxu0 %v6489_v52  ;;  %6949 = vmatprep.mubr.bf16.mxu1 %v6489_v52 }
0x1553   : > { %6907 = vmatmul.mubr.bf16.vlgmr.msra.gmra.mrb[0].mxu0 %v6488_v30  ;;  %6950 = vmatmul.mubr.bf16.vlgmr.msra.gmra.mrb[0].mxu1 %v6488_v30 }
0x1626   : > { %v6908_v56 = vpop.f32.mrb[0].mxu0  ;;  %v6951_v4 = vpop.f32.mrb[0].mxu1 }
0x1627   : > { %6960 = vst [vmem:[%s10425_s16] sm:$0xff] %v6908_v56  ;;  %v6910_v57 = vpop.f32.mrb[1].mxu0  ;;  %v6953_v14 = vpop.f32.mrb[1].mxu1 }
0x1628   : > { %6962 = vst [vmem:[%s10426_s1 + $0x10] sm:$0xff] %v6951_v4  ;;  %6961 = vst [vmem:[%s10426_s1 + $0x8] sm:$0xff] %v6910_v57  ;;  %v6912_v21 = vpop.f32.mrb[2].mxu0  ;;  %v6955_v24 = vpop.f32.mrb[2].mxu1 }
0x1629   : > { %6963 = vst [vmem:[%s10426_s1 + $0x18] sm:$0xff] %v6953_v14  ;;  %6964 = vst [vmem:[%s10426_s1 + $0x20] sm:$0xff] %v6912_v21  ;;  %v6914_v58 = vpop.f32.mrb[3].mxu0  ;;  %v6957_v18 = vpop.f32.mrb[3].mxu1 }
0x162a   : > { %6966 = vst [vmem:[%s10426_s1 + $0x30] sm:$0xff] %v6955_v24  ;;  %6965 = vst [vmem:[%s10426_s1 + $0x28] sm:$0xff] %v6914_v58 }
0x162b   : > { %6967 = vst [vmem:[%s10426_s1 + $0x38] sm:$0xff] %v6957_v18 }
0x162c PF: > { %s10427_s16 = sld [smem:[#allocation12_spill]]  ;;  %s10428_s13 = sld [smem:[#allocation13_spill]] }
0x162d   : > { %s10429_s29 = smov %s8971_s30  ;;  %s10430_s30 = smov %s8975_s15 }
0x1632   : > { %p27_p12 = scmp.ge.s32.totalorder %s10427_s16, 6   ;;  %s10431_s15 = smov %s10428_s13 }
0x1634   :  { %29 = sbr.rel (!%p27_p12) target bundleno = 13 (0xd), region = 155 }
0x163b   :  { %6979 = vsyncpa [#allocation5], 1 }
0x163c   :  { %6981 = vsyncpa [#allocation5 + $0x1], 1 }
0x163d   :  { %6982 = vsyncpa [#allocation7], 1 }
0x163e   :  { %6984 = vsyncpa [#allocation7 + $0x1], 1 }

</bundles_post_ra>
